<compile_context>
chip_gen: v7x
topology: tpu7x:2x2x1
jax: 0.10.0
libtpu: 0.0.40
codegen_flags: <defaults>
</compile_context>

<pallas_src>
import numpy as np
import jax
import jax.numpy as jnp
from jax.experimental import pallas as pl
from jax.experimental.pallas import tpu as pltpu

D_MODEL = 128
NUM_HEADS = 8
DEPTH = D_MODEL // NUM_HEADS
DFF = 512
INPUT_VOCAB_SIZE = 10000
MAX_POS = 1000
NUM_LAYERS = 4
EPS = 1e-6
FINAL_TN = 2048          # vocab tile width of the final projection (bf16 weights)


# ---------------------------------------------------------------------------
# glue: positional encoding (host-side precompute, identical to reference)
# ---------------------------------------------------------------------------
def positional_encoding(position, d_model):
    pos = np.arange(position)[:, None].astype(np.float32)
    i = np.arange(d_model)[None, :]
    angle_rates = 1.0 / np.power(10000.0, (2 * (i // 2)).astype(np.float32) / np.float32(d_model))
    angle_rads = pos * angle_rates
    angle_rads[:, 0::2] = np.sin(angle_rads[:, 0::2])
    angle_rads[:, 1::2] = np.cos(angle_rads[:, 1::2])
    return jnp.asarray(angle_rads[None, ...], dtype=jnp.float32)  # (1, position, d_model)


def _layernorm(x, g, b):
    mu = jnp.mean(x, axis=-1, keepdims=True)
    var = jnp.mean(jnp.square(x - mu), axis=-1, keepdims=True)
    return (x - mu) * jax.lax.rsqrt(var + EPS) * g + b


# ---------------------------------------------------------------------------
# Pallas kernel 1: all NUM_LAYERS encoder layers fused, grid = (batch,)
# Weights use constant index_maps -> DMA'd once, VMEM-resident for all steps.
# ---------------------------------------------------------------------------
def fused_encoder_kernel(
    x_ref,      # (1, S, D)              f32
    mask_ref,   # (1, 1, S)              f32  (1.0 at masked positions)
    wqkv_ref,   # (L, D, 3*D)            bf16 fused [Wq|Wk|Wv]
    bqkv_ref,   # (L, 1, 3*D)            f32  fused [bq|bk|bv]
    wo_ref,     # (L, D, D)              bf16
    w1_ref,     # (L, D, DFF)            bf16
    b1_ref,     # (L, 1, DFF)            f32
    w2_ref,     # (L, DFF, D)            bf16
    vec_ref,    # (L, 8, D)              f32: [bo, ln1_g, ln1_b, ln2_g, ln2_b, ff_b2, 0, 0]
    out_ref,    # (1, S, D)              bf16
    attn_sc,    # VMEM (S, D)            f32  (concat-heads staging buffer)
):
    x = x_ref[0]                        # (S, D) f32
    S = x.shape[0]
    mask_bias = mask_ref[0] * (-1e9)    # (1, S) -> broadcasts over (S_q, S_k)
    scale = 1.0 / np.sqrt(np.float32(DEPTH))
    dn_qkT = (((1,), (1,)), ((), ()))   # (S,DEPTH) x (S,DEPTH) -> (S,S)

    for l in range(NUM_LAYERS):         # unrolled: weights ref-sliced by static layer index
        vec = vec_ref[l]                # (8, D)
        bo, g1, be1, g2, be2, bf2 = (vec[0:1], vec[1:2], vec[2:3],
                                     vec[3:4], vec[4:5], vec[5:6])

        # ---- fused lane-dense QKV projection: one (S,128) x (128,384) matmul ----
        xb = x.astype(jnp.bfloat16)
        qkv = jnp.dot(xb, wqkv_ref[l],
                      preferred_element_type=jnp.float32) + bqkv_ref[l]   # (S, 3D) f32

        # ---- per-head attention core (DEPTH=16 per head is inherent) ----
        for h in range(NUM_HEADS):
            lo = h * DEPTH
            q_h = qkv[:, lo:lo + DEPTH].astype(jnp.bfloat16)                       # (S, DEPTH)
            k_h = qkv[:, D_MODEL + lo:D_MODEL + lo + DEPTH].astype(jnp.bfloat16)
            v_h = qkv[:, 2 * D_MODEL + lo:2 * D_MODEL + lo + DEPTH].astype(jnp.bfloat16)

            logits = jax.lax.dot_general(q_h, k_h, dn_qkT,
                                         preferred_element_type=jnp.float32) * scale
            logits = logits + mask_bias
            logits = logits - jnp.max(logits, axis=-1, keepdims=True)
            p = jnp.exp(logits)
            p = p * pl.reciprocal(jnp.sum(p, axis=-1, keepdims=True), approx=True)

            out_h = jnp.dot(p.astype(jnp.bfloat16), v_h,
                            preferred_element_type=jnp.float32)                    # (S, DEPTH)
            attn_sc[:, lo:lo + DEPTH] = out_h      # "concat heads" via column stores

        # ---- single lane-dense output projection: (S,128) x (128,128) ----
        attn_out = jnp.dot(attn_sc[...].astype(jnp.bfloat16), wo_ref[l],
                           preferred_element_type=jnp.float32) + bo

        # dropout1/dropout2: identity (eval-mode semantics)
        out1 = _layernorm(x + attn_out, g1, be1)

        # TODO(synk): reference EncoderLayer.forward assigns `self.ffn` without calling it
        # (would crash in PyTorch); implemented the clearly-intended `ffn(out1)` instead.
        h1 = jnp.maximum(
            jnp.dot(out1.astype(jnp.bfloat16), w1_ref[l],
                    preferred_element_type=jnp.float32) + b1_ref[l], 0.0)
        ffn_out = jnp.dot(h1.astype(jnp.bfloat16), w2_ref[l],
                          preferred_element_type=jnp.float32) + bf2
        x = _layernorm(out1 + ffn_out, g2, be2)

    out_ref[0] = x.astype(jnp.bfloat16)


def fused_encoder(x, mask3, params):
    B, S, D = x.shape
    assert S % 8 == 0, "sequence length must be a multiple of 8 (f32 sublane tile)"
    const3 = lambda b: (0, 0, 0)
    in_specs = [
        pl.BlockSpec((1, S, D), lambda b: (b, 0, 0)),                    # x
        pl.BlockSpec((1, 1, S), lambda b: (b, 0, 0)),                    # mask
        pl.BlockSpec((NUM_LAYERS, D, 3 * D), const3),                    # wqkv (resident)
        pl.BlockSpec((NUM_LAYERS, 1, 3 * D), const3),                    # bqkv (resident)
        pl.BlockSpec((NUM_LAYERS, D, D), const3),                        # wo   (resident)
        pl.BlockSpec((NUM_LAYERS, D, DFF), const3),                      # ffn w1
        pl.BlockSpec((NUM_LAYERS, 1, DFF), const3),                      # ffn b1
        pl.BlockSpec((NUM_LAYERS, DFF, D), const3),                      # ffn w2
        pl.BlockSpec((NUM_LAYERS, 8, D), const3),                        # bo/LN/b2
    ]
    return pl.pallas_call(
        fused_encoder_kernel,
        out_shape=jax.ShapeDtypeStruct((B, S, D), jnp.bfloat16),
        grid_spec=pltpu.PrefetchScalarGridSpec(
            num_scalar_prefetch=0,
            grid=(B,),
            in_specs=in_specs,
            out_specs=pl.BlockSpec((1, S, D), lambda b: (b, 0, 0)),
            scratch_shapes=[pltpu.VMEM((S, D), jnp.float32)],
        ),
        compiler_params=pltpu.CompilerParams(
            dimension_semantics=("parallel",),   # batch axis splits across megacore
            vmem_limit_bytes=32 * 1024 * 1024,
        ),
    )(x, mask3, params["wqkv"], params["bqkv"], params["wo"],
      params["ff_w1"], params["ff_b1"], params["ff_w2"], params["vec_d"])


# ---------------------------------------------------------------------------
# Pallas kernel 2: final projection d_model -> vocab
# bf16 activations/weights, 2048-wide tiles (5 pipelined steps), exact-vocab
# output via masked partial last block (no post-kernel slice copy).
# ---------------------------------------------------------------------------
def final_linear_kernel(x_ref, w_ref, b_ref, o_ref):
    o_ref[...] = (
        jnp.dot(x_ref[...], w_ref[...], preferred_element_type=jnp.float32) + b_ref[...]
    )


def final_linear(x_bf16, w_pad_bf16, b_pad, vocab):
    B, S, D = x_bf16.shape
    M = B * S
    x2 = x_bf16.reshape(M, D)
    grid_n = pl.cdiv(vocab, FINAL_TN)
    assert w_pad_bf16.shape[1] == grid_n * FINAL_TN
    out = pl.pallas_call(
        final_linear_kernel,
        out_shape=jax.ShapeDtypeStruct((M, vocab), jnp.float32),
        grid_spec=pltpu.PrefetchScalarGridSpec(
            num_scalar_prefetch=0,
            grid=(grid_n,),
            in_specs=[
                pl.BlockSpec((M, D), lambda j: (0, 0)),            # resident activations
                pl.BlockSpec((D, FINAL_TN), lambda j: (0, j)),     # streamed bf16 weight tiles
                pl.BlockSpec((1, FINAL_TN), lambda j: (0, j)),
            ],
            out_specs=pl.BlockSpec((M, FINAL_TN), lambda j: (0, j)),
        ),
        compiler_params=pltpu.CompilerParams(
            dimension_semantics=("parallel",),
            vmem_limit_bytes=32 * 1024 * 1024,
        ),
    )(x2, w_pad_bf16, b_pad)
    return out.reshape(B, S, vocab)


# ---------------------------------------------------------------------------
# full model forward
# ---------------------------------------------------------------------------
def transformer_lm_forward(tokens, mask, params):
    B, S = tokens.shape
    # embedding lookup (glue: gather stays in plain JAX)
    x = jnp.take(params["embedding"], tokens, axis=0)            # (B, S, D)
    x = x * jnp.sqrt(jnp.float32(D_MODEL))
    x = x + params["pos_encoding"][:, :S, :]
    # encoder dropout: identity (eval-mode)
    mask3 = mask.reshape(B, 1, S).astype(jnp.float32)            # (B,1,1,S) -> (B,1,S)
    x = fused_encoder(x, mask3, params)                          # (B, S, D) bf16
    return final_linear(x, params["final_w"], params["final_b"], INPUT_VOCAB_SIZE)


# ---------------------------------------------------------------------------
# deterministic parameter init (fused / lane-dense layouts)
# ---------------------------------------------------------------------------
def _rnd(key, shape, scale=0.02):
    return scale * jax.random.normal(key, shape, dtype=jnp.float32)


def _key_stream(key):
    while True:
        key, sub = jax.random.split(key)
        yield sub


def init_params(key):
    kit = _key_stream(key)
    emb = _rnd(next(kit), (INPUT_VOCAB_SIZE, D_MODEL))

    wqkv_l, bqkv_l, wo_l, w1_l, b1_l, w2_l, vec_l = ([] for _ in range(7))
    zero_d = jnp.zeros((D_MODEL,), jnp.float32)
    for _ in range(NUM_LAYERS):
        wq = _rnd(next(kit), (D_MODEL, D_MODEL))
        wk = _rnd(next(kit), (D_MODEL, D_MODEL))
        wv = _rnd(next(kit), (D_MODEL, D_MODEL))
        wo = _rnd(next(kit), (D_MODEL, D_MODEL))
        bq = _rnd(next(kit), (D_MODEL,))
        bk = _rnd(next(kit), (D_MODEL,))
        bv = _rnd(next(kit), (D_MODEL,))
        bo = _rnd(next(kit), (D_MODEL,))
        ff_w1 = _rnd(next(kit), (D_MODEL, DFF))
        ff_b1 = _rnd(next(kit), (DFF,))
        ff_w2 = _rnd(next(kit), (DFF, D_MODEL))
        ff_b2 = _rnd(next(kit), (D_MODEL,))
        ln1_g = jnp.ones((D_MODEL,), jnp.float32)
        ln1_b = jnp.zeros((D_MODEL,), jnp.float32)
        ln2_g = jnp.ones((D_MODEL,), jnp.float32)
        ln2_b = jnp.zeros((D_MODEL,), jnp.float32)

        # lane-dense fused layouts: columns [0:D]=Q heads, [D:2D]=K heads, [2D:3D]=V heads;
        # within each the head-h slice is columns [h*DEPTH:(h+1)*DEPTH], matching split_heads.
        wqkv_l.append(jnp.concatenate([wq, wk, wv], axis=1))             # (D, 3D)
        bqkv_l.append(jnp.concatenate([bq, bk, bv]).reshape(1, 3 * D_MODEL))
        wo_l.append(wo)                                                  # (D, D): concat-heads -> d_model
        w1_l.append(ff_w1)
        b1_l.append(ff_b1.reshape(1, DFF))
        w2_l.append(ff_w2)
        vec_l.append(jnp.stack([bo, ln1_g, ln1_b, ln2_g, ln2_b, ff_b2,
                                zero_d, zero_d], axis=0))                # (8, D)

    n_pad = pl.cdiv(INPUT_VOCAB_SIZE, FINAL_TN) * FINAL_TN               # 10240
    fw = _rnd(next(kit), (D_MODEL, INPUT_VOCAB_SIZE))
    fb = _rnd(next(kit), (1, INPUT_VOCAB_SIZE))
    final_w = jnp.zeros((D_MODEL, n_pad), jnp.float32).at[:, :INPUT_VOCAB_SIZE].set(fw)
    final_b = jnp.zeros((1, n_pad), jnp.float32).at[:, :INPUT_VOCAB_SIZE].set(fb)

    return {
        "embedding": emb,
        "pos_encoding": positional_encoding(MAX_POS, D_MODEL),
        "wqkv": jnp.stack(wqkv_l).astype(jnp.bfloat16),     # (L, D, 3D) bf16
        "bqkv": jnp.stack(bqkv_l),                          # (L, 1, 3D) f32
        "wo": jnp.stack(wo_l).astype(jnp.bfloat16),         # (L, D, D)  bf16
        "ff_w1": jnp.stack(w1_l).astype(jnp.bfloat16),      # (L, D, DFF) bf16
        "ff_b1": jnp.stack(b1_l),                           # (L, 1, DFF) f32
        "ff_w2": jnp.stack(w2_l).astype(jnp.bfloat16),      # (L, DFF, D) bf16
        "vec_d": jnp.stack(vec_l),                          # (L, 8, D)   f32
        "final_w": final_w.astype(jnp.bfloat16),            # (D, 10240)  bf16
        "final_b": final_b,                                 # (1, 10240)  f32
    }


if __name__ == "__main__":
    B, S = 2, 8
    key = jax.random.PRNGKey(0)
    pkey, tkey = jax.random.split(key)
    params = init_params(pkey)

    tokens = jax.random.randint(tkey, (B, S), 0, INPUT_VOCAB_SIZE, dtype=jnp.int32)
    # padding mask, PyTorch convention (B, 1, 1, S): 1.0 at padded (masked) positions
    mask = jnp.zeros((B, 1, 1, S), jnp.float32).at[:, :, :, -2:].set(1.0)

    fwd = jax.jit(transformer_lm_forward)
    logits = fwd(tokens, mask, params)
    logits = jax.block_until_ready(logits)
    assert logits.shape == (B, S, INPUT_VOCAB_SIZE), logits.shape
    assert bool(jnp.all(jnp.isfinite(logits)))
    print("KERNEL_OK")
</pallas_src>

<mosaic_0001>
module attributes {stable_mosaic.version = 11 : i64} {
  func.func @final_linear_kernel(%arg0: i32, %arg1: memref<16x128xbf16, #tpu.memory_space<vmem>>, %arg2: memref<128x2048xbf16, #tpu.memory_space<vmem>>, %arg3: memref<1x2048xf32, #tpu.memory_space<vmem>>, %arg4: memref<16x2048xf32, #tpu.memory_space<vmem>>) attributes {dimension_semantics = [#tpu.dimension_semantics<parallel>], iteration_bounds = array<i64: 5>, scalar_prefetch = 0 : i64, scratch_operands = 0 : i64, tpu.core_type = #tpu.core_type<tc>, window_params = [{pipeline_mode = #tpu.pipeline_mode<synchronous>, transform_indices = @transform_0, window_bounds = array<i64: 16, 128>}, {transform_indices = @transform_1, window_bounds = array<i64: 128, 2048>}, {transform_indices = @transform_2, window_bounds = array<i64: 1, 2048>}, {transform_indices = @transform_3, window_bounds = array<i64: 16, 2048>}]} {
    %c0 = arith.constant 0 : index
    %c0_0 = arith.constant 0 : index
    %0 = vector.load %arg1[%c0, %c0_0] : memref<16x128xbf16, #tpu.memory_space<vmem>>, vector<16x128xbf16>
    %c0_1 = arith.constant 0 : index
    %c0_2 = arith.constant 0 : index
    %1 = vector.load %arg2[%c0_1, %c0_2] : memref<128x2048xbf16, #tpu.memory_space<vmem>>, vector<128x2048xbf16>
    %cst = arith.constant dense<0.000000e+00> : vector<16x2048xf32>
    %2 = tpu.matmul %0, %1, %cst {dimension_numbers = #tpu.dot_dimension_numbers<[1], [0], [0], [1], [0, 0, 1, 1], [], []>} : vector<16x128xbf16>, vector<128x2048xbf16>, vector<16x2048xf32> -> vector<16x2048xf32>
    %c0_3 = arith.constant 0 : index
    %c0_4 = arith.constant 0 : index
    %3 = vector.load %arg3[%c0_3, %c0_4] : memref<1x2048xf32, #tpu.memory_space<vmem>>, vector<1x2048xf32>
    %4 = vector.broadcast %3 : vector<1x2048xf32> to vector<16x2048xf32>
    %5 = arith.addf %2, %4 : vector<16x2048xf32>
    %c0_5 = arith.constant 0 : index
    %c0_6 = arith.constant 0 : index
    %6 = vector.load %arg4[%c0_5, %c0_6] : memref<16x2048xf32, #tpu.memory_space<vmem>>, vector<16x2048xf32>
    tpu.vector_store %arg4[%c0_5, %c0_6], %5 {strides = array<i32>} : memref<16x2048xf32, #tpu.memory_space<vmem>>, vector<16x2048xf32>,
    return
  }
  func.func @transform_0(%arg0: i32) -> (i32, i32) {
    %c0_i32 = arith.constant 0 : i32
    %c0_i32_0 = arith.constant 0 : i32
    %c0_i32_1 = arith.constant 0 : i32
    return %c0_i32, %c0_i32_0 : i32, i32
  }
  func.func @transform_1(%arg0: i32) -> (i32, i32) {
    %c0_i32 = arith.constant 0 : i32
    %c0_i32_0 = arith.constant 0 : i32
    return %c0_i32, %arg0 : i32, i32
  }
  func.func @transform_2(%arg0: i32) -> (i32, i32) {
    %c0_i32 = arith.constant 0 : i32
    %c0_i32_0 = arith.constant 0 : i32
    return %c0_i32, %arg0 : i32, i32
  }
  func.func @transform_3(%arg0: i32) -> (i32, i32) {
    %c0_i32 = arith.constant 0 : i32
    %c0_i32_0 = arith.constant 0 : i32
    return %c0_i32, %arg0 : i32, i32
  }
}

module attributes {stable_mosaic.version = 11 : i64} {
  func.func @fused_encoder_kernel(%arg0: i32, %arg1: memref<1x8x128xf32, #tpu.memory_space<vmem>>, %arg2: memref<1x1x8xf32, #tpu.memory_space<vmem>>, %arg3: memref<4x128x384xbf16, #tpu.memory_space<vmem>>, %arg4: memref<4x1x384xf32, #tpu.memory_space<vmem>>, %arg5: memref<4x128x128xbf16, #tpu.memory_space<vmem>>, %arg6: memref<4x128x512xbf16, #tpu.memory_space<vmem>>, %arg7: memref<4x1x512xf32, #tpu.memory_space<vmem>>, %arg8: memref<4x512x128xbf16, #tpu.memory_space<vmem>>, %arg9: memref<4x8x128xf32, #tpu.memory_space<vmem>>, %arg10: memref<1x8x128xbf16, #tpu.memory_space<vmem>>, %arg11: memref<8x128xf32, #tpu.memory_space<vmem>>) attributes {dimension_semantics = [#tpu.dimension_semantics<parallel>], iteration_bounds = array<i64: 2>, scalar_prefetch = 0 : i64, scratch_operands = 1 : i64, tpu.core_type = #tpu.core_type<tc>, window_params = [{transform_indices = @transform_0, window_bounds = array<i64: 1, 8, 128>}, {transform_indices = @transform_1, window_bounds = array<i64: 1, 1, 8>}, {pipeline_mode = #tpu.pipeline_mode<synchronous>, transform_indices = @transform_2, window_bounds = array<i64: 4, 128, 384>}, {pipeline_mode = #tpu.pipeline_mode<synchronous>, transform_indices = @transform_3, window_bounds = array<i64: 4, 1, 384>}, {pipeline_mode = #tpu.pipeline_mode<synchronous>, transform_indices = @transform_4, window_bounds = array<i64: 4, 128, 128>}, {pipeline_mode = #tpu.pipeline_mode<synchronous>, transform_indices = @transform_5, window_bounds = array<i64: 4, 128, 512>}, {pipeline_mode = #tpu.pipeline_mode<synchronous>, transform_indices = @transform_6, window_bounds = array<i64: 4, 1, 512>}, {pipeline_mode = #tpu.pipeline_mode<synchronous>, transform_indices = @transform_7, window_bounds = array<i64: 4, 512, 128>}, {pipeline_mode = #tpu.pipeline_mode<synchronous>, transform_indices = @transform_8, window_bounds = array<i64: 4, 8, 128>}, {transform_indices = @transform_9, window_bounds = array<i64: 1, 8, 128>}]} {
    %c0 = arith.constant 0 : index
    %c0_0 = arith.constant 0 : index
    %c0_1 = arith.constant 0 : index
    %0 = vector.load %arg1[%c0, %c0_0, %c0_1] : memref<1x8x128xf32, #tpu.memory_space<vmem>>, vector<1x8x128xf32>
    %1 = vector.shape_cast %0 : vector<1x8x128xf32> to vector<8x128xf32>
    %c0_2 = arith.constant 0 : index
    %c0_3 = arith.constant 0 : index
    %c0_4 = arith.constant 0 : index
    %2 = vector.load %arg2[%c0_2, %c0_3, %c0_4] : memref<1x1x8xf32, #tpu.memory_space<vmem>>, vector<1x1x8xf32>
    %3 = vector.shape_cast %2 : vector<1x1x8xf32> to vector<1x8xf32>
    %cst = arith.constant -1.000000e+09 : f32
    %4 = vector.broadcast %cst : f32 to vector<1x8xf32>
    %5 = arith.mulf %3, %4 : vector<1x8xf32>
    %c0_5 = arith.constant 0 : index
    %c0_6 = arith.constant 0 : index
    %c0_7 = arith.constant 0 : index
    %6 = vector.load %arg9[%c0_5, %c0_6, %c0_7] : memref<4x8x128xf32, #tpu.memory_space<vmem>>, vector<1x8x128xf32>
    %7 = vector.shape_cast %6 : vector<1x8x128xf32> to vector<8x128xf32>
    %8 = vector.extract_strided_slice %7 {offsets = [0, 0], sizes = [1, 128], strides = [1, 1]} : vector<8x128xf32> to vector<1x128xf32>
    %9 = vector.extract_strided_slice %7 {offsets = [1, 0], sizes = [1, 128], strides = [1, 1]} : vector<8x128xf32> to vector<1x128xf32>
    %10 = vector.extract_strided_slice %7 {offsets = [2, 0], sizes = [1, 128], strides = [1, 1]} : vector<8x128xf32> to vector<1x128xf32>
    %11 = vector.extract_strided_slice %7 {offsets = [3, 0], sizes = [1, 128], strides = [1, 1]} : vector<8x128xf32> to vector<1x128xf32>
    %12 = vector.extract_strided_slice %7 {offsets = [4, 0], sizes = [1, 128], strides = [1, 1]} : vector<8x128xf32> to vector<1x128xf32>
    %13 = vector.extract_strided_slice %7 {offsets = [5, 0], sizes = [1, 128], strides = [1, 1]} : vector<8x128xf32> to vector<1x128xf32>
    %14 = arith.truncf %1 : vector<8x128xf32> to vector<8x128xbf16>
    %c0_8 = arith.constant 0 : index
    %c0_9 = arith.constant 0 : index
    %c0_10 = arith.constant 0 : index
    %15 = vector.load %arg3[%c0_8, %c0_9, %c0_10] : memref<4x128x384xbf16, #tpu.memory_space<vmem>>, vector<1x128x384xbf16>
    %16 = vector.shape_cast %15 : vector<1x128x384xbf16> to vector<128x384xbf16>
    %cst_11 = arith.constant dense<0.000000e+00> : vector<8x384xf32>
    %17 = tpu.matmul %14, %16, %cst_11 {dimension_numbers = #tpu.dot_dimension_numbers<[1], [0], [0], [1], [0, 0, 1, 1], [], []>} : vector<8x128xbf16>, vector<128x384xbf16>, vector<8x384xf32> -> vector<8x384xf32>
    %c0_12 = arith.constant 0 : index
    %c0_13 = arith.constant 0 : index
    %c0_14 = arith.constant 0 : index
    %18 = vector.load %arg4[%c0_12, %c0_13, %c0_14] : memref<4x1x384xf32, #tpu.memory_space<vmem>>, vector<1x1x384xf32>
    %19 = vector.shape_cast %18 : vector<1x1x384xf32> to vector<1x384xf32>
    %20 = vector.broadcast %19 : vector<1x384xf32> to vector<8x384xf32>
    %21 = arith.addf %17, %20 : vector<8x384xf32>
    %22 = vector.extract_strided_slice %21 {offsets = [0, 0], sizes = [8, 16], strides = [1, 1]} : vector<8x384xf32> to vector<8x16xf32>
    %23 = arith.truncf %22 : vector<8x16xf32> to vector<8x16xbf16>
    %24 = vector.extract_strided_slice %21 {offsets = [0, 128], sizes = [8, 16], strides = [1, 1]} : vector<8x384xf32> to vector<8x16xf32>
    %25 = arith.truncf %24 : vector<8x16xf32> to vector<8x16xbf16>
    %26 = vector.extract_strided_slice %21 {offsets = [0, 256], sizes = [8, 16], strides = [1, 1]} : vector<8x384xf32> to vector<8x16xf32>
    %27 = arith.truncf %26 : vector<8x16xf32> to vector<8x16xbf16>
    %cst_15 = arith.constant dense<0.000000e+00> : vector<8x8xf32>
    %28 = tpu.matmul %23, %25, %cst_15 {dimension_numbers = #tpu.dot_dimension_numbers<[1], [1], [0], [0], [0, 0, 1, 0], [], []>} : vector<8x16xbf16>, vector<8x16xbf16>, vector<8x8xf32> -> vector<8x8xf32>
    %cst_16 = arith.constant 2.500000e-01 : f32
    %29 = vector.broadcast %cst_16 : f32 to vector<8x8xf32>
    %30 = arith.mulf %28, %29 : vector<8x8xf32>
    %31 = vector.broadcast %5 : vector<1x8xf32> to vector<8x8xf32>
    %32 = arith.addf %30, %31 : vector<8x8xf32>
    %cst_17 = arith.constant dense<0xFF800000> : vector<8xf32>
    %33 = vector.multi_reduction <maximumf>, %32, %cst_17 [1] : vector<8x8xf32> to vector<8xf32>
    %34 = vector.shape_cast %33 : vector<8xf32> to vector<8x1xf32>
    %35 = vector.broadcast %34 : vector<8x1xf32> to vector<8x8xf32>
    %36 = arith.subf %32, %35 : vector<8x8xf32>
    %37 = math.exp %36 : vector<8x8xf32>
    %cst_18 = arith.constant dense<0.000000e+00> : vector<8xf32>
    %38 = vector.multi_reduction <add>, %37, %cst_18 [1] : vector<8x8xf32> to vector<8xf32>
    %39 = vector.shape_cast %38 : vector<8xf32> to vector<8x1xf32>
    %40 = tpu.reciprocal %39 {approx = true} : vector<8x1xf32> -> vector<8x1xf32>
    %41 = vector.broadcast %40 : vector<8x1xf32> to vector<8x8xf32>
    %42 = arith.mulf %37, %41 : vector<8x8xf32>
    %43 = arith.truncf %42 : vector<8x8xf32> to vector<8x8xbf16>
    %cst_19 = arith.constant dense<0.000000e+00> : vector<8x16xf32>
    %44 = tpu.matmul %43, %27, %cst_19 {dimension_numbers = #tpu.dot_dimension_numbers<[1], [0], [0], [1], [0, 0, 1, 1], [], []>} : vector<8x8xbf16>, vector<8x16xbf16>, vector<8x16xf32> -> vector<8x16xf32>
    %c0_20 = arith.constant 0 : index
    %c0_21 = arith.constant 0 : index
    %45 = vector.load %arg11[%c0_20, %c0_21] : memref<8x128xf32, #tpu.memory_space<vmem>>, vector<8x16xf32>
    tpu.vector_store %arg11[%c0_20, %c0_21], %44 {strides = array<i32>} : memref<8x128xf32, #tpu.memory_space<vmem>>, vector<8x16xf32>,
    %46 = vector.extract_strided_slice %21 {offsets = [0, 16], sizes = [8, 16], strides = [1, 1]} : vector<8x384xf32> to vector<8x16xf32>
    %47 = arith.truncf %46 : vector<8x16xf32> to vector<8x16xbf16>
    %48 = vector.extract_strided_slice %21 {offsets = [0, 144], sizes = [8, 16], strides = [1, 1]} : vector<8x384xf32> to vector<8x16xf32>
    %49 = arith.truncf %48 : vector<8x16xf32> to vector<8x16xbf16>
    %50 = vector.extract_strided_slice %21 {offsets = [0, 272], sizes = [8, 16], strides = [1, 1]} : vector<8x384xf32> to vector<8x16xf32>
    %51 = arith.truncf %50 : vector<8x16xf32> to vector<8x16xbf16>
    %cst_22 = arith.constant dense<0.000000e+00> : vector<8x8xf32>
    %52 = tpu.matmul %47, %49, %cst_22 {dimension_numbers = #tpu.dot_dimension_numbers<[1], [1], [0], [0], [0, 0, 1, 0], [], []>} : vector<8x16xbf16>, vector<8x16xbf16>, vector<8x8xf32> -> vector<8x8xf32>
    %cst_23 = arith.constant 2.500000e-01 : f32
    %53 = vector.broadcast %cst_23 : f32 to vector<8x8xf32>
    %54 = arith.mulf %52, %53 : vector<8x8xf32>
    %55 = vector.broadcast %5 : vector<1x8xf32> to vector<8x8xf32>
    %56 = arith.addf %54, %55 : vector<8x8xf32>
    %cst_24 = arith.constant dense<0xFF800000> : vector<8xf32>
    %57 = vector.multi_reduction <maximumf>, %56, %cst_24 [1] : vector<8x8xf32> to vector<8xf32>
    %58 = vector.shape_cast %57 : vector<8xf32> to vector<8x1xf32>
    %59 = vector.broadcast %58 : vector<8x1xf32> to vector<8x8xf32>
    %60 = arith.subf %56, %59 : vector<8x8xf32>
    %61 = math.exp %60 : vector<8x8xf32>
    %cst_25 = arith.constant dense<0.000000e+00> : vector<8xf32>
    %62 = vector.multi_reduction <add>, %61, %cst_25 [1] : vector<8x8xf32> to vector<8xf32>
    %63 = vector.shape_cast %62 : vector<8xf32> to vector<8x1xf32>
    %64 = tpu.reciprocal %63 {approx = true} : vector<8x1xf32> -> vector<8x1xf32>
    %65 = vector.broadcast %64 : vector<8x1xf32> to vector<8x8xf32>
    %66 = arith.mulf %61, %65 : vector<8x8xf32>
    %67 = arith.truncf %66 : vector<8x8xf32> to vector<8x8xbf16>
    %cst_26 = arith.constant dense<0.000000e+00> : vector<8x16xf32>
    %68 = tpu.matmul %67, %51, %cst_26 {dimension_numbers = #tpu.dot_dimension_numbers<[1], [0], [0], [1], [0, 0, 1, 1], [], []>} : vector<8x8xbf16>, vector<8x16xbf16>, vector<8x16xf32> -> vector<8x16xf32>
    %c0_27 = arith.constant 0 : index
    %c16 = arith.constant 16 : index
    %69 = vector.load %arg11[%c0_27, %c16] : memref<8x128xf32, #tpu.memory_space<vmem>>, vector<8x16xf32>
    tpu.vector_store %arg11[%c0_27, %c16], %68 {strides = array<i32>} : memref<8x128xf32, #tpu.memory_space<vmem>>, vector<8x16xf32>,
    %70 = vector.extract_strided_slice %21 {offsets = [0, 32], sizes = [8, 16], strides = [1, 1]} : vector<8x384xf32> to vector<8x16xf32>
    %71 = arith.truncf %70 : vector<8x16xf32> to vector<8x16xbf16>
    %72 = vector.extract_strided_slice %21 {offsets = [0, 160], sizes = [8, 16], strides = [1, 1]} : vector<8x384xf32> to vector<8x16xf32>
    %73 = arith.truncf %72 : vector<8x16xf32> to vector<8x16xbf16>
    %74 = vector.extract_strided_slice %21 {offsets = [0, 288], sizes = [8, 16], strides = [1, 1]} : vector<8x384xf32> to vector<8x16xf32>
    %75 = arith.truncf %74 : vector<8x16xf32> to vector<8x16xbf16>
    %cst_28 = arith.constant dense<0.000000e+00> : vector<8x8xf32>
    %76 = tpu.matmul %71, %73, %cst_28 {dimension_numbers = #tpu.dot_dimension_numbers<[1], [1], [0], [0], [0, 0, 1, 0], [], []>} : vector<8x16xbf16>, vector<8x16xbf16>, vector<8x8xf32> -> vector<8x8xf32>
    %cst_29 = arith.constant 2.500000e-01 : f32
    %77 = vector.broadcast %cst_29 : f32 to vector<8x8xf32>
    %78 = arith.mulf %76, %77 : vector<8x8xf32>
    %79 = vector.broadcast %5 : vector<1x8xf32> to vector<8x8xf32>
    %80 = arith.addf %78, %79 : vector<8x8xf32>
    %cst_30 = arith.constant dense<0xFF800000> : vector<8xf32>
    %81 = vector.multi_reduction <maximumf>, %80, %cst_30 [1] : vector<8x8xf32> to vector<8xf32>
    %82 = vector.shape_cast %81 : vector<8xf32> to vector<8x1xf32>
    %83 = vector.broadcast %82 : vector<8x1xf32> to vector<8x8xf32>
    %84 = arith.subf %80, %83 : vector<8x8xf32>
    %85 = math.exp %84 : vector<8x8xf32>
    %cst_31 = arith.constant dense<0.000000e+00> : vector<8xf32>
    %86 = vector.multi_reduction <add>, %85, %cst_31 [1] : vector<8x8xf32> to vector<8xf32>
    %87 = vector.shape_cast %86 : vector<8xf32> to vector<8x1xf32>
    %88 = tpu.reciprocal %87 {approx = true} : vector<8x1xf32> -> vector<8x1xf32>
    %89 = vector.broadcast %88 : vector<8x1xf32> to vector<8x8xf32>
    %90 = arith.mulf %85, %89 : vector<8x8xf32>
    %91 = arith.truncf %90 : vector<8x8xf32> to vector<8x8xbf16>
    %cst_32 = arith.constant dense<0.000000e+00> : vector<8x16xf32>
    %92 = tpu.matmul %91, %75, %cst_32 {dimension_numbers = #tpu.dot_dimension_numbers<[1], [0], [0], [1], [0, 0, 1, 1], [], []>} : vector<8x8xbf16>, vector<8x16xbf16>, vector<8x16xf32> -> vector<8x16xf32>
    %c0_33 = arith.constant 0 : index
    %c32 = arith.constant 32 : index
    %93 = vector.load %arg11[%c0_33, %c32] : memref<8x128xf32, #tpu.memory_space<vmem>>, vector<8x16xf32>
    tpu.vector_store %arg11[%c0_33, %c32], %92 {strides = array<i32>} : memref<8x128xf32, #tpu.memory_space<vmem>>, vector<8x16xf32>,
    %94 = vector.extract_strided_slice %21 {offsets = [0, 48], sizes = [8, 16], strides = [1, 1]} : vector<8x384xf32> to vector<8x16xf32>
    %95 = arith.truncf %94 : vector<8x16xf32> to vector<8x16xbf16>
    %96 = vector.extract_strided_slice %21 {offsets = [0, 176], sizes = [8, 16], strides = [1, 1]} : vector<8x384xf32> to vector<8x16xf32>
    %97 = arith.truncf %96 : vector<8x16xf32> to vector<8x16xbf16>
    %98 = vector.extract_strided_slice %21 {offsets = [0, 304], sizes = [8, 16], strides = [1, 1]} : vector<8x384xf32> to vector<8x16xf32>
    %99 = arith.truncf %98 : vector<8x16xf32> to vector<8x16xbf16>
    %cst_34 = arith.constant dense<0.000000e+00> : vector<8x8xf32>
    %100 = tpu.matmul %95, %97, %cst_34 {dimension_numbers = #tpu.dot_dimension_numbers<[1], [1], [0], [0], [0, 0, 1, 0], [], []>} : vector<8x16xbf16>, vector<8x16xbf16>, vector<8x8xf32> -> vector<8x8xf32>
    %cst_35 = arith.constant 2.500000e-01 : f32
    %101 = vector.broadcast %cst_35 : f32 to vector<8x8xf32>
    %102 = arith.mulf %100, %101 : vector<8x8xf32>
    %103 = vector.broadcast %5 : vector<1x8xf32> to vector<8x8xf32>
    %104 = arith.addf %102, %103 : vector<8x8xf32>
    %cst_36 = arith.constant dense<0xFF800000> : vector<8xf32>
    %105 = vector.multi_reduction <maximumf>, %104, %cst_36 [1] : vector<8x8xf32> to vector<8xf32>
    %106 = vector.shape_cast %105 : vector<8xf32> to vector<8x1xf32>
    %107 = vector.broadcast %106 : vector<8x1xf32> to vector<8x8xf32>
    %108 = arith.subf %104, %107 : vector<8x8xf32>
    %109 = math.exp %108 : vector<8x8xf32>
    %cst_37 = arith.constant dense<0.000000e+00> : vector<8xf32>
    %110 = vector.multi_reduction <add>, %109, %cst_37 [1] : vector<8x8xf32> to vector<8xf32>
    %111 = vector.shape_cast %110 : vector<8xf32> to vector<8x1xf32>
    %112 = tpu.reciprocal %111 {approx = true} : vector<8x1xf32> -> vector<8x1xf32>
    %113 = vector.broadcast %112 : vector<8x1xf32> to vector<8x8xf32>
    %114 = arith.mulf %109, %113 : vector<8x8xf32>
    %115 = arith.truncf %114 : vector<8x8xf32> to vector<8x8xbf16>
    %cst_38 = arith.constant dense<0.000000e+00> : vector<8x16xf32>
    %116 = tpu.matmul %115, %99, %cst_38 {dimension_numbers = #tpu.dot_dimension_numbers<[1], [0], [0], [1], [0, 0, 1, 1], [], []>} : vector<8x8xbf16>, vector<8x16xbf16>, vector<8x16xf32> -> vector<8x16xf32>
    %c0_39 = arith.constant 0 : index
    %c48 = arith.constant 48 : index
    %117 = vector.load %arg11[%c0_39, %c48] : memref<8x128xf32, #tpu.memory_space<vmem>>, vector<8x16xf32>
    tpu.vector_store %arg11[%c0_39, %c48], %116 {strides = array<i32>} : memref<8x128xf32, #tpu.memory_space<vmem>>, vector<8x16xf32>,
    %118 = vector.extract_strided_slice %21 {offsets = [0, 64], sizes = [8, 16], strides = [1, 1]} : vector<8x384xf32> to vector<8x16xf32>
    %119 = arith.truncf %118 : vector<8x16xf32> to vector<8x16xbf16>
    %120 = vector.extract_strided_slice %21 {offsets = [0, 192], sizes = [8, 16], strides = [1, 1]} : vector<8x384xf32> to vector<8x16xf32>
    %121 = arith.truncf %120 : vector<8x16xf32> to vector<8x16xbf16>
    %122 = vector.extract_strided_slice %21 {offsets = [0, 320], sizes = [8, 16], strides = [1, 1]} : vector<8x384xf32> to vector<8x16xf32>
    %123 = arith.truncf %122 : vector<8x16xf32> to vector<8x16xbf16>
    %cst_40 = arith.constant dense<0.000000e+00> : vector<8x8xf32>
    %124 = tpu.matmul %119, %121, %cst_40 {dimension_numbers = #tpu.dot_dimension_numbers<[1], [1], [0], [0], [0, 0, 1, 0], [], []>} : vector<8x16xbf16>, vector<8x16xbf16>, vector<8x8xf32> -> vector<8x8xf32>
    %cst_41 = arith.constant 2.500000e-01 : f32
    %125 = vector.broadcast %cst_41 : f32 to vector<8x8xf32>
    %126 = arith.mulf %124, %125 : vector<8x8xf32>
    %127 = vector.broadcast %5 : vector<1x8xf32> to vector<8x8xf32>
    %128 = arith.addf %126, %127 : vector<8x8xf32>
    %cst_42 = arith.constant dense<0xFF800000> : vector<8xf32>
    %129 = vector.multi_reduction <maximumf>, %128, %cst_42 [1] : vector<8x8xf32> to vector<8xf32>
    %130 = vector.shape_cast %129 : vector<8xf32> to vector<8x1xf32>
    %131 = vector.broadcast %130 : vector<8x1xf32> to vector<8x8xf32>
    %132 = arith.subf %128, %131 : vector<8x8xf32>
    %133 = math.exp %132 : vector<8x8xf32>
    %cst_43 = arith.constant dense<0.000000e+00> : vector<8xf32>
    %134 = vector.multi_reduction <add>, %133, %cst_43 [1] : vector<8x8xf32> to vector<8xf32>
    %135 = vector.shape_cast %134 : vector<8xf32> to vector<8x1xf32>
    %136 = tpu.reciprocal %135 {approx = true} : vector<8x1xf32> -> vector<8x1xf32>
    %137 = vector.broadcast %136 : vector<8x1xf32> to vector<8x8xf32>
    %138 = arith.mulf %133, %137 : vector<8x8xf32>
    %139 = arith.truncf %138 : vector<8x8xf32> to vector<8x8xbf16>
    %cst_44 = arith.constant dense<0.000000e+00> : vector<8x16xf32>
    %140 = tpu.matmul %139, %123, %cst_44 {dimension_numbers = #tpu.dot_dimension_numbers<[1], [0], [0], [1], [0, 0, 1, 1], [], []>} : vector<8x8xbf16>, vector<8x16xbf16>, vector<8x16xf32> -> vector<8x16xf32>
    %c0_45 = arith.constant 0 : index
    %c64 = arith.constant 64 : index
    %141 = vector.load %arg11[%c0_45, %c64] : memref<8x128xf32, #tpu.memory_space<vmem>>, vector<8x16xf32>
    tpu.vector_store %arg11[%c0_45, %c64], %140 {strides = array<i32>} : memref<8x128xf32, #tpu.memory_space<vmem>>, vector<8x16xf32>,
    %142 = vector.extract_strided_slice %21 {offsets = [0, 80], sizes = [8, 16], strides = [1, 1]} : vector<8x384xf32> to vector<8x16xf32>
    %143 = arith.truncf %142 : vector<8x16xf32> to vector<8x16xbf16>
    %144 = vector.extract_strided_slice %21 {offsets = [0, 208], sizes = [8, 16], strides = [1, 1]} : vector<8x384xf32> to vector<8x16xf32>
    %145 = arith.truncf %144 : vector<8x16xf32> to vector<8x16xbf16>
    %146 = vector.extract_strided_slice %21 {offsets = [0, 336], sizes = [8, 16], strides = [1, 1]} : vector<8x384xf32> to vector<8x16xf32>
    %147 = arith.truncf %146 : vector<8x16xf32> to vector<8x16xbf16>
    %cst_46 = arith.constant dense<0.000000e+00> : vector<8x8xf32>
    %148 = tpu.matmul %143, %145, %cst_46 {dimension_numbers = #tpu.dot_dimension_numbers<[1], [1], [0], [0], [0, 0, 1, 0], [], []>} : vector<8x16xbf16>, vector<8x16xbf16>, vector<8x8xf32> -> vector<8x8xf32>
    %cst_47 = arith.constant 2.500000e-01 : f32
    %149 = vector.broadcast %cst_47 : f32 to vector<8x8xf32>
    %150 = arith.mulf %148, %149 : vector<8x8xf32>
    %151 = vector.broadcast %5 : vector<1x8xf32> to vector<8x8xf32>
    %152 = arith.addf %150, %151 : vector<8x8xf32>
    %cst_48 = arith.constant dense<0xFF800000> : vector<8xf32>
    %153 = vector.multi_reduction <maximumf>, %152, %cst_48 [1] : vector<8x8xf32> to vector<8xf32>
    %154 = vector.shape_cast %153 : vector<8xf32> to vector<8x1xf32>
    %155 = vector.broadcast %154 : vector<8x1xf32> to vector<8x8xf32>
    %156 = arith.subf %152, %155 : vector<8x8xf32>
    %157 = math.exp %156 : vector<8x8xf32>
    %cst_49 = arith.constant dense<0.000000e+00> : vector<8xf32>
    %158 = vector.multi_reduction <add>, %157, %cst_49 [1] : vector<8x8xf32> to vector<8xf32>
    %159 = vector.shape_cast %158 : vector<8xf32> to vector<8x1xf32>
    %160 = tpu.reciprocal %159 {approx = true} : vector<8x1xf32> -> vector<8x1xf32>
    %161 = vector.broadcast %160 : vector<8x1xf32> to vector<8x8xf32>
    %162 = arith.mulf %157, %161 : vector<8x8xf32>
    %163 = arith.truncf %162 : vector<8x8xf32> to vector<8x8xbf16>
    %cst_50 = arith.constant dense<0.000000e+00> : vector<8x16xf32>
    %164 = tpu.matmul %163, %147, %cst_50 {dimension_numbers = #tpu.dot_dimension_numbers<[1], [0], [0], [1], [0, 0, 1, 1], [], []>} : vector<8x8xbf16>, vector<8x16xbf16>, vector<8x16xf32> -> vector<8x16xf32>
    %c0_51 = arith.constant 0 : index
    %c80 = arith.constant 80 : index
    %165 = vector.load %arg11[%c0_51, %c80] : memref<8x128xf32, #tpu.memory_space<vmem>>, vector<8x16xf32>
    tpu.vector_store %arg11[%c0_51, %c80], %164 {strides = array<i32>} : memref<8x128xf32, #tpu.memory_space<vmem>>, vector<8x16xf32>,
    %166 = vector.extract_strided_slice %21 {offsets = [0, 96], sizes = [8, 16], strides = [1, 1]} : vector<8x384xf32> to vector<8x16xf32>
    %167 = arith.truncf %166 : vector<8x16xf32> to vector<8x16xbf16>
    %168 = vector.extract_strided_slice %21 {offsets = [0, 224], sizes = [8, 16], strides = [1, 1]} : vector<8x384xf32> to vector<8x16xf32>
    %169 = arith.truncf %168 : vector<8x16xf32> to vector<8x16xbf16>
    %170 = vector.extract_strided_slice %21 {offsets = [0, 352], sizes = [8, 16], strides = [1, 1]} : vector<8x384xf32> to vector<8x16xf32>
    %171 = arith.truncf %170 : vector<8x16xf32> to vector<8x16xbf16>
    %cst_52 = arith.constant dense<0.000000e+00> : vector<8x8xf32>
    %172 = tpu.matmul %167, %169, %cst_52 {dimension_numbers = #tpu.dot_dimension_numbers<[1], [1], [0], [0], [0, 0, 1, 0], [], []>} : vector<8x16xbf16>, vector<8x16xbf16>, vector<8x8xf32> -> vector<8x8xf32>
    %cst_53 = arith.constant 2.500000e-01 : f32
    %173 = vector.broadcast %cst_53 : f32 to vector<8x8xf32>
    %174 = arith.mulf %172, %173 : vector<8x8xf32>
    %175 = vector.broadcast %5 : vector<1x8xf32> to vector<8x8xf32>
    %176 = arith.addf %174, %175 : vector<8x8xf32>
    %cst_54 = arith.constant dense<0xFF800000> : vector<8xf32>
    %177 = vector.multi_reduction <maximumf>, %176, %cst_54 [1] : vector<8x8xf32> to vector<8xf32>
    %178 = vector.shape_cast %177 : vector<8xf32> to vector<8x1xf32>
    %179 = vector.broadcast %178 : vector<8x1xf32> to vector<8x8xf32>
    %180 = arith.subf %176, %179 : vector<8x8xf32>
    %181 = math.exp %180 : vector<8x8xf32>
    %cst_55 = arith.constant dense<0.000000e+00> : vector<8xf32>
    %182 = vector.multi_reduction <add>, %181, %cst_55 [1] : vector<8x8xf32> to vector<8xf32>
    %183 = vector.shape_cast %182 : vector<8xf32> to vector<8x1xf32>
    %184 = tpu.reciprocal %183 {approx = true} : vector<8x1xf32> -> vector<8x1xf32>
    %185 = vector.broadcast %184 : vector<8x1xf32> to vector<8x8xf32>
    %186 = arith.mulf %181, %185 : vector<8x8xf32>
    %187 = arith.truncf %186 : vector<8x8xf32> to vector<8x8xbf16>
    %cst_56 = arith.constant dense<0.000000e+00> : vector<8x16xf32>
    %188 = tpu.matmul %187, %171, %cst_56 {dimension_numbers = #tpu.dot_dimension_numbers<[1], [0], [0], [1], [0, 0, 1, 1], [], []>} : vector<8x8xbf16>, vector<8x16xbf16>, vector<8x16xf32> -> vector<8x16xf32>
    %c0_57 = arith.constant 0 : index
    %c96 = arith.constant 96 : index
    %189 = vector.load %arg11[%c0_57, %c96] : memref<8x128xf32, #tpu.memory_space<vmem>>, vector<8x16xf32>
    tpu.vector_store %arg11[%c0_57, %c96], %188 {strides = array<i32>} : memref<8x128xf32, #tpu.memory_space<vmem>>, vector<8x16xf32>,
    %190 = vector.extract_strided_slice %21 {offsets = [0, 112], sizes = [8, 16], strides = [1, 1]} : vector<8x384xf32> to vector<8x16xf32>
    %191 = arith.truncf %190 : vector<8x16xf32> to vector<8x16xbf16>
    %192 = vector.extract_strided_slice %21 {offsets = [0, 240], sizes = [8, 16], strides = [1, 1]} : vector<8x384xf32> to vector<8x16xf32>
    %193 = arith.truncf %192 : vector<8x16xf32> to vector<8x16xbf16>
    %194 = vector.extract_strided_slice %21 {offsets = [0, 368], sizes = [8, 16], strides = [1, 1]} : vector<8x384xf32> to vector<8x16xf32>
    %195 = arith.truncf %194 : vector<8x16xf32> to vector<8x16xbf16>
    %cst_58 = arith.constant dense<0.000000e+00> : vector<8x8xf32>
    %196 = tpu.matmul %191, %193, %cst_58 {dimension_numbers = #tpu.dot_dimension_numbers<[1], [1], [0], [0], [0, 0, 1, 0], [], []>} : vector<8x16xbf16>, vector<8x16xbf16>, vector<8x8xf32> -> vector<8x8xf32>
    %cst_59 = arith.constant 2.500000e-01 : f32
    %197 = vector.broadcast %cst_59 : f32 to vector<8x8xf32>
    %198 = arith.mulf %196, %197 : vector<8x8xf32>
    %199 = vector.broadcast %5 : vector<1x8xf32> to vector<8x8xf32>
    %200 = arith.addf %198, %199 : vector<8x8xf32>
    %cst_60 = arith.constant dense<0xFF800000> : vector<8xf32>
    %201 = vector.multi_reduction <maximumf>, %200, %cst_60 [1] : vector<8x8xf32> to vector<8xf32>
    %202 = vector.shape_cast %201 : vector<8xf32> to vector<8x1xf32>
    %203 = vector.broadcast %202 : vector<8x1xf32> to vector<8x8xf32>
    %204 = arith.subf %200, %203 : vector<8x8xf32>
    %205 = math.exp %204 : vector<8x8xf32>
    %cst_61 = arith.constant dense<0.000000e+00> : vector<8xf32>
    %206 = vector.multi_reduction <add>, %205, %cst_61 [1] : vector<8x8xf32> to vector<8xf32>
    %207 = vector.shape_cast %206 : vector<8xf32> to vector<8x1xf32>
    %208 = tpu.reciprocal %207 {approx = true} : vector<8x1xf32> -> vector<8x1xf32>
    %209 = vector.broadcast %208 : vector<8x1xf32> to vector<8x8xf32>
    %210 = arith.mulf %205, %209 : vector<8x8xf32>
    %211 = arith.truncf %210 : vector<8x8xf32> to vector<8x8xbf16>
    %cst_62 = arith.constant dense<0.000000e+00> : vector<8x16xf32>
    %212 = tpu.matmul %211, %195, %cst_62 {dimension_numbers = #tpu.dot_dimension_numbers<[1], [0], [0], [1], [0, 0, 1, 1], [], []>} : vector<8x8xbf16>, vector<8x16xbf16>, vector<8x16xf32> -> vector<8x16xf32>
    %c0_63 = arith.constant 0 : index
    %c112 = arith.constant 112 : index
    %213 = vector.load %arg11[%c0_63, %c112] : memref<8x128xf32, #tpu.memory_space<vmem>>, vector<8x16xf32>
    tpu.vector_store %arg11[%c0_63, %c112], %212 {strides = array<i32>} : memref<8x128xf32, #tpu.memory_space<vmem>>, vector<8x16xf32>,
    %c0_64 = arith.constant 0 : index
    %c0_65 = arith.constant 0 : index
    %214 = vector.load %arg11[%c0_64, %c0_65] : memref<8x128xf32, #tpu.memory_space<vmem>>, vector<8x128xf32>
    %215 = arith.truncf %214 : vector<8x128xf32> to vector<8x128xbf16>
    %c0_66 = arith.constant 0 : index
    %c0_67 = arith.constant 0 : index
    %c0_68 = arith.constant 0 : index
    %216 = vector.load %arg5[%c0_66, %c0_67, %c0_68] : memref<4x128x128xbf16, #tpu.memory_space<vmem>>, vector<1x128x128xbf16>
    %217 = vector.shape_cast %216 : vector<1x128x128xbf16> to vector<128x128xbf16>
    %cst_69 = arith.constant dense<0.000000e+00> : vector<8x128xf32>
    %218 = tpu.matmul %215, %217, %cst_69 {dimension_numbers = #tpu.dot_dimension_numbers<[1], [0], [0], [1], [0, 0, 1, 1], [], []>} : vector<8x128xbf16>, vector<128x128xbf16>, vector<8x128xf32> -> vector<8x128xf32>
    %219 = vector.broadcast %8 : vector<1x128xf32> to vector<8x128xf32>
    %220 = arith.addf %218, %219 : vector<8x128xf32>
    %221 = arith.addf %1, %220 : vector<8x128xf32>
    %cst_70 = arith.constant dense<0.000000e+00> : vector<8xf32>
    %222 = vector.multi_reduction <add>, %221, %cst_70 [1] : vector<8x128xf32> to vector<8xf32>
    %223 = vector.shape_cast %222 : vector<8xf32> to vector<8x1xf32>
    %cst_71 = arith.constant 1.280000e+02 : f32
    %224 = vector.broadcast %cst_71 : f32 to vector<8x1xf32>
    %225 = arith.divf %223, %224 : vector<8x1xf32>
    %226 = vector.broadcast %225 : vector<8x1xf32> to vector<8x128xf32>
    %227 = arith.subf %221, %226 : vector<8x128xf32>
    %228 = arith.mulf %227, %227 : vector<8x128xf32>
    %cst_72 = arith.constant dense<0.000000e+00> : vector<8xf32>
    %229 = vector.multi_reduction <add>, %228, %cst_72 [1] : vector<8x128xf32> to vector<8xf32>
    %230 = vector.shape_cast %229 : vector<8xf32> to vector<8x1xf32>
    %cst_73 = arith.constant 1.280000e+02 : f32
    %231 = vector.broadcast %cst_73 : f32 to vector<8x1xf32>
    %232 = arith.divf %230, %231 : vector<8x1xf32>
    %233 = vector.broadcast %225 : vector<8x1xf32> to vector<8x128xf32>
    %234 = arith.subf %221, %233 : vector<8x128xf32>
    %cst_74 = arith.constant 9.99999997E-7 : f32
    %235 = vector.broadcast %cst_74 : f32 to vector<8x1xf32>
    %236 = arith.addf %232, %235 : vector<8x1xf32>
    %237 = math.rsqrt %236 : vector<8x1xf32>
    %238 = vector.broadcast %237 : vector<8x1xf32> to vector<8x128xf32>
    %239 = arith.mulf %234, %238 : vector<8x128xf32>
    %240 = vector.broadcast %9 : vector<1x128xf32> to vector<8x128xf32>
    %241 = arith.mulf %239, %240 : vector<8x128xf32>
    %242 = vector.broadcast %10 : vector<1x128xf32> to vector<8x128xf32>
    %243 = arith.addf %241, %242 : vector<8x128xf32>
    %244 = arith.truncf %243 : vector<8x128xf32> to vector<8x128xbf16>
    %c0_75 = arith.constant 0 : index
    %c0_76 = arith.constant 0 : index
    %c0_77 = arith.constant 0 : index
    %245 = vector.load %arg6[%c0_75, %c0_76, %c0_77] : memref<4x128x512xbf16, #tpu.memory_space<vmem>>, vector<1x128x512xbf16>
    %246 = vector.shape_cast %245 : vector<1x128x512xbf16> to vector<128x512xbf16>
    %cst_78 = arith.constant dense<0.000000e+00> : vector<8x512xf32>
    %247 = tpu.matmul %244, %246, %cst_78 {dimension_numbers = #tpu.dot_dimension_numbers<[1], [0], [0], [1], [0, 0, 1, 1], [], []>} : vector<8x128xbf16>, vector<128x512xbf16>, vector<8x512xf32> -> vector<8x512xf32>
    %c0_79 = arith.constant 0 : index
    %c0_80 = arith.constant 0 : index
    %c0_81 = arith.constant 0 : index
    %248 = vector.load %arg7[%c0_79, %c0_80, %c0_81] : memref<4x1x512xf32, #tpu.memory_space<vmem>>, vector<1x1x512xf32>
    %249 = vector.shape_cast %248 : vector<1x1x512xf32> to vector<1x512xf32>
    %250 = vector.broadcast %249 : vector<1x512xf32> to vector<8x512xf32>
    %251 = arith.addf %247, %250 : vector<8x512xf32>
    %cst_82 = arith.constant 0.000000e+00 : f32
    %252 = vector.broadcast %cst_82 : f32 to vector<8x512xf32>
    %253 = arith.maximumf %251, %252 : vector<8x512xf32>
    %254 = arith.truncf %253 : vector<8x512xf32> to vector<8x512xbf16>
    %c0_83 = arith.constant 0 : index
    %c0_84 = arith.constant 0 : index
    %c0_85 = arith.constant 0 : index
    %255 = vector.load %arg8[%c0_83, %c0_84, %c0_85] : memref<4x512x128xbf16, #tpu.memory_space<vmem>>, vector<1x512x128xbf16>
    %256 = vector.shape_cast %255 : vector<1x512x128xbf16> to vector<512x128xbf16>
    %cst_86 = arith.constant dense<0.000000e+00> : vector<8x128xf32>
    %257 = tpu.matmul %254, %256, %cst_86 {dimension_numbers = #tpu.dot_dimension_numbers<[1], [0], [0], [1], [0, 0, 1, 1], [], []>} : vector<8x512xbf16>, vector<512x128xbf16>, vector<8x128xf32> -> vector<8x128xf32>
    %258 = vector.broadcast %13 : vector<1x128xf32> to vector<8x128xf32>
    %259 = arith.addf %257, %258 : vector<8x128xf32>
    %260 = arith.addf %243, %259 : vector<8x128xf32>
    %cst_87 = arith.constant dense<0.000000e+00> : vector<8xf32>
    %261 = vector.multi_reduction <add>, %260, %cst_87 [1] : vector<8x128xf32> to vector<8xf32>
    %262 = vector.shape_cast %261 : vector<8xf32> to vector<8x1xf32>
    %cst_88 = arith.constant 1.280000e+02 : f32
    %263 = vector.broadcast %cst_88 : f32 to vector<8x1xf32>
    %264 = arith.divf %262, %263 : vector<8x1xf32>
    %265 = vector.broadcast %264 : vector<8x1xf32> to vector<8x128xf32>
    %266 = arith.subf %260, %265 : vector<8x128xf32>
    %267 = arith.mulf %266, %266 : vector<8x128xf32>
    %cst_89 = arith.constant dense<0.000000e+00> : vector<8xf32>
    %268 = vector.multi_reduction <add>, %267, %cst_89 [1] : vector<8x128xf32> to vector<8xf32>
    %269 = vector.shape_cast %268 : vector<8xf32> to vector<8x1xf32>
    %cst_90 = arith.constant 1.280000e+02 : f32
    %270 = vector.broadcast %cst_90 : f32 to vector<8x1xf32>
    %271 = arith.divf %269, %270 : vector<8x1xf32>
    %272 = vector.broadcast %264 : vector<8x1xf32> to vector<8x128xf32>
    %273 = arith.subf %260, %272 : vector<8x128xf32>
    %cst_91 = arith.constant 9.99999997E-7 : f32
    %274 = vector.broadcast %cst_91 : f32 to vector<8x1xf32>
    %275 = arith.addf %271, %274 : vector<8x1xf32>
    %276 = math.rsqrt %275 : vector<8x1xf32>
    %277 = vector.broadcast %276 : vector<8x1xf32> to vector<8x128xf32>
    %278 = arith.mulf %273, %277 : vector<8x128xf32>
    %279 = vector.broadcast %11 : vector<1x128xf32> to vector<8x128xf32>
    %280 = arith.mulf %278, %279 : vector<8x128xf32>
    %281 = vector.broadcast %12 : vector<1x128xf32> to vector<8x128xf32>
    %282 = arith.addf %280, %281 : vector<8x128xf32>
    %c1 = arith.constant 1 : index
    %c0_92 = arith.constant 0 : index
    %c0_93 = arith.constant 0 : index
    %283 = vector.load %arg9[%c1, %c0_92, %c0_93] : memref<4x8x128xf32, #tpu.memory_space<vmem>>, vector<1x8x128xf32>
    %284 = vector.shape_cast %283 : vector<1x8x128xf32> to vector<8x128xf32>
    %285 = vector.extract_strided_slice %284 {offsets = [0, 0], sizes = [1, 128], strides = [1, 1]} : vector<8x128xf32> to vector<1x128xf32>
    %286 = vector.extract_strided_slice %284 {offsets = [1, 0], sizes = [1, 128], strides = [1, 1]} : vector<8x128xf32> to vector<1x128xf32>
    %287 = vector.extract_strided_slice %284 {offsets = [2, 0], sizes = [1, 128], strides = [1, 1]} : vector<8x128xf32> to vector<1x128xf32>
    %288 = vector.extract_strided_slice %284 {offsets = [3, 0], sizes = [1, 128], strides = [1, 1]} : vector<8x128xf32> to vector<1x128xf32>
    %289 = vector.extract_strided_slice %284 {offsets = [4, 0], sizes = [1, 128], strides = [1, 1]} : vector<8x128xf32> to vector<1x128xf32>
    %290 = vector.extract_strided_slice %284 {offsets = [5, 0], sizes = [1, 128], strides = [1, 1]} : vector<8x128xf32> to vector<1x128xf32>
    %291 = arith.truncf %282 : vector<8x128xf32> to vector<8x128xbf16>
    %c1_94 = arith.constant 1 : index
    %c0_95 = arith.constant 0 : index
    %c0_96 = arith.constant 0 : index
    %292 = vector.load %arg3[%c1_94, %c0_95, %c0_96] : memref<4x128x384xbf16, #tpu.memory_space<vmem>>, vector<1x128x384xbf16>
    %293 = vector.shape_cast %292 : vector<1x128x384xbf16> to vector<128x384xbf16>
    %cst_97 = arith.constant dense<0.000000e+00> : vector<8x384xf32>
    %294 = tpu.matmul %291, %293, %cst_97 {dimension_numbers = #tpu.dot_dimension_numbers<[1], [0], [0], [1], [0, 0, 1, 1], [], []>} : vector<8x128xbf16>, vector<128x384xbf16>, vector<8x384xf32> -> vector<8x384xf32>
    %c1_98 = arith.constant 1 : index
    %c0_99 = arith.constant 0 : index
    %c0_100 = arith.constant 0 : index
    %295 = vector.load %arg4[%c1_98, %c0_99, %c0_100] : memref<4x1x384xf32, #tpu.memory_space<vmem>>, vector<1x1x384xf32>
    %296 = vector.shape_cast %295 : vector<1x1x384xf32> to vector<1x384xf32>
    %297 = vector.broadcast %296 : vector<1x384xf32> to vector<8x384xf32>
    %298 = arith.addf %294, %297 : vector<8x384xf32>
    %299 = vector.extract_strided_slice %298 {offsets = [0, 0], sizes = [8, 16], strides = [1, 1]} : vector<8x384xf32> to vector<8x16xf32>
    %300 = arith.truncf %299 : vector<8x16xf32> to vector<8x16xbf16>
    %301 = vector.extract_strided_slice %298 {offsets = [0, 128], sizes = [8, 16], strides = [1, 1]} : vector<8x384xf32> to vector<8x16xf32>
    %302 = arith.truncf %301 : vector<8x16xf32> to vector<8x16xbf16>
    %303 = vector.extract_strided_slice %298 {offsets = [0, 256], sizes = [8, 16], strides = [1, 1]} : vector<8x384xf32> to vector<8x16xf32>
    %304 = arith.truncf %303 : vector<8x16xf32> to vector<8x16xbf16>
    %cst_101 = arith.constant dense<0.000000e+00> : vector<8x8xf32>
    %305 = tpu.matmul %300, %302, %cst_101 {dimension_numbers = #tpu.dot_dimension_numbers<[1], [1], [0], [0], [0, 0, 1, 0], [], []>} : vector<8x16xbf16>, vector<8x16xbf16>, vector<8x8xf32> -> vector<8x8xf32>
    %cst_102 = arith.constant 2.500000e-01 : f32
    %306 = vector.broadcast %cst_102 : f32 to vector<8x8xf32>
    %307 = arith.mulf %305, %306 : vector<8x8xf32>
    %308 = vector.broadcast %5 : vector<1x8xf32> to vector<8x8xf32>
    %309 = arith.addf %307, %308 : vector<8x8xf32>
    %cst_103 = arith.constant dense<0xFF800000> : vector<8xf32>
    %310 = vector.multi_reduction <maximumf>, %309, %cst_103 [1] : vector<8x8xf32> to vector<8xf32>
    %311 = vector.shape_cast %310 : vector<8xf32> to vector<8x1xf32>
    %312 = vector.broadcast %311 : vector<8x1xf32> to vector<8x8xf32>
    %313 = arith.subf %309, %312 : vector<8x8xf32>
    %314 = math.exp %313 : vector<8x8xf32>
    %cst_104 = arith.constant dense<0.000000e+00> : vector<8xf32>
    %315 = vector.multi_reduction <add>, %314, %cst_104 [1] : vector<8x8xf32> to vector<8xf32>
    %316 = vector.shape_cast %315 : vector<8xf32> to vector<8x1xf32>
    %317 = tpu.reciprocal %316 {approx = true} : vector<8x1xf32> -> vector<8x1xf32>
    %318 = vector.broadcast %317 : vector<8x1xf32> to vector<8x8xf32>
    %319 = arith.mulf %314, %318 : vector<8x8xf32>
    %320 = arith.truncf %319 : vector<8x8xf32> to vector<8x8xbf16>
    %cst_105 = arith.constant dense<0.000000e+00> : vector<8x16xf32>
    %321 = tpu.matmul %320, %304, %cst_105 {dimension_numbers = #tpu.dot_dimension_numbers<[1], [0], [0], [1], [0, 0, 1, 1], [], []>} : vector<8x8xbf16>, vector<8x16xbf16>, vector<8x16xf32> -> vector<8x16xf32>
    %c0_106 = arith.constant 0 : index
    %c0_107 = arith.constant 0 : index
    %322 = vector.load %arg11[%c0_106, %c0_107] : memref<8x128xf32, #tpu.memory_space<vmem>>, vector<8x16xf32>
    tpu.vector_store %arg11[%c0_106, %c0_107], %321 {strides = array<i32>} : memref<8x128xf32, #tpu.memory_space<vmem>>, vector<8x16xf32>,
    %323 = vector.extract_strided_slice %298 {offsets = [0, 16], sizes = [8, 16], strides = [1, 1]} : vector<8x384xf32> to vector<8x16xf32>
    %324 = arith.truncf %323 : vector<8x16xf32> to vector<8x16xbf16>
    %325 = vector.extract_strided_slice %298 {offsets = [0, 144], sizes = [8, 16], strides = [1, 1]} : vector<8x384xf32> to vector<8x16xf32>
    %326 = arith.truncf %325 : vector<8x16xf32> to vector<8x16xbf16>
    %327 = vector.extract_strided_slice %298 {offsets = [0, 272], sizes = [8, 16], strides = [1, 1]} : vector<8x384xf32> to vector<8x16xf32>
    %328 = arith.truncf %327 : vector<8x16xf32> to vector<8x16xbf16>
    %cst_108 = arith.constant dense<0.000000e+00> : vector<8x8xf32>
    %329 = tpu.matmul %324, %326, %cst_108 {dimension_numbers = #tpu.dot_dimension_numbers<[1], [1], [0], [0], [0, 0, 1, 0], [], []>} : vector<8x16xbf16>, vector<8x16xbf16>, vector<8x8xf32> -> vector<8x8xf32>
    %cst_109 = arith.constant 2.500000e-01 : f32
    %330 = vector.broadcast %cst_109 : f32 to vector<8x8xf32>
    %331 = arith.mulf %329, %330 : vector<8x8xf32>
    %332 = vector.broadcast %5 : vector<1x8xf32> to vector<8x8xf32>
    %333 = arith.addf %331, %332 : vector<8x8xf32>
    %cst_110 = arith.constant dense<0xFF800000> : vector<8xf32>
    %334 = vector.multi_reduction <maximumf>, %333, %cst_110 [1] : vector<8x8xf32> to vector<8xf32>
    %335 = vector.shape_cast %334 : vector<8xf32> to vector<8x1xf32>
    %336 = vector.broadcast %335 : vector<8x1xf32> to vector<8x8xf32>
    %337 = arith.subf %333, %336 : vector<8x8xf32>
    %338 = math.exp %337 : vector<8x8xf32>
    %cst_111 = arith.constant dense<0.000000e+00> : vector<8xf32>
    %339 = vector.multi_reduction <add>, %338, %cst_111 [1] : vector<8x8xf32> to vector<8xf32>
    %340 = vector.shape_cast %339 : vector<8xf32> to vector<8x1xf32>
    %341 = tpu.reciprocal %340 {approx = true} : vector<8x1xf32> -> vector<8x1xf32>
    %342 = vector.broadcast %341 : vector<8x1xf32> to vector<8x8xf32>
    %343 = arith.mulf %338, %342 : vector<8x8xf32>
    %344 = arith.truncf %343 : vector<8x8xf32> to vector<8x8xbf16>
    %cst_112 = arith.constant dense<0.000000e+00> : vector<8x16xf32>
    %345 = tpu.matmul %344, %328, %cst_112 {dimension_numbers = #tpu.dot_dimension_numbers<[1], [0], [0], [1], [0, 0, 1, 1], [], []>} : vector<8x8xbf16>, vector<8x16xbf16>, vector<8x16xf32> -> vector<8x16xf32>
    %c0_113 = arith.constant 0 : index
    %c16_114 = arith.constant 16 : index
    %346 = vector.load %arg11[%c0_113, %c16_114] : memref<8x128xf32, #tpu.memory_space<vmem>>, vector<8x16xf32>
    tpu.vector_store %arg11[%c0_113, %c16_114], %345 {strides = array<i32>} : memref<8x128xf32, #tpu.memory_space<vmem>>, vector<8x16xf32>,
    %347 = vector.extract_strided_slice %298 {offsets = [0, 32], sizes = [8, 16], strides = [1, 1]} : vector<8x384xf32> to vector<8x16xf32>
    %348 = arith.truncf %347 : vector<8x16xf32> to vector<8x16xbf16>
    %349 = vector.extract_strided_slice %298 {offsets = [0, 160], sizes = [8, 16], strides = [1, 1]} : vector<8x384xf32> to vector<8x16xf32>
    %350 = arith.truncf %349 : vector<8x16xf32> to vector<8x16xbf16>
    %351 = vector.extract_strided_slice %298 {offsets = [0, 288], sizes = [8, 16], strides = [1, 1]} : vector<8x384xf32> to vector<8x16xf32>
    %352 = arith.truncf %351 : vector<8x16xf32> to vector<8x16xbf16>
    %cst_115 = arith.constant dense<0.000000e+00> : vector<8x8xf32>
    %353 = tpu.matmul %348, %350, %cst_115 {dimension_numbers = #tpu.dot_dimension_numbers<[1], [1], [0], [0], [0, 0, 1, 0], [], []>} : vector<8x16xbf16>, vector<8x16xbf16>, vector<8x8xf32> -> vector<8x8xf32>
    %cst_116 = arith.constant 2.500000e-01 : f32
    %354 = vector.broadcast %cst_116 : f32 to vector<8x8xf32>
    %355 = arith.mulf %353, %354 : vector<8x8xf32>
    %356 = vector.broadcast %5 : vector<1x8xf32> to vector<8x8xf32>
    %357 = arith.addf %355, %356 : vector<8x8xf32>
    %cst_117 = arith.constant dense<0xFF800000> : vector<8xf32>
    %358 = vector.multi_reduction <maximumf>, %357, %cst_117 [1] : vector<8x8xf32> to vector<8xf32>
    %359 = vector.shape_cast %358 : vector<8xf32> to vector<8x1xf32>
    %360 = vector.broadcast %359 : vector<8x1xf32> to vector<8x8xf32>
    %361 = arith.subf %357, %360 : vector<8x8xf32>
    %362 = math.exp %361 : vector<8x8xf32>
    %cst_118 = arith.constant dense<0.000000e+00> : vector<8xf32>
    %363 = vector.multi_reduction <add>, %362, %cst_118 [1] : vector<8x8xf32> to vector<8xf32>
    %364 = vector.shape_cast %363 : vector<8xf32> to vector<8x1xf32>
    %365 = tpu.reciprocal %364 {approx = true} : vector<8x1xf32> -> vector<8x1xf32>
    %366 = vector.broadcast %365 : vector<8x1xf32> to vector<8x8xf32>
    %367 = arith.mulf %362, %366 : vector<8x8xf32>
    %368 = arith.truncf %367 : vector<8x8xf32> to vector<8x8xbf16>
    %cst_119 = arith.constant dense<0.000000e+00> : vector<8x16xf32>
    %369 = tpu.matmul %368, %352, %cst_119 {dimension_numbers = #tpu.dot_dimension_numbers<[1], [0], [0], [1], [0, 0, 1, 1], [], []>} : vector<8x8xbf16>, vector<8x16xbf16>, vector<8x16xf32> -> vector<8x16xf32>
    %c0_120 = arith.constant 0 : index
    %c32_121 = arith.constant 32 : index
    %370 = vector.load %arg11[%c0_120, %c32_121] : memref<8x128xf32, #tpu.memory_space<vmem>>, vector<8x16xf32>
    tpu.vector_store %arg11[%c0_120, %c32_121], %369 {strides = array<i32>} : memref<8x128xf32, #tpu.memory_space<vmem>>, vector<8x16xf32>,
    %371 = vector.extract_strided_slice %298 {offsets = [0, 48], sizes = [8, 16], strides = [1, 1]} : vector<8x384xf32> to vector<8x16xf32>
    %372 = arith.truncf %371 : vector<8x16xf32> to vector<8x16xbf16>
    %373 = vector.extract_strided_slice %298 {offsets = [0, 176], sizes = [8, 16], strides = [1, 1]} : vector<8x384xf32> to vector<8x16xf32>
    %374 = arith.truncf %373 : vector<8x16xf32> to vector<8x16xbf16>
    %375 = vector.extract_strided_slice %298 {offsets = [0, 304], sizes = [8, 16], strides = [1, 1]} : vector<8x384xf32> to vector<8x16xf32>
    %376 = arith.truncf %375 : vector<8x16xf32> to vector<8x16xbf16>
    %cst_122 = arith.constant dense<0.000000e+00> : vector<8x8xf32>
    %377 = tpu.matmul %372, %374, %cst_122 {dimension_numbers = #tpu.dot_dimension_numbers<[1], [1], [0], [0], [0, 0, 1, 0], [], []>} : vector<8x16xbf16>, vector<8x16xbf16>, vector<8x8xf32> -> vector<8x8xf32>
    %cst_123 = arith.constant 2.500000e-01 : f32
    %378 = vector.broadcast %cst_123 : f32 to vector<8x8xf32>
    %379 = arith.mulf %377, %378 : vector<8x8xf32>
    %380 = vector.broadcast %5 : vector<1x8xf32> to vector<8x8xf32>
    %381 = arith.addf %379, %380 : vector<8x8xf32>
    %cst_124 = arith.constant dense<0xFF800000> : vector<8xf32>
    %382 = vector.multi_reduction <maximumf>, %381, %cst_124 [1] : vector<8x8xf32> to vector<8xf32>
    %383 = vector.shape_cast %382 : vector<8xf32> to vector<8x1xf32>
    %384 = vector.broadcast %383 : vector<8x1xf32> to vector<8x8xf32>
    %385 = arith.subf %381, %384 : vector<8x8xf32>
    %386 = math.exp %385 : vector<8x8xf32>
    %cst_125 = arith.constant dense<0.000000e+00> : vector<8xf32>
    %387 = vector.multi_reduction <add>, %386, %cst_125 [1] : vector<8x8xf32> to vector<8xf32>
    %388 = vector.shape_cast %387 : vector<8xf32> to vector<8x1xf32>
    %389 = tpu.reciprocal %388 {approx = true} : vector<8x1xf32> -> vector<8x1xf32>
    %390 = vector.broadcast %389 : vector<8x1xf32> to vector<8x8xf32>
    %391 = arith.mulf %386, %390 : vector<8x8xf32>
    %392 = arith.truncf %391 : vector<8x8xf32> to vector<8x8xbf16>
    %cst_126 = arith.constant dense<0.000000e+00> : vector<8x16xf32>
    %393 = tpu.matmul %392, %376, %cst_126 {dimension_numbers = #tpu.dot_dimension_numbers<[1], [0], [0], [1], [0, 0, 1, 1], [], []>} : vector<8x8xbf16>, vector<8x16xbf16>, vector<8x16xf32> -> vector<8x16xf32>
    %c0_127 = arith.constant 0 : index
    %c48_128 = arith.constant 48 : index
    %394 = vector.load %arg11[%c0_127, %c48_128] : memref<8x128xf32, #tpu.memory_space<vmem>>, vector<8x16xf32>
    tpu.vector_store %arg11[%c0_127, %c48_128], %393 {strides = array<i32>} : memref<8x128xf32, #tpu.memory_space<vmem>>, vector<8x16xf32>,
    %395 = vector.extract_strided_slice %298 {offsets = [0, 64], sizes = [8, 16], strides = [1, 1]} : vector<8x384xf32> to vector<8x16xf32>
    %396 = arith.truncf %395 : vector<8x16xf32> to vector<8x16xbf16>
    %397 = vector.extract_strided_slice %298 {offsets = [0, 192], sizes = [8, 16], strides = [1, 1]} : vector<8x384xf32> to vector<8x16xf32>
    %398 = arith.truncf %397 : vector<8x16xf32> to vector<8x16xbf16>
    %399 = vector.extract_strided_slice %298 {offsets = [0, 320], sizes = [8, 16], strides = [1, 1]} : vector<8x384xf32> to vector<8x16xf32>
    %400 = arith.truncf %399 : vector<8x16xf32> to vector<8x16xbf16>
    %cst_129 = arith.constant dense<0.000000e+00> : vector<8x8xf32>
    %401 = tpu.matmul %396, %398, %cst_129 {dimension_numbers = #tpu.dot_dimension_numbers<[1], [1], [0], [0], [0, 0, 1, 0], [], []>} : vector<8x16xbf16>, vector<8x16xbf16>, vector<8x8xf32> -> vector<8x8xf32>
    %cst_130 = arith.constant 2.500000e-01 : f32
    %402 = vector.broadcast %cst_130 : f32 to vector<8x8xf32>
    %403 = arith.mulf %401, %402 : vector<8x8xf32>
    %404 = vector.broadcast %5 : vector<1x8xf32> to vector<8x8xf32>
    %405 = arith.addf %403, %404 : vector<8x8xf32>
    %cst_131 = arith.constant dense<0xFF800000> : vector<8xf32>
    %406 = vector.multi_reduction <maximumf>, %405, %cst_131 [1] : vector<8x8xf32> to vector<8xf32>
    %407 = vector.shape_cast %406 : vector<8xf32> to vector<8x1xf32>
    %408 = vector.broadcast %407 : vector<8x1xf32> to vector<8x8xf32>
    %409 = arith.subf %405, %408 : vector<8x8xf32>
    %410 = math.exp %409 : vector<8x8xf32>
    %cst_132 = arith.constant dense<0.000000e+00> : vector<8xf32>
    %411 = vector.multi_reduction <add>, %410, %cst_132 [1] : vector<8x8xf32> to vector<8xf32>
    %412 = vector.shape_cast %411 : vector<8xf32> to vector<8x1xf32>
    %413 = tpu.reciprocal %412 {approx = true} : vector<8x1xf32> -> vector<8x1xf32>
    %414 = vector.broadcast %413 : vector<8x1xf32> to vector<8x8xf32>
    %415 = arith.mulf %410, %414 : vector<8x8xf32>
    %416 = arith.truncf %415 : vector<8x8xf32> to vector<8x8xbf16>
    %cst_133 = arith.constant dense<0.000000e+00> : vector<8x16xf32>
    %417 = tpu.matmul %416, %400, %cst_133 {dimension_numbers = #tpu.dot_dimension_numbers<[1], [0], [0], [1], [0, 0, 1, 1], [], []>} : vector<8x8xbf16>, vector<8x16xbf16>, vector<8x16xf32> -> vector<8x16xf32>
    %c0_134 = arith.constant 0 : index
    %c64_135 = arith.constant 64 : index
    %418 = vector.load %arg11[%c0_134, %c64_135] : memref<8x128xf32, #tpu.memory_space<vmem>>, vector<8x16xf32>
    tpu.vector_store %arg11[%c0_134, %c64_135], %417 {strides = array<i32>} : memref<8x128xf32, #tpu.memory_space<vmem>>, vector<8x16xf32>,
    %419 = vector.extract_strided_slice %298 {offsets = [0, 80], sizes = [8, 16], strides = [1, 1]} : vector<8x384xf32> to vector<8x16xf32>
    %420 = arith.truncf %419 : vector<8x16xf32> to vector<8x16xbf16>
    %421 = vector.extract_strided_slice %298 {offsets = [0, 208], sizes = [8, 16], strides = [1, 1]} : vector<8x384xf32> to vector<8x16xf32>
    %422 = arith.truncf %421 : vector<8x16xf32> to vector<8x16xbf16>
    %423 = vector.extract_strided_slice %298 {offsets = [0, 336], sizes = [8, 16], strides = [1, 1]} : vector<8x384xf32> to vector<8x16xf32>
    %424 = arith.truncf %423 : vector<8x16xf32> to vector<8x16xbf16>
    %cst_136 = arith.constant dense<0.000000e+00> : vector<8x8xf32>
    %425 = tpu.matmul %420, %422, %cst_136 {dimension_numbers = #tpu.dot_dimension_numbers<[1], [1], [0], [0], [0, 0, 1, 0], [], []>} : vector<8x16xbf16>, vector<8x16xbf16>, vector<8x8xf32> -> vector<8x8xf32>
    %cst_137 = arith.constant 2.500000e-01 : f32
    %426 = vector.broadcast %cst_137 : f32 to vector<8x8xf32>
    %427 = arith.mulf %425, %426 : vector<8x8xf32>
    %428 = vector.broadcast %5 : vector<1x8xf32> to vector<8x8xf32>
    %429 = arith.addf %427, %428 : vector<8x8xf32>
    %cst_138 = arith.constant dense<0xFF800000> : vector<8xf32>
    %430 = vector.multi_reduction <maximumf>, %429, %cst_138 [1] : vector<8x8xf32> to vector<8xf32>
    %431 = vector.shape_cast %430 : vector<8xf32> to vector<8x1xf32>
    %432 = vector.broadcast %431 : vector<8x1xf32> to vector<8x8xf32>
    %433 = arith.subf %429, %432 : vector<8x8xf32>
    %434 = math.exp %433 : vector<8x8xf32>
    %cst_139 = arith.constant dense<0.000000e+00> : vector<8xf32>
    %435 = vector.multi_reduction <add>, %434, %cst_139 [1] : vector<8x8xf32> to vector<8xf32>
    %436 = vector.shape_cast %435 : vector<8xf32> to vector<8x1xf32>
    %437 = tpu.reciprocal %436 {approx = true} : vector<8x1xf32> -> vector<8x1xf32>
    %438 = vector.broadcast %437 : vector<8x1xf32> to vector<8x8xf32>
    %439 = arith.mulf %434, %438 : vector<8x8xf32>
    %440 = arith.truncf %439 : vector<8x8xf32> to vector<8x8xbf16>
    %cst_140 = arith.constant dense<0.000000e+00> : vector<8x16xf32>
    %441 = tpu.matmul %440, %424, %cst_140 {dimension_numbers = #tpu.dot_dimension_numbers<[1], [0], [0], [1], [0, 0, 1, 1], [], []>} : vector<8x8xbf16>, vector<8x16xbf16>, vector<8x16xf32> -> vector<8x16xf32>
    %c0_141 = arith.constant 0 : index
    %c80_142 = arith.constant 80 : index
    %442 = vector.load %arg11[%c0_141, %c80_142] : memref<8x128xf32, #tpu.memory_space<vmem>>, vector<8x16xf32>
    tpu.vector_store %arg11[%c0_141, %c80_142], %441 {strides = array<i32>} : memref<8x128xf32, #tpu.memory_space<vmem>>, vector<8x16xf32>,
    %443 = vector.extract_strided_slice %298 {offsets = [0, 96], sizes = [8, 16], strides = [1, 1]} : vector<8x384xf32> to vector<8x16xf32>
    %444 = arith.truncf %443 : vector<8x16xf32> to vector<8x16xbf16>
    %445 = vector.extract_strided_slice %298 {offsets = [0, 224], sizes = [8, 16], strides = [1, 1]} : vector<8x384xf32> to vector<8x16xf32>
    %446 = arith.truncf %445 : vector<8x16xf32> to vector<8x16xbf16>
    %447 = vector.extract_strided_slice %298 {offsets = [0, 352], sizes = [8, 16], strides = [1, 1]} : vector<8x384xf32> to vector<8x16xf32>
    %448 = arith.truncf %447 : vector<8x16xf32> to vector<8x16xbf16>
    %cst_143 = arith.constant dense<0.000000e+00> : vector<8x8xf32>
    %449 = tpu.matmul %444, %446, %cst_143 {dimension_numbers = #tpu.dot_dimension_numbers<[1], [1], [0], [0], [0, 0, 1, 0], [], []>} : vector<8x16xbf16>, vector<8x16xbf16>, vector<8x8xf32> -> vector<8x8xf32>
    %cst_144 = arith.constant 2.500000e-01 : f32
    %450 = vector.broadcast %cst_144 : f32 to vector<8x8xf32>
    %451 = arith.mulf %449, %450 : vector<8x8xf32>
    %452 = vector.broadcast %5 : vector<1x8xf32> to vector<8x8xf32>
    %453 = arith.addf %451, %452 : vector<8x8xf32>
    %cst_145 = arith.constant dense<0xFF800000> : vector<8xf32>
    %454 = vector.multi_reduction <maximumf>, %453, %cst_145 [1] : vector<8x8xf32> to vector<8xf32>
    %455 = vector.shape_cast %454 : vector<8xf32> to vector<8x1xf32>
    %456 = vector.broadcast %455 : vector<8x1xf32> to vector<8x8xf32>
    %457 = arith.subf %453, %456 : vector<8x8xf32>
    %458 = math.exp %457 : vector<8x8xf32>
    %cst_146 = arith.constant dense<0.000000e+00> : vector<8xf32>
    %459 = vector.multi_reduction <add>, %458, %cst_146 [1] : vector<8x8xf32> to vector<8xf32>
    %460 = vector.shape_cast %459 : vector<8xf32> to vector<8x1xf32>
    %461 = tpu.reciprocal %460 {approx = true} : vector<8x1xf32> -> vector<8x1xf32>
    %462 = vector.broadcast %461 : vector<8x1xf32> to vector<8x8xf32>
    %463 = arith.mulf %458, %462 : vector<8x8xf32>
    %464 = arith.truncf %463 : vector<8x8xf32> to vector<8x8xbf16>
    %cst_147 = arith.constant dense<0.000000e+00> : vector<8x16xf32>
    %465 = tpu.matmul %464, %448, %cst_147 {dimension_numbers = #tpu.dot_dimension_numbers<[1], [0], [0], [1], [0, 0, 1, 1], [], []>} : vector<8x8xbf16>, vector<8x16xbf16>, vector<8x16xf32> -> vector<8x16xf32>
    %c0_148 = arith.constant 0 : index
    %c96_149 = arith.constant 96 : index
    %466 = vector.load %arg11[%c0_148, %c96_149] : memref<8x128xf32, #tpu.memory_space<vmem>>, vector<8x16xf32>
    tpu.vector_store %arg11[%c0_148, %c96_149], %465 {strides = array<i32>} : memref<8x128xf32, #tpu.memory_space<vmem>>, vector<8x16xf32>,
    %467 = vector.extract_strided_slice %298 {offsets = [0, 112], sizes = [8, 16], strides = [1, 1]} : vector<8x384xf32> to vector<8x16xf32>
    %468 = arith.truncf %467 : vector<8x16xf32> to vector<8x16xbf16>
    %469 = vector.extract_strided_slice %298 {offsets = [0, 240], sizes = [8, 16], strides = [1, 1]} : vector<8x384xf32> to vector<8x16xf32>
    %470 = arith.truncf %469 : vector<8x16xf32> to vector<8x16xbf16>
    %471 = vector.extract_strided_slice %298 {offsets = [0, 368], sizes = [8, 16], strides = [1, 1]} : vector<8x384xf32> to vector<8x16xf32>
    %472 = arith.truncf %471 : vector<8x16xf32> to vector<8x16xbf16>
    %cst_150 = arith.constant dense<0.000000e+00> : vector<8x8xf32>
    %473 = tpu.matmul %468, %470, %cst_150 {dimension_numbers = #tpu.dot_dimension_numbers<[1], [1], [0], [0], [0, 0, 1, 0], [], []>} : vector<8x16xbf16>, vector<8x16xbf16>, vector<8x8xf32> -> vector<8x8xf32>
    %cst_151 = arith.constant 2.500000e-01 : f32
    %474 = vector.broadcast %cst_151 : f32 to vector<8x8xf32>
    %475 = arith.mulf %473, %474 : vector<8x8xf32>
    %476 = vector.broadcast %5 : vector<1x8xf32> to vector<8x8xf32>
    %477 = arith.addf %475, %476 : vector<8x8xf32>
    %cst_152 = arith.constant dense<0xFF800000> : vector<8xf32>
    %478 = vector.multi_reduction <maximumf>, %477, %cst_152 [1] : vector<8x8xf32> to vector<8xf32>
    %479 = vector.shape_cast %478 : vector<8xf32> to vector<8x1xf32>
    %480 = vector.broadcast %479 : vector<8x1xf32> to vector<8x8xf32>
    %481 = arith.subf %477, %480 : vector<8x8xf32>
    %482 = math.exp %481 : vector<8x8xf32>
    %cst_153 = arith.constant dense<0.000000e+00> : vector<8xf32>
    %483 = vector.multi_reduction <add>, %482, %cst_153 [1] : vector<8x8xf32> to vector<8xf32>
    %484 = vector.shape_cast %483 : vector<8xf32> to vector<8x1xf32>
    %485 = tpu.reciprocal %484 {approx = true} : vector<8x1xf32> -> vector<8x1xf32>
    %486 = vector.broadcast %485 : vector<8x1xf32> to vector<8x8xf32>
    %487 = arith.mulf %482, %486 : vector<8x8xf32>
    %488 = arith.truncf %487 : vector<8x8xf32> to vector<8x8xbf16>
    %cst_154 = arith.constant dense<0.000000e+00> : vector<8x16xf32>
    %489 = tpu.matmul %488, %472, %cst_154 {dimension_numbers = #tpu.dot_dimension_numbers<[1], [0], [0], [1], [0, 0, 1, 1], [], []>} : vector<8x8xbf16>, vector<8x16xbf16>, vector<8x16xf32> -> vector<8x16xf32>
    %c0_155 = arith.constant 0 : index
    %c112_156 = arith.constant 112 : index
    %490 = vector.load %arg11[%c0_155, %c112_156] : memref<8x128xf32, #tpu.memory_space<vmem>>, vector<8x16xf32>
    tpu.vector_store %arg11[%c0_155, %c112_156], %489 {strides = array<i32>} : memref<8x128xf32, #tpu.memory_space<vmem>>, vector<8x16xf32>,
    %c0_157 = arith.constant 0 : index
    %c0_158 = arith.constant 0 : index
    %491 = vector.load %arg11[%c0_157, %c0_158] : memref<8x128xf32, #tpu.memory_space<vmem>>, vector<8x128xf32>
    %492 = arith.truncf %491 : vector<8x128xf32> to vector<8x128xbf16>
    %c1_159 = arith.constant 1 : index
    %c0_160 = arith.constant 0 : index
    %c0_161 = arith.constant 0 : index
    %493 = vector.load %arg5[%c1_159, %c0_160, %c0_161] : memref<4x128x128xbf16, #tpu.memory_space<vmem>>, vector<1x128x128xbf16>
    %494 = vector.shape_cast %493 : vector<1x128x128xbf16> to vector<128x128xbf16>
    %cst_162 = arith.constant dense<0.000000e+00> : vector<8x128xf32>
    %495 = tpu.matmul %492, %494, %cst_162 {dimension_numbers = #tpu.dot_dimension_numbers<[1], [0], [0], [1], [0, 0, 1, 1], [], []>} : vector<8x128xbf16>, vector<128x128xbf16>, vector<8x128xf32> -> vector<8x128xf32>
    %496 = vector.broadcast %285 : vector<1x128xf32> to vector<8x128xf32>
    %497 = arith.addf %495, %496 : vector<8x128xf32>
    %498 = arith.addf %282, %497 : vector<8x128xf32>
    %cst_163 = arith.constant dense<0.000000e+00> : vector<8xf32>
    %499 = vector.multi_reduction <add>, %498, %cst_163 [1] : vector<8x128xf32> to vector<8xf32>
    %500 = vector.shape_cast %499 : vector<8xf32> to vector<8x1xf32>
    %cst_164 = arith.constant 1.280000e+02 : f32
    %501 = vector.broadcast %cst_164 : f32 to vector<8x1xf32>
    %502 = arith.divf %500, %501 : vector<8x1xf32>
    %503 = vector.broadcast %502 : vector<8x1xf32> to vector<8x128xf32>
    %504 = arith.subf %498, %503 : vector<8x128xf32>
    %505 = arith.mulf %504, %504 : vector<8x128xf32>
    %cst_165 = arith.constant dense<0.000000e+00> : vector<8xf32>
    %506 = vector.multi_reduction <add>, %505, %cst_165 [1] : vector<8x128xf32> to vector<8xf32>
    %507 = vector.shape_cast %506 : vector<8xf32> to vector<8x1xf32>
    %cst_166 = arith.constant 1.280000e+02 : f32
    %508 = vector.broadcast %cst_166 : f32 to vector<8x1xf32>
    %509 = arith.divf %507, %508 : vector<8x1xf32>
    %510 = vector.broadcast %502 : vector<8x1xf32> to vector<8x128xf32>
    %511 = arith.subf %498, %510 : vector<8x128xf32>
    %cst_167 = arith.constant 9.99999997E-7 : f32
    %512 = vector.broadcast %cst_167 : f32 to vector<8x1xf32>
    %513 = arith.addf %509, %512 : vector<8x1xf32>
    %514 = math.rsqrt %513 : vector<8x1xf32>
    %515 = vector.broadcast %514 : vector<8x1xf32> to vector<8x128xf32>
    %516 = arith.mulf %511, %515 : vector<8x128xf32>
    %517 = vector.broadcast %286 : vector<1x128xf32> to vector<8x128xf32>
    %518 = arith.mulf %516, %517 : vector<8x128xf32>
    %519 = vector.broadcast %287 : vector<1x128xf32> to vector<8x128xf32>
    %520 = arith.addf %518, %519 : vector<8x128xf32>
    %521 = arith.truncf %520 : vector<8x128xf32> to vector<8x128xbf16>
    %c1_168 = arith.constant 1 : index
    %c0_169 = arith.constant 0 : index
    %c0_170 = arith.constant 0 : index
    %522 = vector.load %arg6[%c1_168, %c0_169, %c0_170] : memref<4x128x512xbf16, #tpu.memory_space<vmem>>, vector<1x128x512xbf16>
    %523 = vector.shape_cast %522 : vector<1x128x512xbf16> to vector<128x512xbf16>
    %cst_171 = arith.constant dense<0.000000e+00> : vector<8x512xf32>
    %524 = tpu.matmul %521, %523, %cst_171 {dimension_numbers = #tpu.dot_dimension_numbers<[1], [0], [0], [1], [0, 0, 1, 1], [], []>} : vector<8x128xbf16>, vector<128x512xbf16>, vector<8x512xf32> -> vector<8x512xf32>
    %c1_172 = arith.constant 1 : index
    %c0_173 = arith.constant 0 : index
    %c0_174 = arith.constant 0 : index
    %525 = vector.load %arg7[%c1_172, %c0_173, %c0_174] : memref<4x1x512xf32, #tpu.memory_space<vmem>>, vector<1x1x512xf32>
    %526 = vector.shape_cast %525 : vector<1x1x512xf32> to vector<1x512xf32>
    %527 = vector.broadcast %526 : vector<1x512xf32> to vector<8x512xf32>
    %528 = arith.addf %524, %527 : vector<8x512xf32>
    %cst_175 = arith.constant 0.000000e+00 : f32
    %529 = vector.broadcast %cst_175 : f32 to vector<8x512xf32>
    %530 = arith.maximumf %528, %529 : vector<8x512xf32>
    %531 = arith.truncf %530 : vector<8x512xf32> to vector<8x512xbf16>
    %c1_176 = arith.constant 1 : index
    %c0_177 = arith.constant 0 : index
    %c0_178 = arith.constant 0 : index
    %532 = vector.load %arg8[%c1_176, %c0_177, %c0_178] : memref<4x512x128xbf16, #tpu.memory_space<vmem>>, vector<1x512x128xbf16>
    %533 = vector.shape_cast %532 : vector<1x512x128xbf16> to vector<512x128xbf16>
    %cst_179 = arith.constant dense<0.000000e+00> : vector<8x128xf32>
    %534 = tpu.matmul %531, %533, %cst_179 {dimension_numbers = #tpu.dot_dimension_numbers<[1], [0], [0], [1], [0, 0, 1, 1], [], []>} : vector<8x512xbf16>, vector<512x128xbf16>, vector<8x128xf32> -> vector<8x128xf32>
    %535 = vector.broadcast %290 : vector<1x128xf32> to vector<8x128xf32>
    %536 = arith.addf %534, %535 : vector<8x128xf32>
    %537 = arith.addf %520, %536 : vector<8x128xf32>
    %cst_180 = arith.constant dense<0.000000e+00> : vector<8xf32>
    %538 = vector.multi_reduction <add>, %537, %cst_180 [1] : vector<8x128xf32> to vector<8xf32>
    %539 = vector.shape_cast %538 : vector<8xf32> to vector<8x1xf32>
    %cst_181 = arith.constant 1.280000e+02 : f32
    %540 = vector.broadcast %cst_181 : f32 to vector<8x1xf32>
    %541 = arith.divf %539, %540 : vector<8x1xf32>
    %542 = vector.broadcast %541 : vector<8x1xf32> to vector<8x128xf32>
    %543 = arith.subf %537, %542 : vector<8x128xf32>
    %544 = arith.mulf %543, %543 : vector<8x128xf32>
    %cst_182 = arith.constant dense<0.000000e+00> : vector<8xf32>
    %545 = vector.multi_reduction <add>, %544, %cst_182 [1] : vector<8x128xf32> to vector<8xf32>
    %546 = vector.shape_cast %545 : vector<8xf32> to vector<8x1xf32>
    %cst_183 = arith.constant 1.280000e+02 : f32
    %547 = vector.broadcast %cst_183 : f32 to vector<8x1xf32>
    %548 = arith.divf %546, %547 : vector<8x1xf32>
    %549 = vector.broadcast %541 : vector<8x1xf32> to vector<8x128xf32>
    %550 = arith.subf %537, %549 : vector<8x128xf32>
    %cst_184 = arith.constant 9.99999997E-7 : f32
    %551 = vector.broadcast %cst_184 : f32 to vector<8x1xf32>
    %552 = arith.addf %548, %551 : vector<8x1xf32>
    %553 = math.rsqrt %552 : vector<8x1xf32>
    %554 = vector.broadcast %553 : vector<8x1xf32> to vector<8x128xf32>
    %555 = arith.mulf %550, %554 : vector<8x128xf32>
    %556 = vector.broadcast %288 : vector<1x128xf32> to vector<8x128xf32>
    %557 = arith.mulf %555, %556 : vector<8x128xf32>
    %558 = vector.broadcast %289 : vector<1x128xf32> to vector<8x128xf32>
    %559 = arith.addf %557, %558 : vector<8x128xf32>
    %c2 = arith.constant 2 : index
    %c0_185 = arith.constant 0 : index
    %c0_186 = arith.constant 0 : index
    %560 = vector.load %arg9[%c2, %c0_185, %c0_186] : memref<4x8x128xf32, #tpu.memory_space<vmem>>, vector<1x8x128xf32>
    %561 = vector.shape_cast %560 : vector<1x8x128xf32> to vector<8x128xf32>
    %562 = vector.extract_strided_slice %561 {offsets = [0, 0], sizes = [1, 128], strides = [1, 1]} : vector<8x128xf32> to vector<1x128xf32>
    %563 = vector.extract_strided_slice %561 {offsets = [1, 0], sizes = [1, 128], strides = [1, 1]} : vector<8x128xf32> to vector<1x128xf32>
    %564 = vector.extract_strided_slice %561 {offsets = [2, 0], sizes = [1, 128], strides = [1, 1]} : vector<8x128xf32> to vector<1x128xf32>
    %565 = vector.extract_strided_slice %561 {offsets = [3, 0], sizes = [1, 128], strides = [1, 1]} : vector<8x128xf32> to vector<1x128xf32>
    %566 = vector.extract_strided_slice %561 {offsets = [4, 0], sizes = [1, 128], strides = [1, 1]} : vector<8x128xf32> to vector<1x128xf32>
    %567 = vector.extract_strided_slice %561 {offsets = [5, 0], sizes = [1, 128], strides = [1, 1]} : vector<8x128xf32> to vector<1x128xf32>
    %568 = arith.truncf %559 : vector<8x128xf32> to vector<8x128xbf16>
    %c2_187 = arith.constant 2 : index
    %c0_188 = arith.constant 0 : index
    %c0_189 = arith.constant 0 : index
    %569 = vector.load %arg3[%c2_187, %c0_188, %c0_189] : memref<4x128x384xbf16, #tpu.memory_space<vmem>>, vector<1x128x384xbf16>
    %570 = vector.shape_cast %569 : vector<1x128x384xbf16> to vector<128x384xbf16>
    %cst_190 = arith.constant dense<0.000000e+00> : vector<8x384xf32>
    %571 = tpu.matmul %568, %570, %cst_190 {dimension_numbers = #tpu.dot_dimension_numbers<[1], [0], [0], [1], [0, 0, 1, 1], [], []>} : vector<8x128xbf16>, vector<128x384xbf16>, vector<8x384xf32> -> vector<8x384xf32>
    %c2_191 = arith.constant 2 : index
    %c0_192 = arith.constant 0 : index
    %c0_193 = arith.constant 0 : index
    %572 = vector.load %arg4[%c2_191, %c0_192, %c0_193] : memref<4x1x384xf32, #tpu.memory_space<vmem>>, vector<1x1x384xf32>
    %573 = vector.shape_cast %572 : vector<1x1x384xf32> to vector<1x384xf32>
    %574 = vector.broadcast %573 : vector<1x384xf32> to vector<8x384xf32>
    %575 = arith.addf %571, %574 : vector<8x384xf32>
    %576 = vector.extract_strided_slice %575 {offsets = [0, 0], sizes = [8, 16], strides = [1, 1]} : vector<8x384xf32> to vector<8x16xf32>
    %577 = arith.truncf %576 : vector<8x16xf32> to vector<8x16xbf16>
    %578 = vector.extract_strided_slice %575 {offsets = [0, 128], sizes = [8, 16], strides = [1, 1]} : vector<8x384xf32> to vector<8x16xf32>
    %579 = arith.truncf %578 : vector<8x16xf32> to vector<8x16xbf16>
    %580 = vector.extract_strided_slice %575 {offsets = [0, 256], sizes = [8, 16], strides = [1, 1]} : vector<8x384xf32> to vector<8x16xf32>
    %581 = arith.truncf %580 : vector<8x16xf32> to vector<8x16xbf16>
    %cst_194 = arith.constant dense<0.000000e+00> : vector<8x8xf32>
    %582 = tpu.matmul %577, %579, %cst_194 {dimension_numbers = #tpu.dot_dimension_numbers<[1], [1], [0], [0], [0, 0, 1, 0], [], []>} : vector<8x16xbf16>, vector<8x16xbf16>, vector<8x8xf32> -> vector<8x8xf32>
    %cst_195 = arith.constant 2.500000e-01 : f32
    %583 = vector.broadcast %cst_195 : f32 to vector<8x8xf32>
    %584 = arith.mulf %582, %583 : vector<8x8xf32>
    %585 = vector.broadcast %5 : vector<1x8xf32> to vector<8x8xf32>
    %586 = arith.addf %584, %585 : vector<8x8xf32>
    %cst_196 = arith.constant dense<0xFF800000> : vector<8xf32>
    %587 = vector.multi_reduction <maximumf>, %586, %cst_196 [1] : vector<8x8xf32> to vector<8xf32>
    %588 = vector.shape_cast %587 : vector<8xf32> to vector<8x1xf32>
    %589 = vector.broadcast %588 : vector<8x1xf32> to vector<8x8xf32>
    %590 = arith.subf %586, %589 : vector<8x8xf32>
    %591 = math.exp %590 : vector<8x8xf32>
    %cst_197 = arith.constant dense<0.000000e+00> : vector<8xf32>
    %592 = vector.multi_reduction <add>, %591, %cst_197 [1] : vector<8x8xf32> to vector<8xf32>
    %593 = vector.shape_cast %592 : vector<8xf32> to vector<8x1xf32>
    %594 = tpu.reciprocal %593 {approx = true} : vector<8x1xf32> -> vector<8x1xf32>
    %595 = vector.broadcast %594 : vector<8x1xf32> to vector<8x8xf32>
    %596 = arith.mulf %591, %595 : vector<8x8xf32>
    %597 = arith.truncf %596 : vector<8x8xf32> to vector<8x8xbf16>
    %cst_198 = arith.constant dense<0.000000e+00> : vector<8x16xf32>
    %598 = tpu.matmul %597, %581, %cst_198 {dimension_numbers = #tpu.dot_dimension_numbers<[1], [0], [0], [1], [0, 0, 1, 1], [], []>} : vector<8x8xbf16>, vector<8x16xbf16>, vector<8x16xf32> -> vector<8x16xf32>
    %c0_199 = arith.constant 0 : index
    %c0_200 = arith.constant 0 : index
    %599 = vector.load %arg11[%c0_199, %c0_200] : memref<8x128xf32, #tpu.memory_space<vmem>>, vector<8x16xf32>
    tpu.vector_store %arg11[%c0_199, %c0_200], %598 {strides = array<i32>} : memref<8x128xf32, #tpu.memory_space<vmem>>, vector<8x16xf32>,
    %600 = vector.extract_strided_slice %575 {offsets = [0, 16], sizes = [8, 16], strides = [1, 1]} : vector<8x384xf32> to vector<8x16xf32>
    %601 = arith.truncf %600 : vector<8x16xf32> to vector<8x16xbf16>
    %602 = vector.extract_strided_slice %575 {offsets = [0, 144], sizes = [8, 16], strides = [1, 1]} : vector<8x384xf32> to vector<8x16xf32>
    %603 = arith.truncf %602 : vector<8x16xf32> to vector<8x16xbf16>
    %604 = vector.extract_strided_slice %575 {offsets = [0, 272], sizes = [8, 16], strides = [1, 1]} : vector<8x384xf32> to vector<8x16xf32>
    %605 = arith.truncf %604 : vector<8x16xf32> to vector<8x16xbf16>
    %cst_201 = arith.constant dense<0.000000e+00> : vector<8x8xf32>
    %606 = tpu.matmul %601, %603, %cst_201 {dimension_numbers = #tpu.dot_dimension_numbers<[1], [1], [0], [0], [0, 0, 1, 0], [], []>} : vector<8x16xbf16>, vector<8x16xbf16>, vector<8x8xf32> -> vector<8x8xf32>
    %cst_202 = arith.constant 2.500000e-01 : f32
    %607 = vector.broadcast %cst_202 : f32 to vector<8x8xf32>
    %608 = arith.mulf %606, %607 : vector<8x8xf32>
    %609 = vector.broadcast %5 : vector<1x8xf32> to vector<8x8xf32>
    %610 = arith.addf %608, %609 : vector<8x8xf32>
    %cst_203 = arith.constant dense<0xFF800000> : vector<8xf32>
    %611 = vector.multi_reduction <maximumf>, %610, %cst_203 [1] : vector<8x8xf32> to vector<8xf32>
    %612 = vector.shape_cast %611 : vector<8xf32> to vector<8x1xf32>
    %613 = vector.broadcast %612 : vector<8x1xf32> to vector<8x8xf32>
    %614 = arith.subf %610, %613 : vector<8x8xf32>
    %615 = math.exp %614 : vector<8x8xf32>
    %cst_204 = arith.constant dense<0.000000e+00> : vector<8xf32>
    %616 = vector.multi_reduction <add>, %615, %cst_204 [1] : vector<8x8xf32> to vector<8xf32>
    %617 = vector.shape_cast %616 : vector<8xf32> to vector<8x1xf32>
    %618 = tpu.reciprocal %617 {approx = true} : vector<8x1xf32> -> vector<8x1xf32>
    %619 = vector.broadcast %618 : vector<8x1xf32> to vector<8x8xf32>
    %620 = arith.mulf %615, %619 : vector<8x8xf32>
    %621 = arith.truncf %620 : vector<8x8xf32> to vector<8x8xbf16>
    %cst_205 = arith.constant dense<0.000000e+00> : vector<8x16xf32>
    %622 = tpu.matmul %621, %605, %cst_205 {dimension_numbers = #tpu.dot_dimension_numbers<[1], [0], [0], [1], [0, 0, 1, 1], [], []>} : vector<8x8xbf16>, vector<8x16xbf16>, vector<8x16xf32> -> vector<8x16xf32>
    %c0_206 = arith.constant 0 : index
    %c16_207 = arith.constant 16 : index
    %623 = vector.load %arg11[%c0_206, %c16_207] : memref<8x128xf32, #tpu.memory_space<vmem>>, vector<8x16xf32>
    tpu.vector_store %arg11[%c0_206, %c16_207], %622 {strides = array<i32>} : memref<8x128xf32, #tpu.memory_space<vmem>>, vector<8x16xf32>,
    %624 = vector.extract_strided_slice %575 {offsets = [0, 32], sizes = [8, 16], strides = [1, 1]} : vector<8x384xf32> to vector<8x16xf32>
    %625 = arith.truncf %624 : vector<8x16xf32> to vector<8x16xbf16>
    %626 = vector.extract_strided_slice %575 {offsets = [0, 160], sizes = [8, 16], strides = [1, 1]} : vector<8x384xf32> to vector<8x16xf32>
    %627 = arith.truncf %626 : vector<8x16xf32> to vector<8x16xbf16>
    %628 = vector.extract_strided_slice %575 {offsets = [0, 288], sizes = [8, 16], strides = [1, 1]} : vector<8x384xf32> to vector<8x16xf32>
    %629 = arith.truncf %628 : vector<8x16xf32> to vector<8x16xbf16>
    %cst_208 = arith.constant dense<0.000000e+00> : vector<8x8xf32>
    %630 = tpu.matmul %625, %627, %cst_208 {dimension_numbers = #tpu.dot_dimension_numbers<[1], [1], [0], [0], [0, 0, 1, 0], [], []>} : vector<8x16xbf16>, vector<8x16xbf16>, vector<8x8xf32> -> vector<8x8xf32>
    %cst_209 = arith.constant 2.500000e-01 : f32
    %631 = vector.broadcast %cst_209 : f32 to vector<8x8xf32>
    %632 = arith.mulf %630, %631 : vector<8x8xf32>
    %633 = vector.broadcast %5 : vector<1x8xf32> to vector<8x8xf32>
    %634 = arith.addf %632, %633 : vector<8x8xf32>
    %cst_210 = arith.constant dense<0xFF800000> : vector<8xf32>
    %635 = vector.multi_reduction <maximumf>, %634, %cst_210 [1] : vector<8x8xf32> to vector<8xf32>
    %636 = vector.shape_cast %635 : vector<8xf32> to vector<8x1xf32>
    %637 = vector.broadcast %636 : vector<8x1xf32> to vector<8x8xf32>
    %638 = arith.subf %634, %637 : vector<8x8xf32>
    %639 = math.exp %638 : vector<8x8xf32>
    %cst_211 = arith.constant dense<0.000000e+00> : vector<8xf32>
    %640 = vector.multi_reduction <add>, %639, %cst_211 [1] : vector<8x8xf32> to vector<8xf32>
    %641 = vector.shape_cast %640 : vector<8xf32> to vector<8x1xf32>
    %642 = tpu.reciprocal %641 {approx = true} : vector<8x1xf32> -> vector<8x1xf32>
    %643 = vector.broadcast %642 : vector<8x1xf32> to vector<8x8xf32>
    %644 = arith.mulf %639, %643 : vector<8x8xf32>
    %645 = arith.truncf %644 : vector<8x8xf32> to vector<8x8xbf16>
    %cst_212 = arith.constant dense<0.000000e+00> : vector<8x16xf32>
    %646 = tpu.matmul %645, %629, %cst_212 {dimension_numbers = #tpu.dot_dimension_numbers<[1], [0], [0], [1], [0, 0, 1, 1], [], []>} : vector<8x8xbf16>, vector<8x16xbf16>, vector<8x16xf32> -> vector<8x16xf32>
    %c0_213 = arith.constant 0 : index
    %c32_214 = arith.constant 32 : index
    %647 = vector.load %arg11[%c0_213, %c32_214] : memref<8x128xf32, #tpu.memory_space<vmem>>, vector<8x16xf32>
    tpu.vector_store %arg11[%c0_213, %c32_214], %646 {strides = array<i32>} : memref<8x128xf32, #tpu.memory_space<vmem>>, vector<8x16xf32>,
    %648 = vector.extract_strided_slice %575 {offsets = [0, 48], sizes = [8, 16], strides = [1, 1]} : vector<8x384xf32> to vector<8x16xf32>
    %649 = arith.truncf %648 : vector<8x16xf32> to vector<8x16xbf16>
    %650 = vector.extract_strided_slice %575 {offsets = [0, 176], sizes = [8, 16], strides = [1, 1]} : vector<8x384xf32> to vector<8x16xf32>
    %651 = arith.truncf %650 : vector<8x16xf32> to vector<8x16xbf16>
    %652 = vector.extract_strided_slice %575 {offsets = [0, 304], sizes = [8, 16], strides = [1, 1]} : vector<8x384xf32> to vector<8x16xf32>
    %653 = arith.truncf %652 : vector<8x16xf32> to vector<8x16xbf16>
    %cst_215 = arith.constant dense<0.000000e+00> : vector<8x8xf32>
    %654 = tpu.matmul %649, %651, %cst_215 {dimension_numbers = #tpu.dot_dimension_numbers<[1], [1], [0], [0], [0, 0, 1, 0], [], []>} : vector<8x16xbf16>, vector<8x16xbf16>, vector<8x8xf32> -> vector<8x8xf32>
    %cst_216 = arith.constant 2.500000e-01 : f32
    %655 = vector.broadcast %cst_216 : f32 to vector<8x8xf32>
    %656 = arith.mulf %654, %655 : vector<8x8xf32>
    %657 = vector.broadcast %5 : vector<1x8xf32> to vector<8x8xf32>
    %658 = arith.addf %656, %657 : vector<8x8xf32>
    %cst_217 = arith.constant dense<0xFF800000> : vector<8xf32>
    %659 = vector.multi_reduction <maximumf>, %658, %cst_217 [1] : vector<8x8xf32> to vector<8xf32>
    %660 = vector.shape_cast %659 : vector<8xf32> to vector<8x1xf32>
    %661 = vector.broadcast %660 : vector<8x1xf32> to vector<8x8xf32>
    %662 = arith.subf %658, %661 : vector<8x8xf32>
    %663 = math.exp %662 : vector<8x8xf32>
    %cst_218 = arith.constant dense<0.000000e+00> : vector<8xf32>
    %664 = vector.multi_reduction <add>, %663, %cst_218 [1] : vector<8x8xf32> to vector<8xf32>
    %665 = vector.shape_cast %664 : vector<8xf32> to vector<8x1xf32>
    %666 = tpu.reciprocal %665 {approx = true} : vector<8x1xf32> -> vector<8x1xf32>
    %667 = vector.broadcast %666 : vector<8x1xf32> to vector<8x8xf32>
    %668 = arith.mulf %663, %667 : vector<8x8xf32>
    %669 = arith.truncf %668 : vector<8x8xf32> to vector<8x8xbf16>
    %cst_219 = arith.constant dense<0.000000e+00> : vector<8x16xf32>
    %670 = tpu.matmul %669, %653, %cst_219 {dimension_numbers = #tpu.dot_dimension_numbers<[1], [0], [0], [1], [0, 0, 1, 1], [], []>} : vector<8x8xbf16>, vector<8x16xbf16>, vector<8x16xf32> -> vector<8x16xf32>
    %c0_220 = arith.constant 0 : index
    %c48_221 = arith.constant 48 : index
    %671 = vector.load %arg11[%c0_220, %c48_221] : memref<8x128xf32, #tpu.memory_space<vmem>>, vector<8x16xf32>
    tpu.vector_store %arg11[%c0_220, %c48_221], %670 {strides = array<i32>} : memref<8x128xf32, #tpu.memory_space<vmem>>, vector<8x16xf32>,
    %672 = vector.extract_strided_slice %575 {offsets = [0, 64], sizes = [8, 16], strides = [1, 1]} : vector<8x384xf32> to vector<8x16xf32>
    %673 = arith.truncf %672 : vector<8x16xf32> to vector<8x16xbf16>
    %674 = vector.extract_strided_slice %575 {offsets = [0, 192], sizes = [8, 16], strides = [1, 1]} : vector<8x384xf32> to vector<8x16xf32>
    %675 = arith.truncf %674 : vector<8x16xf32> to vector<8x16xbf16>
    %676 = vector.extract_strided_slice %575 {offsets = [0, 320], sizes = [8, 16], strides = [1, 1]} : vector<8x384xf32> to vector<8x16xf32>
    %677 = arith.truncf %676 : vector<8x16xf32> to vector<8x16xbf16>
    %cst_222 = arith.constant dense<0.000000e+00> : vector<8x8xf32>
    %678 = tpu.matmul %673, %675, %cst_222 {dimension_numbers = #tpu.dot_dimension_numbers<[1], [1], [0], [0], [0, 0, 1, 0], [], []>} : vector<8x16xbf16>, vector<8x16xbf16>, vector<8x8xf32> -> vector<8x8xf32>
    %cst_223 = arith.constant 2.500000e-01 : f32
    %679 = vector.broadcast %cst_223 : f32 to vector<8x8xf32>
    %680 = arith.mulf %678, %679 : vector<8x8xf32>
    %681 = vector.broadcast %5 : vector<1x8xf32> to vector<8x8xf32>
    %682 = arith.addf %680, %681 : vector<8x8xf32>
    %cst_224 = arith.constant dense<0xFF800000> : vector<8xf32>
    %683 = vector.multi_reduction <maximumf>, %682, %cst_224 [1] : vector<8x8xf32> to vector<8xf32>
    %684 = vector.shape_cast %683 : vector<8xf32> to vector<8x1xf32>
    %685 = vector.broadcast %684 : vector<8x1xf32> to vector<8x8xf32>
    %686 = arith.subf %682, %685 : vector<8x8xf32>
    %687 = math.exp %686 : vector<8x8xf32>
    %cst_225 = arith.constant dense<0.000000e+00> : vector<8xf32>
    %688 = vector.multi_reduction <add>, %687, %cst_225 [1] : vector<8x8xf32> to vector<8xf32>
    %689 = vector.shape_cast %688 : vector<8xf32> to vector<8x1xf32>
    %690 = tpu.reciprocal %689 {approx = true} : vector<8x1xf32> -> vector<8x1xf32>
    %691 = vector.broadcast %690 : vector<8x1xf32> to vector<8x8xf32>
    %692 = arith.mulf %687, %691 : vector<8x8xf32>
    %693 = arith.truncf %692 : vector<8x8xf32> to vector<8x8xbf16>
    %cst_226 = arith.constant dense<0.000000e+00> : vector<8x16xf32>
    %694 = tpu.matmul %693, %677, %cst_226 {dimension_numbers = #tpu.dot_dimension_numbers<[1], [0], [0], [1], [0, 0, 1, 1], [], []>} : vector<8x8xbf16>, vector<8x16xbf16>, vector<8x16xf32> -> vector<8x16xf32>
    %c0_227 = arith.constant 0 : index
    %c64_228 = arith.constant 64 : index
    %695 = vector.load %arg11[%c0_227, %c64_228] : memref<8x128xf32, #tpu.memory_space<vmem>>, vector<8x16xf32>
    tpu.vector_store %arg11[%c0_227, %c64_228], %694 {strides = array<i32>} : memref<8x128xf32, #tpu.memory_space<vmem>>, vector<8x16xf32>,
    %696 = vector.extract_strided_slice %575 {offsets = [0, 80], sizes = [8, 16], strides = [1, 1]} : vector<8x384xf32> to vector<8x16xf32>
    %697 = arith.truncf %696 : vector<8x16xf32> to vector<8x16xbf16>
    %698 = vector.extract_strided_slice %575 {offsets = [0, 208], sizes = [8, 16], strides = [1, 1]} : vector<8x384xf32> to vector<8x16xf32>
    %699 = arith.truncf %698 : vector<8x16xf32> to vector<8x16xbf16>
    %700 = vector.extract_strided_slice %575 {offsets = [0, 336], sizes = [8, 16], strides = [1, 1]} : vector<8x384xf32> to vector<8x16xf32>
    %701 = arith.truncf %700 : vector<8x16xf32> to vector<8x16xbf16>
    %cst_229 = arith.constant dense<0.000000e+00> : vector<8x8xf32>
    %702 = tpu.matmul %697, %699, %cst_229 {dimension_numbers = #tpu.dot_dimension_numbers<[1], [1], [0], [0], [0, 0, 1, 0], [], []>} : vector<8x16xbf16>, vector<8x16xbf16>, vector<8x8xf32> -> vector<8x8xf32>
    %cst_230 = arith.constant 2.500000e-01 : f32
    %703 = vector.broadcast %cst_230 : f32 to vector<8x8xf32>
    %704 = arith.mulf %702, %703 : vector<8x8xf32>
    %705 = vector.broadcast %5 : vector<1x8xf32> to vector<8x8xf32>
    %706 = arith.addf %704, %705 : vector<8x8xf32>
    %cst_231 = arith.constant dense<0xFF800000> : vector<8xf32>
    %707 = vector.multi_reduction <maximumf>, %706, %cst_231 [1] : vector<8x8xf32> to vector<8xf32>
    %708 = vector.shape_cast %707 : vector<8xf32> to vector<8x1xf32>
    %709 = vector.broadcast %708 : vector<8x1xf32> to vector<8x8xf32>
    %710 = arith.subf %706, %709 : vector<8x8xf32>
    %711 = math.exp %710 : vector<8x8xf32>
    %cst_232 = arith.constant dense<0.000000e+00> : vector<8xf32>
    %712 = vector.multi_reduction <add>, %711, %cst_232 [1] : vector<8x8xf32> to vector<8xf32>
    %713 = vector.shape_cast %712 : vector<8xf32> to vector<8x1xf32>
    %714 = tpu.reciprocal %713 {approx = true} : vector<8x1xf32> -> vector<8x1xf32>
    %715 = vector.broadcast %714 : vector<8x1xf32> to vector<8x8xf32>
    %716 = arith.mulf %711, %715 : vector<8x8xf32>
    %717 = arith.truncf %716 : vector<8x8xf32> to vector<8x8xbf16>
    %cst_233 = arith.constant dense<0.000000e+00> : vector<8x16xf32>
    %718 = tpu.matmul %717, %701, %cst_233 {dimension_numbers = #tpu.dot_dimension_numbers<[1], [0], [0], [1], [0, 0, 1, 1], [], []>} : vector<8x8xbf16>, vector<8x16xbf16>, vector<8x16xf32> -> vector<8x16xf32>
    %c0_234 = arith.constant 0 : index
    %c80_235 = arith.constant 80 : index
    %719 = vector.load %arg11[%c0_234, %c80_235] : memref<8x128xf32, #tpu.memory_space<vmem>>, vector<8x16xf32>
    tpu.vector_store %arg11[%c0_234, %c80_235], %718 {strides = array<i32>} : memref<8x128xf32, #tpu.memory_space<vmem>>, vector<8x16xf32>,
    %720 = vector.extract_strided_slice %575 {offsets = [0, 96], sizes = [8, 16], strides = [1, 1]} : vector<8x384xf32> to vector<8x16xf32>
    %721 = arith.truncf %720 : vector<8x16xf32> to vector<8x16xbf16>
    %722 = vector.extract_strided_slice %575 {offsets = [0, 224], sizes = [8, 16], strides = [1, 1]} : vector<8x384xf32> to vector<8x16xf32>
    %723 = arith.truncf %722 : vector<8x16xf32> to vector<8x16xbf16>
    %724 = vector.extract_strided_slice %575 {offsets = [0, 352], sizes = [8, 16], strides = [1, 1]} : vector<8x384xf32> to vector<8x16xf32>
    %725 = arith.truncf %724 : vector<8x16xf32> to vector<8x16xbf16>
    %cst_236 = arith.constant dense<0.000000e+00> : vector<8x8xf32>
    %726 = tpu.matmul %721, %723, %cst_236 {dimension_numbers = #tpu.dot_dimension_numbers<[1], [1], [0], [0], [0, 0, 1, 0], [], []>} : vector<8x16xbf16>, vector<8x16xbf16>, vector<8x8xf32> -> vector<8x8xf32>
    %cst_237 = arith.constant 2.500000e-01 : f32
    %727 = vector.broadcast %cst_237 : f32 to vector<8x8xf32>
    %728 = arith.mulf %726, %727 : vector<8x8xf32>
    %729 = vector.broadcast %5 : vector<1x8xf32> to vector<8x8xf32>
    %730 = arith.addf %728, %729 : vector<8x8xf32>
    %cst_238 = arith.constant dense<0xFF800000> : vector<8xf32>
    %731 = vector.multi_reduction <maximumf>, %730, %cst_238 [1] : vector<8x8xf32> to vector<8xf32>
    %732 = vector.shape_cast %731 : vector<8xf32> to vector<8x1xf32>
    %733 = vector.broadcast %732 : vector<8x1xf32> to vector<8x8xf32>
    %734 = arith.subf %730, %733 : vector<8x8xf32>
    %735 = math.exp %734 : vector<8x8xf32>
    %cst_239 = arith.constant dense<0.000000e+00> : vector<8xf32>
    %736 = vector.multi_reduction <add>, %735, %cst_239 [1] : vector<8x8xf32> to vector<8xf32>
    %737 = vector.shape_cast %736 : vector<8xf32> to vector<8x1xf32>
    %738 = tpu.reciprocal %737 {approx = true} : vector<8x1xf32> -> vector<8x1xf32>
    %739 = vector.broadcast %738 : vector<8x1xf32> to vector<8x8xf32>
    %740 = arith.mulf %735, %739 : vector<8x8xf32>
    %741 = arith.truncf %740 : vector<8x8xf32> to vector<8x8xbf16>
    %cst_240 = arith.constant dense<0.000000e+00> : vector<8x16xf32>
    %742 = tpu.matmul %741, %725, %cst_240 {dimension_numbers = #tpu.dot_dimension_numbers<[1], [0], [0], [1], [0, 0, 1, 1], [], []>} : vector<8x8xbf16>, vector<8x16xbf16>, vector<8x16xf32> -> vector<8x16xf32>
    %c0_241 = arith.constant 0 : index
    %c96_242 = arith.constant 96 : index
    %743 = vector.load %arg11[%c0_241, %c96_242] : memref<8x128xf32, #tpu.memory_space<vmem>>, vector<8x16xf32>
    tpu.vector_store %arg11[%c0_241, %c96_242], %742 {strides = array<i32>} : memref<8x128xf32, #tpu.memory_space<vmem>>, vector<8x16xf32>,
    %744 = vector.extract_strided_slice %575 {offsets = [0, 112], sizes = [8, 16], strides = [1, 1]} : vector<8x384xf32> to vector<8x16xf32>
    %745 = arith.truncf %744 : vector<8x16xf32> to vector<8x16xbf16>
    %746 = vector.extract_strided_slice %575 {offsets = [0, 240], sizes = [8, 16], strides = [1, 1]} : vector<8x384xf32> to vector<8x16xf32>
    %747 = arith.truncf %746 : vector<8x16xf32> to vector<8x16xbf16>
    %748 = vector.extract_strided_slice %575 {offsets = [0, 368], sizes = [8, 16], strides = [1, 1]} : vector<8x384xf32> to vector<8x16xf32>
    %749 = arith.truncf %748 : vector<8x16xf32> to vector<8x16xbf16>
    %cst_243 = arith.constant dense<0.000000e+00> : vector<8x8xf32>
    %750 = tpu.matmul %745, %747, %cst_243 {dimension_numbers = #tpu.dot_dimension_numbers<[1], [1], [0], [0], [0, 0, 1, 0], [], []>} : vector<8x16xbf16>, vector<8x16xbf16>, vector<8x8xf32> -> vector<8x8xf32>
    %cst_244 = arith.constant 2.500000e-01 : f32
    %751 = vector.broadcast %cst_244 : f32 to vector<8x8xf32>
    %752 = arith.mulf %750, %751 : vector<8x8xf32>
    %753 = vector.broadcast %5 : vector<1x8xf32> to vector<8x8xf32>
    %754 = arith.addf %752, %753 : vector<8x8xf32>
    %cst_245 = arith.constant dense<0xFF800000> : vector<8xf32>
    %755 = vector.multi_reduction <maximumf>, %754, %cst_245 [1] : vector<8x8xf32> to vector<8xf32>
    %756 = vector.shape_cast %755 : vector<8xf32> to vector<8x1xf32>
    %757 = vector.broadcast %756 : vector<8x1xf32> to vector<8x8xf32>
    %758 = arith.subf %754, %757 : vector<8x8xf32>
    %759 = math.exp %758 : vector<8x8xf32>
    %cst_246 = arith.constant dense<0.000000e+00> : vector<8xf32>
    %760 = vector.multi_reduction <add>, %759, %cst_246 [1] : vector<8x8xf32> to vector<8xf32>
    %761 = vector.shape_cast %760 : vector<8xf32> to vector<8x1xf32>
    %762 = tpu.reciprocal %761 {approx = true} : vector<8x1xf32> -> vector<8x1xf32>
    %763 = vector.broadcast %762 : vector<8x1xf32> to vector<8x8xf32>
    %764 = arith.mulf %759, %763 : vector<8x8xf32>
    %765 = arith.truncf %764 : vector<8x8xf32> to vector<8x8xbf16>
    %cst_247 = arith.constant dense<0.000000e+00> : vector<8x16xf32>
    %766 = tpu.matmul %765, %749, %cst_247 {dimension_numbers = #tpu.dot_dimension_numbers<[1], [0], [0], [1], [0, 0, 1, 1], [], []>} : vector<8x8xbf16>, vector<8x16xbf16>, vector<8x16xf32> -> vector<8x16xf32>
    %c0_248 = arith.constant 0 : index
    %c112_249 = arith.constant 112 : index
    %767 = vector.load %arg11[%c0_248, %c112_249] : memref<8x128xf32, #tpu.memory_space<vmem>>, vector<8x16xf32>
    tpu.vector_store %arg11[%c0_248, %c112_249], %766 {strides = array<i32>} : memref<8x128xf32, #tpu.memory_space<vmem>>, vector<8x16xf32>,
    %c0_250 = arith.constant 0 : index
    %c0_251 = arith.constant 0 : index
    %768 = vector.load %arg11[%c0_250, %c0_251] : memref<8x128xf32, #tpu.memory_space<vmem>>, vector<8x128xf32>
    %769 = arith.truncf %768 : vector<8x128xf32> to vector<8x128xbf16>
    %c2_252 = arith.constant 2 : index
    %c0_253 = arith.constant 0 : index
    %c0_254 = arith.constant 0 : index
    %770 = vector.load %arg5[%c2_252, %c0_253, %c0_254] : memref<4x128x128xbf16, #tpu.memory_space<vmem>>, vector<1x128x128xbf16>
    %771 = vector.shape_cast %770 : vector<1x128x128xbf16> to vector<128x128xbf16>
    %cst_255 = arith.constant dense<0.000000e+00> : vector<8x128xf32>
    %772 = tpu.matmul %769, %771, %cst_255 {dimension_numbers = #tpu.dot_dimension_numbers<[1], [0], [0], [1], [0, 0, 1, 1], [], []>} : vector<8x128xbf16>, vector<128x128xbf16>, vector<8x128xf32> -> vector<8x128xf32>
    %773 = vector.broadcast %562 : vector<1x128xf32> to vector<8x128xf32>
    %774 = arith.addf %772, %773 : vector<8x128xf32>
    %775 = arith.addf %559, %774 : vector<8x128xf32>
    %cst_256 = arith.constant dense<0.000000e+00> : vector<8xf32>
    %776 = vector.multi_reduction <add>, %775, %cst_256 [1] : vector<8x128xf32> to vector<8xf32>
    %777 = vector.shape_cast %776 : vector<8xf32> to vector<8x1xf32>
    %cst_257 = arith.constant 1.280000e+02 : f32
    %778 = vector.broadcast %cst_257 : f32 to vector<8x1xf32>
    %779 = arith.divf %777, %778 : vector<8x1xf32>
    %780 = vector.broadcast %779 : vector<8x1xf32> to vector<8x128xf32>
    %781 = arith.subf %775, %780 : vector<8x128xf32>
    %782 = arith.mulf %781, %781 : vector<8x128xf32>
    %cst_258 = arith.constant dense<0.000000e+00> : vector<8xf32>
    %783 = vector.multi_reduction <add>, %782, %cst_258 [1] : vector<8x128xf32> to vector<8xf32>
    %784 = vector.shape_cast %783 : vector<8xf32> to vector<8x1xf32>
    %cst_259 = arith.constant 1.280000e+02 : f32
    %785 = vector.broadcast %cst_259 : f32 to vector<8x1xf32>
    %786 = arith.divf %784, %785 : vector<8x1xf32>
    %787 = vector.broadcast %779 : vector<8x1xf32> to vector<8x128xf32>
    %788 = arith.subf %775, %787 : vector<8x128xf32>
    %cst_260 = arith.constant 9.99999997E-7 : f32
    %789 = vector.broadcast %cst_260 : f32 to vector<8x1xf32>
    %790 = arith.addf %786, %789 : vector<8x1xf32>
    %791 = math.rsqrt %790 : vector<8x1xf32>
    %792 = vector.broadcast %791 : vector<8x1xf32> to vector<8x128xf32>
    %793 = arith.mulf %788, %792 : vector<8x128xf32>
    %794 = vector.broadcast %563 : vector<1x128xf32> to vector<8x128xf32>
    %795 = arith.mulf %793, %794 : vector<8x128xf32>
    %796 = vector.broadcast %564 : vector<1x128xf32> to vector<8x128xf32>
    %797 = arith.addf %795, %796 : vector<8x128xf32>
    %798 = arith.truncf %797 : vector<8x128xf32> to vector<8x128xbf16>
    %c2_261 = arith.constant 2 : index
    %c0_262 = arith.constant 0 : index
    %c0_263 = arith.constant 0 : index
    %799 = vector.load %arg6[%c2_261, %c0_262, %c0_263] : memref<4x128x512xbf16, #tpu.memory_space<vmem>>, vector<1x128x512xbf16>
    %800 = vector.shape_cast %799 : vector<1x128x512xbf16> to vector<128x512xbf16>
    %cst_264 = arith.constant dense<0.000000e+00> : vector<8x512xf32>
    %801 = tpu.matmul %798, %800, %cst_264 {dimension_numbers = #tpu.dot_dimension_numbers<[1], [0], [0], [1], [0, 0, 1, 1], [], []>} : vector<8x128xbf16>, vector<128x512xbf16>, vector<8x512xf32> -> vector<8x512xf32>
    %c2_265 = arith.constant 2 : index
    %c0_266 = arith.constant 0 : index
    %c0_267 = arith.constant 0 : index
    %802 = vector.load %arg7[%c2_265, %c0_266, %c0_267] : memref<4x1x512xf32, #tpu.memory_space<vmem>>, vector<1x1x512xf32>
    %803 = vector.shape_cast %802 : vector<1x1x512xf32> to vector<1x512xf32>
    %804 = vector.broadcast %803 : vector<1x512xf32> to vector<8x512xf32>
    %805 = arith.addf %801, %804 : vector<8x512xf32>
    %cst_268 = arith.constant 0.000000e+00 : f32
    %806 = vector.broadcast %cst_268 : f32 to vector<8x512xf32>
    %807 = arith.maximumf %805, %806 : vector<8x512xf32>
    %808 = arith.truncf %807 : vector<8x512xf32> to vector<8x512xbf16>
    %c2_269 = arith.constant 2 : index
    %c0_270 = arith.constant 0 : index
    %c0_271 = arith.constant 0 : index
    %809 = vector.load %arg8[%c2_269, %c0_270, %c0_271] : memref<4x512x128xbf16, #tpu.memory_space<vmem>>, vector<1x512x128xbf16>
    %810 = vector.shape_cast %809 : vector<1x512x128xbf16> to vector<512x128xbf16>
    %cst_272 = arith.constant dense<0.000000e+00> : vector<8x128xf32>
    %811 = tpu.matmul %808, %810, %cst_272 {dimension_numbers = #tpu.dot_dimension_numbers<[1], [0], [0], [1], [0, 0, 1, 1], [], []>} : vector<8x512xbf16>, vector<512x128xbf16>, vector<8x128xf32> -> vector<8x128xf32>
    %812 = vector.broadcast %567 : vector<1x128xf32> to vector<8x128xf32>
    %813 = arith.addf %811, %812 : vector<8x128xf32>
    %814 = arith.addf %797, %813 : vector<8x128xf32>
    %cst_273 = arith.constant dense<0.000000e+00> : vector<8xf32>
    %815 = vector.multi_reduction <add>, %814, %cst_273 [1] : vector<8x128xf32> to vector<8xf32>
    %816 = vector.shape_cast %815 : vector<8xf32> to vector<8x1xf32>
    %cst_274 = arith.constant 1.280000e+02 : f32
    %817 = vector.broadcast %cst_274 : f32 to vector<8x1xf32>
    %818 = arith.divf %816, %817 : vector<8x1xf32>
    %819 = vector.broadcast %818 : vector<8x1xf32> to vector<8x128xf32>
    %820 = arith.subf %814, %819 : vector<8x128xf32>
    %821 = arith.mulf %820, %820 : vector<8x128xf32>
    %cst_275 = arith.constant dense<0.000000e+00> : vector<8xf32>
    %822 = vector.multi_reduction <add>, %821, %cst_275 [1] : vector<8x128xf32> to vector<8xf32>
    %823 = vector.shape_cast %822 : vector<8xf32> to vector<8x1xf32>
    %cst_276 = arith.constant 1.280000e+02 : f32
    %824 = vector.broadcast %cst_276 : f32 to vector<8x1xf32>
    %825 = arith.divf %823, %824 : vector<8x1xf32>
    %826 = vector.broadcast %818 : vector<8x1xf32> to vector<8x128xf32>
    %827 = arith.subf %814, %826 : vector<8x128xf32>
    %cst_277 = arith.constant 9.99999997E-7 : f32
    %828 = vector.broadcast %cst_277 : f32 to vector<8x1xf32>
    %829 = arith.addf %825, %828 : vector<8x1xf32>
    %830 = math.rsqrt %829 : vector<8x1xf32>
    %831 = vector.broadcast %830 : vector<8x1xf32> to vector<8x128xf32>
    %832 = arith.mulf %827, %831 : vector<8x128xf32>
    %833 = vector.broadcast %565 : vector<1x128xf32> to vector<8x128xf32>
    %834 = arith.mulf %832, %833 : vector<8x128xf32>
    %835 = vector.broadcast %566 : vector<1x128xf32> to vector<8x128xf32>
    %836 = arith.addf %834, %835 : vector<8x128xf32>
    %c3 = arith.constant 3 : index
    %c0_278 = arith.constant 0 : index
    %c0_279 = arith.constant 0 : index
    %837 = vector.load %arg9[%c3, %c0_278, %c0_279] : memref<4x8x128xf32, #tpu.memory_space<vmem>>, vector<1x8x128xf32>
    %838 = vector.shape_cast %837 : vector<1x8x128xf32> to vector<8x128xf32>
    %839 = vector.extract_strided_slice %838 {offsets = [0, 0], sizes = [1, 128], strides = [1, 1]} : vector<8x128xf32> to vector<1x128xf32>
    %840 = vector.extract_strided_slice %838 {offsets = [1, 0], sizes = [1, 128], strides = [1, 1]} : vector<8x128xf32> to vector<1x128xf32>
    %841 = vector.extract_strided_slice %838 {offsets = [2, 0], sizes = [1, 128], strides = [1, 1]} : vector<8x128xf32> to vector<1x128xf32>
    %842 = vector.extract_strided_slice %838 {offsets = [3, 0], sizes = [1, 128], strides = [1, 1]} : vector<8x128xf32> to vector<1x128xf32>
    %843 = vector.extract_strided_slice %838 {offsets = [4, 0], sizes = [1, 128], strides = [1, 1]} : vector<8x128xf32> to vector<1x128xf32>
    %844 = vector.extract_strided_slice %838 {offsets = [5, 0], sizes = [1, 128], strides = [1, 1]} : vector<8x128xf32> to vector<1x128xf32>
    %845 = arith.truncf %836 : vector<8x128xf32> to vector<8x128xbf16>
    %c3_280 = arith.constant 3 : index
    %c0_281 = arith.constant 0 : index
    %c0_282 = arith.constant 0 : index
    %846 = vector.load %arg3[%c3_280, %c0_281, %c0_282] : memref<4x128x384xbf16, #tpu.memory_space<vmem>>, vector<1x128x384xbf16>
    %847 = vector.shape_cast %846 : vector<1x128x384xbf16> to vector<128x384xbf16>
    %cst_283 = arith.constant dense<0.000000e+00> : vector<8x384xf32>
    %848 = tpu.matmul %845, %847, %cst_283 {dimension_numbers = #tpu.dot_dimension_numbers<[1], [0], [0], [1], [0, 0, 1, 1], [], []>} : vector<8x128xbf16>, vector<128x384xbf16>, vector<8x384xf32> -> vector<8x384xf32>
    %c3_284 = arith.constant 3 : index
    %c0_285 = arith.constant 0 : index
    %c0_286 = arith.constant 0 : index
    %849 = vector.load %arg4[%c3_284, %c0_285, %c0_286] : memref<4x1x384xf32, #tpu.memory_space<vmem>>, vector<1x1x384xf32>
    %850 = vector.shape_cast %849 : vector<1x1x384xf32> to vector<1x384xf32>
    %851 = vector.broadcast %850 : vector<1x384xf32> to vector<8x384xf32>
    %852 = arith.addf %848, %851 : vector<8x384xf32>
    %853 = vector.extract_strided_slice %852 {offsets = [0, 0], sizes = [8, 16], strides = [1, 1]} : vector<8x384xf32> to vector<8x16xf32>
    %854 = arith.truncf %853 : vector<8x16xf32> to vector<8x16xbf16>
    %855 = vector.extract_strided_slice %852 {offsets = [0, 128], sizes = [8, 16], strides = [1, 1]} : vector<8x384xf32> to vector<8x16xf32>
    %856 = arith.truncf %855 : vector<8x16xf32> to vector<8x16xbf16>
    %857 = vector.extract_strided_slice %852 {offsets = [0, 256], sizes = [8, 16], strides = [1, 1]} : vector<8x384xf32> to vector<8x16xf32>
    %858 = arith.truncf %857 : vector<8x16xf32> to vector<8x16xbf16>
    %cst_287 = arith.constant dense<0.000000e+00> : vector<8x8xf32>
    %859 = tpu.matmul %854, %856, %cst_287 {dimension_numbers = #tpu.dot_dimension_numbers<[1], [1], [0], [0], [0, 0, 1, 0], [], []>} : vector<8x16xbf16>, vector<8x16xbf16>, vector<8x8xf32> -> vector<8x8xf32>
    %cst_288 = arith.constant 2.500000e-01 : f32
    %860 = vector.broadcast %cst_288 : f32 to vector<8x8xf32>
    %861 = arith.mulf %859, %860 : vector<8x8xf32>
    %862 = vector.broadcast %5 : vector<1x8xf32> to vector<8x8xf32>
    %863 = arith.addf %861, %862 : vector<8x8xf32>
    %cst_289 = arith.constant dense<0xFF800000> : vector<8xf32>
    %864 = vector.multi_reduction <maximumf>, %863, %cst_289 [1] : vector<8x8xf32> to vector<8xf32>
    %865 = vector.shape_cast %864 : vector<8xf32> to vector<8x1xf32>
    %866 = vector.broadcast %865 : vector<8x1xf32> to vector<8x8xf32>
    %867 = arith.subf %863, %866 : vector<8x8xf32>
    %868 = math.exp %867 : vector<8x8xf32>
    %cst_290 = arith.constant dense<0.000000e+00> : vector<8xf32>
    %869 = vector.multi_reduction <add>, %868, %cst_290 [1] : vector<8x8xf32> to vector<8xf32>
    %870 = vector.shape_cast %869 : vector<8xf32> to vector<8x1xf32>
    %871 = tpu.reciprocal %870 {approx = true} : vector<8x1xf32> -> vector<8x1xf32>
    %872 = vector.broadcast %871 : vector<8x1xf32> to vector<8x8xf32>
    %873 = arith.mulf %868, %872 : vector<8x8xf32>
    %874 = arith.truncf %873 : vector<8x8xf32> to vector<8x8xbf16>
    %cst_291 = arith.constant dense<0.000000e+00> : vector<8x16xf32>
    %875 = tpu.matmul %874, %858, %cst_291 {dimension_numbers = #tpu.dot_dimension_numbers<[1], [0], [0], [1], [0, 0, 1, 1], [], []>} : vector<8x8xbf16>, vector<8x16xbf16>, vector<8x16xf32> -> vector<8x16xf32>
    %c0_292 = arith.constant 0 : index
    %c0_293 = arith.constant 0 : index
    %876 = vector.load %arg11[%c0_292, %c0_293] : memref<8x128xf32, #tpu.memory_space<vmem>>, vector<8x16xf32>
    tpu.vector_store %arg11[%c0_292, %c0_293], %875 {strides = array<i32>} : memref<8x128xf32, #tpu.memory_space<vmem>>, vector<8x16xf32>,
    %877 = vector.extract_strided_slice %852 {offsets = [0, 16], sizes = [8, 16], strides = [1, 1]} : vector<8x384xf32> to vector<8x16xf32>
    %878 = arith.truncf %877 : vector<8x16xf32> to vector<8x16xbf16>
    %879 = vector.extract_strided_slice %852 {offsets = [0, 144], sizes = [8, 16], strides = [1, 1]} : vector<8x384xf32> to vector<8x16xf32>
    %880 = arith.truncf %879 : vector<8x16xf32> to vector<8x16xbf16>
    %881 = vector.extract_strided_slice %852 {offsets = [0, 272], sizes = [8, 16], strides = [1, 1]} : vector<8x384xf32> to vector<8x16xf32>
    %882 = arith.truncf %881 : vector<8x16xf32> to vector<8x16xbf16>
    %cst_294 = arith.constant dense<0.000000e+00> : vector<8x8xf32>
    %883 = tpu.matmul %878, %880, %cst_294 {dimension_numbers = #tpu.dot_dimension_numbers<[1], [1], [0], [0], [0, 0, 1, 0], [], []>} : vector<8x16xbf16>, vector<8x16xbf16>, vector<8x8xf32> -> vector<8x8xf32>
    %cst_295 = arith.constant 2.500000e-01 : f32
    %884 = vector.broadcast %cst_295 : f32 to vector<8x8xf32>
    %885 = arith.mulf %883, %884 : vector<8x8xf32>
    %886 = vector.broadcast %5 : vector<1x8xf32> to vector<8x8xf32>
    %887 = arith.addf %885, %886 : vector<8x8xf32>
    %cst_296 = arith.constant dense<0xFF800000> : vector<8xf32>
    %888 = vector.multi_reduction <maximumf>, %887, %cst_296 [1] : vector<8x8xf32> to vector<8xf32>
    %889 = vector.shape_cast %888 : vector<8xf32> to vector<8x1xf32>
    %890 = vector.broadcast %889 : vector<8x1xf32> to vector<8x8xf32>
    %891 = arith.subf %887, %890 : vector<8x8xf32>
    %892 = math.exp %891 : vector<8x8xf32>
    %cst_297 = arith.constant dense<0.000000e+00> : vector<8xf32>
    %893 = vector.multi_reduction <add>, %892, %cst_297 [1] : vector<8x8xf32> to vector<8xf32>
    %894 = vector.shape_cast %893 : vector<8xf32> to vector<8x1xf32>
    %895 = tpu.reciprocal %894 {approx = true} : vector<8x1xf32> -> vector<8x1xf32>
    %896 = vector.broadcast %895 : vector<8x1xf32> to vector<8x8xf32>
    %897 = arith.mulf %892, %896 : vector<8x8xf32>
    %898 = arith.truncf %897 : vector<8x8xf32> to vector<8x8xbf16>
    %cst_298 = arith.constant dense<0.000000e+00> : vector<8x16xf32>
    %899 = tpu.matmul %898, %882, %cst_298 {dimension_numbers = #tpu.dot_dimension_numbers<[1], [0], [0], [1], [0, 0, 1, 1], [], []>} : vector<8x8xbf16>, vector<8x16xbf16>, vector<8x16xf32> -> vector<8x16xf32>
    %c0_299 = arith.constant 0 : index
    %c16_300 = arith.constant 16 : index
    %900 = vector.load %arg11[%c0_299, %c16_300] : memref<8x128xf32, #tpu.memory_space<vmem>>, vector<8x16xf32>
    tpu.vector_store %arg11[%c0_299, %c16_300], %899 {strides = array<i32>} : memref<8x128xf32, #tpu.memory_space<vmem>>, vector<8x16xf32>,
    %901 = vector.extract_strided_slice %852 {offsets = [0, 32], sizes = [8, 16], strides = [1, 1]} : vector<8x384xf32> to vector<8x16xf32>
    %902 = arith.truncf %901 : vector<8x16xf32> to vector<8x16xbf16>
    %903 = vector.extract_strided_slice %852 {offsets = [0, 160], sizes = [8, 16], strides = [1, 1]} : vector<8x384xf32> to vector<8x16xf32>
    %904 = arith.truncf %903 : vector<8x16xf32> to vector<8x16xbf16>
    %905 = vector.extract_strided_slice %852 {offsets = [0, 288], sizes = [8, 16], strides = [1, 1]} : vector<8x384xf32> to vector<8x16xf32>
    %906 = arith.truncf %905 : vector<8x16xf32> to vector<8x16xbf16>
    %cst_301 = arith.constant dense<0.000000e+00> : vector<8x8xf32>
    %907 = tpu.matmul %902, %904, %cst_301 {dimension_numbers = #tpu.dot_dimension_numbers<[1], [1], [0], [0], [0, 0, 1, 0], [], []>} : vector<8x16xbf16>, vector<8x16xbf16>, vector<8x8xf32> -> vector<8x8xf32>
    %cst_302 = arith.constant 2.500000e-01 : f32
    %908 = vector.broadcast %cst_302 : f32 to vector<8x8xf32>
    %909 = arith.mulf %907, %908 : vector<8x8xf32>
    %910 = vector.broadcast %5 : vector<1x8xf32> to vector<8x8xf32>
    %911 = arith.addf %909, %910 : vector<8x8xf32>
    %cst_303 = arith.constant dense<0xFF800000> : vector<8xf32>
    %912 = vector.multi_reduction <maximumf>, %911, %cst_303 [1] : vector<8x8xf32> to vector<8xf32>
    %913 = vector.shape_cast %912 : vector<8xf32> to vector<8x1xf32>
    %914 = vector.broadcast %913 : vector<8x1xf32> to vector<8x8xf32>
    %915 = arith.subf %911, %914 : vector<8x8xf32>
    %916 = math.exp %915 : vector<8x8xf32>
    %cst_304 = arith.constant dense<0.000000e+00> : vector<8xf32>
    %917 = vector.multi_reduction <add>, %916, %cst_304 [1] : vector<8x8xf32> to vector<8xf32>
    %918 = vector.shape_cast %917 : vector<8xf32> to vector<8x1xf32>
    %919 = tpu.reciprocal %918 {approx = true} : vector<8x1xf32> -> vector<8x1xf32>
    %920 = vector.broadcast %919 : vector<8x1xf32> to vector<8x8xf32>
    %921 = arith.mulf %916, %920 : vector<8x8xf32>
    %922 = arith.truncf %921 : vector<8x8xf32> to vector<8x8xbf16>
    %cst_305 = arith.constant dense<0.000000e+00> : vector<8x16xf32>
    %923 = tpu.matmul %922, %906, %cst_305 {dimension_numbers = #tpu.dot_dimension_numbers<[1], [0], [0], [1], [0, 0, 1, 1], [], []>} : vector<8x8xbf16>, vector<8x16xbf16>, vector<8x16xf32> -> vector<8x16xf32>
    %c0_306 = arith.constant 0 : index
    %c32_307 = arith.constant 32 : index
    %924 = vector.load %arg11[%c0_306, %c32_307] : memref<8x128xf32, #tpu.memory_space<vmem>>, vector<8x16xf32>
    tpu.vector_store %arg11[%c0_306, %c32_307], %923 {strides = array<i32>} : memref<8x128xf32, #tpu.memory_space<vmem>>, vector<8x16xf32>,
    %925 = vector.extract_strided_slice %852 {offsets = [0, 48], sizes = [8, 16], strides = [1, 1]} : vector<8x384xf32> to vector<8x16xf32>
    %926 = arith.truncf %925 : vector<8x16xf32> to vector<8x16xbf16>
    %927 = vector.extract_strided_slice %852 {offsets = [0, 176], sizes = [8, 16], strides = [1, 1]} : vector<8x384xf32> to vector<8x16xf32>
    %928 = arith.truncf %927 : vector<8x16xf32> to vector<8x16xbf16>
    %929 = vector.extract_strided_slice %852 {offsets = [0, 304], sizes = [8, 16], strides = [1, 1]} : vector<8x384xf32> to vector<8x16xf32>
    %930 = arith.truncf %929 : vector<8x16xf32> to vector<8x16xbf16>
    %cst_308 = arith.constant dense<0.000000e+00> : vector<8x8xf32>
    %931 = tpu.matmul %926, %928, %cst_308 {dimension_numbers = #tpu.dot_dimension_numbers<[1], [1], [0], [0], [0, 0, 1, 0], [], []>} : vector<8x16xbf16>, vector<8x16xbf16>, vector<8x8xf32> -> vector<8x8xf32>
    %cst_309 = arith.constant 2.500000e-01 : f32
    %932 = vector.broadcast %cst_309 : f32 to vector<8x8xf32>
    %933 = arith.mulf %931, %932 : vector<8x8xf32>
    %934 = vector.broadcast %5 : vector<1x8xf32> to vector<8x8xf32>
    %935 = arith.addf %933, %934 : vector<8x8xf32>
    %cst_310 = arith.constant dense<0xFF800000> : vector<8xf32>
    %936 = vector.multi_reduction <maximumf>, %935, %cst_310 [1] : vector<8x8xf32> to vector<8xf32>
    %937 = vector.shape_cast %936 : vector<8xf32> to vector<8x1xf32>
    %938 = vector.broadcast %937 : vector<8x1xf32> to vector<8x8xf32>
    %939 = arith.subf %935, %938 : vector<8x8xf32>
    %940 = math.exp %939 : vector<8x8xf32>
    %cst_311 = arith.constant dense<0.000000e+00> : vector<8xf32>
    %941 = vector.multi_reduction <add>, %940, %cst_311 [1] : vector<8x8xf32> to vector<8xf32>
    %942 = vector.shape_cast %941 : vector<8xf32> to vector<8x1xf32>
    %943 = tpu.reciprocal %942 {approx = true} : vector<8x1xf32> -> vector<8x1xf32>
    %944 = vector.broadcast %943 : vector<8x1xf32> to vector<8x8xf32>
    %945 = arith.mulf %940, %944 : vector<8x8xf32>
    %946 = arith.truncf %945 : vector<8x8xf32> to vector<8x8xbf16>
    %cst_312 = arith.constant dense<0.000000e+00> : vector<8x16xf32>
    %947 = tpu.matmul %946, %930, %cst_312 {dimension_numbers = #tpu.dot_dimension_numbers<[1], [0], [0], [1], [0, 0, 1, 1], [], []>} : vector<8x8xbf16>, vector<8x16xbf16>, vector<8x16xf32> -> vector<8x16xf32>
    %c0_313 = arith.constant 0 : index
    %c48_314 = arith.constant 48 : index
    %948 = vector.load %arg11[%c0_313, %c48_314] : memref<8x128xf32, #tpu.memory_space<vmem>>, vector<8x16xf32>
    tpu.vector_store %arg11[%c0_313, %c48_314], %947 {strides = array<i32>} : memref<8x128xf32, #tpu.memory_space<vmem>>, vector<8x16xf32>,
    %949 = vector.extract_strided_slice %852 {offsets = [0, 64], sizes = [8, 16], strides = [1, 1]} : vector<8x384xf32> to vector<8x16xf32>
    %950 = arith.truncf %949 : vector<8x16xf32> to vector<8x16xbf16>
    %951 = vector.extract_strided_slice %852 {offsets = [0, 192], sizes = [8, 16], strides = [1, 1]} : vector<8x384xf32> to vector<8x16xf32>
    %952 = arith.truncf %951 : vector<8x16xf32> to vector<8x16xbf16>
    %953 = vector.extract_strided_slice %852 {offsets = [0, 320], sizes = [8, 16], strides = [1, 1]} : vector<8x384xf32> to vector<8x16xf32>
    %954 = arith.truncf %953 : vector<8x16xf32> to vector<8x16xbf16>
    %cst_315 = arith.constant dense<0.000000e+00> : vector<8x8xf32>
    %955 = tpu.matmul %950, %952, %cst_315 {dimension_numbers = #tpu.dot_dimension_numbers<[1], [1], [0], [0], [0, 0, 1, 0], [], []>} : vector<8x16xbf16>, vector<8x16xbf16>, vector<8x8xf32> -> vector<8x8xf32>
    %cst_316 = arith.constant 2.500000e-01 : f32
    %956 = vector.broadcast %cst_316 : f32 to vector<8x8xf32>
    %957 = arith.mulf %955, %956 : vector<8x8xf32>
    %958 = vector.broadcast %5 : vector<1x8xf32> to vector<8x8xf32>
    %959 = arith.addf %957, %958 : vector<8x8xf32>
    %cst_317 = arith.constant dense<0xFF800000> : vector<8xf32>
    %960 = vector.multi_reduction <maximumf>, %959, %cst_317 [1] : vector<8x8xf32> to vector<8xf32>
    %961 = vector.shape_cast %960 : vector<8xf32> to vector<8x1xf32>
    %962 = vector.broadcast %961 : vector<8x1xf32> to vector<8x8xf32>
    %963 = arith.subf %959, %962 : vector<8x8xf32>
    %964 = math.exp %963 : vector<8x8xf32>
    %cst_318 = arith.constant dense<0.000000e+00> : vector<8xf32>
    %965 = vector.multi_reduction <add>, %964, %cst_318 [1] : vector<8x8xf32> to vector<8xf32>
    %966 = vector.shape_cast %965 : vector<8xf32> to vector<8x1xf32>
    %967 = tpu.reciprocal %966 {approx = true} : vector<8x1xf32> -> vector<8x1xf32>
    %968 = vector.broadcast %967 : vector<8x1xf32> to vector<8x8xf32>
    %969 = arith.mulf %964, %968 : vector<8x8xf32>
    %970 = arith.truncf %969 : vector<8x8xf32> to vector<8x8xbf16>
    %cst_319 = arith.constant dense<0.000000e+00> : vector<8x16xf32>
    %971 = tpu.matmul %970, %954, %cst_319 {dimension_numbers = #tpu.dot_dimension_numbers<[1], [0], [0], [1], [0, 0, 1, 1], [], []>} : vector<8x8xbf16>, vector<8x16xbf16>, vector<8x16xf32> -> vector<8x16xf32>
    %c0_320 = arith.constant 0 : index
    %c64_321 = arith.constant 64 : index
    %972 = vector.load %arg11[%c0_320, %c64_321] : memref<8x128xf32, #tpu.memory_space<vmem>>, vector<8x16xf32>
    tpu.vector_store %arg11[%c0_320, %c64_321], %971 {strides = array<i32>} : memref<8x128xf32, #tpu.memory_space<vmem>>, vector<8x16xf32>,
    %973 = vector.extract_strided_slice %852 {offsets = [0, 80], sizes = [8, 16], strides = [1, 1]} : vector<8x384xf32> to vector<8x16xf32>
    %974 = arith.truncf %973 : vector<8x16xf32> to vector<8x16xbf16>
    %975 = vector.extract_strided_slice %852 {offsets = [0, 208], sizes = [8, 16], strides = [1, 1]} : vector<8x384xf32> to vector<8x16xf32>
    %976 = arith.truncf %975 : vector<8x16xf32> to vector<8x16xbf16>
    %977 = vector.extract_strided_slice %852 {offsets = [0, 336], sizes = [8, 16], strides = [1, 1]} : vector<8x384xf32> to vector<8x16xf32>
    %978 = arith.truncf %977 : vector<8x16xf32> to vector<8x16xbf16>
    %cst_322 = arith.constant dense<0.000000e+00> : vector<8x8xf32>
    %979 = tpu.matmul %974, %976, %cst_322 {dimension_numbers = #tpu.dot_dimension_numbers<[1], [1], [0], [0], [0, 0, 1, 0], [], []>} : vector<8x16xbf16>, vector<8x16xbf16>, vector<8x8xf32> -> vector<8x8xf32>
    %cst_323 = arith.constant 2.500000e-01 : f32
    %980 = vector.broadcast %cst_323 : f32 to vector<8x8xf32>
    %981 = arith.mulf %979, %980 : vector<8x8xf32>
    %982 = vector.broadcast %5 : vector<1x8xf32> to vector<8x8xf32>
    %983 = arith.addf %981, %982 : vector<8x8xf32>
    %cst_324 = arith.constant dense<0xFF800000> : vector<8xf32>
    %984 = vector.multi_reduction <maximumf>, %983, %cst_324 [1] : vector<8x8xf32> to vector<8xf32>
    %985 = vector.shape_cast %984 : vector<8xf32> to vector<8x1xf32>
    %986 = vector.broadcast %985 : vector<8x1xf32> to vector<8x8xf32>
    %987 = arith.subf %983, %986 : vector<8x8xf32>
    %988 = math.exp %987 : vector<8x8xf32>
    %cst_325 = arith.constant dense<0.000000e+00> : vector<8xf32>
    %989 = vector.multi_reduction <add>, %988, %cst_325 [1] : vector<8x8xf32> to vector<8xf32>
    %990 = vector.shape_cast %989 : vector<8xf32> to vector<8x1xf32>
    %991 = tpu.reciprocal %990 {approx = true} : vector<8x1xf32> -> vector<8x1xf32>
    %992 = vector.broadcast %991 : vector<8x1xf32> to vector<8x8xf32>
    %993 = arith.mulf %988, %992 : vector<8x8xf32>
    %994 = arith.truncf %993 : vector<8x8xf32> to vector<8x8xbf16>
    %cst_326 = arith.constant dense<0.000000e+00> : vector<8x16xf32>
    %995 = tpu.matmul %994, %978, %cst_326 {dimension_numbers = #tpu.dot_dimension_numbers<[1], [0], [0], [1], [0, 0, 1, 1], [], []>} : vector<8x8xbf16>, vector<8x16xbf16>, vector<8x16xf32> -> vector<8x16xf32>
    %c0_327 = arith.constant 0 : index
    %c80_328 = arith.constant 80 : index
    %996 = vector.load %arg11[%c0_327, %c80_328] : memref<8x128xf32, #tpu.memory_space<vmem>>, vector<8x16xf32>
    tpu.vector_store %arg11[%c0_327, %c80_328], %995 {strides = array<i32>} : memref<8x128xf32, #tpu.memory_space<vmem>>, vector<8x16xf32>,
    %997 = vector.extract_strided_slice %852 {offsets = [0, 96], sizes = [8, 16], strides = [1, 1]} : vector<8x384xf32> to vector<8x16xf32>
    %998 = arith.truncf %997 : vector<8x16xf32> to vector<8x16xbf16>
    %999 = vector.extract_strided_slice %852 {offsets = [0, 224], sizes = [8, 16], strides = [1, 1]} : vector<8x384xf32> to vector<8x16xf32>
    %1000 = arith.truncf %999 : vector<8x16xf32> to vector<8x16xbf16>
    %1001 = vector.extract_strided_slice %852 {offsets = [0, 352], sizes = [8, 16], strides = [1, 1]} : vector<8x384xf32> to vector<8x16xf32>
    %1002 = arith.truncf %1001 : vector<8x16xf32> to vector<8x16xbf16>
    %cst_329 = arith.constant dense<0.000000e+00> : vector<8x8xf32>
    %1003 = tpu.matmul %998, %1000, %cst_329 {dimension_numbers = #tpu.dot_dimension_numbers<[1], [1], [0], [0], [0, 0, 1, 0], [], []>} : vector<8x16xbf16>, vector<8x16xbf16>, vector<8x8xf32> -> vector<8x8xf32>
    %cst_330 = arith.constant 2.500000e-01 : f32
    %1004 = vector.broadcast %cst_330 : f32 to vector<8x8xf32>
    %1005 = arith.mulf %1003, %1004 : vector<8x8xf32>
    %1006 = vector.broadcast %5 : vector<1x8xf32> to vector<8x8xf32>
    %1007 = arith.addf %1005, %1006 : vector<8x8xf32>
    %cst_331 = arith.constant dense<0xFF800000> : vector<8xf32>
    %1008 = vector.multi_reduction <maximumf>, %1007, %cst_331 [1] : vector<8x8xf32> to vector<8xf32>
    %1009 = vector.shape_cast %1008 : vector<8xf32> to vector<8x1xf32>
    %1010 = vector.broadcast %1009 : vector<8x1xf32> to vector<8x8xf32>
    %1011 = arith.subf %1007, %1010 : vector<8x8xf32>
    %1012 = math.exp %1011 : vector<8x8xf32>
    %cst_332 = arith.constant dense<0.000000e+00> : vector<8xf32>
    %1013 = vector.multi_reduction <add>, %1012, %cst_332 [1] : vector<8x8xf32> to vector<8xf32>
    %1014 = vector.shape_cast %1013 : vector<8xf32> to vector<8x1xf32>
    %1015 = tpu.reciprocal %1014 {approx = true} : vector<8x1xf32> -> vector<8x1xf32>
    %1016 = vector.broadcast %1015 : vector<8x1xf32> to vector<8x8xf32>
    %1017 = arith.mulf %1012, %1016 : vector<8x8xf32>
    %1018 = arith.truncf %1017 : vector<8x8xf32> to vector<8x8xbf16>
    %cst_333 = arith.constant dense<0.000000e+00> : vector<8x16xf32>
    %1019 = tpu.matmul %1018, %1002, %cst_333 {dimension_numbers = #tpu.dot_dimension_numbers<[1], [0], [0], [1], [0, 0, 1, 1], [], []>} : vector<8x8xbf16>, vector<8x16xbf16>, vector<8x16xf32> -> vector<8x16xf32>
    %c0_334 = arith.constant 0 : index
    %c96_335 = arith.constant 96 : index
    %1020 = vector.load %arg11[%c0_334, %c96_335] : memref<8x128xf32, #tpu.memory_space<vmem>>, vector<8x16xf32>
    tpu.vector_store %arg11[%c0_334, %c96_335], %1019 {strides = array<i32>} : memref<8x128xf32, #tpu.memory_space<vmem>>, vector<8x16xf32>,
    %1021 = vector.extract_strided_slice %852 {offsets = [0, 112], sizes = [8, 16], strides = [1, 1]} : vector<8x384xf32> to vector<8x16xf32>
    %1022 = arith.truncf %1021 : vector<8x16xf32> to vector<8x16xbf16>
    %1023 = vector.extract_strided_slice %852 {offsets = [0, 240], sizes = [8, 16], strides = [1, 1]} : vector<8x384xf32> to vector<8x16xf32>
    %1024 = arith.truncf %1023 : vector<8x16xf32> to vector<8x16xbf16>
    %1025 = vector.extract_strided_slice %852 {offsets = [0, 368], sizes = [8, 16], strides = [1, 1]} : vector<8x384xf32> to vector<8x16xf32>
    %1026 = arith.truncf %1025 : vector<8x16xf32> to vector<8x16xbf16>
    %cst_336 = arith.constant dense<0.000000e+00> : vector<8x8xf32>
    %1027 = tpu.matmul %1022, %1024, %cst_336 {dimension_numbers = #tpu.dot_dimension_numbers<[1], [1], [0], [0], [0, 0, 1, 0], [], []>} : vector<8x16xbf16>, vector<8x16xbf16>, vector<8x8xf32> -> vector<8x8xf32>
    %cst_337 = arith.constant 2.500000e-01 : f32
    %1028 = vector.broadcast %cst_337 : f32 to vector<8x8xf32>
    %1029 = arith.mulf %1027, %1028 : vector<8x8xf32>
    %1030 = vector.broadcast %5 : vector<1x8xf32> to vector<8x8xf32>
    %1031 = arith.addf %1029, %1030 : vector<8x8xf32>
    %cst_338 = arith.constant dense<0xFF800000> : vector<8xf32>
    %1032 = vector.multi_reduction <maximumf>, %1031, %cst_338 [1] : vector<8x8xf32> to vector<8xf32>
    %1033 = vector.shape_cast %1032 : vector<8xf32> to vector<8x1xf32>
    %1034 = vector.broadcast %1033 : vector<8x1xf32> to vector<8x8xf32>
    %1035 = arith.subf %1031, %1034 : vector<8x8xf32>
    %1036 = math.exp %1035 : vector<8x8xf32>
    %cst_339 = arith.constant dense<0.000000e+00> : vector<8xf32>
    %1037 = vector.multi_reduction <add>, %1036, %cst_339 [1] : vector<8x8xf32> to vector<8xf32>
    %1038 = vector.shape_cast %1037 : vector<8xf32> to vector<8x1xf32>
    %1039 = tpu.reciprocal %1038 {approx = true} : vector<8x1xf32> -> vector<8x1xf32>
    %1040 = vector.broadcast %1039 : vector<8x1xf32> to vector<8x8xf32>
    %1041 = arith.mulf %1036, %1040 : vector<8x8xf32>
    %1042 = arith.truncf %1041 : vector<8x8xf32> to vector<8x8xbf16>
    %cst_340 = arith.constant dense<0.000000e+00> : vector<8x16xf32>
    %1043 = tpu.matmul %1042, %1026, %cst_340 {dimension_numbers = #tpu.dot_dimension_numbers<[1], [0], [0], [1], [0, 0, 1, 1], [], []>} : vector<8x8xbf16>, vector<8x16xbf16>, vector<8x16xf32> -> vector<8x16xf32>
    %c0_341 = arith.constant 0 : index
    %c112_342 = arith.constant 112 : index
    %1044 = vector.load %arg11[%c0_341, %c112_342] : memref<8x128xf32, #tpu.memory_space<vmem>>, vector<8x16xf32>
    tpu.vector_store %arg11[%c0_341, %c112_342], %1043 {strides = array<i32>} : memref<8x128xf32, #tpu.memory_space<vmem>>, vector<8x16xf32>,
    %c0_343 = arith.constant 0 : index
    %c0_344 = arith.constant 0 : index
    %1045 = vector.load %arg11[%c0_343, %c0_344] : memref<8x128xf32, #tpu.memory_space<vmem>>, vector<8x128xf32>
    %1046 = arith.truncf %1045 : vector<8x128xf32> to vector<8x128xbf16>
    %c3_345 = arith.constant 3 : index
    %c0_346 = arith.constant 0 : index
    %c0_347 = arith.constant 0 : index
    %1047 = vector.load %arg5[%c3_345, %c0_346, %c0_347] : memref<4x128x128xbf16, #tpu.memory_space<vmem>>, vector<1x128x128xbf16>
    %1048 = vector.shape_cast %1047 : vector<1x128x128xbf16> to vector<128x128xbf16>
    %cst_348 = arith.constant dense<0.000000e+00> : vector<8x128xf32>
    %1049 = tpu.matmul %1046, %1048, %cst_348 {dimension_numbers = #tpu.dot_dimension_numbers<[1], [0], [0], [1], [0, 0, 1, 1], [], []>} : vector<8x128xbf16>, vector<128x128xbf16>, vector<8x128xf32> -> vector<8x128xf32>
    %1050 = vector.broadcast %839 : vector<1x128xf32> to vector<8x128xf32>
    %1051 = arith.addf %1049, %1050 : vector<8x128xf32>
    %1052 = arith.addf %836, %1051 : vector<8x128xf32>
    %cst_349 = arith.constant dense<0.000000e+00> : vector<8xf32>
    %1053 = vector.multi_reduction <add>, %1052, %cst_349 [1] : vector<8x128xf32> to vector<8xf32>
    %1054 = vector.shape_cast %1053 : vector<8xf32> to vector<8x1xf32>
    %cst_350 = arith.constant 1.280000e+02 : f32
    %1055 = vector.broadcast %cst_350 : f32 to vector<8x1xf32>
    %1056 = arith.divf %1054, %1055 : vector<8x1xf32>
    %1057 = vector.broadcast %1056 : vector<8x1xf32> to vector<8x128xf32>
    %1058 = arith.subf %1052, %1057 : vector<8x128xf32>
    %1059 = arith.mulf %1058, %1058 : vector<8x128xf32>
    %cst_351 = arith.constant dense<0.000000e+00> : vector<8xf32>
    %1060 = vector.multi_reduction <add>, %1059, %cst_351 [1] : vector<8x128xf32> to vector<8xf32>
    %1061 = vector.shape_cast %1060 : vector<8xf32> to vector<8x1xf32>
    %cst_352 = arith.constant 1.280000e+02 : f32
    %1062 = vector.broadcast %cst_352 : f32 to vector<8x1xf32>
    %1063 = arith.divf %1061, %1062 : vector<8x1xf32>
    %1064 = vector.broadcast %1056 : vector<8x1xf32> to vector<8x128xf32>
    %1065 = arith.subf %1052, %1064 : vector<8x128xf32>
    %cst_353 = arith.constant 9.99999997E-7 : f32
    %1066 = vector.broadcast %cst_353 : f32 to vector<8x1xf32>
    %1067 = arith.addf %1063, %1066 : vector<8x1xf32>
    %1068 = math.rsqrt %1067 : vector<8x1xf32>
    %1069 = vector.broadcast %1068 : vector<8x1xf32> to vector<8x128xf32>
    %1070 = arith.mulf %1065, %1069 : vector<8x128xf32>
    %1071 = vector.broadcast %840 : vector<1x128xf32> to vector<8x128xf32>
    %1072 = arith.mulf %1070, %1071 : vector<8x128xf32>
    %1073 = vector.broadcast %841 : vector<1x128xf32> to vector<8x128xf32>
    %1074 = arith.addf %1072, %1073 : vector<8x128xf32>
    %1075 = arith.truncf %1074 : vector<8x128xf32> to vector<8x128xbf16>
    %c3_354 = arith.constant 3 : index
    %c0_355 = arith.constant 0 : index
    %c0_356 = arith.constant 0 : index
    %1076 = vector.load %arg6[%c3_354, %c0_355, %c0_356] : memref<4x128x512xbf16, #tpu.memory_space<vmem>>, vector<1x128x512xbf16>
    %1077 = vector.shape_cast %1076 : vector<1x128x512xbf16> to vector<128x512xbf16>
    %cst_357 = arith.constant dense<0.000000e+00> : vector<8x512xf32>
    %1078 = tpu.matmul %1075, %1077, %cst_357 {dimension_numbers = #tpu.dot_dimension_numbers<[1], [0], [0], [1], [0, 0, 1, 1], [], []>} : vector<8x128xbf16>, vector<128x512xbf16>, vector<8x512xf32> -> vector<8x512xf32>
    %c3_358 = arith.constant 3 : index
    %c0_359 = arith.constant 0 : index
    %c0_360 = arith.constant 0 : index
    %1079 = vector.load %arg7[%c3_358, %c0_359, %c0_360] : memref<4x1x512xf32, #tpu.memory_space<vmem>>, vector<1x1x512xf32>
    %1080 = vector.shape_cast %1079 : vector<1x1x512xf32> to vector<1x512xf32>
    %1081 = vector.broadcast %1080 : vector<1x512xf32> to vector<8x512xf32>
    %1082 = arith.addf %1078, %1081 : vector<8x512xf32>
    %cst_361 = arith.constant 0.000000e+00 : f32
    %1083 = vector.broadcast %cst_361 : f32 to vector<8x512xf32>
    %1084 = arith.maximumf %1082, %1083 : vector<8x512xf32>
    %1085 = arith.truncf %1084 : vector<8x512xf32> to vector<8x512xbf16>
    %c3_362 = arith.constant 3 : index
    %c0_363 = arith.constant 0 : index
    %c0_364 = arith.constant 0 : index
    %1086 = vector.load %arg8[%c3_362, %c0_363, %c0_364] : memref<4x512x128xbf16, #tpu.memory_space<vmem>>, vector<1x512x128xbf16>
    %1087 = vector.shape_cast %1086 : vector<1x512x128xbf16> to vector<512x128xbf16>
    %cst_365 = arith.constant dense<0.000000e+00> : vector<8x128xf32>
    %1088 = tpu.matmul %1085, %1087, %cst_365 {dimension_numbers = #tpu.dot_dimension_numbers<[1], [0], [0], [1], [0, 0, 1, 1], [], []>} : vector<8x512xbf16>, vector<512x128xbf16>, vector<8x128xf32> -> vector<8x128xf32>
    %1089 = vector.broadcast %844 : vector<1x128xf32> to vector<8x128xf32>
    %1090 = arith.addf %1088, %1089 : vector<8x128xf32>
    %1091 = arith.addf %1074, %1090 : vector<8x128xf32>
    %cst_366 = arith.constant dense<0.000000e+00> : vector<8xf32>
    %1092 = vector.multi_reduction <add>, %1091, %cst_366 [1] : vector<8x128xf32> to vector<8xf32>
    %1093 = vector.shape_cast %1092 : vector<8xf32> to vector<8x1xf32>
    %cst_367 = arith.constant 1.280000e+02 : f32
    %1094 = vector.broadcast %cst_367 : f32 to vector<8x1xf32>
    %1095 = arith.divf %1093, %1094 : vector<8x1xf32>
    %1096 = vector.broadcast %1095 : vector<8x1xf32> to vector<8x128xf32>
    %1097 = arith.subf %1091, %1096 : vector<8x128xf32>
    %1098 = arith.mulf %1097, %1097 : vector<8x128xf32>
    %cst_368 = arith.constant dense<0.000000e+00> : vector<8xf32>
    %1099 = vector.multi_reduction <add>, %1098, %cst_368 [1] : vector<8x128xf32> to vector<8xf32>
    %1100 = vector.shape_cast %1099 : vector<8xf32> to vector<8x1xf32>
    %cst_369 = arith.constant 1.280000e+02 : f32
    %1101 = vector.broadcast %cst_369 : f32 to vector<8x1xf32>
    %1102 = arith.divf %1100, %1101 : vector<8x1xf32>
    %1103 = vector.broadcast %1095 : vector<8x1xf32> to vector<8x128xf32>
    %1104 = arith.subf %1091, %1103 : vector<8x128xf32>
    %cst_370 = arith.constant 9.99999997E-7 : f32
    %1105 = vector.broadcast %cst_370 : f32 to vector<8x1xf32>
    %1106 = arith.addf %1102, %1105 : vector<8x1xf32>
    %1107 = math.rsqrt %1106 : vector<8x1xf32>
    %1108 = vector.broadcast %1107 : vector<8x1xf32> to vector<8x128xf32>
    %1109 = arith.mulf %1104, %1108 : vector<8x128xf32>
    %1110 = vector.broadcast %842 : vector<1x128xf32> to vector<8x128xf32>
    %1111 = arith.mulf %1109, %1110 : vector<8x128xf32>
    %1112 = vector.broadcast %843 : vector<1x128xf32> to vector<8x128xf32>
    %1113 = arith.addf %1111, %1112 : vector<8x128xf32>
    %1114 = arith.truncf %1113 : vector<8x128xf32> to vector<8x128xbf16>
    %c0_371 = arith.constant 0 : index
    %c0_372 = arith.constant 0 : index
    %c0_373 = arith.constant 0 : index
    %1115 = vector.load %arg10[%c0_371, %c0_372, %c0_373] : memref<1x8x128xbf16, #tpu.memory_space<vmem>>, vector<1x8x128xbf16>
    %1116 = vector.shape_cast %1115 : vector<1x8x128xbf16> to vector<8x128xbf16>
    %1117 = vector.shape_cast %1114 : vector<8x128xbf16> to vector<1x8x128xbf16>
    tpu.vector_store %arg10[%c0_371, %c0_372, %c0_373], %1117 {strides = array<i32>} : memref<1x8x128xbf16, #tpu.memory_space<vmem>>, vector<1x8x128xbf16>,
    return
  }
  func.func @transform_0(%arg0: i32) -> (i32, i32, i32) {
    %c0_i32 = arith.constant 0 : i32
    %c0_i32_0 = arith.constant 0 : i32
    %c0_i32_1 = arith.constant 0 : i32
    return %arg0, %c0_i32, %c0_i32_0 : i32, i32, i32
  }
  func.func @transform_1(%arg0: i32) -> (i32, i32, i32) {
    %c0_i32 = arith.constant 0 : i32
    %c0_i32_0 = arith.constant 0 : i32
    %c0_i32_1 = arith.constant 0 : i32
    return %arg0, %c0_i32, %c0_i32_0 : i32, i32, i32
  }
  func.func @transform_2(%arg0: i32) -> (i32, i32, i32) {
    %c0_i32 = arith.constant 0 : i32
    %c0_i32_0 = arith.constant 0 : i32
    %c0_i32_1 = arith.constant 0 : i32
    %c0_i32_2 = arith.constant 0 : i32
    return %c0_i32, %c0_i32_0, %c0_i32_1 : i32, i32, i32
  }
  func.func @transform_3(%arg0: i32) -> (i32, i32, i32) {
    %c0_i32 = arith.constant 0 : i32
    %c0_i32_0 = arith.constant 0 : i32
    %c0_i32_1 = arith.constant 0 : i32
    %c0_i32_2 = arith.constant 0 : i32
    return %c0_i32, %c0_i32_0, %c0_i32_1 : i32, i32, i32
  }
  func.func @transform_4(%arg0: i32) -> (i32, i32, i32) {
    %c0_i32 = arith.constant 0 : i32
    %c0_i32_0 = arith.constant 0 : i32
    %c0_i32_1 = arith.constant 0 : i32
    %c0_i32_2 = arith.constant 0 : i32
    return %c0_i32, %c0_i32_0, %c0_i32_1 : i32, i32, i32
  }
  func.func @transform_5(%arg0: i32) -> (i32, i32, i32) {
    %c0_i32 = arith.constant 0 : i32
    %c0_i32_0 = arith.constant 0 : i32
    %c0_i32_1 = arith.constant 0 : i32
    %c0_i32_2 = arith.constant 0 : i32
    return %c0_i32, %c0_i32_0, %c0_i32_1 : i32, i32, i32
  }
  func.func @transform_6(%arg0: i32) -> (i32, i32, i32) {
    %c0_i32 = arith.constant 0 : i32
    %c0_i32_0 = arith.constant 0 : i32
    %c0_i32_1 = arith.constant 0 : i32
    %c0_i32_2 = arith.constant 0 : i32
    return %c0_i32, %c0_i32_0, %c0_i32_1 : i32, i32, i32
  }
  func.func @transform_7(%arg0: i32) -> (i32, i32, i32) {
    %c0_i32 = arith.constant 0 : i32
    %c0_i32_0 = arith.constant 0 : i32
    %c0_i32_1 = arith.constant 0 : i32
    %c0_i32_2 = arith.constant 0 : i32
    return %c0_i32, %c0_i32_0, %c0_i32_1 : i32, i32, i32
  }
  func.func @transform_8(%arg0: i32) -> (i32, i32, i32) {
    %c0_i32 = arith.constant 0 : i32
    %c0_i32_0 = arith.constant 0 : i32
    %c0_i32_1 = arith.constant 0 : i32
    %c0_i32_2 = arith.constant 0 : i32
    return %c0_i32, %c0_i32_0, %c0_i32_1 : i32, i32, i32
  }
  func.func @transform_9(%arg0: i32) -> (i32, i32, i32) {
    %c0_i32 = arith.constant 0 : i32
    %c0_i32_0 = arith.constant 0 : i32
    %c0_i32_1 = arith.constant 0 : i32
    return %arg0, %c0_i32, %c0_i32_0 : i32, i32, i32
  }
}

</mosaic_0001>

<bundles_post_ra>
// kernel: transformer_lm_forward.3
= control target key start
LH: loop header
LB: loop body
LE: loop exit
PB: predicated region body
PF: predicated region fallthrough
CT: control target
= control target key end

     0   :  { %8 = vsyncpa [#allocation3], 0  ;;  %s2402_s0 = inlined_call_operand.vmem [shape: bf16[16,128], index: 0, kind: input, shape index: {}]   ;;  %s2403_s1 = inlined_call_operand.hbm [shape: bf16[128,10240], index: 1, kind: input, shape index: {}]   ;;  %s2404_s2 = inlined_call_operand.hbm [shape: f32[1,10240], index: 2, kind: input, shape index: {}]   ;;  %s2405_s3 = inlined_call_operand.hbm [shape: f32[16,10000], index: 3, kind: output, shape index: {}]  }
   0x1   :  { %10 = vsyncpa [#allocation3 + $0x1], 0 }
   0x2   :  { %11 = vsyncpa [#allocation6], 0 }
   0x3   :  { %13 = vsyncpa [#allocation6 + $0x1], 0 }
   0x4   :  { %14 = vsyncpa [#allocation4], 0 }
   0x5   :  { %16 = vsyncpa [#allocation4 + $0x1], 0  ;;  %s1963_s12 = smov 0   ;;  %s1965_s13 = smov 0  }
   0x6   :  { %s1967_s14 = smov 0   ;;  %s1969_s15 = smov 0  }
   0x7 LB: > { %s1984_s16 = sadd.s32 4294967295, %s1932_s15   ;;  %s1588_s17 = sadd.s32 4294967294, %s1932_s15   ;;  %s1932_s15 = sphi %s1969_s15, %s2421_s15   ;;  %s1928_s14 = sphi %s1967_s14, %s2420_s14   ;;  %s1924_s13 = sphi %s1965_s13, %s2419_s13   ;;  %s1920_s12 = sphi %s1963_s12, %s2418_s12  }
   0x8   : > { %s1988_s18 = sadd.s32 1, %s1932_s15   ;;  %s50_s19 = sadd.s32 1, %s1928_s14 }
   0x9   : > { %s47_s20 = ssub.s32 %s1932_s15, %s1988_s18  ;;  %p57_p0 = scmp.ne.s32.totalorder %s1928_s14, %s1924_s13 }
   0xa   : > { %p48_p1 = scmp.eq.s32.totalorder %s47_s20, 0  ;;  %p58_p2 = scmp.eq.s32.totalorder %s1932_s15, 0 }
   0xb   : > { %p63_p3 = scmp.ne.s32.totalorder %s1924_s13, %s1920_s12  ;;  %p64_p4 = scmp.eq.s32.totalorder %s1984_s16, 0 }
   0xc   : > { %s2000_s21 = scalar_select %p48_p1, %s1928_s14, %s50_s19  }
   0xd   : > { %p2002_p5 = por %p58_p2, %p57_p0  ;;  %p2006_p6 = por %p64_p4, %p63_p3 }
   0xe   : > { %p113_p7 = scmp.eq.s32.totalorder %s1984_s16, 4  ;;  %p119_p8 = scmp.eq.s32.totalorder %s1588_s17, 4 }
   0xf   : > { %s2408_s23 = scalar_select %p2006_p6, 1, 0 }
  0x10   : > { %p1761_p9 = scmp.lt.s32.totalorder %s1932_s15, 5  ;;  %p2012_p10 = por %p113_p7, %p57_p0 }
  0x11   : > { %p2016_p11 = por %p119_p8, %p63_p3  ;;  %s2021_s26 = sand.u32 1, %s1928_s14  }
  0x12   : > { %s2409_s24 = scalar_select %p2012_p10, 1, 0 }
  0x13   : > { %s2410_s25 = scalar_select %p2016_p11, 1, 0 }
  0x14   : > { %s1740_s27 = sshll.u32 %s1932_s15, 10  ;;  %s1591_s28 = sshll.u32 %s2021_s26, 10 }
  0x15   : > { %s2028_s4 = scalar_lea.hbm %s2403_s1, %s1740_s27  ;;  %s146_s5 = scalar_lea.vmem [#allocation2], %s1591_s28 }
  0x16   : > { %s153_s6 = sshll.u32 %s146_s5, 4  ;;  %p2032_p12 = pnand %p1761_p9, %p2002_p5  ;;  %s2036_s6 = int_to_ptr.vmem [resolvable:$true] %s153_s6 }
  0x17   : > { %s143_s8 = scalar_lea.sflag [#allocation3], %s2021_s26  ;;  %s1802_s9 = scalar_lea.hbm %s2028_s4, 16384 }
  0x18   : > { %p1803_p0 = scmp.ne.s32.totalorder %s2028_s4, %s1802_s9  ;;  %p1804_p1 = pneg %p2032_p12 }
  0x19   : > { %s1807_s17 = scalar_lea.hbm %s2403_s1, 81920  ;;  %p1808_p4 = scmp.lt.u32.totalorder %s2028_s4, %s2403_s1 }
  0x1a   : > { %p1805_p2 = pnand %p1804_p1, %p1803_p0  ;;  %p1809_p5 = scmp.lt.u32.totalorder %s1807_s17, %s1802_s9 }
  0x1b   : > { %p1811_p8 = scmp.lt.u32.totalorder %s1802_s9, %s2028_s4 }
  0x1c   : > { %p1806_p3 = pneg %p1805_p2  ;;  %p1810_p7 = por %p1809_p5, %p1808_p4 }
  0x1e   : > { %p1812_p9 = por %p1811_p8, %p1810_p7 }
  0x20   : > { %p1813_p13 = pnand %p1812_p9, %p1806_p3 }
  0x22   : > { %1816 = shalt.err (!%p1813_p13)
}
  0x23   : > { %s1817_s22 = scalar_lea.vmem %s2036_s6, 16384  ;;  %s1934_s27 = smov [#allocation2]  }
  0x24   : > { %p1818_p0 = scmp.ne.s32.totalorder %s2036_s6, %s1817_s22  ;;  %s1822_s28 = sshll.u32 %s1934_s27, 4  ;;  %s1823_s28 = int_to_ptr.vmem [resolvable:$false] %s1822_s28 }
  0x25   : > { %s1824_s29 = scalar_lea.vmem %s1823_s28, 32768  ;;  %p1825_p10 = scmp.lt.s32.totalorder %s2036_s6, %s1823_s28 }
  0x26   : > { %p1820_p2 = pnand %p1818_p0, %p1804_p1  ;;  %p1826_p4 = scmp.lt.s32.totalorder %s1824_s29, %s1817_s22 }
  0x28   : > { %p1821_p11 = pneg %p1820_p2  ;;  %p1827_p5 = por %p1826_p4, %p1825_p10 }
  0x2a   : > { %p1828_p7 = pnand %p1827_p5, %p1821_p11 }
  0x2c   : > { %1831 = shalt.err (!%p1828_p7)
}
  0x2d   : > { %s1935_s30 = smov 5120   ;;  %s1936_s5 = smov 1024  }
  0x2e   : > { %s1937_s9 = smov 64   ;;  %p180_p13 = scmp.lt.s32.totalorder %s1932_s15, 6 }
  0x2f   : > { %1753 = dma.hbm_to_vmem [thread:$0]  (!%p2032_p12), %s2028_s4, 16384, %s2036_s6, %s143_s8, %s1935_s30, %s1936_s5, %s1937_s9  }
  0x30   : > { %s1594_s10 = sshll.u32 %s2021_s26, 4  ;;  %s1741_s11 = sshll.u32 %s1932_s15, 8 }
  0x31   : > { %p2412_p10 = scmp.ge.s32.totalorder %s1932_s15, 1  ;;  %s2079_s22 = scalar_lea.hbm %s2404_s2, %s1741_s11 }
  0x32   : > { %s167_s27 = scalar_lea.vmem [#allocation5], %s1594_s10  ;;  %s164_s4 = scalar_lea.sflag [#allocation6], %s2021_s26 }
  0x33   : > { %p2072_p11 = pnand %p2412_p10, %p180_p13  ;;  %s175_s28 = sshll.u32 %s167_s27, 4  ;;  %s176_s28 = int_to_ptr.vmem [resolvable:$true] %s175_s28 }
  0x34   : > { %s1832_s6 = scalar_lea.hbm %s2079_s22, 256  ;;  %s1837_s30 = scalar_lea.hbm %s2404_s2, 1280 }
  0x35   : > { %s2413_s17 = scalar_select %p2072_p11, 1, 0 }
  0x36   : > { %p1833_p3 = scmp.ne.s32.totalorder %s2079_s22, %s1832_s6  ;;  %p1838_p0 = scmp.lt.u32.totalorder %s2079_s22, %s2404_s2 }
  0x37   : > { %p1839_p2 = scmp.lt.u32.totalorder %s1837_s30, %s1832_s6  ;;  %p1841_p5 = scmp.lt.u32.totalorder %s1832_s6, %s2079_s22 }
  0x38   : > { %p1835_p8 = pnand %p1833_p3, %p1804_p1 }
  0x39   : > { %p1840_p4 = por %p1839_p2, %p1838_p0 }
  0x3a   : > { %p1836_p9 = pneg %p1835_p8 }
  0x3b   : > { %p1842_p7 = por %p1841_p5, %p1840_p4 }
  0x3d   : > { %p1843_p13 = pnand %p1842_p7, %p1836_p9 }
  0x3f   : > { %1846 = shalt.err (!%p1843_p13)
}
  0x40   : > { %s1847_s26 = scalar_lea.vmem %s176_s28, 256  ;;  %s1938_s10 = smov [#allocation5]  }
  0x41   : > { %p1848_p10 = scmp.ne.s32.totalorder %s176_s28, %s1847_s26  ;;  %s1852_s11 = sshll.u32 %s1938_s10, 4  ;;  %s1853_s11 = int_to_ptr.vmem [resolvable:$false] %s1852_s11 }
  0x42   : > { %s1854_s19 = scalar_lea.vmem %s1853_s11, 512  ;;  %p1855_p6 = scmp.lt.s32.totalorder %s176_s28, %s1853_s11 }
  0x43   : > { %p1850_p3 = pnand %p1848_p10, %p1804_p1  ;;  %p1856_p11 = scmp.lt.s32.totalorder %s1854_s19, %s1847_s26 }
  0x45   : > { %p1851_p8 = pneg %p1850_p3  ;;  %p1857_p0 = por %p1856_p11, %p1855_p6 }
  0x47   : > { %p1858_p2 = pnand %p1857_p0, %p1851_p8 }
  0x49   : > { %1861 = shalt.err (!%p1858_p2)
}
  0x4a   : > { %1756 = dma.hbm_to_vmem [thread:$0]  (!%p2032_p12), %s2079_s22, 256, %s176_s28, %s164_s4  }
  0x4b   : > { %p2414_p9 = scmp.ne.s32.totalorder %s2413_s17, 0 }
  0x4c   : > { %s2104_s20 = sand.u32 (!%p2414_p9), 1, %s1924_s13   ;;  %p2415_p6 = scmp.ne.s32.totalorder (!%p2414_p9), %s2408_s23, 0 }
  0x4d   : > { %184 = sbr.rel (%p2414_p9) target bundleno = 467 (0x1d3), region = 32  ;;  %s1598_s27 = sshll.u32 (!%p2414_p9), %s2104_s20, 10 }
  0x4e   : > { %s187_s6 = scalar_lea.sflag (!%p2414_p9), [#allocation3], %s2104_s20  ;;  %s2108_s8 = scalar_lea.vmem (!%p2414_p9), [#allocation2], %s1598_s27 }
  0x54   : > { %1907 = dma.done.wait (%p2415_p6), %s187_s6, 16384  }
  0x55   : > { %1909 = vsyncadd (%p2415_p6), %s187_s6, 4294950912  ;;  %s1599_s7 = sshll.u32 %s2104_s20, 4  ;;  %s196_s17 = scalar_lea.sflag [#allocation6], %s2104_s20 }
  0x56   : > { %s2116_s22 = scalar_lea.vmem [#allocation5], %s1599_s7 }
  0x57   : > { %1911 = dma.done.wait (%p2415_p6), %s196_s17, 256  }
  0x58   : > { %1913 = vsyncadd (%p2415_p6), %s196_s17, 4294967040  ;;  %v1939_v0 = vmov 0   ;;  %v237_v1 = vld [vmem:[%s2108_s8] sm:$0xff]  ;;  %v238_v3 = vld [vmem:[%s2108_s8 + $0x8] sm:$0xff]  ;;  %s1600_s4 = sshll.u32 %s2104_s20, 8  ;;  %s1472_s30 = scalar_lea.sflag [#allocation4], %s2104_s20 }
  0x59   : > { %1127 = vmatprep.mubr.bf16.mxu0 %v1939_v0  ;;  %1170 = vmatprep.mubr.bf16.mxu1 %v1939_v0  ;;  %v245_v2 = vld [vmem:[%s2108_s8 + $0x40] sm:$0xff]  ;;  %v246_v5 = vld [vmem:[%s2108_s8 + $0x48] sm:$0xff]  ;;  %v239_v63 = vld [vmem:[%s2108_s8 + $0x10] sm:$0xff]  ;;  %s2287_s29 = scalar_lea.vmem [#allocation7], %s1600_s4  ;;  %p2416_p12 = scmp.ne.s32.totalorder %s2409_s24, 0 }
  0x5a   : > { %v1603_v4 = vcombine.high %v237_v1, %v245_v2  ;;  %v1602_v6 = vcombine.low %v237_v1, %v245_v2  ;;  %v253_v7 = vld [vmem:[%s2108_s8 + $0x80] sm:$0xff]  ;;  %v1605_v9 = vcombine.high %v238_v3, %v246_v5  ;;  %v1604_v10 = vcombine.low %v238_v3, %v246_v5  ;;  %v254_v12 = vld [vmem:[%s2108_s8 + $0x88] sm:$0xff]  ;;  %v247_v1 = vld [vmem:[%s2108_s8 + $0x50] sm:$0xff]  ;;  %s1731_s5 = sshll.u32 (%p2416_p12), %s1984_s16, 4 }
  0x5b   : > { %v261_v8 = vld [vmem:[%s2108_s8 + $0xc0] sm:$0xff]  ;;  %v262_v13 = vld [vmem:[%s2108_s8 + $0xc8] sm:$0xff]  ;;  %v240_v2 = vld [vmem:[%s2108_s8 + $0x18] sm:$0xff]  ;;  %s1480_s9 = ssub.s32 (%p2416_p12), 79, %s1731_s5 }
  0x5c   : > { %v1619_v11 = vcombine.high %v253_v7, %v261_v8  ;;  %v269_v14 = vld [vmem:[%s2108_s8 + $0x100] sm:$0xff]  ;;  %1095 = vmatprep.subr.bf16.mxu0 %v1603_v4  ;;  %v1621_v15 = vcombine.high %v254_v12, %v262_v13  ;;  %v270_v17 = vld [vmem:[%s2108_s8 + $0x108] sm:$0xff]  ;;  %1138 = vmatprep.subr.bf16.mxu1 %v1605_v9  ;;  %v1618_v19 = vcombine.low %v253_v7, %v261_v8  ;;  %v248_v3 = vld [vmem:[%s2108_s8 + $0x58] sm:$0xff]  ;;  %p1481_p1 = scmp.lt.s32.totalorder (%p2416_p12), %s1480_s9, 16 }
  0x5d   : > { %v277_v16 = vld [vmem:[%s2108_s8 + $0x140] sm:$0xff]  ;;  %v278_v18 = vld [vmem:[%s2108_s8 + $0x148] sm:$0xff]  ;;  %1096 = vmatpush1.bf16.msra.mxu0 %v1602_v6  ;;  %1139 = vmatpush1.bf16.msra.mxu1 %v1604_v10  ;;  %v1620_v20 = vcombine.low %v254_v12, %v262_v13  ;;  %v1607_v6 = vcombine.high %v239_v63, %v247_v1  ;;  %v1609_v7 = vcombine.high %v240_v2, %v248_v3  ;;  %v255_v8 = vld [vmem:[%s2108_s8 + $0x90] sm:$0xff] }
  0x5e   : > { %1097 = vmatprep.subr.bf16.mxu0 %v1619_v11  ;;  %v1635_v21 = vcombine.high %v269_v14, %v277_v16  ;;  %1140 = vmatprep.subr.bf16.mxu1 %v1621_v15  ;;  %v1637_v22 = vcombine.high %v270_v17, %v278_v18  ;;  %v285_v23 = vld [vmem:[%s2108_s8 + $0x180] sm:$0xff]  ;;  %v286_v25 = vld [vmem:[%s2108_s8 + $0x188] sm:$0xff]  ;;  %v1634_v27 = vcombine.low %v269_v14, %v277_v16  ;;  %v263_v9 = vld [vmem:[%s2108_s8 + $0xd0] sm:$0xff] }
  0x5f   : > { %v293_v24 = vld [vmem:[%s2108_s8 + $0x1c0] sm:$0xff]  ;;  %v294_v26 = vld [vmem:[%s2108_s8 + $0x1c8] sm:$0xff]  ;;  %v1636_v28 = vcombine.low %v270_v17, %v278_v18  ;;  %v256_v11 = vld [vmem:[%s2108_s8 + $0x98] sm:$0xff]  ;;  %v1606_v13 = vcombine.low %v239_v63, %v247_v1  ;;  %v1608_v14 = vcombine.low %v240_v2, %v248_v3  ;;  %v1623_v15 = vcombine.high %v255_v8, %v263_v9 }
  0x60   : > { %v1651_v29 = vcombine.high %v285_v23, %v293_v24  ;;  %v1653_v30 = vcombine.high %v286_v25, %v294_v26  ;;  %v301_v31 = vld [vmem:[%s2108_s8 + $0x200] sm:$0xff]  ;;  %v302_v33 = vld [vmem:[%s2108_s8 + $0x208] sm:$0xff]  ;;  %v1650_v35 = vcombine.low %v285_v23, %v293_v24  ;;  %v1652_v36 = vcombine.low %v286_v25, %v294_v26  ;;  %v264_v12 = vld [vmem:[%s2108_s8 + $0xd8] sm:$0xff] }
  0x61   : > { %1098 = vmatpush1.bf16.msra.mxu0 %v1618_v19  ;;  %1141 = vmatpush1.bf16.msra.mxu1 %v1620_v20  ;;  %v309_v32 = vld [vmem:[%s2108_s8 + $0x240] sm:$0xff]  ;;  %v310_v34 = vld [vmem:[%s2108_s8 + $0x248] sm:$0xff]  ;;  %v1625_v16 = vcombine.high %v256_v11, %v264_v12  ;;  %v271_v17 = vld [vmem:[%s2108_s8 + $0x110] sm:$0xff] }
  0x62   : > { %1099 = vmatprep.subr.bf16.mxu0 %v1635_v21  ;;  %1142 = vmatprep.subr.bf16.mxu1 %v1637_v22  ;;  %v1667_v37 = vcombine.high %v301_v31, %v309_v32  ;;  %v1669_v38 = vcombine.high %v302_v33, %v310_v34  ;;  %v317_v39 = vld [vmem:[%s2108_s8 + $0x280] sm:$0xff]  ;;  %v318_v41 = vld [vmem:[%s2108_s8 + $0x288] sm:$0xff]  ;;  %v1666_v43 = vcombine.low %v301_v31, %v309_v32  ;;  %v279_v18 = vld [vmem:[%s2108_s8 + $0x150] sm:$0xff] }
  0x63   : > { %v325_v40 = vld [vmem:[%s2108_s8 + $0x2c0] sm:$0xff]  ;;  %v326_v42 = vld [vmem:[%s2108_s8 + $0x2c8] sm:$0xff]  ;;  %v1668_v44 = vcombine.low %v302_v33, %v310_v34  ;;  %v272_v19 = vld [vmem:[%s2108_s8 + $0x118] sm:$0xff]  ;;  %v1622_v21 = vcombine.low %v255_v8, %v263_v9  ;;  %v1624_v22 = vcombine.low %v256_v11, %v264_v12  ;;  %v1639_v23 = vcombine.high %v271_v17, %v279_v18 }
  0x64   : > { %v1683_v45 = vcombine.high %v317_v39, %v325_v40  ;;  %v1685_v46 = vcombine.high %v318_v41, %v326_v42  ;;  %v333_v47 = vld [vmem:[%s2108_s8 + $0x300] sm:$0xff]  ;;  %v334_v49 = vld [vmem:[%s2108_s8 + $0x308] sm:$0xff]  ;;  %v1682_v51 = vcombine.low %v317_v39, %v325_v40  ;;  %v1684_v52 = vcombine.low %v318_v41, %v326_v42  ;;  %v280_v20 = vld [vmem:[%s2108_s8 + $0x158] sm:$0xff] }
  0x65   : > { %1100 = vmatpush1.bf16.msra.mxu0 %v1634_v27  ;;  %1143 = vmatpush1.bf16.msra.mxu1 %v1636_v28  ;;  %v341_v48 = vld [vmem:[%s2108_s8 + $0x340] sm:$0xff]  ;;  %v342_v50 = vld [vmem:[%s2108_s8 + $0x348] sm:$0xff]  ;;  %v1641_v24 = vcombine.high %v272_v19, %v280_v20  ;;  %v287_v25 = vld [vmem:[%s2108_s8 + $0x190] sm:$0xff] }
  0x66   : > { %1101 = vmatprep.subr.bf16.mxu0 %v1651_v29  ;;  %1144 = vmatprep.subr.bf16.mxu1 %v1653_v30  ;;  %v1699_v53 = vcombine.high %v333_v47, %v341_v48  ;;  %v1701_v54 = vcombine.high %v334_v49, %v342_v50  ;;  %v349_v55 = vld [vmem:[%s2108_s8 + $0x380] sm:$0xff]  ;;  %v350_v57 = vld [vmem:[%s2108_s8 + $0x388] sm:$0xff]  ;;  %v1698_v59 = vcombine.low %v333_v47, %v341_v48  ;;  %v295_v26 = vld [vmem:[%s2108_s8 + $0x1d0] sm:$0xff] }
  0x67   : > { %v357_v56 = vld [vmem:[%s2108_s8 + $0x3c0] sm:$0xff]  ;;  %v358_v58 = vld [vmem:[%s2108_s8 + $0x3c8] sm:$0xff]  ;;  %v1700_v60 = vcombine.low %v334_v49, %v342_v50  ;;  %v288_v27 = vld [vmem:[%s2108_s8 + $0x198] sm:$0xff]  ;;  %v1638_v29 = vcombine.low %v271_v17, %v279_v18  ;;  %v1640_v30 = vcombine.low %v272_v19, %v280_v20  ;;  %v1655_v31 = vcombine.high %v287_v25, %v295_v26 }
  0x68   : > { %v1715_v61 = vcombine.high %v349_v55, %v357_v56  ;;  %v1717_v62 = vcombine.high %v350_v57, %v358_v58  ;;  %v1714_v4 = vcombine.low %v349_v55, %v357_v56  ;;  %v1716_v5 = vcombine.low %v350_v57, %v358_v58  ;;  %v2165_v10 = vld [vmem:[%s2402_s0] sm:$0xff]   ;;  %v296_v28 = vld [vmem:[%s2108_s8 + $0x1d8] sm:$0xff]  ;;  %v303_v33 = vld [vmem:[%s2108_s8 + $0x210] sm:$0xff] }
  0x69   : > { %1102 = vmatpush1.bf16.msra.mxu0 %v1650_v35  ;;  %1145 = vmatpush1.bf16.msra.mxu1 %v1652_v36  ;;  %v1657_v32 = vcombine.high %v288_v27, %v296_v28  ;;  %v311_v34 = vld [vmem:[%s2108_s8 + $0x250] sm:$0xff]  ;;  %v304_v35 = vld [vmem:[%s2108_s8 + $0x218] sm:$0xff]  ;;  %v241_v2 = vld [vmem:[%s2108_s8 + $0x20] sm:$0xff] }
  0x6a   : > { %1103 = vmatprep.subr.bf16.mxu0 %v1667_v37  ;;  %1146 = vmatprep.subr.bf16.mxu1 %v1669_v38  ;;  %v312_v36 = vld [vmem:[%s2108_s8 + $0x258] sm:$0xff]  ;;  %v1654_v37 = vcombine.low %v287_v25, %v295_v26  ;;  %v1656_v38 = vcombine.low %v288_v27, %v296_v28  ;;  %v1671_v39 = vcombine.high %v303_v33, %v311_v34  ;;  %v319_v41 = vld [vmem:[%s2108_s8 + $0x290] sm:$0xff]  ;;  %v249_v3 = vld [vmem:[%s2108_s8 + $0x60] sm:$0xff] }
  0x6b   : > { %v1673_v40 = vcombine.high %v304_v35, %v312_v36  ;;  %v327_v42 = vld [vmem:[%s2108_s8 + $0x2d0] sm:$0xff]  ;;  %v1611_v8 = vcombine.high %v241_v2, %v249_v3  ;;  %v257_v11 = vld [vmem:[%s2108_s8 + $0xa0] sm:$0xff] }
  0x6c   : > { %v1687_v47 = vcombine.high %v319_v41, %v327_v42  ;;  %v335_v49 = vld [vmem:[%s2108_s8 + $0x310] sm:$0xff]  ;;  %v265_v12 = vld [vmem:[%s2108_s8 + $0xe0] sm:$0xff] }
  0x6d   : > { %1104 = vmatpush1.bf16.msra.mxu0 %v1666_v43  ;;  %1147 = vmatpush1.bf16.msra.mxu1 %v1668_v44  ;;  %v320_v43 = vld [vmem:[%s2108_s8 + $0x298] sm:$0xff]  ;;  %v343_v50 = vld [vmem:[%s2108_s8 + $0x350] sm:$0xff]  ;;  %v1627_v17 = vcombine.high %v257_v11, %v265_v12  ;;  %v273_v19 = vld [vmem:[%s2108_s8 + $0x120] sm:$0xff] }
  0x6e   : > { %1105 = vmatprep.subr.bf16.mxu0 %v1683_v45  ;;  %1148 = vmatprep.subr.bf16.mxu1 %v1685_v46  ;;  %v328_v44 = vld [vmem:[%s2108_s8 + $0x2d8] sm:$0xff]  ;;  %v1670_v45 = vcombine.low %v303_v33, %v311_v34  ;;  %v1672_v46 = vcombine.low %v304_v35, %v312_v36  ;;  %v1703_v55 = vcombine.high %v335_v49, %v343_v50  ;;  %v351_v57 = vld [vmem:[%s2108_s8 + $0x390] sm:$0xff]  ;;  %v281_v20 = vld [vmem:[%s2108_s8 + $0x160] sm:$0xff] }
  0x6f   : > { %v1689_v48 = vcombine.high %v320_v43, %v328_v44  ;;  %v359_v58 = vld [vmem:[%s2108_s8 + $0x3d0] sm:$0xff]  ;;  %v1643_v25 = vcombine.high %v273_v19, %v281_v20  ;;  %v289_v27 = vld [vmem:[%s2108_s8 + $0x1a0] sm:$0xff] }
  0x70   : > { %v1719_v63 = vcombine.high %v351_v57, %v359_v58  ;;  %v297_v28 = vld [vmem:[%s2108_s8 + $0x1e0] sm:$0xff] }
  0x71   : > { %1106 = vmatpush1.bf16.msra.mxu0 %v1682_v51  ;;  %1149 = vmatpush1.bf16.msra.mxu1 %v1684_v52  ;;  %v336_v51 = vld [vmem:[%s2108_s8 + $0x318] sm:$0xff]  ;;  %v1659_v33 = vcombine.high %v289_v27, %v297_v28  ;;  %v305_v35 = vld [vmem:[%s2108_s8 + $0x220] sm:$0xff] }
  0x72   : > { %1107 = vmatprep.subr.bf16.mxu0 %v1699_v53  ;;  %1150 = vmatprep.subr.bf16.mxu1 %v1701_v54  ;;  %v344_v52 = vld [vmem:[%s2108_s8 + $0x358] sm:$0xff]  ;;  %v1686_v53 = vcombine.low %v319_v41, %v327_v42  ;;  %v1688_v54 = vcombine.low %v320_v43, %v328_v44  ;;  %v313_v36 = vld [vmem:[%s2108_s8 + $0x260] sm:$0xff] }
  0x73   : > { %v1705_v56 = vcombine.high %v336_v51, %v344_v52  ;;  %v1675_v41 = vcombine.high %v305_v35, %v313_v36  ;;  %v321_v43 = vld [vmem:[%s2108_s8 + $0x2a0] sm:$0xff] }
  0x74   : > { %v329_v44 = vld [vmem:[%s2108_s8 + $0x2e0] sm:$0xff] }
  0x75   : > { %1108 = vmatpush1.bf16.msra.mxu0 %v1698_v59  ;;  %1151 = vmatpush1.bf16.msra.mxu1 %v1700_v60  ;;  %v352_v59 = vld [vmem:[%s2108_s8 + $0x398] sm:$0xff] }
  0x76   : > { %1109 = vmatprep.subr.bf16.mxu0 %v1715_v61  ;;  %1152 = vmatprep.subr.bf16.mxu1 %v1717_v62  ;;  %v360_v60 = vld [vmem:[%s2108_s8 + $0x3d8] sm:$0xff]  ;;  %v1702_v61 = vcombine.low %v335_v49, %v343_v50  ;;  %v1704_v62 = vcombine.low %v336_v51, %v344_v52  ;;  %v1691_v49 = vcombine.high %v321_v43, %v329_v44  ;;  %v337_v51 = vld [vmem:[%s2108_s8 + $0x320] sm:$0xff] }
  0x77   : > { %v1721_v1 = vcombine.high %v352_v59, %v360_v60  ;;  %v345_v52 = vld [vmem:[%s2108_s8 + $0x360] sm:$0xff] }
  0x79   : > { %1110 = vmatpush1.bf16.msra.mxu0 %v1714_v4  ;;  %1153 = vmatpush1.bf16.msra.mxu1 %v1716_v5  ;;  %v242_v4 = vld [vmem:[%s2108_s8 + $0x28] sm:$0xff] }
  0x7a   : > { %1181 = vmatprep.subr.bf16.mxu0 %v1607_v6  ;;  %1224 = vmatprep.subr.bf16.mxu1 %v1609_v7  ;;  %v250_v5 = vld [vmem:[%s2108_s8 + $0x68] sm:$0xff]  ;;  %v1718_v6 = vcombine.low %v351_v57, %v359_v58  ;;  %v1720_v7 = vcombine.low %v352_v59, %v360_v60  ;;  %v1707_v57 = vcombine.high %v337_v51, %v345_v52  ;;  %v353_v59 = vld [vmem:[%s2108_s8 + $0x3a0] sm:$0xff] }
  0x7b   : > { %v1613_v9 = vcombine.high %v242_v4, %v250_v5  ;;  %v361_v60 = vld [vmem:[%s2108_s8 + $0x3e0] sm:$0xff] }
  0x7c   : > { %1128 = vmatmul.mubr.bf16.vlgmr.msra.gmra.mrb[0].mxu0 %v2165_v10  ;;  %1171 = vmatmul.mubr.bf16.vlgmr.msra.gmra.mrb[0].mxu1 %v2165_v10 }
  0x7d   : > { %1182 = vmatpush1.bf16.msra.mxu0 %v1606_v13  ;;  %1225 = vmatpush1.bf16.msra.mxu1 %v1608_v14  ;;  %v258_v13 = vld [vmem:[%s2108_s8 + $0xa8] sm:$0xff] }
  0x7e   : > { %1183 = vmatprep.subr.bf16.mxu0 %v1623_v15  ;;  %1226 = vmatprep.subr.bf16.mxu1 %v1625_v16  ;;  %v266_v14 = vld [vmem:[%s2108_s8 + $0xe8] sm:$0xff]  ;;  %v1610_v15 = vcombine.low %v241_v2, %v249_v3  ;;  %v1612_v16 = vcombine.low %v242_v4, %v250_v5  ;;  %v1723_v2 = vcombine.high %v353_v59, %v361_v60  ;;  %v243_v4 = vld [vmem:[%s2108_s8 + $0x30] sm:$0xff] }
  0x7f   : > { %1213 = vmatprep.mubr.bf16.mxu0 %v1939_v0  ;;  %1256 = vmatprep.mubr.bf16.mxu1 %v1939_v0  ;;  %v1629_v18 = vcombine.high %v258_v13, %v266_v14  ;;  %v251_v5 = vld [vmem:[%s2108_s8 + $0x70] sm:$0xff] }
  0x81   : > { %1184 = vmatpush1.bf16.msra.mxu0 %v1622_v21  ;;  %1227 = vmatpush1.bf16.msra.mxu1 %v1624_v22  ;;  %v274_v21 = vld [vmem:[%s2108_s8 + $0x128] sm:$0xff] }
  0x82   : > { %1185 = vmatprep.subr.bf16.mxu0 %v1639_v23  ;;  %1228 = vmatprep.subr.bf16.mxu1 %v1641_v24  ;;  %v282_v22 = vld [vmem:[%s2108_s8 + $0x168] sm:$0xff]  ;;  %v1626_v23 = vcombine.low %v257_v11, %v265_v12  ;;  %v1628_v24 = vcombine.low %v258_v13, %v266_v14  ;;  %v1615_v11 = vcombine.high %v243_v4, %v251_v5  ;;  %v259_v13 = vld [vmem:[%s2108_s8 + $0xb0] sm:$0xff] }
  0x83   : > { %v1645_v26 = vcombine.high %v274_v21, %v282_v22  ;;  %v267_v14 = vld [vmem:[%s2108_s8 + $0xf0] sm:$0xff] }
  0x85   : > { %1186 = vmatpush1.bf16.msra.mxu0 %v1638_v29  ;;  %1229 = vmatpush1.bf16.msra.mxu1 %v1640_v30  ;;  %v290_v29 = vld [vmem:[%s2108_s8 + $0x1a8] sm:$0xff] }
  0x86   : > { %1187 = vmatprep.subr.bf16.mxu0 %v1655_v31  ;;  %1230 = vmatprep.subr.bf16.mxu1 %v1657_v32  ;;  %v298_v30 = vld [vmem:[%s2108_s8 + $0x1e8] sm:$0xff]  ;;  %v1642_v31 = vcombine.low %v273_v19, %v281_v20  ;;  %v1644_v32 = vcombine.low %v274_v21, %v282_v22  ;;  %v1631_v19 = vcombine.high %v259_v13, %v267_v14  ;;  %v275_v21 = vld [vmem:[%s2108_s8 + $0x130] sm:$0xff] }
  0x87   : > { %v1661_v34 = vcombine.high %v290_v29, %v298_v30  ;;  %v283_v22 = vld [vmem:[%s2108_s8 + $0x170] sm:$0xff] }
  0x89   : > { %1188 = vmatpush1.bf16.msra.mxu0 %v1654_v37  ;;  %1231 = vmatpush1.bf16.msra.mxu1 %v1656_v38  ;;  %v306_v37 = vld [vmem:[%s2108_s8 + $0x228] sm:$0xff] }
  0x8a   : > { %1189 = vmatprep.subr.bf16.mxu0 %v1671_v39  ;;  %1232 = vmatprep.subr.bf16.mxu1 %v1673_v40  ;;  %v314_v38 = vld [vmem:[%s2108_s8 + $0x268] sm:$0xff]  ;;  %v1658_v39 = vcombine.low %v289_v27, %v297_v28  ;;  %v1660_v40 = vcombine.low %v290_v29, %v298_v30  ;;  %v1647_v27 = vcombine.high %v275_v21, %v283_v22  ;;  %v291_v29 = vld [vmem:[%s2108_s8 + $0x1b0] sm:$0xff] }
  0x8b   : > { %v1677_v42 = vcombine.high %v306_v37, %v314_v38  ;;  %v299_v30 = vld [vmem:[%s2108_s8 + $0x1f0] sm:$0xff] }
  0x8d   : > { %1190 = vmatpush1.bf16.msra.mxu0 %v1670_v45  ;;  %1233 = vmatpush1.bf16.msra.mxu1 %v1672_v46  ;;  %v322_v45 = vld [vmem:[%s2108_s8 + $0x2a8] sm:$0xff] }
  0x8e   : > { %1191 = vmatprep.subr.bf16.mxu0 %v1687_v47  ;;  %1234 = vmatprep.subr.bf16.mxu1 %v1689_v48  ;;  %v330_v46 = vld [vmem:[%s2108_s8 + $0x2e8] sm:$0xff]  ;;  %v1674_v47 = vcombine.low %v305_v35, %v313_v36  ;;  %v1676_v48 = vcombine.low %v306_v37, %v314_v38  ;;  %v1663_v35 = vcombine.high %v291_v29, %v299_v30  ;;  %v307_v37 = vld [vmem:[%s2108_s8 + $0x230] sm:$0xff] }
  0x8f   : > { %v1693_v50 = vcombine.high %v322_v45, %v330_v46  ;;  %v315_v38 = vld [vmem:[%s2108_s8 + $0x270] sm:$0xff] }
  0x91   : > { %1192 = vmatpush1.bf16.msra.mxu0 %v1686_v53  ;;  %1235 = vmatpush1.bf16.msra.mxu1 %v1688_v54  ;;  %v338_v53 = vld [vmem:[%s2108_s8 + $0x328] sm:$0xff] }
  0x92   : > { %1193 = vmatprep.subr.bf16.mxu0 %v1703_v55  ;;  %1236 = vmatprep.subr.bf16.mxu1 %v1705_v56  ;;  %v346_v54 = vld [vmem:[%s2108_s8 + $0x368] sm:$0xff]  ;;  %v1690_v55 = vcombine.low %v321_v43, %v329_v44  ;;  %v1692_v56 = vcombine.low %v322_v45, %v330_v46  ;;  %v323_v44 = vld [vmem:[%s2108_s8 + $0x2b0] sm:$0xff]  ;;  %v324_v46 = vld [vmem:[%s2108_s8 + $0x2b8] sm:$0xff] }
  0x93   : > { %v1709_v58 = vcombine.high %v338_v53, %v346_v54  ;;  %v331_v45 = vld [vmem:[%s2108_s8 + $0x2f0] sm:$0xff] }
  0x95   : > { %1194 = vmatpush1.bf16.msra.mxu0 %v1702_v61  ;;  %1237 = vmatpush1.bf16.msra.mxu1 %v1704_v62  ;;  %v354_v61 = vld [vmem:[%s2108_s8 + $0x3a8] sm:$0xff] }
  0x96   : > { %1195 = vmatprep.subr.bf16.mxu0 %v1719_v63  ;;  %1238 = vmatprep.subr.bf16.mxu1 %v1721_v1  ;;  %v362_v62 = vld [vmem:[%s2108_s8 + $0x3e8] sm:$0xff]  ;;  %v1706_v63 = vcombine.low %v337_v51, %v345_v52  ;;  %v1708_v1 = vcombine.low %v338_v53, %v346_v54  ;;  %v339_v52 = vld [vmem:[%s2108_s8 + $0x330] sm:$0xff]  ;;  %v340_v54 = vld [vmem:[%s2108_s8 + $0x338] sm:$0xff] }
  0x97   : > { %v1725_v3 = vcombine.high %v354_v61, %v362_v62  ;;  %v347_v53 = vld [vmem:[%s2108_s8 + $0x370] sm:$0xff] }
  0x99   : > { %1196 = vmatpush1.bf16.msra.mxu0 %v1718_v6  ;;  %1239 = vmatpush1.bf16.msra.mxu1 %v1720_v7  ;;  %v244_v6 = vld [vmem:[%s2108_s8 + $0x38] sm:$0xff] }
  0x9a   : > { %1267 = vmatprep.subr.bf16.mxu0 %v1611_v8  ;;  %1310 = vmatprep.subr.bf16.mxu1 %v1613_v9  ;;  %v252_v7 = vld [vmem:[%s2108_s8 + $0x78] sm:$0xff]  ;;  %v1722_v8 = vcombine.low %v353_v59, %v361_v60  ;;  %v1724_v9 = vcombine.low %v354_v61, %v362_v62  ;;  %v355_v60 = vld [vmem:[%s2108_s8 + $0x3b0] sm:$0xff] }
  0x9b   : > { %v1617_v12 = vcombine.high %v244_v6, %v252_v7  ;;  %v363_v61 = vld [vmem:[%s2108_s8 + $0x3f0] sm:$0xff]  ;;  %v356_v62 = vld [vmem:[%s2108_s8 + $0x3b8] sm:$0xff] }
  0x9c   : > { %1214 = vmatmul.mubr.bf16.vlgmr.msra.gmra.mrb[4].mxu0 %v2165_v10  ;;  %1257 = vmatmul.mubr.bf16.vlgmr.msra.gmra.mrb[4].mxu1 %v2165_v10 }
  0x9d   : > { %1268 = vmatpush1.bf16.msra.mxu0 %v1610_v15  ;;  %1311 = vmatpush1.bf16.msra.mxu1 %v1612_v16  ;;  %v260_v15 = vld [vmem:[%s2108_s8 + $0xb8] sm:$0xff] }
  0x9e   : > { %1269 = vmatprep.subr.bf16.mxu0 %v1627_v17  ;;  %1312 = vmatprep.subr.bf16.mxu1 %v1629_v18  ;;  %v268_v16 = vld [vmem:[%s2108_s8 + $0xf8] sm:$0xff]  ;;  %v1614_v17 = vcombine.low %v243_v4, %v251_v5  ;;  %v1616_v18 = vcombine.low %v244_v6, %v252_v7  ;;  %v1726_v5 = vcombine.low %v355_v60, %v363_v61  ;;  %v369_v7 = vlaneseq }
  0x9f   : > { %1299 = vmatprep.mubr.bf16.mxu0 %v1939_v0  ;;  %1342 = vmatprep.mubr.bf16.mxu1 %v1939_v0  ;;  %v1633_v20 = vcombine.high %v260_v15, %v268_v16 }
  0xa1   : > { %1270 = vmatpush1.bf16.msra.mxu0 %v1626_v23  ;;  %1313 = vmatpush1.bf16.msra.mxu1 %v1628_v24  ;;  %v276_v23 = vld [vmem:[%s2108_s8 + $0x138] sm:$0xff] }
  0xa2   : > { %1271 = vmatprep.subr.bf16.mxu0 %v1643_v25  ;;  %1314 = vmatprep.subr.bf16.mxu1 %v1645_v26  ;;  %v284_v24 = vld [vmem:[%s2108_s8 + $0x178] sm:$0xff]  ;;  %v1630_v25 = vcombine.low %v259_v13, %v267_v14  ;;  %v1632_v26 = vcombine.low %v260_v15, %v268_v16 }
  0xa3   : > { %v1649_v28 = vcombine.high %v276_v23, %v284_v24 }
  0xa5   : > { %1272 = vmatpush1.bf16.msra.mxu0 %v1642_v31  ;;  %1315 = vmatpush1.bf16.msra.mxu1 %v1644_v32  ;;  %v292_v31 = vld [vmem:[%s2108_s8 + $0x1b8] sm:$0xff] }
  0xa6   : > { %1273 = vmatprep.subr.bf16.mxu0 %v1659_v33  ;;  %1316 = vmatprep.subr.bf16.mxu1 %v1661_v34  ;;  %v300_v32 = vld [vmem:[%s2108_s8 + $0x1f8] sm:$0xff]  ;;  %v1646_v33 = vcombine.low %v275_v21, %v283_v22  ;;  %v1648_v34 = vcombine.low %v276_v23, %v284_v24 }
  0xa7   : > { %v1665_v36 = vcombine.high %v292_v31, %v300_v32 }
  0xa9   : > { %1274 = vmatpush1.bf16.msra.mxu0 %v1658_v39  ;;  %1317 = vmatpush1.bf16.msra.mxu1 %v1660_v40  ;;  %v308_v39 = vld [vmem:[%s2108_s8 + $0x238] sm:$0xff] }
  0xaa   : > { %1275 = vmatprep.subr.bf16.mxu0 %v1675_v41  ;;  %1318 = vmatprep.subr.bf16.mxu1 %v1677_v42  ;;  %v316_v40 = vld [vmem:[%s2108_s8 + $0x278] sm:$0xff]  ;;  %v1662_v41 = vcombine.low %v291_v29, %v299_v30  ;;  %v1679_v42 = vcombine.high %v307_v37, %v315_v38 }
  0xab   : > { %v1681_v43 = vcombine.high %v308_v39, %v316_v40 }
  0xad   : > { %1276 = vmatpush1.bf16.msra.mxu0 %v1674_v47  ;;  %1319 = vmatpush1.bf16.msra.mxu1 %v1676_v48  ;;  %v332_v47 = vld [vmem:[%s2108_s8 + $0x2f8] sm:$0xff]  ;;  %v1678_v48 = vcombine.low %v307_v37, %v315_v38 }
  0xae   : > { %1277 = vmatprep.subr.bf16.mxu0 %v1691_v49  ;;  %1320 = vmatprep.subr.bf16.mxu1 %v1693_v50  ;;  %v1680_v49 = vcombine.low %v308_v39, %v316_v40  ;;  %v1695_v50 = vcombine.high %v323_v44, %v331_v45  ;;  %v1697_v51 = vcombine.high %v324_v46, %v332_v47 }
  0xb1   : > { %1278 = vmatpush1.bf16.msra.mxu0 %v1690_v55  ;;  %1321 = vmatpush1.bf16.msra.mxu1 %v1692_v56  ;;  %v348_v55 = vld [vmem:[%s2108_s8 + $0x378] sm:$0xff]  ;;  %v1694_v56 = vcombine.low %v323_v44, %v331_v45 }
  0xb2   : > { %1279 = vmatprep.subr.bf16.mxu0 %v1707_v57  ;;  %1322 = vmatprep.subr.bf16.mxu1 %v1709_v58  ;;  %v1696_v57 = vcombine.low %v324_v46, %v332_v47  ;;  %v1711_v58 = vcombine.high %v339_v52, %v347_v53  ;;  %v1713_v59 = vcombine.high %v340_v54, %v348_v55 }
  0xb5   : > { %1280 = vmatpush1.bf16.msra.mxu0 %v1706_v63  ;;  %1323 = vmatpush1.bf16.msra.mxu1 %v1708_v1  ;;  %v364_v63 = vld [vmem:[%s2108_s8 + $0x3f8] sm:$0xff]  ;;  %v1710_v1 = vcombine.low %v339_v52, %v347_v53 }
  0xb6   : > { %1281 = vmatprep.subr.bf16.mxu0 %v1723_v2  ;;  %1324 = vmatprep.subr.bf16.mxu1 %v1725_v3  ;;  %v1712_v2 = vcombine.low %v340_v54, %v348_v55  ;;  %v1727_v3 = vcombine.high %v355_v60, %v363_v61  ;;  %v1729_v4 = vcombine.high %v356_v62, %v364_v63 }
  0xb7   : > { %v1728_v6 = vcombine.low %v356_v62, %v364_v63 }
  0xb9   : > { %1282 = vmatpush1.bf16.msra.mxu0 %v1722_v8  ;;  %1325 = vmatpush1.bf16.msra.mxu1 %v1724_v9  ;;  %v2271_v8 = vshrl.u32 %v369_v7, 7 }
  0xba   : > { %1353 = vmatprep.subr.bf16.mxu0 %v1615_v11  ;;  %1396 = vmatprep.subr.bf16.mxu1 %v1617_v12  ;;  %v365_v11 = vld [vmem:[%s2116_s22] sm:$0xff] }
  0xbb   : > { %v371_v9 = vsub.s32 0, %v2271_v8  ;;  %v379_v12 = vsub.s32 2, %v2271_v8  ;;  %v375_v13 = vsub.s32 1, %v2271_v8  ;;  %v383_v14 = vsub.s32 3, %v2271_v8 }
  0xbc   : > { %1300 = vmatmul.mubr.bf16.vlgmr.msra.gmra.mrb[8].mxu0 %v2165_v10  ;;  %1343 = vmatmul.mubr.bf16.vlgmr.msra.gmra.mrb[8].mxu1 %v2165_v10  ;;  %v399_v37 = vsub.s32 7, %v2271_v8 }
  0xbd   : > { %1354 = vmatpush1.bf16.msra.mxu0 %v1614_v17  ;;  %1397 = vmatpush1.bf16.msra.mxu1 %v1616_v18  ;;  %v372_v15 = vrot.slane %v365_v11, %v371_v9  ;;  %v380_v16 = vrot.slane %v365_v11, %v379_v12  ;;  %v384_v17 = vrot.slane %v365_v11, %v383_v14 }
  0xbe   : > { %1355 = vmatprep.subr.bf16.mxu0 %v1631_v19  ;;  %1398 = vmatprep.subr.bf16.mxu1 %v1633_v20 }
  0xbf   : > { %1385 = vmatprep.mubr.bf16.mxu0 %v1939_v0  ;;  %1428 = vmatprep.mubr.bf16.mxu1 %v1939_v0  ;;  %v1664_v0 = vcombine.low %v292_v31, %v300_v32 }
  0xc1   : > { %1356 = vmatpush1.bf16.msra.mxu0 %v1630_v25  ;;  %1399 = vmatpush1.bf16.msra.mxu1 %v1632_v26 }
  0xc2   : > { %1357 = vmatprep.subr.bf16.mxu0 %v1647_v27  ;;  %1400 = vmatprep.subr.bf16.mxu1 %v1649_v28 }
  0xc5   : > { %1358 = vmatpush1.bf16.msra.mxu0 %v1646_v33  ;;  %1401 = vmatpush1.bf16.msra.mxu1 %v1648_v34  ;;  %v387_v34 = vsub.s32 4, %v2271_v8 }
  0xc6   : > { %1359 = vmatprep.subr.bf16.mxu0 %v1663_v35  ;;  %1402 = vmatprep.subr.bf16.mxu1 %v1665_v36  ;;  %v395_v35 = vsub.s32 6, %v2271_v8  ;;  %v391_v36 = vsub.s32 5, %v2271_v8 }
  0xc7   : > { %v388_v38 = vrot.slane %v365_v11, %v387_v34 }
  0xc8   : > { %v396_v39 = vrot.slane %v365_v11, %v395_v35  ;;  %v392_v40 = vrot.slane %v365_v11, %v391_v36 }
  0xc9   : > { %1360 = vmatpush1.bf16.msra.mxu0 %v1662_v41  ;;  %1403 = vmatpush1.bf16.msra.mxu1 %v1664_v0  ;;  %v400_v41 = vrot.slane %v365_v11, %v399_v37 }
  0xca   : > { %1361 = vmatprep.subr.bf16.mxu0 %v1679_v42  ;;  %1404 = vmatprep.subr.bf16.mxu1 %v1681_v43 }
  0xcd   : > { %1362 = vmatpush1.bf16.msra.mxu0 %v1678_v48  ;;  %1405 = vmatpush1.bf16.msra.mxu1 %v1680_v49 }
  0xce   : > { %1363 = vmatprep.subr.bf16.mxu0 %v1695_v50  ;;  %1406 = vmatprep.subr.bf16.mxu1 %v1697_v51 }
  0xd1   : > { %1364 = vmatpush1.bf16.msra.mxu0 %v1694_v56  ;;  %1407 = vmatpush1.bf16.msra.mxu1 %v1696_v57  ;;  %v366_v57 = vld [vmem:[%s2116_s22 + $0x8] sm:$0xff] }
  0xd2   : > { %1365 = vmatprep.subr.bf16.mxu0 %v1711_v58  ;;  %1408 = vmatprep.subr.bf16.mxu1 %v1713_v59  ;;  %v404_v58 = vrot.slane %v366_v57, %v371_v9  ;;  %v412_v59 = vrot.slane %v366_v57, %v379_v12  ;;  %v408_v60 = vrot.slane %v366_v57, %v375_v13 }
  0xd3   : > { %v416_v61 = vrot.slane %v366_v57, %v383_v14 }
  0xd5   : > { %1366 = vmatpush1.bf16.msra.mxu0 %v1710_v1  ;;  %1409 = vmatpush1.bf16.msra.mxu1 %v1712_v2 }
  0xd6   : > { %1367 = vmatprep.subr.bf16.mxu0 %v1727_v3  ;;  %1410 = vmatprep.subr.bf16.mxu1 %v1729_v4 }
  0xd9   : > { %1368 = vmatpush1.bf16.msra.mxu0 %v1726_v5  ;;  %1411 = vmatpush1.bf16.msra.mxu1 %v1728_v6 }
  0xdc   : > { %1386 = vmatmul.mubr.bf16.vlgmr.msra.gmra.mrb[12].mxu0 %v2165_v10  ;;  %1429 = vmatmul.mubr.bf16.vlgmr.msra.gmra.mrb[12].mxu1 %v2165_v10  ;;  %v376_v10 = vrot.slane %v365_v11, %v375_v13 }
 0x14f   : > { %v1129_v18 = vpop.f32.mrb[0].mxu0  ;;  %v1172_v20 = vpop.f32.mrb[0].mxu1 }
 0x150   : > { %v1130_v19 = vadd.f32 %v1129_v18, %v372_v15  ;;  %v1131_v21 = vpop.f32.mrb[1].mxu0  ;;  %v1173_v22 = vadd.f32 %v1172_v20, %v380_v16  ;;  %v1174_v24 = vpop.f32.mrb[1].mxu1  ;;  %v432_v18 = vrot.slane %v366_v57, %v399_v37 }
 0x151   : > { %v1132_v23 = vadd.f32 %v1131_v21, %v376_v10  ;;  %v1133_v25 = vpop.f32.mrb[2].mxu0  ;;  %v1175_v26 = vadd.f32 %v1174_v24, %v384_v17  ;;  %v1176_v28 = vpop.f32.mrb[2].mxu1 }
 0x152   : > { %1439 = vst [vmem:[%s2287_s29] sm:$0xff] %v1130_v19  ;;  %v1134_v27 = vadd.f32 %v1133_v25, %v372_v15  ;;  %v1135_v29 = vpop.f32.mrb[3].mxu0  ;;  %1441 = vst [vmem:[%s2287_s29 + $0x10] sm:$0xff] %v1173_v22  ;;  %v1177_v30 = vadd.f32 %v1176_v28, %v380_v16  ;;  %v1178_v32 = vpop.f32.mrb[3].mxu1  ;;  %v420_v16 = vrot.slane %v366_v57, %v387_v34 }
 0x153   : > { %1440 = vst [vmem:[%s2287_s29 + $0x8] sm:$0xff] %v1132_v23  ;;  %v1136_v31 = vadd.f32 %v1135_v29, %v376_v10  ;;  %1442 = vst [vmem:[%s2287_s29 + $0x18] sm:$0xff] %v1175_v26  ;;  %v1179_v33 = vadd.f32 %v1178_v32, %v384_v17  ;;  %v428_v10 = vrot.slane %v366_v57, %v395_v35 }
 0x154   : > { %1455 = vst [vmem:[%s2287_s29 + $0x80] sm:$0xff] %v1134_v27  ;;  %1457 = vst [vmem:[%s2287_s29 + $0x90] sm:$0xff] %v1177_v30  ;;  %v424_v17 = vrot.slane %v366_v57, %v391_v36 }
 0x155   : > { %1456 = vst [vmem:[%s2287_s29 + $0x88] sm:$0xff] %v1136_v31  ;;  %1458 = vst [vmem:[%s2287_s29 + $0x98] sm:$0xff] %v1179_v33 }
 0x16f   : > { %v1215_v0 = vpop.f32.mrb[4].mxu0  ;;  %v1258_v43 = vpop.f32.mrb[4].mxu1 }
 0x170   : > { %v1216_v42 = vadd.f32 %v1215_v0, %v388_v38  ;;  %v1217_v44 = vpop.f32.mrb[5].mxu0  ;;  %v1259_v45 = vadd.f32 %v1258_v43, %v396_v39  ;;  %v1260_v47 = vpop.f32.mrb[5].mxu1 }
 0x171   : > { %v1218_v46 = vadd.f32 %v1217_v44, %v392_v40  ;;  %v1219_v48 = vpop.f32.mrb[6].mxu0  ;;  %v1261_v49 = vadd.f32 %v1260_v47, %v400_v41  ;;  %v1262_v51 = vpop.f32.mrb[6].mxu1 }
 0x172   : > { %1443 = vst [vmem:[%s2287_s29 + $0x20] sm:$0xff] %v1216_v42  ;;  %v1220_v50 = vadd.f32 %v1219_v48, %v388_v38  ;;  %v1221_v52 = vpop.f32.mrb[7].mxu0  ;;  %1445 = vst [vmem:[%s2287_s29 + $0x30] sm:$0xff] %v1259_v45  ;;  %v1263_v53 = vadd.f32 %v1262_v51, %v396_v39  ;;  %v1264_v55 = vpop.f32.mrb[7].mxu1 }
 0x173   : > { %1444 = vst [vmem:[%s2287_s29 + $0x28] sm:$0xff] %v1218_v46  ;;  %v1222_v54 = vadd.f32 %v1221_v52, %v392_v40  ;;  %1446 = vst [vmem:[%s2287_s29 + $0x38] sm:$0xff] %v1261_v49  ;;  %v1265_v56 = vadd.f32 %v1264_v55, %v400_v41 }
 0x174   : > { %1459 = vst [vmem:[%s2287_s29 + $0xa0] sm:$0xff] %v1220_v50  ;;  %1461 = vst [vmem:[%s2287_s29 + $0xb0] sm:$0xff] %v1263_v53 }
 0x175   : > { %1460 = vst [vmem:[%s2287_s29 + $0xa8] sm:$0xff] %v1222_v54  ;;  %1462 = vst [vmem:[%s2287_s29 + $0xb8] sm:$0xff] %v1265_v56 }
 0x18f   : > { %v1301_v62 = vpop.f32.mrb[8].mxu0  ;;  %v1344_v1 = vpop.f32.mrb[8].mxu1 }
 0x190   : > { %v1302_v63 = vadd.f32 %v1301_v62, %v404_v58  ;;  %v1303_v2 = vpop.f32.mrb[9].mxu0  ;;  %v1345_v3 = vadd.f32 %v1344_v1, %v412_v59  ;;  %v1346_v5 = vpop.f32.mrb[9].mxu1 }
 0x191   : > { %v1304_v4 = vadd.f32 %v1303_v2, %v408_v60  ;;  %v1305_v6 = vpop.f32.mrb[10].mxu0  ;;  %v1347_v7 = vadd.f32 %v1346_v5, %v416_v61  ;;  %v1348_v11 = vpop.f32.mrb[10].mxu1 }
 0x192   : > { %1447 = vst [vmem:[%s2287_s29 + $0x40] sm:$0xff] %v1302_v63  ;;  %v1306_v9 = vadd.f32 %v1305_v6, %v404_v58  ;;  %v1307_v8 = vpop.f32.mrb[11].mxu0  ;;  %1449 = vst [vmem:[%s2287_s29 + $0x50] sm:$0xff] %v1345_v3  ;;  %v1349_v12 = vadd.f32 %v1348_v11, %v412_v59  ;;  %v1350_v14 = vpop.f32.mrb[11].mxu1 }
 0x193   : > { %1448 = vst [vmem:[%s2287_s29 + $0x48] sm:$0xff] %v1304_v4  ;;  %v1308_v13 = vadd.f32 %v1307_v8, %v408_v60  ;;  %1450 = vst [vmem:[%s2287_s29 + $0x58] sm:$0xff] %v1347_v7  ;;  %v1351_v15 = vadd.f32 %v1350_v14, %v416_v61 }
 0x194   : > { %1463 = vst [vmem:[%s2287_s29 + $0xc0] sm:$0xff] %v1306_v9  ;;  %1465 = vst [vmem:[%s2287_s29 + $0xd0] sm:$0xff] %v1349_v12 }
 0x195   : > { %1464 = vst [vmem:[%s2287_s29 + $0xc8] sm:$0xff] %v1308_v13  ;;  %1466 = vst [vmem:[%s2287_s29 + $0xd8] sm:$0xff] %v1351_v15 }
 0x1af   : > { %v1387_v19 = vpop.f32.mrb[12].mxu0  ;;  %v1430_v21 = vpop.f32.mrb[12].mxu1  ;;  %1478 = sbr.rel (!%p2416_p12) target bundleno = 467 (0x1d3), region = 44 }
 0x1b0   : > { %v1388_v20 = vadd.f32 %v1387_v19, %v420_v16  ;;  %v1389_v22 = vpop.f32.mrb[13].mxu0  ;;  %v1431_v23 = vadd.f32 %v1430_v21, %v428_v10  ;;  %v1432_v25 = vpop.f32.mrb[13].mxu1 }
 0x1b1   : > { %v1390_v24 = vadd.f32 %v1389_v22, %v424_v17  ;;  %v1391_v26 = vpop.f32.mrb[14].mxu0  ;;  %v1433_v27 = vadd.f32 %v1432_v25, %v432_v18  ;;  %v1434_v29 = vpop.f32.mrb[14].mxu1 }
 0x1b2   : > { %1451 = vst [vmem:[%s2287_s29 + $0x60] sm:$0xff] %v1388_v20  ;;  %v1392_v28 = vadd.f32 %v1391_v26, %v420_v16  ;;  %v1393_v30 = vpop.f32.mrb[15].mxu0  ;;  %1453 = vst [vmem:[%s2287_s29 + $0x70] sm:$0xff] %v1431_v23  ;;  %v1435_v31 = vadd.f32 %v1434_v29, %v428_v10  ;;  %v1436_v33 = vpop.f32.mrb[15].mxu1 }
 0x1b3   : > { %1452 = vst [vmem:[%s2287_s29 + $0x68] sm:$0xff] %v1390_v24  ;;  %v1394_v32 = vadd.f32 %v1393_v30, %v424_v17  ;;  %1454 = vst [vmem:[%s2287_s29 + $0x78] sm:$0xff] %v1433_v27  ;;  %v1437_v34 = vadd.f32 %v1436_v33, %v432_v18 }
 0x1b4   : > { %1467 = vst [vmem:[%s2287_s29 + $0xe0] sm:$0xff] %v1392_v28  ;;  %1469 = vst [vmem:[%s2287_s29 + $0xf0] sm:$0xff] %v1435_v31 }
 0x1b5   : > { %1468 = vst [vmem:[%s2287_s29 + $0xe8] sm:$0xff] %v1394_v32  ;;  %1470 = vst [vmem:[%s2287_s29 + $0xf8] sm:$0xff] %v1437_v34 }
 0x1b6   : > { %s2423_s9 = smov (!%p1481_p1, %s1480_s9), 16 }
 0x1b7   : > { %s2341_s26 = sshll.u32 %s2423_s9, 8 }
 0x1b8   : > { %s1485_s10 = ssub.s32 4096, %s2341_s26 }
 0x1b9   : > { %1486 = vsyncadd %s1472_s30, %s1485_s10  ;;  %p1733_p11 = scmp.ne.s32.totalorder %s2341_s26, 0  ;;  %s1742_s24 = sshll.u32 %s1984_s16, 11 }
 0x1ba   : > { %s2351_s27 = scalar_lea.hbm %s2405_s3, %s1742_s24  ;;  %s1735_s6 = sshll.u32 %s2423_s9, 3 }
 0x1bb   : > { %s1492_s8 = sshll.u32 %s2287_s29, 4  ;;  %s1940_s17 = smov [#allocation7]   ;;  %s2355_s8 = int_to_ptr.vmem [resolvable:$true] %s1492_s8 }
 0x1bc   : > { %s1862_s7 = scalar_lea.vmem %s2355_s8, %s2341_s26  ;;  %s1866_s22 = sshll.u32 %s1940_s17, 4  ;;  %s1867_s22 = int_to_ptr.vmem [resolvable:$false] %s1866_s22 }
 0x1bd   : > { %p1863_p4 = scmp.ne.s32.totalorder %s2355_s8, %s1862_s7  ;;  %s1868_s16 = scalar_lea.vmem %s1867_s22, 8192 }
 0x1be   : > { %p1869_p13 = scmp.lt.s32.totalorder %s2355_s8, %s1867_s22  ;;  %p1870_p10 = scmp.lt.s32.totalorder %s1868_s16, %s1862_s7 }
 0x1bf   : > { %p1864_p5 = pnand %p1863_p4, %p1733_p11 }
 0x1c0   : > { %p1871_p3 = por %p1870_p10, %p1869_p13 }
 0x1c1   : > { %p1865_p7 = pneg %p1864_p5 }
 0x1c3   : > { %p1872_p8 = pnand %p1871_p3, %p1865_p7 }
 0x1c5   : > { %1875 = shalt.err (!%p1872_p8)
}
 0x1c6   : > { %s1876_s23 = scalar_lea.hbm %s2351_s27, %s2341_s26  ;;  %s1880_s29 = scalar_lea.hbm %s2405_s3, 20224 }
 0x1c7   : > { %p1877_p0 = scmp.ne.s32.totalorder %s2351_s27, %s1876_s23  ;;  %p1881_p6 = scmp.lt.u32.totalorder %s2351_s27, %s2405_s3 }
 0x1c8   : > { %p1882_p12 = scmp.lt.u32.totalorder %s1880_s29, %s1876_s23  ;;  %p1884_p4 = scmp.lt.u32.totalorder %s1876_s23, %s2351_s27 }
 0x1c9   : > { %p1878_p2 = pnand %p1877_p0, %p1733_p11 }
 0x1ca   : > { %p1883_p1 = por %p1882_p12, %p1881_p6 }
 0x1cb   : > { %p1879_p9 = pneg %p1878_p2 }
 0x1cc   : > { %p1885_p5 = por %p1884_p4, %p1883_p1 }
 0x1ce   : > { %p1886_p7 = pnand %p1885_p5, %p1879_p9 }
 0x1d0   : > { %1889 = shalt.err (!%p1886_p7)
}
 0x1d1   : > { %s1941_s24 = smov 2048   ;;  %s1942_s11 = smov 10112  }
 0x1d2   : > { %1498 = dma.vmem_to_hbm [thread:$0]  (%p1733_p11), %s2355_s8, %s2341_s26, %s2351_s27, %s1472_s30, %s1941_s24, %s1942_s11, %s1735_s6  }
 0x1d3 PF: > { %p1762_p13 = scmp.ge.s32.totalorder %s1932_s15, 2  ;;  %s1507_s19 = sand.u32 1, %s1920_s12  }
 0x1d4   : > { %p2417_p10 = scmp.ne.s32.totalorder %s2410_s25, 0  ;;  %s1508_s7 = scalar_lea.sflag [#allocation4], %s1507_s19 }
 0x1d6   : > { %p1758_p3 = pnand %p1762_p13, %p2417_p10 }
 0x1d8   : > { %1915 = dma.done.wait (!%p1758_p3), %s1508_s7, 4096  }
 0x1d9   : > { %1917 = vsyncadd (!%p1758_p3), %s1508_s7, 4294963200  ;;  %p19_p8 = scmp.ge.s32.totalorder %s1988_s18, 7   ;;  %s2418_s12 = smov %s1924_s13 }
 0x1da   : > { %s2419_s13 = smov %s1928_s14  ;;  %s2420_s14 = smov %s2000_s21 }
 0x1db   : > { %s2421_s15 = smov %s1988_s18  ;;  %21 = sbr.rel (!%p19_p8) target bundleno = 7 (0x7), region = 90 }
 0x1e2   :  { %1513 = vsyncpa [#allocation3], 1 }
 0x1e3   :  { %1515 = vsyncpa [#allocation3 + $0x1], 1 }
 0x1e4   :  { %1516 = vsyncpa [#allocation6], 1 }
 0x1e5   :  { %1518 = vsyncpa [#allocation6 + $0x1], 1 }
 0x1e6   :  { %1519 = vsyncpa [#allocation4], 1 }
 0x1e7   :  { %1521 = vsyncpa [#allocation4 + $0x1], 1 }

// kernel: transformer_lm_forward.2
= control target key start
LH: loop header
LB: loop body
LE: loop exit
PB: predicated region body
PF: predicated region fallthrough
CT: control target
= control target key end

     0   :  { %s12355_s0 = inlined_call_operand.vmem [shape: f32[2,8,128], index: 0, kind: input, shape index: {}]   ;;  %s12356_s1 = inlined_call_operand.hbm [shape: f32[2,1,8], index: 1, kind: input, shape index: {}]   ;;  %s12357_s2 = inlined_call_operand.hbm [shape: bf16[4,128,384], index: 2, kind: input, shape index: {}]   ;;  %s12358_s3 = inlined_call_operand.hbm [shape: f32[4,1,384], index: 3, kind: input, shape index: {}]   ;;  %s12359_s4 = inlined_call_operand.hbm [shape: bf16[4,128,128], index: 4, kind: input, shape index: {}]   ;;  %s12360_s5 = inlined_call_operand.hbm [shape: bf16[4,128,512], index: 5, kind: input, shape index: {}]   ;;  %s12361_s6 = inlined_call_operand.hbm [shape: f32[4,1,512], index: 6, kind: input, shape index: {}]   ;;  %s12362_s7 = inlined_call_operand.hbm [shape: bf16[4,512,128], index: 7, kind: input, shape index: {}]   ;;  %s12363_s8 = inlined_call_operand.hbm [shape: f32[4,8,128], index: 8, kind: input, shape index: {}]   ;;  %s12364_s9 = inlined_call_operand.vmem [shape: bf16[2,8,128], index: 9, kind: output, shape index: {}]  }
   0x1   :  { %12369 = sst [smem:[#allocation21_spill]] %s12357_s2 }
   0x2   :  { %12370 = sst [smem:[#allocation22_spill]] %s12358_s3 }
   0x3   :  { %12371 = sst [smem:[#allocation23_spill]] %s12364_s9 }
   0x4   :  { %14 = vsyncpa [#allocation4], 0 }
   0x5   :  { %16 = vsyncpa [#allocation4 + $0x1], 0 }
   0x6   :  { %17 = vsyncpa [#allocation6], 0 }
   0x7   :  { %18 = vsyncpa [#allocation9], 0 }
   0x8   :  { %19 = vsyncpa [#allocation12], 0 }
   0x9   :  { %20 = vsyncpa [#allocation15], 0  ;;  %s11115_s30 = smov 0   ;;  %s11117_s10 = smov 0  }
   0xa   :  { %s11119_s11 = smov 0   ;;  %s11121_s12 = smov 0  }
   0xb LB: > { %s11037_s13 = smov [#allocation5]   ;;  %s11136_s15 = sadd.s32 4294967295, %s11035_s12   ;;  %s11035_s12 = sphi %s11121_s12, %s12395_s12   ;;  %s11031_s11 = sphi %s11119_s11, %s12394_s11   ;;  %s11027_s10 = sphi %s11117_s10, %s12393_s10   ;;  %s11023_s30 = sphi %s11115_s30, %s12392_s30  }
   0xc   : > { %s268_s14 = sshll.u32 %s11037_s13, 4  ;;  %p8614_p0 = scmp.ge.s32.totalorder %s11035_s12, 1  ;;  %s11141_s14 = int_to_ptr.vmem [resolvable:$true] %s268_s14 }
   0xd   : > { %p12365_p1 = scmp.eq.s32.totalorder %s11136_s15, 0  ;;  %p256_p2 = scmp.lt.s32.totalorder %s11035_s12, 3 }
   0xe   : > { %s11038_s17 = smov [#allocation8]   ;;  %s11039_s20 = smov [#allocation11]  }
   0xf   : > { %p11143_p3 = pnand %p8614_p0, %p256_p2  ;;  %s294_s18 = sshll.u32 %s11038_s17, 4  ;;  %s11155_s18 = int_to_ptr.vmem [resolvable:$true] %s294_s18 }
  0x10   : > { %s11157_s21 = sshll.u32 %s11039_s20, 4  ;;  %s12374_s2 = sld [smem:[#allocation21_spill]]  ;;  %s321_s21 = int_to_ptr.vmem [resolvable:$true] %s11157_s21 }
  0x11   : > { %s12372_s16 = scalar_select %p11143_p3, 1, 0 }
  0x12   : > { %p10034_p4 = pneg %p11143_p3 }
  0x14   : > { %p11151_p5 = pnand %p10034_p4, %p12365_p1 }
  0x16   : > { %s10759_s24 = scalar_lea.hbm %s12374_s2, 12288  ;;  %p11167_p7 = pneg %p11151_p5 }
  0x17   : > { %p10760_p6 = scmp.ne.s32.totalorder %s12374_s2, %s10759_s24  ;;  %p10766_p10 = scmp.lt.u32.totalorder %s10759_s24, %s12374_s2 }
  0x19   : > { %p10762_p8 = pnand %p11167_p7, %p10760_p6 }
  0x1b   : > { %p10763_p9 = pneg %p10762_p8 }
  0x1d   : > { %p10768_p11 = pnand %p10766_p10, %p10763_p9 }
  0x1f   : > { %10771 = shalt.err (!%p10768_p11)
}
  0x20   : > { %s10772_s13 = scalar_lea.vmem %s11141_s14, 12288  ;;  %p10780_p2 = scmp.lt.s32.totalorder %s11141_s14, %s11141_s14 }
  0x21   : > { %p10773_p12 = scmp.ne.s32.totalorder %s11141_s14, %s10772_s13  ;;  %p10781_p4 = scmp.lt.s32.totalorder %s10772_s13, %s10772_s13 }
  0x23   : > { %p10775_p13 = pnand %p10773_p12, %p11167_p7  ;;  %p10782_p6 = por %p10781_p4, %p10780_p2 }
  0x25   : > { %p10776_p0 = pneg %p10775_p13 }
  0x27   : > { %p10783_p8 = pnand %p10782_p6, %p10776_p0 }
  0x29   : > { %10786 = shalt.err (!%p10783_p8)
}
  0x2a   : > { %s11040_s17 = smov 192   ;;  %s11041_s20 = smov 12  }
  0x2b   : > { %10037 = dma.hbm_to_vmem [thread:$0]  (!%p11151_p5), %s12374_s2, 12288, %s11141_s14, [#allocation6], %s11040_s17, %s11040_s17, %s11041_s20  }
  0x2c   : > { %s10787_s26 = scalar_lea.hbm %s12359_s4, 4096 }
  0x2d   : > { %p10788_p9 = scmp.ne.s32.totalorder %s12359_s4, %s10787_s26  ;;  %p10794_p12 = scmp.lt.u32.totalorder %s10787_s26, %s12359_s4 }
  0x2f   : > { %p10790_p10 = pnand %p10788_p9, %p11167_p7 }
  0x31   : > { %p10791_p11 = pneg %p10790_p10 }
  0x33   : > { %p10796_p13 = pnand %p10794_p12, %p10791_p11 }
  0x35   : > { %10799 = shalt.err (!%p10796_p13)
}
  0x36   : > { %s10800_s14 = scalar_lea.vmem %s11155_s18, 4096  ;;  %p10808_p6 = scmp.lt.s32.totalorder %s11155_s18, %s11155_s18 }
  0x37   : > { %p10801_p0 = scmp.ne.s32.totalorder %s11155_s18, %s10800_s14  ;;  %p10809_p8 = scmp.lt.s32.totalorder %s10800_s14, %s10800_s14 }
  0x39   : > { %p10803_p2 = pnand %p10801_p0, %p11167_p7  ;;  %p10810_p9 = por %p10809_p8, %p10808_p6 }
  0x3b   : > { %p10804_p4 = pneg %p10803_p2 }
  0x3d   : > { %p10811_p10 = pnand %p10810_p9, %p10804_p4 }
  0x3f   : > { %10814 = shalt.err (!%p10811_p10)
}
  0x40   : > { %s12367_s17 = smov 64   ;;  %s12368_s9 = smov 4  }
  0x41   : > { %10043 = dma.hbm_to_vmem [thread:$0]  (!%p11151_p5), %s12359_s4, 4096, %s11155_s18, [#allocation9], %s12367_s17, %s12367_s17, %s12368_s9  }
  0x42   : > { %s10815_s25 = scalar_lea.hbm %s12361_s6, 256 }
  0x43   : > { %p10816_p11 = scmp.ne.s32.totalorder %s12361_s6, %s10815_s25  ;;  %p10822_p0 = scmp.lt.u32.totalorder %s10815_s25, %s12361_s6 }
  0x45   : > { %p10818_p12 = pnand %p10816_p11, %p11167_p7 }
  0x47   : > { %p10819_p13 = pneg %p10818_p12 }
  0x49   : > { %p10824_p2 = pnand %p10822_p0, %p10819_p13 }
  0x4b   : > { %10827 = shalt.err (!%p10824_p2)
}
  0x4c   : > { %s10828_s14 = scalar_lea.vmem %s321_s21, 256  ;;  %p10836_p9 = scmp.lt.s32.totalorder %s321_s21, %s321_s21 }
  0x4d   : > { %p10829_p4 = scmp.ne.s32.totalorder %s321_s21, %s10828_s14  ;;  %p10837_p10 = scmp.lt.s32.totalorder %s10828_s14, %s10828_s14 }
  0x4f   : > { %p10831_p6 = pnand %p10829_p4, %p11167_p7  ;;  %p10838_p1 = por %p10837_p10, %p10836_p9 }
  0x51   : > { %p10832_p8 = pneg %p10831_p6 }
  0x53   : > { %p10839_p3 = pnand %p10838_p1, %p10832_p8 }
  0x55   : > { %10842 = shalt.err (!%p10839_p3)
}
  0x56   : > { %10049 = dma.hbm_to_vmem [thread:$0]  (!%p11151_p5), %s12361_s6, 256, %s321_s21, [#allocation12], %s12367_s17, %s12367_s17, %s12368_s9  }
  0x57   : > { %s11044_s22 = smov [#allocation7]   ;;  %s12376_s3 = sld [smem:[#allocation22_spill]] }
  0x58   : > { %s281_s23 = sshll.u32 %s11044_s22, 4  ;;  %s282_s23 = int_to_ptr.vmem [resolvable:$true] %s281_s23 }
  0x5d   : > { %s10843_s26 = scalar_lea.hbm %s12376_s3, 192 }
  0x5e   : > { %p10844_p1 = scmp.ne.s32.totalorder %s12376_s3, %s10843_s26  ;;  %p10850_p12 = scmp.lt.u32.totalorder %s10843_s26, %s12376_s3 }
  0x60   : > { %p10846_p3 = pnand %p10844_p1, %p11167_p7 }
  0x62   : > { %p10847_p11 = pneg %p10846_p3 }
  0x64   : > { %p10852_p13 = pnand %p10850_p12, %p10847_p11 }
  0x66   : > { %10855 = shalt.err (!%p10852_p13)
}
  0x67   : > { %s10856_s21 = scalar_lea.vmem %s282_s23, 192  ;;  %p10864_p6 = scmp.lt.s32.totalorder %s282_s23, %s282_s23 }
  0x68   : > { %p10857_p0 = scmp.ne.s32.totalorder %s282_s23, %s10856_s21  ;;  %p10865_p8 = scmp.lt.s32.totalorder %s10856_s21, %s10856_s21 }
  0x6a   : > { %p10859_p2 = pnand %p10857_p0, %p11167_p7  ;;  %p10866_p9 = por %p10865_p8, %p10864_p6 }
  0x6c   : > { %p10860_p4 = pneg %p10859_p2 }
  0x6e   : > { %p10867_p10 = pnand %p10866_p9, %p10860_p4 }
  0x70   : > { %10870 = shalt.err (!%p10867_p10)
}
  0x71   : > { %s11045_s18 = smov 48   ;;  %s11046_s20 = smov 3  }
  0x72   : > { %10040 = dma.hbm_to_vmem [thread:$0]  (!%p11151_p5), %s12376_s3, 192, %s282_s23, [#allocation6], %s11045_s18, %s11045_s18, %s11046_s20  }
  0x73   : > { %s11047_s25 = smov [#allocation10]   ;;  %s10871_s13 = scalar_lea.hbm %s12360_s5, 16384 }
  0x74   : > { %s307_s26 = sshll.u32 %s11047_s25, 4  ;;  %p10872_p1 = scmp.ne.s32.totalorder %s12360_s5, %s10871_s13  ;;  %s308_s26 = int_to_ptr.vmem [resolvable:$true] %s307_s26 }
  0x75   : > { %p10878_p12 = scmp.lt.u32.totalorder %s10871_s13, %s12360_s5 }
  0x76   : > { %p10874_p3 = pnand %p10872_p1, %p11167_p7 }
  0x78   : > { %p10875_p11 = pneg %p10874_p3 }
  0x7a   : > { %p10880_p13 = pnand %p10878_p12, %p10875_p11 }
  0x7c   : > { %10883 = shalt.err (!%p10880_p13)
}
  0x7d   : > { %s10884_s23 = scalar_lea.vmem %s308_s26, 16384  ;;  %p10892_p6 = scmp.lt.s32.totalorder %s308_s26, %s308_s26 }
  0x7e   : > { %p10885_p0 = scmp.ne.s32.totalorder %s308_s26, %s10884_s23  ;;  %p10893_p8 = scmp.lt.s32.totalorder %s10884_s23, %s10884_s23 }
  0x80   : > { %p10887_p2 = pnand %p10885_p0, %p11167_p7  ;;  %p10894_p9 = por %p10893_p8, %p10892_p6 }
  0x82   : > { %p10888_p4 = pneg %p10887_p2 }
  0x84   : > { %p10895_p10 = pnand %p10894_p9, %p10888_p4 }
  0x86   : > { %10898 = shalt.err (!%p10895_p10)
}
  0x87   : > { %s11048_s18 = smov 256   ;;  %s11049_s20 = smov 16  }
  0x88   : > { %10046 = dma.hbm_to_vmem [thread:$0]  (!%p11151_p5), %s12360_s5, 16384, %s308_s26, [#allocation9], %s11048_s18, %s11048_s18, %s11049_s20  }
  0x89   : > { %s11050_s22 = smov [#allocation13]   ;;  %s11051_s25 = smov [#allocation14]  }
  0x8a   : > { %s333_s24 = sshll.u32 %s11050_s22, 4  ;;  %s346_s28 = sshll.u32 %s11051_s25, 4  ;;  %s334_s24 = int_to_ptr.vmem [resolvable:$true] %s333_s24  ;;  %s347_s28 = int_to_ptr.vmem [resolvable:$true] %s346_s28 }
  0x8b   : > { %s10899_s14 = scalar_lea.hbm %s12362_s7, 16384 }
  0x8c   : > { %p10900_p1 = scmp.ne.s32.totalorder %s12362_s7, %s10899_s14  ;;  %p10906_p12 = scmp.lt.u32.totalorder %s10899_s14, %s12362_s7 }
  0x8e   : > { %p10902_p3 = pnand %p10900_p1, %p11167_p7 }
  0x90   : > { %p10903_p11 = pneg %p10902_p3 }
  0x92   : > { %p10908_p13 = pnand %p10906_p12, %p10903_p11 }
  0x94   : > { %10911 = shalt.err (!%p10908_p13)
}
  0x95   : > { %s10912_s26 = scalar_lea.vmem %s334_s24, 16384  ;;  %p10920_p6 = scmp.lt.s32.totalorder %s334_s24, %s334_s24 }
  0x96   : > { %p10913_p0 = scmp.ne.s32.totalorder %s334_s24, %s10912_s26  ;;  %p10921_p8 = scmp.lt.s32.totalorder %s10912_s26, %s10912_s26 }
  0x98   : > { %p10915_p2 = pnand %p10913_p0, %p11167_p7  ;;  %p10922_p9 = por %p10921_p8, %p10920_p6 }
  0x9a   : > { %p10916_p4 = pneg %p10915_p2 }
  0x9c   : > { %p10923_p10 = pnand %p10922_p9, %p10916_p4 }
  0x9e   : > { %10926 = shalt.err (!%p10923_p10)
}
  0x9f   : > { %s12377_s18 = smov 4   ;;  %s12378_s20 = smov 64  }
  0xa0   : > { %10052 = dma.hbm_to_vmem [thread:$0]  (!%p11151_p5), %s12362_s7, 16384, %s334_s24, [#allocation12], %s12378_s20, %s12378_s20, %s12377_s18  }
  0xa1   : > { %s10927_s22 = scalar_lea.hbm %s12363_s8, 512 }
  0xa2   : > { %p10928_p1 = scmp.ne.s32.totalorder %s12363_s8, %s10927_s22  ;;  %p10934_p12 = scmp.lt.u32.totalorder %s10927_s22, %s12363_s8 }
  0xa4   : > { %p10930_p3 = pnand %p10928_p1, %p11167_p7 }
  0xa6   : > { %p10931_p11 = pneg %p10930_p3 }
  0xa8   : > { %p10936_p13 = pnand %p10934_p12, %p10931_p11 }
  0xaa   : > { %10939 = shalt.err (!%p10936_p13)
}
  0xab   : > { %s10940_s21 = scalar_lea.vmem %s347_s28, 512  ;;  %p10948_p6 = scmp.lt.s32.totalorder %s347_s28, %s347_s28 }
  0xac   : > { %p10941_p0 = scmp.ne.s32.totalorder %s347_s28, %s10940_s21  ;;  %p10949_p8 = scmp.lt.s32.totalorder %s10940_s21, %s10940_s21 }
  0xae   : > { %p10943_p2 = pnand %p10941_p0, %p11167_p7  ;;  %p10950_p9 = por %p10949_p8, %p10948_p6 }
  0xb0   : > { %p10944_p4 = pneg %p10943_p2 }
  0xb2   : > { %p10951_p10 = pnand %p10950_p9, %p10944_p4 }
  0xb4   : > { %10954 = shalt.err (!%p10951_p10)
}
  0xb5   : > { %s11052_s24 = smov 128   ;;  %s11053_s27 = smov 8  }
  0xb6   : > { %10055 = dma.hbm_to_vmem [thread:$0]  (!%p11151_p5), %s12363_s8, 512, %s347_s28, [#allocation15], %s11052_s24, %s11052_s24, %s11053_s27  }
  0xb7   : > { %s11312_s18 = sadd.s32 1, %s11035_s12   ;;  %s59_s2 = sadd.s32 1, %s11031_s11 }
  0xb8   : > { %s56_s20 = ssub.s32 %s11035_s12, %s11312_s18  ;;  %p66_p1 = scmp.ne.s32.totalorder %s11031_s11, %s11027_s10 }
  0xb9   : > { %p57_p7 = scmp.eq.s32.totalorder %s56_s20, 0  ;;  %p67_p3 = scmp.eq.s32.totalorder %s11035_s12, 0 }
  0xba   : > { %p72_p11 = scmp.ne.s32.totalorder %s11027_s10, %s11023_s30  ;;  %p12379_p13 = scmp.eq.s32.totalorder %s11136_s15, 0 }
  0xbb   : > { %s11323_s3 = scalar_select %p57_p7, %s11031_s11, %s59_s2  }
  0xbc   : > { %p68_p12 = por %p67_p3, %p66_p1  ;;  %p11327_p0 = por %p12379_p13, %p72_p11 }
  0xbd   : > { %p10067_p2 = scmp.lt.s32.totalorder %s11035_s12, 2  ;;  %s367_s19 = sand.u32 1, %s11031_s11  }
  0xbe   : > { %s8623_s28 = sshll.u32 %s11035_s12, 4  ;;  %s370_s9 = scalar_lea.vmem [#allocation3], %s367_s19 }
  0xbf   : > { %s377_s22 = sshll.u32 %s370_s9, 4  ;;  %s11337_s13 = scalar_lea.hbm %s12356_s1, %s8623_s28  ;;  %s11339_s22 = int_to_ptr.vmem [resolvable:$true] %s377_s22 }
  0xc0   : > { %p11341_p5 = pnand %p10067_p2, %p68_p12  ;;  %s368_s12 = scalar_lea.sflag [#allocation4], %s367_s19 }
  0xc1   : > { %s10955_s14 = scalar_lea.hbm %s11337_s13, 16  ;;  %s10960_s27 = scalar_lea.hbm %s12356_s1, 32 }
  0xc2   : > { %p10956_p4 = scmp.ne.s32.totalorder %s11337_s13, %s10955_s14  ;;  %p10957_p6 = pneg %p11341_p5 }
  0xc3   : > { %p10961_p10 = scmp.lt.u32.totalorder %s11337_s13, %s12356_s1  ;;  %p10962_p7 = scmp.lt.u32.totalorder %s10960_s27, %s10955_s14 }
  0xc4   : > { %p10958_p8 = pnand %p10957_p6, %p10956_p4  ;;  %p10964_p3 = scmp.lt.u32.totalorder %s10955_s14, %s11337_s13 }
  0xc5   : > { %p10963_p1 = por %p10962_p7, %p10961_p10 }
  0xc6   : > { %p10959_p9 = pneg %p10958_p8 }
  0xc7   : > { %p10965_p11 = por %p10964_p3, %p10963_p1 }
  0xc9   : > { %p10966_p12 = pnand %p10965_p11, %p10959_p9 }
  0xcb   : > { %10969 = shalt.err (!%p10966_p12)
}
  0xcc   : > { %s10970_s20 = scalar_lea.vmem %s11339_s22, 16  ;;  %s11054_s2 = smov [#allocation3]  }
  0xcd   : > { %p10971_p13 = scmp.ne.s32.totalorder %s11339_s22, %s10970_s20  ;;  %s10975_s19 = sshll.u32 %s11054_s2, 4  ;;  %s10976_s19 = int_to_ptr.vmem [resolvable:$false] %s10975_s19 }
  0xce   : > { %s10977_s28 = scalar_lea.vmem %s10976_s19, 32  ;;  %p10978_p8 = scmp.lt.s32.totalorder %s11339_s22, %s10976_s19 }
  0xcf   : > { %p10973_p2 = pnand %p10971_p13, %p10957_p6  ;;  %p10979_p10 = scmp.lt.s32.totalorder %s10977_s28, %s10970_s20 }
  0xd1   : > { %p10974_p4 = pneg %p10973_p2  ;;  %p10980_p7 = por %p10979_p10, %p10978_p8 }
  0xd3   : > { %p10981_p1 = pnand %p10980_p7, %p10974_p4 }
  0xd5   : > { %10984 = shalt.err (!%p10981_p1)
}
  0xd6   : > { %10059 = dma.hbm_to_vmem [thread:$0]  (!%p11341_p5), %s11337_s13, 16, %s11339_s22, %s368_s12  }
  0xd7   : > { %p12382_p9 = scmp.ne.s32.totalorder %s12372_s16, 0 }
  0xd8   : > { %s388_s9 = sand.u32 (!%p12382_p9), 1, %s11027_s10  }
  0xd9   : > { %386 = sbr.rel (%p12382_p9) target bundleno = 12269 (0x2fed), region = 56  ;;  %s389_s25 = scalar_lea.sflag (!%p12382_p9), [#allocation4], %s388_s9 }
  0xda   : > { %s11373_s29 = scalar_lea.vmem (!%p12382_p9), [#allocation3], %s388_s9 }
  0xe0   : > { %11002 = dma.done.wait (%p11327_p0), %s389_s25, 16  }
  0xe1   : > { %11004 = vsyncadd (%p11327_p0), %s389_s25, 4294967280  ;;  %p12383_p6 = scmp.eq.s32.totalorder %s11136_s15, 0 }
  0xe3   : > { %11006 = dma.done.wait (%p12383_p6), [#allocation6], 12480   ;;  %p12384_p3 = pmov %p12383_p6 }
  0xe5   : > { %11008 = vsyncadd (%p12384_p3), [#allocation6], 4294954816  ;;  %p12385_p5 = pmov %p12384_p3 }
  0xe6   : > { %p12386_p11 = pmov %p12384_p3 }
  0xe7   : > { %11010 = dma.done.wait (%p12385_p5), [#allocation9], 20480  }
  0xe8   : > { %11012 = vsyncadd (%p12386_p11), [#allocation9], 4294946816  ;;  %p12387_p12 = pmov %p12384_p3 }
  0xe9   : > { %p12388_p13 = pmov %p12384_p3 }
  0xea   : > { %11014 = dma.done.wait (%p12387_p12), [#allocation12], 16640  }
  0xeb   : > { %11016 = vsyncadd (%p12388_p13), [#allocation12], 4294950656  ;;  %p12389_p0 = pmov %p12384_p3 }
  0xed   : > { %11018 = dma.done.wait (%p12389_p0), [#allocation15], 512   ;;  %p12390_p2 = pmov %p12389_p0 }
  0xee   : > { %v11055_v0 = vmov 0   ;;  %v11056_v1 = vmov 0.0   ;;  %v10134_v2 = vld [vmem:[#allocation5 + $0x4] ss:$12 sps:$4 sm:$0xff]   ;;  %v10136_v3 = vld [vmem:[#allocation5] ss:$12 sps:$4 sm:$0xff]   ;;  %v504_v28 = vlaneseq }
  0xef   : > { %11020 = vsyncadd (%p12390_p2), [#allocation15], 4294966784  ;;  %679 = vmatprep.mubr.bf16.mxu0 %v11055_v0  ;;  %9460 = vmatprep.subr.bf16.mxu1 %v11056_v1  ;;  %v10137_v4 = vld [vmem:[#allocation5 + $0x1c] ss:$12 sps:$4 sm:$0xff]   ;;  %v10139_v5 = vld [vmem:[#allocation5 + $0x18] ss:$12 sps:$4 sm:$0xff]  }
  0xf0   : > { %647 = vmatprep.subr.bf16.mxu0 %v10134_v2  ;;  %v10140_v6 = vld [vmem:[#allocation5 + $0x34] ss:$12 sps:$4 sm:$0xff]   ;;  %v10142_v7 = vld [vmem:[#allocation5 + $0x30] ss:$12 sps:$4 sm:$0xff]   ;;  %v10143_v8 = vld [vmem:[#allocation5 + $0x4c] ss:$12 sps:$4 sm:$0xff]  }
  0xf1   : > { %648 = vmatpush1.bf16.msra.mxu0 %v10136_v3  ;;  %v10145_v9 = vld [vmem:[#allocation5 + $0x48] ss:$12 sps:$4 sm:$0xff]   ;;  %p456_p4 = scmp.lt.s32.totalorder %s11136_s15, 1  ;;  %v10146_v11 = vld [vmem:[#allocation5 + $0x64] ss:$12 sps:$4 sm:$0xff]   ;;  %vm11057_vm0 = vmmov 0  }
  0xf2   : > { %649 = vmatprep.subr.bf16.mxu0 %v10137_v4  ;;  %v10158_v10 = vld [vmem:[#allocation5 + $0x8] ss:$12 sps:$4 sm:$0xff]   ;;  %v10159_v12 = vld [vmem:[#allocation5 + $0x20] ss:$12 sps:$4 sm:$0xff]   ;;  %v10160_v15 = vld [vmem:[#allocation5 + $0x38] ss:$12 sps:$4 sm:$0xff]   ;;  %9476 = vmatprep.mubr.msk.bf16.mxu1 %vm11057_vm0, %v11056_v1 }
  0xf3   : > { %9461 = vmatpush3.bf16.msra.mxu1 %v10158_v10  ;;  %s12397_s15 = smov (!%p456_p4, %s11136_s15), 1  ;;  %v10148_v13 = vld [vmem:[#allocation5 + $0x60] ss:$12 sps:$4 sm:$0xff]   ;;  %v10149_v14 = vld [vmem:[#allocation5 + $0x7c] ss:$12 sps:$4 sm:$0xff]   ;;  %v11423_v29 = vshrl.u32 %v504_v28, 7 }
  0xf4   : > { %9462 = vmatprep.subr.bf16.mxu1 %v11056_v1  ;;  %s8632_s16 = sshll.u32 %s12397_s15, 3  ;;  %v10151_v16 = vld [vmem:[#allocation5 + $0x78] ss:$12 sps:$4 sm:$0xff]   ;;  %v10152_v17 = vld [vmem:[#allocation5 + $0x94] ss:$12 sps:$4 sm:$0xff]   ;;  %vm731_vm1 = vcmask 130048  }
  0xf5   : > { %650 = vmatpush1.bf16.msra.mxu0 %v10139_v5  ;;  %v10161_v18 = vld [vmem:[#allocation5 + $0x50] ss:$12 sps:$4 sm:$0xff]   ;;  %v10155_v20 = vld [vmem:[#allocation5 + $0xac] ss:$12 sps:$4 sm:$0xff]   ;;  %s11407_s13 = scalar_lea.vmem %s12355_s0, %s8632_s16  ;;  %v10162_v21 = vld [vmem:[#allocation5 + $0x68] ss:$12 sps:$4 sm:$0xff]  }
  0xf6   : > { %651 = vmatprep.subr.bf16.mxu0 %v10140_v6  ;;  %v10154_v19 = vld [vmem:[#allocation5 + $0x90] ss:$12 sps:$4 sm:$0xff]   ;;  %v10157_v22 = vld [vmem:[#allocation5 + $0xa8] ss:$12 sps:$4 sm:$0xff]   ;;  %v10163_v24 = vld [vmem:[#allocation5 + $0x80] ss:$12 sps:$4 sm:$0xff]  }
  0xf7   : > { %9463 = vmatpush3.bf16.msra.mxu1 %v10159_v12  ;;  %v465_v23 = vld [vmem:[%s11407_s13] sm:$0xff]  ;;  %v11426_v30 = vsub.s32 1, %v11423_v29  ;;  %v502_v31 = vld [vmem:[#allocation7] sm:$0x7]  ;;  %v11429_v32 = vsub.s32 0, %v11423_v29  ;;  %s11058_s30 = smov 112  }
  0xf8   : > { %9464 = vmatprep.subr.bf16.mxu1 %v11056_v1  ;;  %v469_v25 = vpack.c.bf16 %v465_v23, %v465_v23  ;;  %v10164_v26 = vld [vmem:[#allocation5 + $0x98] ss:$12 sps:$4 sm:$0xff]   ;;  %v10165_v27 = vld [vmem:[#allocation5 + $0xb0] ss:$12 sps:$4 sm:$0xff]   ;;  %s11059_s12 = smov 96   ;;  %s11060_s14 = smov 80  }
  0xf9   : > { %652 = vmatpush1.bf16.msra.mxu0 %v10142_v7  ;;  %v511_v33 = vrot.slane %v502_v31, %v11426_v30  ;;  %v507_v34 = vrot.slane %v502_v31, %v11429_v32  ;;  %s11061_s21 = smov 64   ;;  %s11062_s24 = smov 48   ;;  %v11449_v44 = vsub.s32 2, %v11423_v29  ;;  %vm802_vm2 = vcmask 1043456   ;;  %v466_v53 = vld [vmem:[%s11373_s29] sm:$0x1] }
  0xfa   : > { %653 = vmatprep.subr.bf16.mxu0 %v10143_v8  ;;  %s11063_s27 = smov 32   ;;  %s11064_s23 = smov 16   ;;  %v467_v54 = vmul.f32 -1e+09, %v466_v53  ;;  %vm786_vm3 = vcmask 64512   ;;  %vm966_vm4 = vcmask 261248  }
  0xfb   : > { %9465 = vmatpush3.bf16.msra.mxu1 %v10160_v15  ;;  %v515_v45 = vrot.slane %v502_v31, %v11449_v44  ;;  %vm1084_vm5 = vcmask 392448   ;;  %vm1202_vm6 = vcmask 523648   ;;  %vm1320_vm7 = vcmask 654848   ;;  %s8633_s26 = sshll.u32 %s12397_s15, 2  ;;  %s12391_s19 = sld [smem:[#allocation23_spill]] }
  0xfc   : > { %9466 = vmatprep.subr.bf16.mxu1 %v11056_v1  ;;  %v11459_v55 = vrot.slane %v467_v54, %v11429_v32  ;;  %vm1438_vm8 = vcmask 786048   ;;  %vm1556_vm9 = vcmask 917248   ;;  %vm1674_vm10 = vcmask 1048448  }
  0xfd   : > { %654 = vmatpush1.bf16.msra.mxu0 %v10145_v9 }
  0xfe   : > { %655 = vmatprep.subr.bf16.mxu0 %v10146_v11 }
  0xff   : > { %9467 = vmatpush3.bf16.msra.mxu1 %v10161_v18 }
 0x100   : > { %9468 = vmatprep.subr.bf16.mxu1 %v11056_v1 }
 0x101   : > { %656 = vmatpush1.bf16.msra.mxu0 %v10148_v13  ;;  %s463_s28 = scalar_lea.vmem %s12391_s19, %s8633_s26 }
 0x102   : > { %657 = vmatprep.subr.bf16.mxu0 %v10149_v14 }
 0x103   : > { %9469 = vmatpush3.bf16.msra.mxu1 %v10162_v21 }
 0x104   : > { %9470 = vmatprep.subr.bf16.mxu1 %v11056_v1 }
 0x105   : > { %658 = vmatpush1.bf16.msra.mxu0 %v10151_v16 }
 0x106   : > { %659 = vmatprep.subr.bf16.mxu0 %v10152_v17 }
 0x107   : > { %9471 = vmatpush3.bf16.msra.mxu1 %v10163_v24 }
 0x108   : > { %9472 = vmatprep.subr.bf16.mxu1 %v11056_v1 }
 0x109   : > { %660 = vmatpush1.bf16.msra.mxu0 %v10154_v19 }
 0x10a   : > { %661 = vmatprep.subr.bf16.mxu0 %v10155_v20 }
 0x10b   : > { %9473 = vmatpush3.bf16.msra.mxu1 %v10164_v26 }
 0x10c   : > { %9474 = vmatprep.subr.bf16.mxu1 %v11056_v1 }
 0x10d   : > { %662 = vmatpush1.bf16.msra.mxu0 %v10157_v22 }
 0x10e   : > { %9504 = vmatprep.subr.bf16.mxu0 %v11056_v1 }
 0x10f   : > { %9475 = vmatpush3.bf16.msra.mxu1 %v10165_v27 }
 0x110   : > { %680 = vmatmul.mubr.bf16.vlgmr.msra.gmra.mrb[0].mxu0 %v469_v25  ;;  %9480 = vmatprep.subr.bf16.mxu1 %v11056_v1 }
 0x111   : > { %9506 = vmatprep.mubr.msk.bf16.mxu0 %vm11057_vm0, %v11056_v1 }
 0x112   : > { %9477 = vmatmul.mubr.bf16.vlgmr.msra.gmra.mrb[0].mxu1 %v469_v25 }
 0x113   : > { %9482 = vmatprep.mubr.msk.bf16.mxu1 %vm11057_vm0, %v11056_v1 }
 0x1e3   : > { %v681_v35 = vpop.f32.mrb[0].mxu0 }
 0x1e4   : > { %v683_v36 = vpop.f32.mrb[1].mxu0  ;;  %v682_v40 = vadd.f32 %v681_v35, %v507_v34 }
 0x1e5   : > { %v684_v37 = vadd.f32 %v683_v36, %v511_v33  ;;  %v685_v38 = vpop.f32.mrb[2].mxu0  ;;  %v722_v46 = vpop.f32.mrb[0].mxu1 }
 0x1e6   : > { %v686_v39 = vpop.f32.mrb[3].mxu0  ;;  %v728_v43 = vpack.c.bf16 %v682_v40, %v682_v40  ;;  %v723_v47 = vadd.f32 %v722_v46, %v515_v45  ;;  %v9478_v48 = vpop.f32.mrb[1].mxu1 }
 0x1e7   : > { %v729_v41 = vpack.c.bf16 %v684_v37, %v684_v37  ;;  %v725_v49 = vpop.f32.mrb[2].mxu1 }
 0x1e8   : > { %v11452_v50 = vpack.c.bf16 %v723_v47, %v723_v47  ;;  %v9479_v51 = vpop.f32.mrb[3].mxu1 }
 0x1e9   : > { %851 = vrot.lane.b32.xlu1 %v729_v41, %s11058_s30  ;;  %v736_v42 = vsel %vm731_vm1, %v729_v41, 0 }
 0x1ea   : > { %9481 = vmatpush3.bf16.xpose.msra.mxu1 %v736_v42  ;;  %v804_v52 = vsel %vm802_vm2, %v11452_v50, 0 }
 0x1eb   : > { %9486 = vmatprep.subr.bf16.mxu1 %v11056_v1 }
 0x1ed   : > { %848 = vrot.lane.b32.xlu1 %v728_v43, %s11058_s30 }
 0x1f1   : > { %968 = vrot.lane.b32.xlu1 %v728_v43, %s11059_s12  ;;  %9483 = vmatmul.mubr.msk.bf16.vlgmr.msra.gmra.mrb[4].mxu1 %vm731_vm1, %v728_v43 }
 0x1f2   : > { %9488 = vmatprep.mubr.msk.bf16.mxu1 %vm11057_vm0, %v11056_v1  ;;  %9487 = vmatpush3.bf16.msra.mxu1 %v804_v52 }
 0x1f3   : > { %9492 = vmatprep.subr.bf16.mxu1 %v11056_v1 }
 0x1f5   : > { %1088 = vrot.lane.b32.xlu1 %v729_v41, %s11060_s14 }
 0x1f9   : > { %1086 = vrot.lane.b32.xlu1 %v728_v43, %s11060_s14 }
 0x1fd   : > { %1206 = vrot.lane.b32.xlu1 %v729_v41, %s11061_s21 }
 0x201   : > { %1204 = vrot.lane.b32.xlu1 %v728_v43, %s11061_s21 }
 0x205   : > { %1324 = vrot.lane.b32.xlu1 %v729_v41, %s11062_s24 }
 0x209   : > { %1442 = vrot.lane.b32.xlu1 %v729_v41, %s11063_s27 }
 0x20d   : > { %1560 = vrot.lane.b32.xlu1 %v729_v41, %s11064_s23 }
 0x25b   : > { %v852_v6 = vpop.permute.xlu1 %851 }
 0x25c   : > { %v857_v19 = vsel %vm731_vm1, %v852_v6, 0 }
 0x25f   : > { %v849_v7 = vpop.permute.xlu1 %848 }
 0x263   : > { %v969_v8 = vpop.permute.xlu1 %968 }
 0x267   : > { %v1089_v10 = vpop.permute.xlu1 %1088 }
 0x268   : > { %v1094_v16 = vsel %vm731_vm1, %v1089_v10, 0 }
 0x26b   : > { %v1087_v13 = vpop.permute.xlu1 %1086 }
 0x26f   : > { %v1207_v17 = vpop.permute.xlu1 %1206 }
 0x270   : > { %v1212_v21 = vsel %vm731_vm1, %v1207_v17, 0 }
 0x273   : > { %v1205_v20 = vpop.permute.xlu1 %1204 }
 0x277   : > { %v1325_v22 = vpop.permute.xlu1 %1324 }
 0x278   : > { %v1330_v23 = vsel %vm731_vm1, %v1325_v22, 0 }
 0x27b   : > { %v1443_v24 = vpop.permute.xlu1 %1442 }
 0x27c   : > { %v1448_v26 = vsel %vm731_vm1, %v1443_v24, 0 }
 0x27f   : > { %v1561_v27 = vpop.permute.xlu1 %1560 }
 0x280   : > { %v1566_v31 = vsel %vm731_vm1, %v1561_v27, 0 }
 0x2c4   : > { %v772_v56 = vpop.f32.mrb[4].mxu1 }
 0x2c5   : > { %v778_v57 = vmul.f32 0.25, %v772_v56  ;;  %v9484_v58 = vpop.f32.mrb[5].mxu1 }
 0x2c6   : > { %v775_v59 = vpop.f32.mrb[6].mxu1 }
 0x2c7   : > { %v9485_v60 = vpop.f32.mrb[7].mxu1  ;;  %v785_v61 = vadd.f32 %v11459_v55, %v778_v57 }
 0x2c9   : > { %v787_v62 = vsel %vm786_vm3, %v785_v61, -inf }
 0x2ca   : > { %788 = vmax.xlane.f32.xlu0 %v787_v62 }
 0x357   : > { %v789_v63 = vpop.xlane.xlu0 %788 }
 0x358   : > { %v790_v2 = vsub.f32 %v785_v61, %v789_v63 }
 0x35a   : > { %v791_v3 = vmul.f32 1.442695, %v790_v2 }
 0x35c   : > { %10614 = vpow2.f32 %v791_v3 }
 0x366   : > { %v10615_v4 = vpop.eup %10614 }
 0x367   : > { %v793_v5 = vsel %vm786_vm3, %v10615_v4, 0.0 }
 0x368   : > { %794 = vadd.xlane.f32.xlu0 %v793_v5 }
 0x37e   : > { %970 = vrot.lane.b32.xlu0 %v729_v41, %s11059_s12 }
 0x382   : > { %1322 = vrot.lane.b32.xlu0 %v728_v43, %s11062_s24 }
 0x386   : > { %1440 = vrot.lane.b32.xlu0 %v728_v43, %s11063_s27 }
 0x38a   : > { %1558 = vrot.lane.b32.xlu0 %v728_v43, %s11064_s23 }
 0x3f5   : > { %v795_v9 = vpop.xlane.xlu0 %794 }
 0x3f6   : > { %10616 = vrcp.f32 %v795_v9 }
 0x3f9   : > { %v971_v11 = vpop.permute.xlu0 %970 }
 0x3fa   : > { %v976_v12 = vsel %vm731_vm1, %v971_v11, 0 }
 0x3fb   : > { %9505 = vmatpush3.bf16.xpose.msra.mxu0 %v976_v12 }
 0x3fc   : > { %9516 = vmatprep.subr.bf16.mxu0 %v11056_v1 }
 0x3fd   : > { %v1323_v25 = vpop.permute.xlu0 %1322 }
 0x400   : > { %v10617_v14 = vpop.eup %10616 }
 0x401   : > { %v797_v15 = vmul.f32 %v10617_v14, %v10615_v4  ;;  %v1441_v28 = vpop.permute.xlu0 %1440 }
 0x402   : > { %9507 = vmatmul.mubr.msk.bf16.vlgmr.msra.gmra.mrb[4].mxu0 %vm731_vm1, %v969_v8 }
 0x403   : > { %9517 = vmatpush3.bf16.xpose.msra.mxu0 %v1094_v16  ;;  %v798_v18 = vpack.c.bf16 %v797_v15, %v797_v15  ;;  %9518 = vmatprep.mubr.msk.bf16.mxu0 %vm11057_vm0, %v11056_v1 }
 0x404   : > { %9528 = vmatprep.subr.bf16.mxu0 %v11056_v1 }
 0x405   : > { %9489 = vmatmul.mubr.msk.bf16.vlgmr.msra.gmra.mrb[8].mxu1 %vm786_vm3, %v798_v18  ;;  %v1559_v33 = vpop.permute.xlu0 %1558 }
 0x406   : > { %9493 = vmatpush3.bf16.xpose.msra.mxu1 %v857_v19  ;;  %9494 = vmatprep.mubr.msk.bf16.mxu1 %vm11057_vm0, %v11056_v1 }
 0x407   : > { %9498 = vmatprep.subr.bf16.mxu1 %v11056_v1 }
 0x40a   : > { %9519 = vmatmul.mubr.msk.bf16.vlgmr.msra.gmra.mrb[8].mxu0 %vm731_vm1, %v1087_v13 }
 0x40b   : > { %9529 = vmatpush3.bf16.xpose.msra.mxu0 %v1212_v21  ;;  %9530 = vmatprep.mubr.msk.bf16.mxu0 %vm11057_vm0, %v11056_v1 }
 0x40c   : > { %9540 = vmatprep.subr.bf16.mxu0 %v11056_v1 }
 0x40d   : > { %9495 = vmatmul.mubr.msk.bf16.vlgmr.msra.gmra.mrb[12].mxu1 %vm731_vm1, %v849_v7 }
 0x40e   : > { %9500 = vmatprep.mubr.msk.bf16.mxu1 %vm11057_vm0, %v11056_v1 }
 0x412   : > { %9531 = vmatmul.mubr.msk.bf16.vlgmr.msra.gmra.mrb[12].mxu0 %vm731_vm1, %v1205_v20 }
 0x413   : > { %9541 = vmatpush3.bf16.xpose.msra.mxu0 %v1330_v23  ;;  %9542 = vmatprep.mubr.msk.bf16.mxu0 %vm11057_vm0, %v11056_v1 }
 0x414   : > { %9552 = vmatprep.subr.bf16.mxu0 %v11056_v1 }
 0x41a   : > { %9543 = vmatmul.mubr.msk.bf16.vlgmr.msra.gmra.mrb[16].mxu0 %vm731_vm1, %v1323_v25 }
 0x41b   : > { %9553 = vmatpush3.bf16.xpose.msra.mxu0 %v1448_v26  ;;  %9554 = vmatprep.mubr.msk.bf16.mxu0 %vm11057_vm0, %v11056_v1 }
 0x41c   : > { %9564 = vmatprep.subr.bf16.mxu0 %v11056_v1 }
 0x422   : > { %9555 = vmatmul.mubr.msk.bf16.vlgmr.msra.gmra.mrb[20].mxu0 %vm731_vm1, %v1441_v28 }
 0x423   : > { %9565 = vmatpush3.bf16.xpose.msra.mxu0 %v1566_v31  ;;  %9566 = vmatprep.mubr.msk.bf16.mxu0 %vm11057_vm0, %v11056_v1 }
 0x424   : > { %9576 = vmatprep.subr.bf16.mxu0 %v11056_v1 }
 0x42a   : > { %9567 = vmatmul.mubr.msk.bf16.vlgmr.msra.gmra.mrb[24].mxu0 %vm731_vm1, %v1559_v33 }
 0x42b   : > { %9592 = vmatprep.mubr.msk.bf16.mxu0 %vm11057_vm0, %v11056_v1 }
 0x4d5   : > { %v1012_v34 = vpop.f32.mrb[4].mxu0 }
 0x4d6   : > { %v1018_v35 = vmul.f32 0.25, %v1012_v34  ;;  %v9508_v36 = vpop.f32.mrb[5].mxu0 }
 0x4d7   : > { %v1015_v37 = vpop.f32.mrb[6].mxu0 }
 0x4d8   : > { %v840_v38 = vpop.f32.mrb[8].mxu1  ;;  %v9509_v39 = vpop.f32.mrb[7].mxu0  ;;  %v1019_v40 = vadd.f32 %v1018_v35, %v11459_v55 }
 0x4d9   : > { %846 = vst.msk [vmem:[#allocation2] sm:$0xff] %vm731_vm1, %v840_v38  ;;  %v9490_v41 = vpop.f32.mrb[9].mxu1 }
 0x4da   : > { %v843_v42 = vpop.f32.mrb[10].mxu1  ;;  %v1020_v43 = vsel %vm786_vm3, %v1019_v40, -inf }
 0x4db   : > { %1021 = vmax.xlane.f32.xlu0 %v1020_v43  ;;  %v9491_v45 = vpop.f32.mrb[11].mxu1 }
 0x4dd   : > { %v1130_v46 = vpop.f32.mrb[8].mxu0 }
 0x4de   : > { %v1136_v47 = vmul.f32 0.25, %v1130_v46  ;;  %v9520_v48 = vpop.f32.mrb[9].mxu0 }
 0x4df   : > { %v1133_v49 = vpop.f32.mrb[10].mxu0 }
 0x4e0   : > { %v893_v51 = vpop.f32.mrb[12].mxu1  ;;  %v9521_v52 = vpop.f32.mrb[11].mxu0  ;;  %v1137_v53 = vadd.f32 %v1136_v47, %v11459_v55 }
 0x4e1   : > { %v899_v54 = vmul.f32 0.25, %v893_v51  ;;  %v9496_v56 = vpop.f32.mrb[13].mxu1 }
 0x4e2   : > { %v896_v57 = vpop.f32.mrb[14].mxu1  ;;  %v1138_v58 = vsel %vm786_vm3, %v1137_v53, -inf }
 0x4e3   : > { %1139 = vmax.xlane.f32.xlu0 %v1138_v58  ;;  %v9497_v59 = vpop.f32.mrb[15].mxu1  ;;  %v900_v60 = vadd.f32 %v899_v54, %v11459_v55 }
 0x4e5   : > { %v1248_v61 = vpop.f32.mrb[12].mxu0  ;;  %v901_v62 = vsel %vm786_vm3, %v900_v60, -inf }
 0x4e6   : > { %v1254_v63 = vmul.f32 0.25, %v1248_v61  ;;  %v9532_v2 = vpop.f32.mrb[13].mxu0  ;;  %902 = vmax.xlane.f32.xlu1 %v901_v62 }
 0x4e7   : > { %v1251_v3 = vpop.f32.mrb[14].mxu0 }
 0x4e8   : > { %v9533_v4 = vpop.f32.mrb[15].mxu0  ;;  %v1255_v5 = vadd.f32 %v1254_v63, %v11459_v55 }
 0x4ea   : > { %v1256_v6 = vsel %vm786_vm3, %v1255_v5, -inf }
 0x4eb   : > { %1257 = vmax.xlane.f32.xlu1 %v1256_v6 }
 0x4ed   : > { %v1366_v7 = vpop.f32.mrb[16].mxu0 }
 0x4ee   : > { %v1372_v8 = vmul.f32 0.25, %v1366_v7  ;;  %v9544_v9 = vpop.f32.mrb[17].mxu0 }
 0x4ef   : > { %v1369_v10 = vpop.f32.mrb[18].mxu0 }
 0x4f0   : > { %v9545_v11 = vpop.f32.mrb[19].mxu0  ;;  %v1373_v12 = vadd.f32 %v1372_v8, %v11459_v55 }
 0x4f2   : > { %v1374_v13 = vsel %vm786_vm3, %v1373_v12, -inf }
 0x4f3   : > { %1375 = vmax.xlane.f32.xlu0 %v1374_v13 }
 0x4f5   : > { %v1484_v14 = vpop.f32.mrb[20].mxu0 }
 0x4f6   : > { %v1490_v15 = vmul.f32 0.25, %v1484_v14  ;;  %v9556_v16 = vpop.f32.mrb[21].mxu0 }
 0x4f7   : > { %v1487_v17 = vpop.f32.mrb[22].mxu0 }
 0x4f8   : > { %v9557_v18 = vpop.f32.mrb[23].mxu0  ;;  %v1491_v19 = vadd.f32 %v1490_v15, %v11459_v55 }
 0x4fa   : > { %v1492_v20 = vsel %vm786_vm3, %v1491_v19, -inf }
 0x4fb   : > { %1493 = vmax.xlane.f32.xlu1 %v1492_v20 }
 0x4fd   : > { %v1602_v21 = vpop.f32.mrb[24].mxu0 }
 0x4fe   : > { %v1608_v22 = vmul.f32 0.25, %v1602_v21  ;;  %v9568_v23 = vpop.f32.mrb[25].mxu0 }
 0x4ff   : > { %v1605_v24 = vpop.f32.mrb[26].mxu0 }
 0x500   : > { %v9569_v25 = vpop.f32.mrb[27].mxu0  ;;  %v1609_v26 = vadd.f32 %v1608_v22, %v11459_v55 }
 0x502   : > { %v1610_v27 = vsel %vm786_vm3, %v1609_v26, -inf }
 0x503   : > { %1611 = vmax.xlane.f32.xlu0 %v1610_v27 }
 0x568   : > { %v1022_v28 = vpop.xlane.xlu0 %1021 }
 0x569   : > { %v1023_v31 = vsub.f32 %v1019_v40, %v1022_v28 }
 0x56b   : > { %v1024_v33 = vmul.f32 1.442695, %v1023_v31 }
 0x56d   : > { %10618 = vpow2.f32 %v1024_v33 }
 0x570   : > { %v1140_v34 = vpop.xlane.xlu0 %1139 }
 0x571   : > { %v1141_v35 = vsub.f32 %v1137_v53, %v1140_v34 }
 0x573   : > { %v1142_v36 = vmul.f32 1.442695, %v1141_v35  ;;  %v903_v37 = vpop.xlane.xlu1 %902 }
 0x574   : > { %v904_v38 = vsub.f32 %v900_v60, %v903_v37 }
 0x575   : > { %10620 = vpow2.f32 %v1142_v36 }
 0x576   : > { %v905_v39 = vmul.f32 1.442695, %v904_v38 }
 0x577   : > { %v11521_v41 = vpop.eup %10618 }
 0x578   : > { %10622 = vpow2.f32 %v905_v39  ;;  %v1258_v42 = vpop.xlane.xlu1 %1257  ;;  %v1026_v43 = vsel %vm786_vm3, %v11521_v41, 0.0 }
 0x579   : > { %v1259_v45 = vsub.f32 %v1255_v5, %v1258_v42  ;;  %1027 = vadd.xlane.f32.xlu0 %v1026_v43 }
 0x57b   : > { %v1260_v46 = vmul.f32 1.442695, %v1259_v45 }
 0x57d   : > { %10624 = vpow2.f32 %v1260_v46 }
 0x57f   : > { %v11525_v40 = vpop.eup %10620 }
 0x580   : > { %v1376_v47 = vpop.xlane.xlu0 %1375  ;;  %v1144_v48 = vsel %vm786_vm3, %v11525_v40, 0.0 }
 0x581   : > { %v1377_v49 = vsub.f32 %v1373_v12, %v1376_v47  ;;  %1145 = vadd.xlane.f32.xlu1 %v1144_v48 }
 0x582   : > { %v10623_v51 = vpop.eup %10622 }
 0x583   : > { %v1378_v52 = vmul.f32 1.442695, %v1377_v49  ;;  %v907_v53 = vsel %vm786_vm3, %v10623_v51, 0.0 }
 0x585   : > { %10626 = vpow2.f32 %v1378_v52  ;;  %908 = vadd.xlane.f32.xlu1 %v907_v53 }
 0x587   : > { %v11530_v54 = vpop.eup %10624 }
 0x588   : > { %v1262_v56 = vsel %vm786_vm3, %v11530_v54, 0.0  ;;  %v1494_v59 = vpop.xlane.xlu1 %1493 }
 0x589   : > { %1263 = vadd.xlane.f32.xlu0 %v1262_v56  ;;  %v1495_v60 = vsub.f32 %v1491_v19, %v1494_v59 }
 0x58b   : > { %v1496_v61 = vmul.f32 1.442695, %v1495_v60 }
 0x58d   : > { %10628 = vpow2.f32 %v1496_v61 }
 0x58f   : > { %v11534_v57 = vpop.eup %10626 }
 0x590   : > { %v1380_v58 = vsel %vm786_vm3, %v11534_v57, 0.0  ;;  %v1612_v62 = vpop.xlane.xlu0 %1611 }
 0x591   : > { %1381 = vadd.xlane.f32.xlu0 %v1380_v58  ;;  %v1613_v63 = vsub.f32 %v1609_v26, %v1612_v62 }
 0x593   : > { %v1614_v3 = vmul.f32 1.442695, %v1613_v63 }
 0x595   : > { %10630 = vpow2.f32 %v1614_v3 }
 0x596   : > { %914 = vrot.lane.b32.xlu1 %v11452_v50, %s11058_s30 }
 0x597   : > { %v11544_v2 = vpop.eup %10628 }
 0x598   : > { %v1498_v4 = vsel %vm786_vm3, %v11544_v2, 0.0 }
 0x59f   : > { %v11548_v5 = vpop.eup %10630 }
 0x5a0   : > { %v1616_v6 = vsel %vm786_vm3, %v11548_v5, 0.0 }
 0x5a7   : > { %1032 = vrot.lane.b32.xlu0 %v11452_v50, %s11059_s12 }
 0x5ab   : > { %1150 = vrot.lane.b32.xlu0 %v11452_v50, %s11060_s14 }
 0x5ba   : > { %1499 = vadd.xlane.f32.xlu1 %v1498_v4  ;;  %v10166_v4 = vld [vmem:[#allocation8] sm:$0xff]  }
 0x5bb   : > { %9577 = vmatpush3.bf16.msra.mxu0 %v10166_v4 }
 0x5bc   : > { %9578 = vmatprep.subr.bf16.mxu0 %v11056_v1 }
 0x5ca   : > { %1617 = vadd.xlane.f32.xlu0 %v1616_v6 }
 0x5cb   : > { %1268 = vrot.lane.b32.xlu1 %v11452_v50, %s11061_s21 }
 0x5cf   : > { %1504 = vrot.lane.b32.xlu1 %v11452_v50, %s11063_s27 }
 0x5d3   : > { %1622 = vrot.lane.b32.xlu1 %v11452_v50, %s11064_s23 }
 0x5e0   : > { %1386 = vrot.lane.b32.xlu0 %v11452_v50, %s11062_s24 }
 0x606   : > { %v1028_v9 = vpop.xlane.xlu0 %1027 }
 0x60e   : > { %v1146_v7 = vpop.xlane.xlu1 %1145 }
 0x612   : > { %v909_v8 = vpop.xlane.xlu1 %908 }
 0x613   : > { %10632 = vrcp.f32 %v909_v8 }
 0x614   : > { %10634 = vrcp.f32 %v1028_v9 }
 0x615   : > { %10636 = vrcp.f32 %v1146_v7 }
 0x616   : > { %v915_v10 = vpop.permute.xlu1 %914  ;;  %v1264_v12 = vpop.xlane.xlu0 %1263 }
 0x617   : > { %v920_v11 = vsel %vm802_vm2, %v915_v10, 0  ;;  %10638 = vrcp.f32 %v1264_v12  ;;  %v10168_v10 = vld [vmem:[#allocation8 + $0x10] sm:$0xff]   ;;  %v10170_v12 = vld [vmem:[#allocation8 + $0x20] sm:$0xff]  }
 0x618   : > { %9499 = vmatpush3.bf16.msra.mxu1 %v920_v11  ;;  %v10169_v11 = vld [vmem:[#allocation8 + $0x18] sm:$0xff]  }
 0x619   : > { %9510 = vmatprep.subr.bf16.mxu1 %v11056_v1 }
 0x61d   : > { %v10633_v13 = vpop.eup %10632 }
 0x61e   : > { %v1382_v14 = vpop.xlane.xlu0 %1381  ;;  %v911_v15 = vmul.f32 %v10633_v13, %v10623_v51  ;;  %v10635_v17 = vpop.eup %10634  ;;  %v10171_v13 = vld [vmem:[#allocation8 + $0x28] sm:$0xff]  }
 0x61f   : > { %v1030_v19 = vmul.f32 %v10635_v17, %v11521_v41  ;;  %v10637_v22 = vpop.eup %10636  ;;  %10640 = vrcp.f32 %v1382_v14 }
 0x620   : > { %v912_v16 = vpack.c.bf16 %v911_v15, %v911_v15  ;;  %v1148_v24 = vmul.f32 %v10637_v22, %v11525_v40 }
 0x621   : > { %v1031_v21 = vpack.c.bf16 %v1030_v19, %v1030_v19  ;;  %v10639_v26 = vpop.eup %10638 }
 0x622   : > { %v1033_v18 = vpop.permute.xlu0 %1032  ;;  %9501 = vmatmul.mubr.msk.bf16.vlgmr.msra.gmra.mrb[16].mxu1 %vm786_vm3, %v912_v16  ;;  %v1149_v25 = vpack.c.bf16 %v1148_v24, %v1148_v24  ;;  %v1266_v28 = vmul.f32 %v10639_v26, %v11530_v54 }
 0x623   : > { %v1038_v50 = vsel %vm802_vm2, %v1033_v18, 0  ;;  %9512 = vmatprep.mubr.msk.bf16.mxu1 %vm11057_vm0, %v11056_v1  ;;  %v10172_v18 = vld [vmem:[#allocation8 + $0x30] sm:$0xff]  }
 0x624   : > { %9511 = vmatpush3.bf16.msra.mxu1 %v1038_v50  ;;  %v1267_v34 = vpack.c.bf16 %v1266_v28, %v1266_v28  ;;  %v10173_v50 = vld [vmem:[#allocation8 + $0x38] sm:$0xff]  }
 0x625   : > { %9522 = vmatprep.subr.bf16.mxu1 %v11056_v1 }
 0x626   : > { %v1151_v20 = vpop.permute.xlu0 %1150 }
 0x627   : > { %v1156_v23 = vsel %vm802_vm2, %v1151_v20, 0 }
 0x629   : > { %v10641_v35 = vpop.eup %10640 }
 0x62a   : > { %9513 = vmatmul.mubr.msk.bf16.vlgmr.msra.gmra.mrb[20].mxu1 %vm786_vm3, %v1031_v21  ;;  %v1384_v37 = vmul.f32 %v10641_v35, %v11534_v57 }
 0x62b   : > { %9523 = vmatpush3.bf16.msra.mxu1 %v1156_v23  ;;  %9524 = vmatprep.mubr.msk.bf16.mxu1 %vm11057_vm0, %v11056_v1 }
 0x62c   : > { %9534 = vmatprep.subr.bf16.mxu1 %v11056_v1  ;;  %v1385_v42 = vpack.c.bf16 %v1384_v37, %v1384_v37 }
 0x632   : > { %9525 = vmatmul.mubr.msk.bf16.vlgmr.msra.gmra.mrb[24].mxu1 %vm786_vm3, %v1149_v25 }
 0x633   : > { %9536 = vmatprep.mubr.msk.bf16.mxu1 %vm11057_vm0, %v11056_v1 }
 0x647   : > { %v1500_v27 = vpop.xlane.xlu1 %1499 }
 0x648   : > { %10642 = vrcp.f32 %v1500_v27 }
 0x64b   : > { %v1269_v31 = vpop.permute.xlu1 %1268 }
 0x64c   : > { %v1274_v33 = vsel %vm802_vm2, %v1269_v31, 0 }
 0x64d   : > { %9535 = vmatpush3.bf16.msra.mxu1 %v1274_v33 }
 0x64e   : > { %9546 = vmatprep.subr.bf16.mxu1 %v11056_v1 }
 0x64f   : > { %v1505_v41 = vpop.permute.xlu1 %1504 }
 0x650   : > { %9537 = vmatmul.mubr.msk.bf16.vlgmr.msra.gmra.mrb[28].mxu1 %vm786_vm3, %v1267_v34  ;;  %v1510_v45 = vsel %vm802_vm2, %v1505_v41, 0 }
 0x651   : > { %9548 = vmatprep.mubr.msk.bf16.mxu1 %vm11057_vm0, %v11056_v1 }
 0x652   : > { %v10643_v43 = vpop.eup %10642 }
 0x653   : > { %v1502_v46 = vmul.f32 %v10643_v43, %v11544_v2  ;;  %v1623_v40 = vpop.permute.xlu1 %1622 }
 0x654   : > { %v1628_v49 = vsel %vm802_vm2, %v1623_v40, 0 }
 0x655   : > { %v1503_v47 = vpack.c.bf16 %v1502_v46, %v1502_v46 }
 0x657   : > { %v1618_v36 = vpop.xlane.xlu0 %1617 }
 0x658   : > { %10644 = vrcp.f32 %v1618_v36 }
 0x65b   : > { %v1387_v38 = vpop.permute.xlu0 %1386 }
 0x65c   : > { %v1392_v39 = vsel %vm802_vm2, %v1387_v38, 0 }
 0x65d   : > { %9547 = vmatpush3.bf16.msra.mxu1 %v1392_v39  ;;  %v11621_v39 = vld [vmem:[#allocation14] sm:$0xff] }
 0x65e   : > { %9558 = vmatprep.subr.bf16.mxu1 %v11056_v1  ;;  %v1697_v41 = vrot.slane %v11621_v39, %v11429_v32 }
 0x660   : > { %9549 = vmatmul.mubr.msk.bf16.vlgmr.msra.gmra.mrb[32].mxu1 %vm786_vm3, %v1385_v42 }
 0x661   : > { %9559 = vmatpush3.bf16.msra.mxu1 %v1510_v45  ;;  %9560 = vmatprep.mubr.msk.bf16.mxu1 %vm11057_vm0, %v11056_v1 }
 0x662   : > { %9570 = vmatprep.subr.bf16.mxu1 %v11056_v1  ;;  %v10645_v48 = vpop.eup %10644 }
 0x663   : > { %v1620_v51 = vmul.f32 %v10645_v48, %v11548_v5  ;;  %v10167_v5 = vld [vmem:[#allocation8 + $0x8] sm:$0xff]  }
 0x664   : > { %9579 = vmatpush3.bf16.msra.mxu0 %v10167_v5  ;;  %v10194_v5 = vld [vmem:[#allocation10 + $0x64] ss:$16 sps:$4 sm:$0xff]  }
 0x665   : > { %v1621_v52 = vpack.c.bf16 %v1620_v51, %v1620_v51  ;;  %9580 = vmatprep.subr.bf16.mxu0 %v11056_v1  ;;  %v10176_v51 = vld [vmem:[#allocation10 + $0x4] ss:$16 sps:$4 sm:$0xff]  }
 0x668   : > { %9561 = vmatmul.mubr.msk.bf16.vlgmr.msra.gmra.mrb[36].mxu1 %vm786_vm3, %v1503_v47  ;;  %9581 = vmatpush3.bf16.msra.mxu0 %v10168_v10  ;;  %v10758_v47 = vld [vmem:[%s11407_s13] sm:$0xff] }
 0x669   : > { %9571 = vmatpush3.bf16.msra.mxu1 %v1628_v49  ;;  %9572 = vmatprep.mubr.msk.bf16.mxu1 %vm11057_vm0, %v11056_v1  ;;  %v10174_v49 = vld [vmem:[#allocation10] ss:$16 sps:$4 sm:$0xff]  }
 0x66a   : > { %9582 = vmatprep.subr.bf16.mxu0 %v11056_v1  ;;  %2024 = vmatprep.subr.bf16.mxu1 %v10176_v51  ;;  %v10198_v10 = vld [vmem:[#allocation10 + $0x80] ss:$16 sps:$4 sm:$0xff]  }
 0x66b   : > { %v10233_v51 = vld [vmem:[#allocation13 + $0x90] sm:$0xff]  }
 0x66c   : > { %9583 = vmatpush3.bf16.msra.mxu0 %v10169_v11  ;;  %v10201_v11 = vld [vmem:[#allocation10 + $0x88] ss:$16 sps:$4 sm:$0xff]  }
 0x66d   : > { %9584 = vmatprep.subr.bf16.mxu0 %v11056_v1 }
 0x670   : > { %9573 = vmatmul.mubr.msk.bf16.vlgmr.msra.gmra.mrb[40].mxu1 %vm786_vm3, %v1621_v52  ;;  %9585 = vmatpush3.bf16.msra.mxu0 %v10170_v12  ;;  %v10177_v52 = vld [vmem:[#allocation10 + $0x8] ss:$16 sps:$4 sm:$0xff]   ;;  %v10203_v12 = vld [vmem:[#allocation10 + $0x8c] ss:$16 sps:$4 sm:$0xff]  }
 0x671   : > { %2056 = vmatprep.mubr.bf16.mxu1 %v11055_v0  ;;  %9586 = vmatprep.subr.bf16.mxu0 %v11056_v1 }
 0x672   : > { %2025 = vmatpush1.bf16.msra.mxu1 %v10174_v49  ;;  %v10232_v49 = vld [vmem:[#allocation13 + $0x10] sm:$0xff]  }
 0x674   : > { %9587 = vmatpush3.bf16.msra.mxu0 %v10171_v13  ;;  %v10206_v13 = vld [vmem:[#allocation10 + $0xa4] ss:$16 sps:$4 sm:$0xff]  }
 0x675   : > { %9588 = vmatprep.subr.bf16.mxu0 %v11056_v1 }
 0x678   : > { %9589 = vmatpush3.bf16.msra.mxu0 %v10172_v18  ;;  %v10215_v18 = vld [vmem:[#allocation10 + $0xcc] ss:$16 sps:$4 sm:$0xff]  }
 0x679   : > { %9590 = vmatprep.subr.bf16.mxu0 %v11056_v1 }
 0x67c   : > { %9591 = vmatpush3.bf16.msra.mxu0 %v10173_v50  ;;  %v10210_v50 = vld [vmem:[#allocation10 + $0xc0] ss:$16 sps:$4 sm:$0xff]  }
 0x6f5   : > { %v956_v53 = vpop.f32.mrb[16].mxu1 }
 0x6f6   : > { %963 = vrot.lane.b32.xlu1 %v956_v53, %s11064_s23  ;;  %v9502_v54 = vpop.f32.mrb[17].mxu1  ;;  %v10179_v53 = vld [vmem:[#allocation10 + $0xc] ss:$16 sps:$4 sm:$0xff]  }
 0x6f7   : > { %v959_v56 = vpop.f32.mrb[18].mxu1  ;;  %v10182_v54 = vld [vmem:[#allocation10 + $0x24] ss:$16 sps:$4 sm:$0xff]   ;;  %2065 = vmatprep.subr.bf16.mxu0 %v10179_v53  ;;  %v10235_v53 = vld [vmem:[#allocation13 + $0xd8] sm:$0xff]  }
 0x6f8   : > { %v9503_v57 = vpop.f32.mrb[19].mxu1  ;;  %v10185_v56 = vld [vmem:[#allocation10 + $0x2c] ss:$16 sps:$4 sm:$0xff]   ;;  %2026 = vmatprep.subr.bf16.mxu1 %v10182_v54 }
 0x6f9   : > { %v10180_v57 = vld [vmem:[#allocation10 + $0x20] ss:$16 sps:$4 sm:$0xff]   ;;  %v10236_v54 = vld [vmem:[#allocation13 + $0x18] sm:$0xff]  }
 0x6fa   : > { %2027 = vmatpush1.bf16.msra.mxu1 %v10180_v57  ;;  %v10238_v57 = vld [vmem:[#allocation13 + $0x60] sm:$0xff]  }
 0x6fd   : > { %v1074_v58 = vpop.f32.mrb[20].mxu1 }
 0x6fe   : > { %1081 = vrot.lane.b32.xlu1 %v1074_v58, %s11063_s27  ;;  %v9514_v59 = vpop.f32.mrb[21].mxu1  ;;  %v10183_v58 = vld [vmem:[#allocation10 + $0x28] ss:$16 sps:$4 sm:$0xff]  }
 0x6ff   : > { %v1077_v60 = vpop.f32.mrb[22].mxu1  ;;  %v10188_v59 = vld [vmem:[#allocation10 + $0x44] ss:$16 sps:$4 sm:$0xff]  }
 0x700   : > { %v9515_v61 = vpop.f32.mrb[23].mxu1  ;;  %v10191_v60 = vld [vmem:[#allocation10 + $0x4c] ss:$16 sps:$4 sm:$0xff]   ;;  %2028 = vmatprep.subr.bf16.mxu1 %v10188_v59  ;;  %v10240_v59 = vld [vmem:[#allocation13 + $0x20] sm:$0xff]  }
 0x701   : > { %v10186_v61 = vld [vmem:[#allocation10 + $0x40] ss:$16 sps:$4 sm:$0xff]  }
 0x702   : > { %2029 = vmatpush1.bf16.msra.mxu1 %v10186_v61  ;;  %v10242_v61 = vld [vmem:[#allocation13 + $0x68] sm:$0xff]  }
 0x703   : > { %2030 = vmatprep.subr.bf16.mxu1 %v10194_v5  ;;  %v10248_v5 = vld [vmem:[#allocation13 + $0x30] sm:$0xff]  }
 0x705   : > { %v1192_v62 = vpop.f32.mrb[24].mxu1 }
 0x706   : > { %1199 = vrot.lane.b32.xlu0 %v1192_v62, %s11062_s24  ;;  %v9526_v63 = vpop.f32.mrb[25].mxu1  ;;  %v10189_v62 = vld [vmem:[#allocation10 + $0x48] ss:$16 sps:$4 sm:$0xff]  }
 0x707   : > { %v1195_v2 = vpop.f32.mrb[26].mxu1 }
 0x708   : > { %v9527_v3 = vpop.f32.mrb[27].mxu1 }
 0x723   : > { %v1310_v6 = vpop.f32.mrb[28].mxu1 }
 0x724   : > { %1317 = vrot.lane.b32.xlu1 %v1310_v6, %s11061_s21  ;;  %v9538_v7 = vpop.f32.mrb[29].mxu1  ;;  %v10197_v6 = vld [vmem:[#allocation10 + $0x6c] ss:$16 sps:$4 sm:$0xff]  }
 0x725   : > { %v1313_v8 = vpop.f32.mrb[30].mxu1  ;;  %v10192_v7 = vld [vmem:[#allocation10 + $0x60] ss:$16 sps:$4 sm:$0xff]  }
 0x726   : > { %v9539_v9 = vpop.f32.mrb[31].mxu1  ;;  %v10195_v8 = vld [vmem:[#allocation10 + $0x68] ss:$16 sps:$4 sm:$0xff]   ;;  %2031 = vmatpush1.bf16.msra.mxu1 %v10192_v7 }
 0x727   : > { %v10200_v9 = vld [vmem:[#allocation10 + $0x84] ss:$16 sps:$4 sm:$0xff]   ;;  %v10250_v7 = vld [vmem:[#allocation13 + $0x78] sm:$0xff]  }
 0x728   : > { %2032 = vmatprep.subr.bf16.mxu1 %v10200_v9  ;;  %v10252_v9 = vld [vmem:[#allocation13 + $0x38] sm:$0xff]  }
 0x72a   : > { %2033 = vmatpush1.bf16.msra.mxu1 %v10198_v10  ;;  %v10253_v10 = vld [vmem:[#allocation13 + $0xb8] sm:$0xff]  }
 0x72b   : > { %2034 = vmatprep.subr.bf16.mxu1 %v10206_v13 }
 0x733   : > { %v1428_v14 = vpop.f32.mrb[32].mxu1 }
 0x734   : > { %1435 = vrot.lane.b32.xlu0 %v1428_v14, %s11060_s14  ;;  %v9550_v15 = vpop.f32.mrb[33].mxu1  ;;  %v10209_v14 = vld [vmem:[#allocation10 + $0xac] ss:$16 sps:$4 sm:$0xff]  }
 0x735   : > { %v1431_v16 = vpop.f32.mrb[34].mxu1  ;;  %v10204_v15 = vld [vmem:[#allocation10 + $0xa0] ss:$16 sps:$4 sm:$0xff]  }
 0x736   : > { %v9551_v17 = vpop.f32.mrb[35].mxu1  ;;  %v10207_v16 = vld [vmem:[#allocation10 + $0xa8] ss:$16 sps:$4 sm:$0xff]   ;;  %2035 = vmatpush1.bf16.msra.mxu1 %v10204_v15 }
 0x737   : > { %v10212_v17 = vld [vmem:[#allocation10 + $0xc4] ss:$16 sps:$4 sm:$0xff]  }
 0x738   : > { %2036 = vmatprep.subr.bf16.mxu1 %v10212_v17 }
 0x73a   : > { %2037 = vmatpush1.bf16.msra.mxu1 %v10210_v50 }
 0x73b   : > { %v1546_v19 = vpop.f32.mrb[36].mxu1 }
 0x73c   : > { %1553 = vrot.lane.b32.xlu1 %v1546_v19, %s11059_s12  ;;  %v9562_v20 = vpop.f32.mrb[37].mxu1  ;;  %v10213_v19 = vld [vmem:[#allocation10 + $0xc8] ss:$16 sps:$4 sm:$0xff]  }
 0x73d   : > { %v1549_v21 = vpop.f32.mrb[38].mxu1  ;;  %v10218_v20 = vld [vmem:[#allocation10 + $0xe4] ss:$16 sps:$4 sm:$0xff]  }
 0x73e   : > { %v9563_v22 = vpop.f32.mrb[39].mxu1  ;;  %v10221_v21 = vld [vmem:[#allocation10 + $0xec] ss:$16 sps:$4 sm:$0xff]   ;;  %2038 = vmatprep.subr.bf16.mxu1 %v10218_v20 }
 0x73f   : > { %v10216_v22 = vld [vmem:[#allocation10 + $0xe0] ss:$16 sps:$4 sm:$0xff]  }
 0x740   : > { %2039 = vmatpush1.bf16.msra.mxu1 %v10216_v22 }
 0x743   : > { %v1664_v23 = vpop.f32.mrb[40].mxu1 }
 0x744   : > { %1671 = vrot.lane.b32.xlu0 %v1664_v23, %s11058_s30  ;;  %v9574_v24 = vpop.f32.mrb[41].mxu1  ;;  %v10219_v23 = vld [vmem:[#allocation10 + $0xe8] ss:$16 sps:$4 sm:$0xff]  }
 0x745   : > { %v1667_v25 = vpop.f32.mrb[42].mxu1  ;;  %v10222_v24 = vld [vmem:[#allocation13 + $0x40] sm:$0xff]  }
 0x746   : > { %v9575_v26 = vpop.f32.mrb[43].mxu1  ;;  %v10223_v25 = vld [vmem:[#allocation13 + $0xc0] sm:$0xff]   ;;  %9134 = vmatprep.subr.bf16.mxu1 %v10222_v24 }
 0x768   : > { %v964_v27 = vpop.permute.xlu1 %963 }
 0x769   : > { %967 = vst.msk [vmem:[#allocation2] sm:$0xff] %vm966_vm4, %v964_v27 }
 0x770   : > { %v1082_v28 = vpop.permute.xlu1 %1081 }
 0x771   : > { %1085 = vst.msk [vmem:[#allocation2] sm:$0xff] %vm1084_vm5, %v1082_v28 }
 0x778   : > { %v1200_v31 = vpop.permute.xlu0 %1199 }
 0x779   : > { %1203 = vst.msk [vmem:[#allocation2] sm:$0xff] %vm1202_vm6, %v1200_v31  ;;  %v1802_v31 = vrot.slane %v11621_v39, %v11426_v30 }
 0x796   : > { %v1318_v33 = vpop.permute.xlu1 %1317 }
 0x797   : > { %1321 = vst.msk [vmem:[#allocation2] sm:$0xff] %vm1320_vm7, %v1318_v33 }
 0x7a6   : > { %v1436_v34 = vpop.permute.xlu0 %1435 }
 0x7a7   : > { %1439 = vst.msk [vmem:[#allocation2] sm:$0xff] %vm1438_vm8, %v1436_v34 }
 0x7ae   : > { %v1554_v35 = vpop.permute.xlu1 %1553 }
 0x7af   : > { %1557 = vst.msk [vmem:[#allocation2] sm:$0xff] %vm1556_vm9, %v1554_v35  ;;  %v1807_v35 = vrot.slane %v11621_v39, %v11449_v44 }
 0x7b6   : > { %v1672_v36 = vpop.permute.xlu0 %1671 }
 0x7b7   : > { %1675 = vst.msk [vmem:[#allocation2] sm:$0xff] %vm1674_vm10, %v1672_v36 }
 0x7be   : > { %v1676_v37 = vld [vmem:[#allocation2] sm:$0xff] }
 0x7bf   : > { %v1677_v38 = vpack.c.bf16 %v1676_v37, %v1676_v37 }
 0x7c1   : > { %9593 = vmatmul.mubr.bf16.vlgmr.msra.gmra.mrb[28].mxu0 %v1677_v38  ;;  %v10224_v38 = vld [vmem:[#allocation13] sm:$0xff]  }
 0x7c2   : > { %2097 = vmatprep.mubr.bf16.mxu0 %v11055_v0  ;;  %2066 = vmatpush1.bf16.msra.mxu0 %v10177_v52  ;;  %v10234_v52 = vld [vmem:[#allocation13 + $0x58] sm:$0xff]  }
 0x7c3   : > { %2067 = vmatprep.subr.bf16.mxu0 %v10185_v56  ;;  %v10237_v56 = vld [vmem:[#allocation13 + $0x98] sm:$0xff]  }
 0x7c6   : > { %2068 = vmatpush1.bf16.msra.mxu0 %v10183_v58  ;;  %v10239_v58 = vld [vmem:[#allocation13 + $0xe0] sm:$0xff]  }
 0x7c7   : > { %2069 = vmatprep.subr.bf16.mxu0 %v10191_v60  ;;  %v10241_v60 = vld [vmem:[#allocation13 + $0xa0] sm:$0xff]  }
 0x7ca   : > { %2070 = vmatpush1.bf16.msra.mxu0 %v10189_v62  ;;  %v10243_v62 = vld [vmem:[#allocation13 + $0xe8] sm:$0xff]  }
 0x7cb   : > { %2071 = vmatprep.subr.bf16.mxu0 %v10197_v6  ;;  %v10249_v6 = vld [vmem:[#allocation13 + $0xb0] sm:$0xff]  }
 0x7ce   : > { %2072 = vmatpush1.bf16.msra.mxu0 %v10195_v8  ;;  %v10251_v8 = vld [vmem:[#allocation13 + $0xf8] sm:$0xff]  }
 0x7cf   : > { %2073 = vmatprep.subr.bf16.mxu0 %v10203_v12  ;;  %v11636_v12 = vsub.s32 3, %v11423_v29 }
 0x7d2   : > { %2074 = vmatpush1.bf16.msra.mxu0 %v10201_v11  ;;  %v1842_v11 = vld [vmem:[#allocation11] sm:$0xf] }
 0x7d3   : > { %2075 = vmatprep.subr.bf16.mxu0 %v10209_v14  ;;  %v1847_v13 = vrot.slane %v1842_v11, %v11429_v32  ;;  %v1855_v14 = vrot.slane %v1842_v11, %v11449_v44  ;;  %v1851_v15 = vrot.slane %v1842_v11, %v11426_v30 }
 0x7d6   : > { %2076 = vmatpush1.bf16.msra.mxu0 %v10207_v16  ;;  %v1859_v16 = vrot.slane %v1842_v11, %v11636_v12  ;;  %v10269_v11 = vld [vmem:[#allocation5 + $0x110] ss:$12 sps:$4 sm:$0xff]  }
 0x7d7   : > { %2077 = vmatprep.subr.bf16.mxu0 %v10215_v18 }
 0x7da   : > { %2078 = vmatpush1.bf16.msra.mxu0 %v10213_v19 }
 0x7db   : > { %2079 = vmatprep.subr.bf16.mxu0 %v10221_v21 }
 0x7de   : > { %2080 = vmatpush1.bf16.msra.mxu0 %v10219_v23 }
 0x7df   : > { %9156 = vmatprep.subr.bf16.mxu0 %v10223_v25 }
 0x894   : > { %v1780_v42 = vpop.f32.mrb[28].mxu0 }
 0x895   : > { %v1781_v43 = vadd.f32 %v1780_v42, %v1697_v41  ;;  %v9594_v45 = vpop.f32.mrb[29].mxu0  ;;  %v10225_v41 = vld [vmem:[#allocation13 + $0x80] sm:$0xff]  }
 0x896   : > { %v1783_v46 = vpop.f32.mrb[30].mxu0  ;;  %v10227_v45 = vld [vmem:[#allocation13 + $0xc8] sm:$0xff]  }
 0x897   : > { %v9595_v40 = vpop.f32.mrb[31].mxu0  ;;  %v1786_v48 = vadd.f32 %v10758_v47, %v1781_v43  ;;  %v10226_v43 = vld [vmem:[#allocation13 + $0x48] sm:$0xff]   ;;  %v10230_v47 = vld [vmem:[#allocation13 + $0x50] sm:$0xff]  }
 0x898   : > { %v10228_v46 = vld [vmem:[#allocation13 + $0x8] sm:$0xff]  }
 0x899   : > { %1787 = vadd.xlane.f32.xlu1 %v1786_v48  ;;  %v10229_v40 = vld [vmem:[#allocation13 + $0x88] sm:$0xff]  }
 0x926   : > { %v1788_v63 = vpop.xlane.xlu1 %1787 }
 0x927   : > { %v1790_v2 = vmul.f32 0.0078125, %v1788_v63  ;;  %v10244_v63 = vld [vmem:[#allocation13 + $0x28] sm:$0xff]  }
 0x929   : > { %v1791_v3 = vsub.f32 %v1786_v48, %v1790_v2  ;;  %v10231_v48 = vld [vmem:[#allocation13 + $0xd0] sm:$0xff]   ;;  %v10245_v2 = vld [vmem:[#allocation13 + $0xa8] sm:$0xff]  }
 0x92b   : > { %v1792_v4 = vmul.f32 %v1791_v3, %v1791_v3 }
 0x92d   : > { %1793 = vadd.xlane.f32.xlu0 %v1792_v4  ;;  %v10247_v4 = vld [vmem:[#allocation13 + $0xf0] sm:$0xff]  }
 0x9ba   : > { %v1794_v26 = vpop.xlane.xlu0 %1793 }
 0x9bb   : > { %v1795_v27 = vmul.f32 0.0078125, %v1794_v26 }
 0x9bd   : > { %v1796_v28 = vadd.f32 1e-06, %v1795_v27 }
 0x9bf   : > { %10646 = vrsqrt.f32 %v1796_v28 }
 0x9c9   : > { %v10647_v33 = vpop.eup %10646 }
 0x9ca   : > { %v1798_v34 = vmul.f32 %v10647_v33, %v1791_v3  ;;  %v10246_v3 = vld [vmem:[#allocation13 + $0x70] sm:$0xff]  }
 0x9cc   : > { %v1803_v36 = vmul.f32 %v1802_v31, %v1798_v34 }
 0x9ce   : > { %v11630_v37 = vadd.f32 %v1807_v35, %v1803_v36 }
 0x9d0   : > { %v1809_v42 = vpack.c.bf16 %v11630_v37, %v11630_v37 }
 0x9d2   : > { %2057 = vmatmul.mubr.bf16.vlgmr.msra.gmra.mrb[44].mxu1 %v1809_v42  ;;  %2098 = vmatmul.mubr.bf16.vlgmr.msra.gmra.mrb[32].mxu0 %v1809_v42  ;;  %v11646_v42 = vsub.s32 5, %v11423_v29 }
 0x9d3   : > { %9135 = vmatpush3.bf16.msra.mxu1 %v10224_v38  ;;  %9157 = vmatpush3.bf16.msra.mxu0 %v10225_v41 }
 0x9d4   : > { %9136 = vmatprep.subr.bf16.mxu1 %v10226_v43  ;;  %9158 = vmatprep.subr.bf16.mxu0 %v10227_v45 }
 0x9d7   : > { %9137 = vmatpush3.bf16.msra.mxu1 %v10228_v46  ;;  %9159 = vmatpush3.bf16.msra.mxu0 %v10229_v40  ;;  %v2181_v46 = vrot.slane %v11621_v39, %v11646_v42 }
 0x9d8   : > { %9138 = vmatprep.subr.bf16.mxu1 %v10230_v47  ;;  %9160 = vmatprep.subr.bf16.mxu0 %v10231_v48 }
 0x9db   : > { %9139 = vmatpush3.bf16.msra.mxu1 %v10232_v49  ;;  %9161 = vmatpush3.bf16.msra.mxu0 %v10233_v51 }
 0x9dc   : > { %9140 = vmatprep.subr.bf16.mxu1 %v10234_v52  ;;  %9162 = vmatprep.subr.bf16.mxu0 %v10235_v53 }
 0x9df   : > { %9141 = vmatpush3.bf16.msra.mxu1 %v10236_v54  ;;  %9163 = vmatpush3.bf16.msra.mxu0 %v10237_v56 }
 0x9e0   : > { %9142 = vmatprep.subr.bf16.mxu1 %v10238_v57  ;;  %9164 = vmatprep.subr.bf16.mxu0 %v10239_v58 }
 0x9e3   : > { %9143 = vmatpush3.bf16.msra.mxu1 %v10240_v59  ;;  %9165 = vmatpush3.bf16.msra.mxu0 %v10241_v60  ;;  %v10254_v59 = vld [vmem:[#allocation5 + $0xc0] ss:$12 sps:$4 sm:$0xff]   ;;  %v10256_v60 = vld [vmem:[#allocation5 + $0xc4] ss:$12 sps:$4 sm:$0xff]  }
 0x9e4   : > { %9144 = vmatprep.subr.bf16.mxu1 %v10242_v61  ;;  %9166 = vmatprep.subr.bf16.mxu0 %v10243_v62  ;;  %v10257_v61 = vld [vmem:[#allocation5 + $0xc8] ss:$12 sps:$4 sm:$0xff]  }
 0x9e5   : > { %v10260_v62 = vld [vmem:[#allocation5 + $0xdc] ss:$12 sps:$4 sm:$0xff]  }
 0x9e7   : > { %9145 = vmatpush3.bf16.msra.mxu1 %v10244_v63  ;;  %9167 = vmatpush3.bf16.msra.mxu0 %v10245_v2  ;;  %v10261_v63 = vld [vmem:[#allocation5 + $0xe0] ss:$12 sps:$4 sm:$0xff]   ;;  %v10258_v2 = vld [vmem:[#allocation5 + $0xd8] ss:$12 sps:$4 sm:$0xff]  }
 0x9e8   : > { %9146 = vmatprep.subr.bf16.mxu1 %v10246_v3  ;;  %9168 = vmatprep.subr.bf16.mxu0 %v10247_v4  ;;  %v10264_v3 = vld [vmem:[#allocation5 + $0xf4] ss:$12 sps:$4 sm:$0xff]   ;;  %v10262_v4 = vld [vmem:[#allocation5 + $0xf0] ss:$12 sps:$4 sm:$0xff]  }
 0x9eb   : > { %9147 = vmatpush3.bf16.msra.mxu1 %v10248_v5  ;;  %9169 = vmatpush3.bf16.msra.mxu0 %v10249_v6 }
 0x9ec   : > { %9148 = vmatprep.subr.bf16.mxu1 %v10250_v7  ;;  %9170 = vmatprep.subr.bf16.mxu0 %v10251_v8  ;;  %v10265_v8 = vld [vmem:[#allocation5 + $0xf8] ss:$12 sps:$4 sm:$0xff]  }
 0x9ef   : > { %9149 = vmatpush3.bf16.msra.mxu1 %v10252_v9  ;;  %9171 = vmatpush3.bf16.msra.mxu0 %v10253_v10  ;;  %v10268_v9 = vld [vmem:[#allocation5 + $0x10c] ss:$12 sps:$4 sm:$0xff]   ;;  %v10266_v10 = vld [vmem:[#allocation5 + $0x108] ss:$12 sps:$4 sm:$0xff]  }
 0x9f0   : > { %9596 = vmatprep.subr.bf16.mxu0 %v11056_v1  ;;  %2658 = vmatprep.subr.bf16.mxu1 %v10256_v60 }
 0xaa5   : > { %v2058_v17 = vpop.f32.mrb[44].mxu1  ;;  %v2099_v18 = vpop.f32.mrb[32].mxu0 }
 0xaa6   : > { %v2059_v50 = vadd.f32 %v2058_v17, %v1847_v13  ;;  %v2100_v19 = vadd.f32 %v2099_v18, %v1855_v14  ;;  %v2060_v20 = vpop.f32.mrb[45].mxu1  ;;  %v2101_v21 = vpop.f32.mrb[33].mxu0  ;;  %v10272_v13 = vld [vmem:[#allocation5 + $0x124] ss:$12 sps:$4 sm:$0xff]   ;;  %v10270_v14 = vld [vmem:[#allocation5 + $0x120] ss:$12 sps:$4 sm:$0xff]  }
 0xaa7   : > { %v2061_v22 = vadd.f32 %v2060_v20, %v1851_v15  ;;  %v2102_v23 = vadd.f32 %v2101_v21, %v1859_v16  ;;  %v2062_v24 = vpop.f32.mrb[46].mxu1  ;;  %v2103_v25 = vpop.f32.mrb[34].mxu0  ;;  %v10273_v15 = vld [vmem:[#allocation5 + $0x128] ss:$12 sps:$4 sm:$0xff]   ;;  %v10274_v17 = vld [vmem:[#allocation5 + $0x138] ss:$12 sps:$4 sm:$0xff]  }
 0xaa8   : > { %v2106_v26 = vmax.f32 %v2059_v50, 0.0  ;;  %v2108_v27 = vmax.f32 %v2100_v19, 0.0  ;;  %v2063_v28 = vpop.f32.mrb[47].mxu1  ;;  %v2104_v31 = vpop.f32.mrb[35].mxu0  ;;  %v10276_v16 = vld [vmem:[#allocation5 + $0x13c] ss:$12 sps:$4 sm:$0xff]  }
 0xaa9   : > { %v2107_v33 = vmax.f32 %v2061_v22, 0.0  ;;  %v2109_v34 = vmax.f32 %v2102_v23, 0.0  ;;  %v10277_v18 = vld [vmem:[#allocation5 + $0x140] ss:$12 sps:$4 sm:$0xff]   ;;  %v10278_v19 = vld [vmem:[#allocation5 + $0x150] ss:$12 sps:$4 sm:$0xff]   ;;  %v2469_v28 = vrot.slane %v11621_v39, %v11636_v12 }
 0xaaa   : > { %v2110_v38 = vpack.c.bf16 %v2106_v26, %v2106_v26  ;;  %v2112_v41 = vpack.c.bf16 %v2108_v27, %v2108_v27  ;;  %v10280_v50 = vld [vmem:[#allocation5 + $0x154] ss:$12 sps:$4 sm:$0xff]   ;;  %v10281_v20 = vld [vmem:[#allocation5 + $0x158] ss:$12 sps:$4 sm:$0xff]   ;;  %v10285_v23 = vld [vmem:[#allocation5 + $0x170] ss:$12 sps:$4 sm:$0xff]  }
 0xaab   : > { %v2111_v35 = vpack.c.bf16 %v2107_v33, %v2107_v33  ;;  %v2113_v36 = vpack.c.bf16 %v2109_v34, %v2109_v34  ;;  %v10284_v21 = vld [vmem:[#allocation5 + $0x16c] ss:$12 sps:$4 sm:$0xff]   ;;  %v10282_v22 = vld [vmem:[#allocation5 + $0x168] ss:$12 sps:$4 sm:$0xff]   ;;  %v11661_v27 = vsub.s32 4, %v11423_v29 }
 0xaac   : > { %v2513_v29 = vld [vmem:[#allocation7 + $0x3] sm:$0x7] }
 0xaad   : > { %2406 = vmatprep.mubr.bf16.mxu1 %v2111_v35  ;;  %2446 = vmatprep.mubr.bf16.mxu0 %v2113_v36  ;;  %v2474_v34 = vrot.slane %v11621_v39, %v11661_v27 }
 0xaae   : > { %2407 = vmatmul.mubr.bf16.vlgmr.msra.gmra.mrb[48].mxu1 %v2110_v38  ;;  %2447 = vmatmul.mubr.bf16.vlgmr.msra.gmra.mrb[36].mxu0 %v2112_v41  ;;  %v2522_v41 = vrot.slane %v2513_v29, %v11426_v30 }
 0xaaf   : > { %2690 = vmatprep.mubr.bf16.mxu1 %v11055_v0  ;;  %9612 = vmatprep.mubr.msk.bf16.mxu0 %vm11057_vm0, %v11056_v1 }
 0xab0   : > { %9597 = vmatpush3.bf16.msra.mxu0 %v10257_v61  ;;  %2659 = vmatpush1.bf16.msra.mxu1 %v10254_v59 }
 0xab1   : > { %9598 = vmatprep.subr.bf16.mxu0 %v11056_v1  ;;  %2660 = vmatprep.subr.bf16.mxu1 %v10260_v62 }
 0xab4   : > { %9599 = vmatpush3.bf16.msra.mxu0 %v10261_v63  ;;  %2661 = vmatpush1.bf16.msra.mxu1 %v10258_v2 }
 0xab5   : > { %9600 = vmatprep.subr.bf16.mxu0 %v11056_v1  ;;  %2662 = vmatprep.subr.bf16.mxu1 %v10264_v3 }
 0xab8   : > { %2663 = vmatpush1.bf16.msra.mxu1 %v10262_v4  ;;  %9601 = vmatpush3.bf16.msra.mxu0 %v10265_v8 }
 0xab9   : > { %9602 = vmatprep.subr.bf16.mxu0 %v11056_v1  ;;  %2664 = vmatprep.subr.bf16.mxu1 %v10268_v9 }
 0xabc   : > { %2665 = vmatpush1.bf16.msra.mxu1 %v10266_v10  ;;  %9603 = vmatpush3.bf16.msra.mxu0 %v10269_v11 }
 0xabd   : > { %2666 = vmatprep.subr.bf16.mxu1 %v10272_v13  ;;  %9604 = vmatprep.subr.bf16.mxu0 %v11056_v1 }
 0xac0   : > { %2667 = vmatpush1.bf16.msra.mxu1 %v10270_v14  ;;  %9605 = vmatpush3.bf16.msra.mxu0 %v10273_v15 }
 0xac1   : > { %2668 = vmatprep.subr.bf16.mxu1 %v10276_v16  ;;  %9606 = vmatprep.subr.bf16.mxu0 %v11056_v1 }
 0xac4   : > { %2669 = vmatpush1.bf16.msra.mxu1 %v10274_v17  ;;  %9607 = vmatpush3.bf16.msra.mxu0 %v10277_v18 }
 0xac5   : > { %2670 = vmatprep.subr.bf16.mxu1 %v10280_v50  ;;  %9608 = vmatprep.subr.bf16.mxu0 %v11056_v1 }
 0xac8   : > { %2671 = vmatpush1.bf16.msra.mxu1 %v10278_v19  ;;  %9609 = vmatpush3.bf16.msra.mxu0 %v10281_v20 }
 0xac9   : > { %2672 = vmatprep.subr.bf16.mxu1 %v10284_v21  ;;  %9610 = vmatprep.subr.bf16.mxu0 %v11056_v1 }
 0xacc   : > { %2673 = vmatpush1.bf16.msra.mxu1 %v10282_v22  ;;  %9611 = vmatpush3.bf16.msra.mxu0 %v10285_v23 }
 0xacd   : > { %9616 = vmatprep.subr.bf16.mxu1 %v11056_v1  ;;  %9640 = vmatprep.subr.bf16.mxu0 %v11056_v1 }
 0xb81   : > { %v9150_v43 = vpop.f32.mrb[48].mxu1  ;;  %v9172_v45 = vpop.f32.mrb[36].mxu0 }
 0xb82   : > { %v9151_v40 = vpop.f32.mrb[49].mxu1  ;;  %v9173_v47 = vpop.f32.mrb[37].mxu0 }
 0xb83   : > { %v9152_v48 = vadd.f32 %v9151_v40, %v9150_v43  ;;  %v9174_v49 = vadd.f32 %v9173_v47, %v9172_v45  ;;  %v9153_v51 = vpop.f32.mrb[50].mxu1  ;;  %v9175_v52 = vpop.f32.mrb[38].mxu0  ;;  %v2526_v40 = vrot.slane %v2513_v29, %v11449_v44 }
 0xb84   : > { %v9154_v53 = vpop.f32.mrb[51].mxu1  ;;  %v9176_v54 = vpop.f32.mrb[39].mxu0 }
 0xb85   : > { %v2409_v56 = vadd.f32 %v9152_v48, %v2181_v46  ;;  %v2518_v53 = vrot.slane %v2513_v29, %v11429_v32 }
 0xb87   : > { %v2449_v57 = vadd.f32 %v9174_v49, %v2409_v56 }
 0xb89   : > { %v2454_v58 = vadd.f32 %v2449_v57, %v11630_v37 }
 0xb8b   : > { %2455 = vadd.xlane.f32.xlu0 %v2454_v58 }
 0xc18   : > { %v2456_v37 = vpop.xlane.xlu0 %2455 }
 0xc19   : > { %v2457_v5 = vmul.f32 0.0078125, %v2456_v37 }
 0xc1b   : > { %v2458_v6 = vsub.f32 %v2454_v58, %v2457_v5 }
 0xc1d   : > { %v2459_v7 = vmul.f32 %v2458_v6, %v2458_v6 }
 0xc1f   : > { %2460 = vadd.xlane.f32.xlu1 %v2459_v7 }
 0xcac   : > { %v2461_v24 = vpop.xlane.xlu1 %2460 }
 0xcad   : > { %v2462_v25 = vmul.f32 0.0078125, %v2461_v24 }
 0xcaf   : > { %v2463_v26 = vadd.f32 1e-06, %v2462_v25 }
 0xcb1   : > { %10648 = vrsqrt.f32 %v2463_v26 }
 0xcbb   : > { %v10649_v31 = vpop.eup %10648 }
 0xcbc   : > { %v2465_v33 = vmul.f32 %v10649_v31, %v2458_v6 }
 0xcbe   : > { %v2470_v35 = vmul.f32 %v2469_v28, %v2465_v33 }
 0xcc0   : > { %v11667_v36 = vadd.f32 %v2474_v34, %v2470_v35 }
 0xcc2   : > { %v2478_v38 = vpack.c.bf16 %v11667_v36, %v11667_v36 }
 0xcc4   : > { %2691 = vmatmul.mubr.bf16.vlgmr.msra.gmra.mrb[52].mxu1 %v2478_v38  ;;  %9613 = vmatmul.mubr.bf16.vlgmr.msra.gmra.mrb[40].mxu0 %v2478_v38 }
 0xcc5   : > { %9618 = vmatprep.mubr.msk.bf16.mxu1 %vm11057_vm0, %v11056_v1  ;;  %9642 = vmatprep.mubr.msk.bf16.mxu0 %vm11057_vm0, %v11056_v1 }
 0xd97   : > { %v2692_v43 = vpop.f32.mrb[52].mxu1  ;;  %v2733_v45 = vpop.f32.mrb[40].mxu0 }
 0xd98   : > { %v2694_v39 = vpop.f32.mrb[53].mxu1  ;;  %v9614_v46 = vpop.f32.mrb[41].mxu0  ;;  %v2734_v56 = vadd.f32 %v2733_v45, %v2526_v40  ;;  %v2693_v58 = vadd.f32 %v2692_v43, %v2518_v53 }
 0xd99   : > { %v2695_v47 = vadd.f32 %v2694_v39, %v2522_v41  ;;  %v2696_v48 = vpop.f32.mrb[54].mxu1  ;;  %v2736_v49 = vpop.f32.mrb[42].mxu0 }
 0xd9a   : > { %v2697_v51 = vpop.f32.mrb[55].mxu1  ;;  %v9615_v52 = vpop.f32.mrb[43].mxu0  ;;  %v11680_v59 = vpack.c.bf16 %v2734_v56, %v2734_v56  ;;  %v2739_v60 = vpack.c.bf16 %v2693_v58, %v2693_v58 }
 0xd9b   : > { %v2740_v54 = vpack.c.bf16 %v2695_v47, %v2695_v47 }
 0xd9c   : > { %v2806_v61 = vsel %vm802_vm2, %v11680_v59, 0 }
 0xd9d   : > { %v2746_v57 = vsel %vm731_vm1, %v2740_v54, 0 }
 0xd9e   : > { %9617 = vmatpush3.bf16.xpose.msra.mxu1 %v2746_v57 }
 0xd9f   : > { %9622 = vmatprep.subr.bf16.mxu1 %v11056_v1 }
 0xda5   : > { %9619 = vmatmul.mubr.msk.bf16.vlgmr.msra.gmra.mrb[56].mxu1 %vm731_vm1, %v2739_v60 }
 0xda6   : > { %9623 = vmatpush3.bf16.msra.mxu1 %v2806_v61  ;;  %9624 = vmatprep.mubr.msk.bf16.mxu1 %vm11057_vm0, %v11056_v1 }
 0xda7   : > { %9628 = vmatprep.subr.bf16.mxu1 %v11056_v1 }
 0xe78   : > { %v2782_v62 = vpop.f32.mrb[56].mxu1 }
 0xe79   : > { %v2788_v63 = vmul.f32 0.25, %v2782_v62  ;;  %v9620_v2 = vpop.f32.mrb[57].mxu1 }
 0xe7a   : > { %v2785_v3 = vpop.f32.mrb[58].mxu1 }
 0xe7b   : > { %v9621_v4 = vpop.f32.mrb[59].mxu1  ;;  %v2789_v37 = vadd.f32 %v2788_v63, %v11459_v55 }
 0xe7d   : > { %v2790_v5 = vsel %vm786_vm3, %v2789_v37, -inf }
 0xe7e   : > { %2791 = vmax.xlane.f32.xlu0 %v2790_v5 }
 0xe94   : > { %2853 = vrot.lane.b32.xlu0 %v2740_v54, %s11058_s30 }
 0xe98   : > { %2969 = vrot.lane.b32.xlu0 %v2739_v60, %s11059_s12 }
 0xe9c   : > { %3086 = vrot.lane.b32.xlu0 %v2739_v60, %s11060_s14 }
 0xea0   : > { %3203 = vrot.lane.b32.xlu0 %v2739_v60, %s11061_s21 }
 0xea4   : > { %3320 = vrot.lane.b32.xlu0 %v2739_v60, %s11062_s24 }
 0xea8   : > { %3437 = vrot.lane.b32.xlu0 %v2739_v60, %s11063_s27 }
 0xeac   : > { %3554 = vrot.lane.b32.xlu0 %v2739_v60, %s11064_s23 }
 0xf0b   : > { %v2792_v6 = vpop.xlane.xlu0 %2791 }
 0xf0c   : > { %v2793_v7 = vsub.f32 %v2789_v37, %v2792_v6 }
 0xf0e   : > { %v2794_v8 = vmul.f32 1.442695, %v2793_v7 }
 0xf0f   : > { %v2854_v16 = vpop.permute.xlu0 %2853 }
 0xf10   : > { %10650 = vpow2.f32 %v2794_v8  ;;  %v2859_v20 = vsel %vm731_vm1, %v2854_v16, 0 }
 0xf13   : > { %v2970_v21 = vpop.permute.xlu0 %2969 }
 0xf17   : > { %v3087_v24 = vpop.permute.xlu0 %3086 }
 0xf1a   : > { %v10651_v9 = vpop.eup %10650 }
 0xf1b   : > { %v2796_v10 = vsel %vm786_vm3, %v10651_v9, 0.0  ;;  %v3204_v28 = vpop.permute.xlu0 %3203 }
 0xf1c   : > { %2797 = vadd.xlane.f32.xlu1 %v2796_v10 }
 0xf1f   : > { %v3321_v34 = vpop.permute.xlu0 %3320 }
 0xf23   : > { %v3438_v29 = vpop.permute.xlu0 %3437 }
 0xf27   : > { %v3555_v43 = vpop.permute.xlu0 %3554 }
 0xf2d   : > { %2850 = vrot.lane.b32.xlu1 %v2739_v60, %s11058_s30 }
 0xf31   : > { %2971 = vrot.lane.b32.xlu1 %v2740_v54, %s11059_s12 }
 0xf35   : > { %3088 = vrot.lane.b32.xlu1 %v2740_v54, %s11060_s14 }
 0xf39   : > { %3205 = vrot.lane.b32.xlu1 %v2740_v54, %s11061_s21 }
 0xf3d   : > { %3322 = vrot.lane.b32.xlu1 %v2740_v54, %s11062_s24 }
 0xf41   : > { %3439 = vrot.lane.b32.xlu1 %v2740_v54, %s11063_s27 }
 0xf45   : > { %3556 = vrot.lane.b32.xlu1 %v2740_v54, %s11064_s23 }
 0xfa9   : > { %v2798_v11 = vpop.xlane.xlu1 %2797 }
 0xfaa   : > { %10652 = vrcp.f32 %v2798_v11 }
 0xfad   : > { %v2851_v13 = vpop.permute.xlu1 %2850 }
 0xfb1   : > { %v2972_v14 = vpop.permute.xlu1 %2971 }
 0xfb2   : > { %v2977_v15 = vsel %vm731_vm1, %v2972_v14, 0 }
 0xfb3   : > { %9641 = vmatpush3.bf16.xpose.msra.mxu0 %v2977_v15 }
 0xfb4   : > { %v10653_v17 = vpop.eup %10652  ;;  %9652 = vmatprep.subr.bf16.mxu0 %v11056_v1 }
 0xfb5   : > { %v2800_v18 = vmul.f32 %v10653_v17, %v10651_v9  ;;  %v3089_v50 = vpop.permute.xlu1 %3088 }
 0xfb6   : > { %v3094_v22 = vsel %vm731_vm1, %v3089_v50, 0 }
 0xfb7   : > { %v2801_v19 = vpack.c.bf16 %v2800_v18, %v2800_v18 }
 0xfb9   : > { %9625 = vmatmul.mubr.msk.bf16.vlgmr.msra.gmra.mrb[60].mxu1 %vm786_vm3, %v2801_v19  ;;  %v3206_v23 = vpop.permute.xlu1 %3205 }
 0xfba   : > { %9629 = vmatpush3.bf16.xpose.msra.mxu1 %v2859_v20  ;;  %9643 = vmatmul.mubr.msk.bf16.vlgmr.msra.gmra.mrb[44].mxu0 %vm731_vm1, %v2970_v21  ;;  %v3211_v25 = vsel %vm731_vm1, %v3206_v23, 0 }
 0xfbb   : > { %9653 = vmatpush3.bf16.xpose.msra.mxu0 %v3094_v22  ;;  %9630 = vmatprep.mubr.msk.bf16.mxu1 %vm11057_vm0, %v11056_v1 }
 0xfbc   : > { %9654 = vmatprep.mubr.msk.bf16.mxu0 %vm11057_vm0, %v11056_v1  ;;  %9664 = vmatprep.subr.bf16.mxu0 %v11056_v1 }
 0xfbd   : > { %9634 = vmatprep.subr.bf16.mxu1 %v11056_v1  ;;  %v3323_v26 = vpop.permute.xlu1 %3322 }
 0xfbe   : > { %v3328_v31 = vsel %vm731_vm1, %v3323_v26, 0 }
 0xfc1   : > { %9631 = vmatmul.mubr.msk.bf16.vlgmr.msra.gmra.mrb[64].mxu1 %vm731_vm1, %v2851_v13  ;;  %v3440_v33 = vpop.permute.xlu1 %3439 }
 0xfc2   : > { %9655 = vmatmul.mubr.msk.bf16.vlgmr.msra.gmra.mrb[48].mxu0 %vm731_vm1, %v3087_v24  ;;  %9636 = vmatprep.mubr.msk.bf16.mxu1 %vm11057_vm0, %v11056_v1  ;;  %v3445_v35 = vsel %vm731_vm1, %v3440_v33, 0 }
 0xfc3   : > { %9665 = vmatpush3.bf16.xpose.msra.mxu0 %v3211_v25  ;;  %9666 = vmatprep.mubr.msk.bf16.mxu0 %vm11057_vm0, %v11056_v1 }
 0xfc4   : > { %9676 = vmatprep.subr.bf16.mxu0 %v11056_v1 }
 0xfc5   : > { %v3557_v38 = vpop.permute.xlu1 %3556 }
 0xfc6   : > { %v3562_v41 = vsel %vm731_vm1, %v3557_v38, 0 }
 0xfca   : > { %9667 = vmatmul.mubr.msk.bf16.vlgmr.msra.gmra.mrb[52].mxu0 %vm731_vm1, %v3204_v28 }
 0xfcb   : > { %9677 = vmatpush3.bf16.xpose.msra.mxu0 %v3328_v31  ;;  %9678 = vmatprep.mubr.msk.bf16.mxu0 %vm11057_vm0, %v11056_v1 }
 0xfcc   : > { %9688 = vmatprep.subr.bf16.mxu0 %v11056_v1 }
 0xfd2   : > { %9679 = vmatmul.mubr.msk.bf16.vlgmr.msra.gmra.mrb[56].mxu0 %vm731_vm1, %v3321_v34 }
 0xfd3   : > { %9689 = vmatpush3.bf16.xpose.msra.mxu0 %v3445_v35  ;;  %9690 = vmatprep.mubr.msk.bf16.mxu0 %vm11057_vm0, %v11056_v1 }
 0xfd4   : > { %9700 = vmatprep.subr.bf16.mxu0 %v11056_v1 }
 0xfda   : > { %9691 = vmatmul.mubr.msk.bf16.vlgmr.msra.gmra.mrb[60].mxu0 %vm731_vm1, %v3438_v29 }
 0xfdb   : > { %9701 = vmatpush3.bf16.xpose.msra.mxu0 %v3562_v41  ;;  %9702 = vmatprep.mubr.msk.bf16.mxu0 %vm11057_vm0, %v11056_v1 }
 0xfdc   : > { %9712 = vmatprep.subr.bf16.mxu0 %v11056_v1 }
 0xfe2   : > { %9703 = vmatmul.mubr.msk.bf16.vlgmr.msra.gmra.mrb[64].mxu0 %vm731_vm1, %v3555_v43 }
 0xfe3   : > { %9728 = vmatprep.mubr.msk.bf16.mxu0 %vm11057_vm0, %v11056_v1 }
0x108c   : > { %v2842_v45 = vpop.f32.mrb[60].mxu1 }
0x108d   : > { %2848 = vst.msk [vmem:[#allocation2] sm:$0xff] %vm731_vm1, %v2842_v45  ;;  %v9626_v39 = vpop.f32.mrb[61].mxu1  ;;  %v3013_v46 = vpop.f32.mrb[44].mxu0 }
0x108e   : > { %v3019_v40 = vmul.f32 0.25, %v3013_v46  ;;  %v2845_v47 = vpop.f32.mrb[62].mxu1  ;;  %v9644_v48 = vpop.f32.mrb[45].mxu0 }
0x108f   : > { %v9627_v49 = vpop.f32.mrb[63].mxu1  ;;  %v3016_v51 = vpop.f32.mrb[46].mxu0 }
0x1090   : > { %v9645_v52 = vpop.f32.mrb[47].mxu0  ;;  %v3020_v53 = vadd.f32 %v3019_v40, %v11459_v55 }
0x1092   : > { %v3021_v54 = vsel %vm786_vm3, %v3020_v53, -inf }
0x1093   : > { %3022 = vmax.xlane.f32.xlu0 %v3021_v54 }
0x1094   : > { %v2895_v56 = vpop.f32.mrb[64].mxu1 }
0x1095   : > { %v2901_v57 = vmul.f32 0.25, %v2895_v56  ;;  %v9632_v58 = vpop.f32.mrb[65].mxu1  ;;  %v3130_v60 = vpop.f32.mrb[48].mxu0 }
0x1096   : > { %v3136_v61 = vmul.f32 0.25, %v3130_v60  ;;  %v2898_v62 = vpop.f32.mrb[66].mxu1  ;;  %v9656_v63 = vpop.f32.mrb[49].mxu0 }
0x1097   : > { %v9633_v2 = vpop.f32.mrb[67].mxu1  ;;  %v3133_v3 = vpop.f32.mrb[50].mxu0  ;;  %v2902_v4 = vadd.f32 %v2901_v57, %v11459_v55 }
0x1098   : > { %v9657_v37 = vpop.f32.mrb[51].mxu0  ;;  %v3137_v5 = vadd.f32 %v3136_v61, %v11459_v55 }
0x1099   : > { %v2903_v6 = vsel %vm786_vm3, %v2902_v4, -inf }
0x109a   : > { %2904 = vmax.xlane.f32.xlu1 %v2903_v6  ;;  %v3138_v7 = vsel %vm786_vm3, %v3137_v5, -inf }
0x109b   : > { %3139 = vmax.xlane.f32.xlu0 %v3138_v7 }
0x109d   : > { %v3247_v8 = vpop.f32.mrb[52].mxu0 }
0x109e   : > { %v3253_v9 = vmul.f32 0.25, %v3247_v8  ;;  %v9668_v10 = vpop.f32.mrb[53].mxu0 }
0x109f   : > { %v3250_v11 = vpop.f32.mrb[54].mxu0 }
0x10a0   : > { %v9669_v13 = vpop.f32.mrb[55].mxu0  ;;  %v3254_v14 = vadd.f32 %v3253_v9, %v11459_v55 }
0x10a2   : > { %v3255_v15 = vsel %vm786_vm3, %v3254_v14, -inf }
0x10a3   : > { %3256 = vmax.xlane.f32.xlu1 %v3255_v15 }
0x10a5   : > { %v3364_v16 = vpop.f32.mrb[56].mxu0 }
0x10a6   : > { %v3370_v17 = vmul.f32 0.25, %v3364_v16  ;;  %v9680_v18 = vpop.f32.mrb[57].mxu0 }
0x10a7   : > { %v3367_v50 = vpop.f32.mrb[58].mxu0 }
0x10a8   : > { %v9681_v19 = vpop.f32.mrb[59].mxu0  ;;  %v3371_v20 = vadd.f32 %v3370_v17, %v11459_v55 }
0x10aa   : > { %v3372_v21 = vsel %vm786_vm3, %v3371_v20, -inf }
0x10ab   : > { %3373 = vmax.xlane.f32.xlu0 %v3372_v21 }
0x10ad   : > { %v3481_v22 = vpop.f32.mrb[60].mxu0 }
0x10ae   : > { %v3487_v23 = vmul.f32 0.25, %v3481_v22  ;;  %v9692_v24 = vpop.f32.mrb[61].mxu0 }
0x10af   : > { %v3484_v25 = vpop.f32.mrb[62].mxu0 }
0x10b0   : > { %v9693_v26 = vpop.f32.mrb[63].mxu0  ;;  %v3488_v28 = vadd.f32 %v3487_v23, %v11459_v55 }
0x10b2   : > { %v3489_v31 = vsel %vm786_vm3, %v3488_v28, -inf }
0x10b3   : > { %3490 = vmax.xlane.f32.xlu1 %v3489_v31 }
0x10b5   : > { %v3598_v33 = vpop.f32.mrb[64].mxu0 }
0x10b6   : > { %v3604_v34 = vmul.f32 0.25, %v3598_v33  ;;  %v9704_v35 = vpop.f32.mrb[65].mxu0 }
0x10b7   : > { %v3601_v38 = vpop.f32.mrb[66].mxu0 }
0x10b8   : > { %v9705_v29 = vpop.f32.mrb[67].mxu0  ;;  %v3605_v41 = vadd.f32 %v3604_v34, %v11459_v55 }
0x10ba   : > { %v3606_v43 = vsel %vm786_vm3, %v3605_v41, -inf }
0x10bb   : > { %3607 = vmax.xlane.f32.xlu0 %v3606_v43 }
0x1120   : > { %v3023_v45 = vpop.xlane.xlu0 %3022 }
0x1121   : > { %v3024_v39 = vsub.f32 %v3020_v53, %v3023_v45 }
0x1123   : > { %v3025_v46 = vmul.f32 1.442695, %v3024_v39 }
0x1125   : > { %10654 = vpow2.f32 %v3025_v46 }
0x1127   : > { %v2905_v40 = vpop.xlane.xlu1 %2904 }
0x1128   : > { %v2906_v47 = vsub.f32 %v2902_v4, %v2905_v40  ;;  %v3140_v48 = vpop.xlane.xlu0 %3139 }
0x1129   : > { %v3141_v49 = vsub.f32 %v3137_v5, %v3140_v48 }
0x112a   : > { %v2907_v51 = vmul.f32 1.442695, %v2906_v47 }
0x112b   : > { %v3142_v52 = vmul.f32 1.442695, %v3141_v49 }
0x112d   : > { %10656 = vpow2.f32 %v3142_v52 }
0x112e   : > { %10658 = vpow2.f32 %v2907_v51 }
0x112f   : > { %v11758_v54 = vpop.eup %10654 }
0x1130   : > { %v3257_v56 = vpop.xlane.xlu1 %3256  ;;  %v3027_v57 = vsel %vm786_vm3, %v11758_v54, 0.0 }
0x1131   : > { %v3258_v58 = vsub.f32 %v3254_v14, %v3257_v56  ;;  %3028 = vadd.xlane.f32.xlu0 %v3027_v57 }
0x1133   : > { %v3259_v60 = vmul.f32 1.442695, %v3258_v58 }
0x1135   : > { %10660 = vpow2.f32 %v3259_v60 }
0x1137   : > { %v11762_v53 = vpop.eup %10656 }
0x1138   : > { %v3374_v61 = vpop.xlane.xlu0 %3373  ;;  %v3144_v62 = vsel %vm786_vm3, %v11762_v53, 0.0  ;;  %v10659_v63 = vpop.eup %10658 }
0x1139   : > { %v3375_v2 = vsub.f32 %v3371_v20, %v3374_v61  ;;  %3145 = vadd.xlane.f32.xlu1 %v3144_v62  ;;  %v2909_v4 = vsel %vm786_vm3, %v10659_v63, 0.0 }
0x113b   : > { %v3376_v3 = vmul.f32 1.442695, %v3375_v2 }
0x113d   : > { %10662 = vpow2.f32 %v3376_v3  ;;  %2910 = vadd.xlane.f32.xlu1 %v2909_v4 }
0x113f   : > { %v11767_v37 = vpop.eup %10660 }
0x1140   : > { %v3261_v5 = vsel %vm786_vm3, %v11767_v37, 0.0  ;;  %v3491_v8 = vpop.xlane.xlu1 %3490 }
0x1141   : > { %3262 = vadd.xlane.f32.xlu0 %v3261_v5  ;;  %v3492_v9 = vsub.f32 %v3488_v28, %v3491_v8 }
0x1143   : > { %v3493_v10 = vmul.f32 1.442695, %v3492_v9 }
0x1145   : > { %10664 = vpow2.f32 %v3493_v10 }
0x1147   : > { %v11771_v6 = vpop.eup %10662 }
0x1148   : > { %v3378_v7 = vsel %vm786_vm3, %v11771_v6, 0.0  ;;  %v3608_v11 = vpop.xlane.xlu0 %3607 }
0x1149   : > { %3379 = vadd.xlane.f32.xlu0 %v3378_v7  ;;  %v3609_v13 = vsub.f32 %v3605_v41, %v3608_v11 }
0x114b   : > { %v3610_v15 = vmul.f32 1.442695, %v3609_v13 }
0x114d   : > { %10666 = vpow2.f32 %v3610_v15 }
0x114e   : > { %2916 = vrot.lane.b32.xlu1 %v11680_v59, %s11058_s30 }
0x114f   : > { %v11781_v14 = vpop.eup %10664 }
0x1150   : > { %v3495_v16 = vsel %vm786_vm3, %v11781_v14, 0.0 }
0x1157   : > { %v11785_v17 = vpop.eup %10666 }
0x1158   : > { %v3612_v18 = vsel %vm786_vm3, %v11785_v17, 0.0 }
0x115f   : > { %3033 = vrot.lane.b32.xlu0 %v11680_v59, %s11059_s12 }
0x1163   : > { %3150 = vrot.lane.b32.xlu0 %v11680_v59, %s11060_s14 }
0x1172   : > { %3496 = vadd.xlane.f32.xlu1 %v3495_v16 }
0x1182   : > { %3613 = vadd.xlane.f32.xlu0 %v3612_v18 }
0x1183   : > { %3267 = vrot.lane.b32.xlu1 %v11680_v59, %s11061_s21 }
0x1187   : > { %3501 = vrot.lane.b32.xlu1 %v11680_v59, %s11063_s27 }
0x118b   : > { %3618 = vrot.lane.b32.xlu1 %v11680_v59, %s11064_s23 }
0x1198   : > { %3384 = vrot.lane.b32.xlu0 %v11680_v59, %s11062_s24 }
0x11be   : > { %v3029_v20 = vpop.xlane.xlu0 %3028 }
0x11c6   : > { %v3146_v50 = vpop.xlane.xlu1 %3145 }
0x11ca   : > { %v2911_v19 = vpop.xlane.xlu1 %2910 }
0x11cb   : > { %10668 = vrcp.f32 %v2911_v19  ;;  %v10287_v19 = vld [vmem:[#allocation8 + $0x48] sm:$0xff]  }
0x11cc   : > { %10670 = vrcp.f32 %v3029_v20 }
0x11cd   : > { %10672 = vrcp.f32 %v3146_v50  ;;  %v10286_v50 = vld [vmem:[#allocation8 + $0x40] sm:$0xff]  }
0x11ce   : > { %v2917_v21 = vpop.permute.xlu1 %2916  ;;  %v3263_v23 = vpop.xlane.xlu0 %3262  ;;  %9713 = vmatpush3.bf16.msra.mxu0 %v10286_v50 }
0x11cf   : > { %v2922_v22 = vsel %vm802_vm2, %v2917_v21, 0  ;;  %10674 = vrcp.f32 %v3263_v23  ;;  %9714 = vmatprep.subr.bf16.mxu0 %v11056_v1 }
0x11d0   : > { %9635 = vmatpush3.bf16.msra.mxu1 %v2922_v22 }
0x11d1   : > { %9646 = vmatprep.subr.bf16.mxu1 %v11056_v1 }
0x11d2   : > { %9715 = vmatpush3.bf16.msra.mxu0 %v10287_v19 }
0x11d3   : > { %9716 = vmatprep.subr.bf16.mxu0 %v11056_v1 }
0x11d5   : > { %v10669_v24 = vpop.eup %10668 }
0x11d6   : > { %v3380_v25 = vpop.xlane.xlu0 %3379  ;;  %v2913_v26 = vmul.f32 %v10669_v24, %v10659_v63  ;;  %v10671_v31 = vpop.eup %10670  ;;  %v10288_v24 = vld [vmem:[#allocation8 + $0x50] sm:$0xff]  }
0x11d7   : > { %v3031_v34 = vmul.f32 %v10671_v31, %v11758_v54  ;;  %v10673_v29 = vpop.eup %10672  ;;  %10676 = vrcp.f32 %v3380_v25  ;;  %9717 = vmatpush3.bf16.msra.mxu0 %v10288_v24  ;;  %v10289_v25 = vld [vmem:[#allocation8 + $0x58] sm:$0xff]   ;;  %v10320_v24 = vld [vmem:[#allocation10 + $0x184] ss:$16 sps:$4 sm:$0xff]  }
0x11d8   : > { %v2914_v28 = vpack.c.bf16 %v2913_v26, %v2913_v26  ;;  %v3148_v43 = vmul.f32 %v10673_v29, %v11762_v53  ;;  %9718 = vmatprep.subr.bf16.mxu0 %v11056_v1  ;;  %v10290_v26 = vld [vmem:[#allocation8 + $0x60] sm:$0xff]  }
0x11d9   : > { %v3032_v38 = vpack.c.bf16 %v3031_v34, %v3031_v34  ;;  %v10675_v39 = vpop.eup %10674 }
0x11da   : > { %v3034_v33 = vpop.permute.xlu0 %3033  ;;  %9637 = vmatmul.mubr.msk.bf16.vlgmr.msra.gmra.mrb[68].mxu1 %vm786_vm3, %v2914_v28  ;;  %v3149_v45 = vpack.c.bf16 %v3148_v43, %v3148_v43  ;;  %v3265_v40 = vmul.f32 %v10675_v39, %v11767_v37  ;;  %v10291_v28 = vld [vmem:[#allocation8 + $0x68] sm:$0xff]  }
0x11db   : > { %v3039_v59 = vsel %vm802_vm2, %v3034_v33, 0  ;;  %9648 = vmatprep.mubr.msk.bf16.mxu1 %vm11057_vm0, %v11056_v1  ;;  %9719 = vmatpush3.bf16.msra.mxu0 %v10289_v25  ;;  %v10318_v25 = vld [vmem:[#allocation10 + $0x180] ss:$16 sps:$4 sm:$0xff]  }
0x11dc   : > { %9647 = vmatpush3.bf16.msra.mxu1 %v3039_v59  ;;  %v3266_v49 = vpack.c.bf16 %v3265_v40, %v3265_v40  ;;  %9720 = vmatprep.subr.bf16.mxu0 %v11056_v1 }
0x11dd   : > { %9658 = vmatprep.subr.bf16.mxu1 %v11056_v1 }
0x11de   : > { %v3151_v35 = vpop.permute.xlu0 %3150 }
0x11df   : > { %v3156_v41 = vsel %vm802_vm2, %v3151_v35, 0  ;;  %9721 = vmatpush3.bf16.msra.mxu0 %v10290_v26  ;;  %v10292_v35 = vld [vmem:[#allocation8 + $0x70] sm:$0xff]   ;;  %v10321_v26 = vld [vmem:[#allocation10 + $0x188] ss:$16 sps:$4 sm:$0xff]  }
0x11e0   : > { %9722 = vmatprep.subr.bf16.mxu0 %v11056_v1 }
0x11e1   : > { %v10677_v51 = vpop.eup %10676 }
0x11e2   : > { %9649 = vmatmul.mubr.msk.bf16.vlgmr.msra.gmra.mrb[72].mxu1 %vm786_vm3, %v3032_v38  ;;  %v3382_v54 = vmul.f32 %v10677_v51, %v11771_v6  ;;  %v10293_v38 = vld [vmem:[#allocation8 + $0x78] sm:$0xff]  }
0x11e3   : > { %9659 = vmatpush3.bf16.msra.mxu1 %v3156_v41  ;;  %9660 = vmatprep.mubr.msk.bf16.mxu1 %vm11057_vm0, %v11056_v1 }
0x11e4   : > { %9670 = vmatprep.subr.bf16.mxu1 %v11056_v1  ;;  %v3383_v60 = vpack.c.bf16 %v3382_v54, %v3382_v54  ;;  %9723 = vmatpush3.bf16.msra.mxu0 %v10291_v28  ;;  %v10323_v28 = vld [vmem:[#allocation10 + $0x18c] ss:$16 sps:$4 sm:$0xff]  }
0x11e5   : > { %9724 = vmatprep.subr.bf16.mxu0 %v11056_v1 }
0x11e8   : > { %9725 = vmatpush3.bf16.msra.mxu0 %v10292_v35  ;;  %v10332_v35 = vld [vmem:[#allocation10 + $0x1c4] ss:$16 sps:$4 sm:$0xff]  }
0x11e9   : > { %9726 = vmatprep.subr.bf16.mxu0 %v11056_v1 }
0x11ea   : > { %9661 = vmatmul.mubr.msk.bf16.vlgmr.msra.gmra.mrb[76].mxu1 %vm786_vm3, %v3149_v45 }
0x11eb   : > { %9672 = vmatprep.mubr.msk.bf16.mxu1 %vm11057_vm0, %v11056_v1 }
0x11ec   : > { %9727 = vmatpush3.bf16.msra.mxu0 %v10293_v38  ;;  %v10335_v38 = vld [vmem:[#allocation10 + $0x1cc] ss:$16 sps:$4 sm:$0xff]  }
0x11ff   : > { %v3497_v46 = vpop.xlane.xlu1 %3496 }
0x1200   : > { %10678 = vrcp.f32 %v3497_v46 }
0x1203   : > { %v3268_v47 = vpop.permute.xlu1 %3267 }
0x1204   : > { %v3273_v48 = vsel %vm802_vm2, %v3268_v47, 0 }
0x1205   : > { %9671 = vmatpush3.bf16.msra.mxu1 %v3273_v48 }
0x1206   : > { %9682 = vmatprep.subr.bf16.mxu1 %v11056_v1 }
0x1207   : > { %v3502_v58 = vpop.permute.xlu1 %3501 }
0x1208   : > { %9673 = vmatmul.mubr.msk.bf16.vlgmr.msra.gmra.mrb[80].mxu1 %vm786_vm3, %v3266_v49  ;;  %v3507_v61 = vsel %vm802_vm2, %v3502_v58, 0 }
0x1209   : > { %9684 = vmatprep.mubr.msk.bf16.mxu1 %vm11057_vm0, %v11056_v1 }
0x120a   : > { %v10679_v53 = vpop.eup %10678 }
0x120b   : > { %v3499_v62 = vmul.f32 %v10679_v53, %v11781_v14  ;;  %v3619_v63 = vpop.permute.xlu1 %3618  ;;  %v11858_v53 = vld [vmem:[#allocation14 + $0x8] sm:$0xff] }
0x120c   : > { %v3624_v4 = vsel %vm802_vm2, %v3619_v63, 0 }
0x120d   : > { %v3500_v2 = vpack.c.bf16 %v3499_v62, %v3499_v62 }
0x120f   : > { %v3614_v52 = vpop.xlane.xlu0 %3613 }
0x1210   : > { %10680 = vrcp.f32 %v3614_v52 }
0x1213   : > { %v3385_v56 = vpop.permute.xlu0 %3384 }
0x1214   : > { %v3390_v57 = vsel %vm802_vm2, %v3385_v56, 0 }
0x1215   : > { %9683 = vmatpush3.bf16.msra.mxu1 %v3390_v57 }
0x1216   : > { %9694 = vmatprep.subr.bf16.mxu1 %v11056_v1 }
0x1218   : > { %9685 = vmatmul.mubr.msk.bf16.vlgmr.msra.gmra.mrb[84].mxu1 %vm786_vm3, %v3383_v60 }
0x1219   : > { %9695 = vmatpush3.bf16.msra.mxu1 %v3507_v61  ;;  %9696 = vmatprep.mubr.msk.bf16.mxu1 %vm11057_vm0, %v11056_v1  ;;  %v3693_v61 = vrot.slane %v11858_v53, %v11429_v32 }
0x121a   : > { %9706 = vmatprep.subr.bf16.mxu1 %v11056_v1  ;;  %v10681_v3 = vpop.eup %10680 }
0x121b   : > { %v3616_v37 = vmul.f32 %v10681_v3, %v11785_v17 }
0x121d   : > { %v3617_v5 = vpack.c.bf16 %v3616_v37, %v3616_v37 }
0x1220   : > { %9697 = vmatmul.mubr.msk.bf16.vlgmr.msra.gmra.mrb[88].mxu1 %vm786_vm3, %v3500_v2 }
0x1221   : > { %9707 = vmatpush3.bf16.msra.mxu1 %v3624_v4  ;;  %9708 = vmatprep.mubr.msk.bf16.mxu1 %vm11057_vm0, %v11056_v1 }
0x1228   : > { %9709 = vmatmul.mubr.msk.bf16.vlgmr.msra.gmra.mrb[92].mxu1 %vm786_vm3, %v3617_v5  ;;  %v10294_v5 = vld [vmem:[#allocation10 + $0x100] ss:$16 sps:$4 sm:$0xff]  }
0x1229   : > { %4053 = vmatprep.mubr.bf16.mxu1 %v11055_v0 }
0x12ad   : > { %v2958_v6 = vpop.f32.mrb[68].mxu1 }
0x12ae   : > { %2965 = vrot.lane.b32.xlu1 %v2958_v6, %s11064_s23  ;;  %v9638_v7 = vpop.f32.mrb[69].mxu1  ;;  %v10296_v6 = vld [vmem:[#allocation10 + $0x104] ss:$16 sps:$4 sm:$0xff]  }
0x12af   : > { %v2961_v8 = vpop.f32.mrb[70].mxu1  ;;  %v10297_v7 = vld [vmem:[#allocation10 + $0x108] ss:$16 sps:$4 sm:$0xff]   ;;  %4021 = vmatprep.subr.bf16.mxu1 %v10296_v6  ;;  %v10351_v6 = vld [vmem:[#allocation13 + $0x1d0] sm:$0xff]  }
0x12b0   : > { %v9639_v9 = vpop.f32.mrb[71].mxu1  ;;  %v10299_v8 = vld [vmem:[#allocation10 + $0x10c] ss:$16 sps:$4 sm:$0xff]   ;;  %4022 = vmatpush1.bf16.msra.mxu1 %v10294_v5  ;;  %v10350_v5 = vld [vmem:[#allocation13 + $0x150] sm:$0xff]  }
0x12b1   : > { %v10302_v9 = vld [vmem:[#allocation10 + $0x124] ss:$16 sps:$4 sm:$0xff]   ;;  %4062 = vmatprep.subr.bf16.mxu0 %v10299_v8 }
0x12b2   : > { %4023 = vmatprep.subr.bf16.mxu1 %v10302_v9  ;;  %v10353_v8 = vld [vmem:[#allocation13 + $0x190] sm:$0xff]   ;;  %v10354_v9 = vld [vmem:[#allocation13 + $0x158] sm:$0xff]  }
0x12b5   : > { %v3075_v10 = vpop.f32.mrb[72].mxu1 }
0x12b6   : > { %3082 = vrot.lane.b32.xlu1 %v3075_v10, %s11063_s27  ;;  %v9650_v11 = vpop.f32.mrb[73].mxu1  ;;  %v10305_v10 = vld [vmem:[#allocation10 + $0x12c] ss:$16 sps:$4 sm:$0xff]  }
0x12b7   : > { %v3078_v13 = vpop.f32.mrb[74].mxu1  ;;  %v10300_v11 = vld [vmem:[#allocation10 + $0x120] ss:$16 sps:$4 sm:$0xff]  }
0x12b8   : > { %v9651_v14 = vpop.f32.mrb[75].mxu1  ;;  %v10303_v13 = vld [vmem:[#allocation10 + $0x128] ss:$16 sps:$4 sm:$0xff]   ;;  %4024 = vmatpush1.bf16.msra.mxu1 %v10300_v11 }
0x12b9   : > { %v10308_v14 = vld [vmem:[#allocation10 + $0x144] ss:$16 sps:$4 sm:$0xff]   ;;  %v10356_v11 = vld [vmem:[#allocation13 + $0x118] sm:$0xff]  }
0x12ba   : > { %4025 = vmatprep.subr.bf16.mxu1 %v10308_v14  ;;  %v10358_v14 = vld [vmem:[#allocation13 + $0x160] sm:$0xff]  }
0x12bd   : > { %v3192_v15 = vpop.f32.mrb[76].mxu1 }
0x12be   : > { %3199 = vrot.lane.b32.xlu0 %v3192_v15, %s11062_s24  ;;  %v9662_v16 = vpop.f32.mrb[77].mxu1  ;;  %v10311_v15 = vld [vmem:[#allocation10 + $0x14c] ss:$16 sps:$4 sm:$0xff]  }
0x12bf   : > { %v3195_v17 = vpop.f32.mrb[78].mxu1  ;;  %v10306_v16 = vld [vmem:[#allocation10 + $0x140] ss:$16 sps:$4 sm:$0xff]  }
0x12c0   : > { %v9663_v18 = vpop.f32.mrb[79].mxu1  ;;  %4026 = vmatpush1.bf16.msra.mxu1 %v10306_v16  ;;  %v10360_v16 = vld [vmem:[#allocation13 + $0x120] sm:$0xff]  }
0x12db   : > { %v3309_v20 = vpop.f32.mrb[80].mxu1 }
0x12dc   : > { %3316 = vrot.lane.b32.xlu1 %v3309_v20, %s11061_s21  ;;  %v9674_v21 = vpop.f32.mrb[81].mxu1  ;;  %v10314_v20 = vld [vmem:[#allocation10 + $0x164] ss:$16 sps:$4 sm:$0xff]  }
0x12dd   : > { %v3312_v22 = vpop.f32.mrb[82].mxu1  ;;  %v10317_v21 = vld [vmem:[#allocation10 + $0x16c] ss:$16 sps:$4 sm:$0xff]   ;;  %4027 = vmatprep.subr.bf16.mxu1 %v10314_v20  ;;  %v10366_v20 = vld [vmem:[#allocation13 + $0x170] sm:$0xff]  }
0x12de   : > { %v9675_v23 = vpop.f32.mrb[83].mxu1  ;;  %v10312_v22 = vld [vmem:[#allocation10 + $0x160] ss:$16 sps:$4 sm:$0xff]  }
0x12df   : > { %v10315_v23 = vld [vmem:[#allocation10 + $0x168] ss:$16 sps:$4 sm:$0xff]   ;;  %4028 = vmatpush1.bf16.msra.mxu1 %v10312_v22  ;;  %v10368_v22 = vld [vmem:[#allocation13 + $0x130] sm:$0xff]  }
0x12e0   : > { %4029 = vmatprep.subr.bf16.mxu1 %v10320_v24  ;;  %v10370_v24 = vld [vmem:[#allocation13 + $0x178] sm:$0xff]  }
0x12e3   : > { %4030 = vmatpush1.bf16.msra.mxu1 %v10318_v25  ;;  %v10371_v25 = vld [vmem:[#allocation13 + $0x1f8] sm:$0xff]  }
0x12eb   : > { %v3426_v31 = vpop.f32.mrb[84].mxu1 }
0x12ec   : > { %3433 = vrot.lane.b32.xlu0 %v3426_v31, %s11060_s14  ;;  %v9686_v33 = vpop.f32.mrb[85].mxu1  ;;  %v10326_v31 = vld [vmem:[#allocation10 + $0x1a4] ss:$16 sps:$4 sm:$0xff]  }
0x12ed   : > { %v3429_v59 = vpop.f32.mrb[86].mxu1  ;;  %v10329_v33 = vld [vmem:[#allocation10 + $0x1ac] ss:$16 sps:$4 sm:$0xff]   ;;  %4031 = vmatprep.subr.bf16.mxu1 %v10326_v31  ;;  %v3839_v31 = vld [vmem:[#allocation11 + $0x4] sm:$0xf] }
0x12ee   : > { %v9687_v34 = vpop.f32.mrb[87].mxu1  ;;  %v10324_v59 = vld [vmem:[#allocation10 + $0x1a0] ss:$16 sps:$4 sm:$0xff]  }
0x12ef   : > { %v10327_v34 = vld [vmem:[#allocation10 + $0x1a8] ss:$16 sps:$4 sm:$0xff]   ;;  %4032 = vmatpush1.bf16.msra.mxu1 %v10324_v59  ;;  %v3852_v59 = vrot.slane %v3839_v31, %v11449_v44 }
0x12f0   : > { %4033 = vmatprep.subr.bf16.mxu1 %v10332_v35  ;;  %v3856_v35 = vrot.slane %v3839_v31, %v11636_v12 }
0x12f3   : > { %v3543_v29 = vpop.f32.mrb[88].mxu1 }
0x12f4   : > { %3550 = vrot.lane.b32.xlu1 %v3543_v29, %s11059_s12  ;;  %v9698_v41 = vpop.f32.mrb[89].mxu1  ;;  %v10330_v29 = vld [vmem:[#allocation10 + $0x1c0] ss:$16 sps:$4 sm:$0xff]  }
0x12f5   : > { %v3546_v43 = vpop.f32.mrb[90].mxu1  ;;  %v10333_v41 = vld [vmem:[#allocation10 + $0x1c8] ss:$16 sps:$4 sm:$0xff]   ;;  %4034 = vmatpush1.bf16.msra.mxu1 %v10330_v29 }
0x12f6   : > { %v9699_v45 = vpop.f32.mrb[91].mxu1  ;;  %v10338_v43 = vld [vmem:[#allocation10 + $0x1e4] ss:$16 sps:$4 sm:$0xff]  }
0x12f7   : > { %v10341_v45 = vld [vmem:[#allocation10 + $0x1ec] ss:$16 sps:$4 sm:$0xff]   ;;  %4035 = vmatprep.subr.bf16.mxu1 %v10338_v43 }
0x12fb   : > { %v3660_v39 = vpop.f32.mrb[92].mxu1 }
0x12fc   : > { %3667 = vrot.lane.b32.xlu0 %v3660_v39, %s11058_s30  ;;  %v9710_v46 = vpop.f32.mrb[93].mxu1  ;;  %v10336_v39 = vld [vmem:[#allocation10 + $0x1e0] ss:$16 sps:$4 sm:$0xff]  }
0x12fd   : > { %v3663_v40 = vpop.f32.mrb[94].mxu1  ;;  %v10339_v46 = vld [vmem:[#allocation10 + $0x1e8] ss:$16 sps:$4 sm:$0xff]   ;;  %4036 = vmatpush1.bf16.msra.mxu1 %v10336_v39 }
0x12fe   : > { %v9711_v47 = vpop.f32.mrb[95].mxu1  ;;  %v10342_v40 = vld [vmem:[#allocation13 + $0x140] sm:$0xff]  }
0x12ff   : > { %v10343_v47 = vld [vmem:[#allocation13 + $0x1c0] sm:$0xff]   ;;  %9228 = vmatprep.subr.bf16.mxu1 %v10342_v40 }
0x1320   : > { %v2966_v48 = vpop.permute.xlu1 %2965 }
0x1321   : > { %2968 = vst.msk [vmem:[#allocation2] sm:$0xff] %vm966_vm4, %v2966_v48 }
0x1328   : > { %v3083_v49 = vpop.permute.xlu1 %3082 }
0x1329   : > { %3085 = vst.msk [vmem:[#allocation2] sm:$0xff] %vm1084_vm5, %v3083_v49 }
0x1330   : > { %v3200_v51 = vpop.permute.xlu0 %3199 }
0x1331   : > { %3202 = vst.msk [vmem:[#allocation2] sm:$0xff] %vm1202_vm6, %v3200_v51 }
0x134e   : > { %v3317_v52 = vpop.permute.xlu1 %3316 }
0x134f   : > { %3319 = vst.msk [vmem:[#allocation2] sm:$0xff] %vm1320_vm7, %v3317_v52  ;;  %v3797_v52 = vrot.slane %v11858_v53, %v11426_v30 }
0x135e   : > { %v3434_v54 = vpop.permute.xlu0 %3433 }
0x135f   : > { %3436 = vst.msk [vmem:[#allocation2] sm:$0xff] %vm1438_vm8, %v3434_v54 }
0x1366   : > { %v3551_v56 = vpop.permute.xlu1 %3550 }
0x1367   : > { %3553 = vst.msk [vmem:[#allocation2] sm:$0xff] %vm1556_vm9, %v3551_v56 }
0x136e   : > { %v3668_v57 = vpop.permute.xlu0 %3667 }
0x136f   : > { %3670 = vst.msk [vmem:[#allocation2] sm:$0xff] %vm1674_vm10, %v3668_v57  ;;  %v3802_v57 = vrot.slane %v11858_v53, %v11449_v44 }
0x1376   : > { %v3671_v58 = vld [vmem:[#allocation2] sm:$0xff] }
0x1377   : > { %v3672_v60 = vpack.c.bf16 %v3671_v58, %v3671_v58 }
0x1379   : > { %9729 = vmatmul.mubr.bf16.vlgmr.msra.gmra.mrb[68].mxu0 %v3672_v60 }
0x137a   : > { %4094 = vmatprep.mubr.bf16.mxu0 %v11055_v0  ;;  %4063 = vmatpush1.bf16.msra.mxu0 %v10297_v7  ;;  %v10352_v7 = vld [vmem:[#allocation13 + $0x110] sm:$0xff]  }
0x137b   : > { %4064 = vmatprep.subr.bf16.mxu0 %v10305_v10  ;;  %v10355_v10 = vld [vmem:[#allocation13 + $0x1d8] sm:$0xff]  }
0x137e   : > { %4065 = vmatpush1.bf16.msra.mxu0 %v10303_v13  ;;  %v10357_v13 = vld [vmem:[#allocation13 + $0x198] sm:$0xff]  }
0x137f   : > { %4066 = vmatprep.subr.bf16.mxu0 %v10311_v15  ;;  %v10359_v15 = vld [vmem:[#allocation13 + $0x1e0] sm:$0xff]  }
0x144c   : > { %v3776_v62 = vpop.f32.mrb[68].mxu0 }
0x144d   : > { %v3777_v63 = vadd.f32 %v3776_v62, %v3693_v61  ;;  %v9730_v2 = vpop.f32.mrb[69].mxu0  ;;  %v10344_v61 = vld [vmem:[#allocation13 + $0x100] sm:$0xff]  }
0x144e   : > { %v3779_v3 = vpop.f32.mrb[70].mxu0  ;;  %v10345_v62 = vld [vmem:[#allocation13 + $0x180] sm:$0xff]   ;;  %v10346_v2 = vld [vmem:[#allocation13 + $0x148] sm:$0xff]  }
0x144f   : > { %v9731_v4 = vpop.f32.mrb[71].mxu0  ;;  %v3782_v37 = vadd.f32 %v3777_v63, %v11667_v36  ;;  %v10309_v36 = vld [vmem:[#allocation10 + $0x148] ss:$16 sps:$4 sm:$0xff]  }
0x1450   : > { %4067 = vmatpush1.bf16.msra.mxu0 %v10309_v36  ;;  %v10347_v3 = vld [vmem:[#allocation13 + $0x1c8] sm:$0xff]   ;;  %v10361_v36 = vld [vmem:[#allocation13 + $0x1a0] sm:$0xff]  }
0x1451   : > { %3783 = vadd.xlane.f32.xlu1 %v3782_v37  ;;  %4068 = vmatprep.subr.bf16.mxu0 %v10317_v21  ;;  %v10348_v4 = vld [vmem:[#allocation13 + $0x108] sm:$0xff]   ;;  %v10367_v21 = vld [vmem:[#allocation13 + $0x1f0] sm:$0xff]  }
0x1454   : > { %4069 = vmatpush1.bf16.msra.mxu0 %v10315_v23  ;;  %v10369_v23 = vld [vmem:[#allocation13 + $0x1b0] sm:$0xff]  }
0x1455   : > { %4070 = vmatprep.subr.bf16.mxu0 %v10323_v28  ;;  %v10373_v28 = vld [vmem:[#allocation13 + $0x1b8] sm:$0xff]  }
0x1458   : > { %4071 = vmatpush1.bf16.msra.mxu0 %v10321_v26  ;;  %v10372_v26 = vld [vmem:[#allocation13 + $0x138] sm:$0xff]  }
0x1459   : > { %4072 = vmatprep.subr.bf16.mxu0 %v10329_v33  ;;  %v3844_v33 = vrot.slane %v3839_v31, %v11429_v32 }
0x145c   : > { %4073 = vmatpush1.bf16.msra.mxu0 %v10327_v34  ;;  %v3848_v34 = vrot.slane %v3839_v31, %v11426_v30  ;;  %v10389_v31 = vld [vmem:[#allocation5 + $0x1d0] ss:$12 sps:$4 sm:$0xff]  }
0x145d   : > { %4074 = vmatprep.subr.bf16.mxu0 %v10335_v38 }
0x1460   : > { %4075 = vmatpush1.bf16.msra.mxu0 %v10333_v41 }
0x1461   : > { %4076 = vmatprep.subr.bf16.mxu0 %v10341_v45 }
0x1464   : > { %4077 = vmatpush1.bf16.msra.mxu0 %v10339_v46 }
0x1465   : > { %9250 = vmatprep.subr.bf16.mxu0 %v10343_v47 }
0x14de   : > { %v3784_v17 = vpop.xlane.xlu1 %3783 }
0x14df   : > { %v3785_v18 = vmul.f32 0.0078125, %v3784_v17  ;;  %v10362_v17 = vld [vmem:[#allocation13 + $0x168] sm:$0xff]  }
0x14e1   : > { %v3786_v50 = vsub.f32 %v3782_v37, %v3785_v18  ;;  %v10349_v37 = vld [vmem:[#allocation13 + $0x188] sm:$0xff]  }
0x14e2   : > { %v10363_v18 = vld [vmem:[#allocation13 + $0x1e8] sm:$0xff]  }
0x14e3   : > { %v3787_v19 = vmul.f32 %v3786_v50, %v3786_v50 }
0x14e5   : > { %3788 = vadd.xlane.f32.xlu0 %v3787_v19  ;;  %v10365_v19 = vld [vmem:[#allocation13 + $0x1a8] sm:$0xff]  }
0x1572   : > { %v3789_v48 = vpop.xlane.xlu0 %3788 }
0x1573   : > { %v3790_v49 = vmul.f32 0.0078125, %v3789_v48 }
0x1575   : > { %v3791_v51 = vadd.f32 1e-06, %v3790_v49 }
0x1577   : > { %10682 = vrsqrt.f32 %v3791_v51 }
0x1581   : > { %v10683_v54 = vpop.eup %10682 }
0x1582   : > { %v3793_v56 = vmul.f32 %v10683_v54, %v3786_v50  ;;  %v10364_v50 = vld [vmem:[#allocation13 + $0x128] sm:$0xff]  }
0x1584   : > { %v3798_v58 = vmul.f32 %v3797_v52, %v3793_v56 }
0x1586   : > { %v11867_v60 = vadd.f32 %v3802_v57, %v3798_v58 }
0x1588   : > { %v3804_v63 = vpack.c.bf16 %v11867_v60, %v11867_v60 }
0x158a   : > { %4054 = vmatmul.mubr.bf16.vlgmr.msra.gmra.mrb[96].mxu1 %v3804_v63  ;;  %4095 = vmatmul.mubr.bf16.vlgmr.msra.gmra.mrb[72].mxu0 %v3804_v63 }
0x158b   : > { %9229 = vmatpush3.bf16.msra.mxu1 %v10344_v61  ;;  %9251 = vmatpush3.bf16.msra.mxu0 %v10345_v62 }
0x158c   : > { %9230 = vmatprep.subr.bf16.mxu1 %v10346_v2  ;;  %9252 = vmatprep.subr.bf16.mxu0 %v10347_v3 }
0x158f   : > { %9231 = vmatpush3.bf16.msra.mxu1 %v10348_v4  ;;  %9253 = vmatpush3.bf16.msra.mxu0 %v10349_v37  ;;  %v4179_v4 = vrot.slane %v11858_v53, %v11646_v42 }
0x1590   : > { %9232 = vmatprep.subr.bf16.mxu1 %v10350_v5  ;;  %9254 = vmatprep.subr.bf16.mxu0 %v10351_v6 }
0x1593   : > { %9233 = vmatpush3.bf16.msra.mxu1 %v10352_v7  ;;  %9255 = vmatpush3.bf16.msra.mxu0 %v10353_v8 }
0x1594   : > { %9234 = vmatprep.subr.bf16.mxu1 %v10354_v9  ;;  %9256 = vmatprep.subr.bf16.mxu0 %v10355_v10 }
0x1597   : > { %9235 = vmatpush3.bf16.msra.mxu1 %v10356_v11  ;;  %9257 = vmatpush3.bf16.msra.mxu0 %v10357_v13 }
0x1598   : > { %9236 = vmatprep.subr.bf16.mxu1 %v10358_v14  ;;  %9258 = vmatprep.subr.bf16.mxu0 %v10359_v15 }
0x159b   : > { %9237 = vmatpush3.bf16.msra.mxu1 %v10360_v16  ;;  %9259 = vmatpush3.bf16.msra.mxu0 %v10361_v36  ;;  %v10374_v16 = vld [vmem:[#allocation5 + $0x180] ss:$12 sps:$4 sm:$0xff]   ;;  %v10376_v36 = vld [vmem:[#allocation5 + $0x184] ss:$12 sps:$4 sm:$0xff]  }
0x159c   : > { %9238 = vmatprep.subr.bf16.mxu1 %v10362_v17  ;;  %9260 = vmatprep.subr.bf16.mxu0 %v10363_v18  ;;  %v10377_v17 = vld [vmem:[#allocation5 + $0x188] ss:$12 sps:$4 sm:$0xff]  }
0x159d   : > { %v10380_v18 = vld [vmem:[#allocation5 + $0x19c] ss:$12 sps:$4 sm:$0xff]  }
0x159f   : > { %9239 = vmatpush3.bf16.msra.mxu1 %v10364_v50  ;;  %9261 = vmatpush3.bf16.msra.mxu0 %v10365_v19  ;;  %v10381_v50 = vld [vmem:[#allocation5 + $0x1a0] ss:$12 sps:$4 sm:$0xff]   ;;  %v10378_v19 = vld [vmem:[#allocation5 + $0x198] ss:$12 sps:$4 sm:$0xff]  }
0x15a0   : > { %9240 = vmatprep.subr.bf16.mxu1 %v10366_v20  ;;  %9262 = vmatprep.subr.bf16.mxu0 %v10367_v21  ;;  %v10384_v20 = vld [vmem:[#allocation5 + $0x1b4] ss:$12 sps:$4 sm:$0xff]   ;;  %v10382_v21 = vld [vmem:[#allocation5 + $0x1b0] ss:$12 sps:$4 sm:$0xff]  }
0x15a3   : > { %9241 = vmatpush3.bf16.msra.mxu1 %v10368_v22  ;;  %9263 = vmatpush3.bf16.msra.mxu0 %v10369_v23 }
0x15a4   : > { %9242 = vmatprep.subr.bf16.mxu1 %v10370_v24  ;;  %9264 = vmatprep.subr.bf16.mxu0 %v10371_v25  ;;  %v10385_v25 = vld [vmem:[#allocation5 + $0x1b8] ss:$12 sps:$4 sm:$0xff]  }
0x15a7   : > { %9243 = vmatpush3.bf16.msra.mxu1 %v10372_v26  ;;  %9265 = vmatpush3.bf16.msra.mxu0 %v10373_v28  ;;  %v10388_v26 = vld [vmem:[#allocation5 + $0x1cc] ss:$12 sps:$4 sm:$0xff]   ;;  %v10386_v28 = vld [vmem:[#allocation5 + $0x1c8] ss:$12 sps:$4 sm:$0xff]  }
0x15a8   : > { %9732 = vmatprep.subr.bf16.mxu0 %v11056_v1  ;;  %4656 = vmatprep.subr.bf16.mxu1 %v10376_v36 }
0x165d   : > { %v4055_v38 = vpop.f32.mrb[96].mxu1  ;;  %v4096_v29 = vpop.f32.mrb[72].mxu0 }
0x165e   : > { %v4056_v41 = vadd.f32 %v4055_v38, %v3844_v33  ;;  %v4097_v43 = vadd.f32 %v4096_v29, %v3852_v59  ;;  %v4057_v45 = vpop.f32.mrb[97].mxu1  ;;  %v4098_v39 = vpop.f32.mrb[73].mxu0  ;;  %v10392_v33 = vld [vmem:[#allocation5 + $0x1e4] ss:$12 sps:$4 sm:$0xff]   ;;  %v10390_v59 = vld [vmem:[#allocation5 + $0x1e0] ss:$12 sps:$4 sm:$0xff]  }
0x165f   : > { %v4058_v46 = vadd.f32 %v4057_v45, %v3848_v34  ;;  %v4099_v40 = vadd.f32 %v4098_v39, %v3856_v35  ;;  %v4059_v47 = vpop.f32.mrb[98].mxu1  ;;  %v4100_v48 = vpop.f32.mrb[74].mxu0  ;;  %v10393_v34 = vld [vmem:[#allocation5 + $0x1e8] ss:$12 sps:$4 sm:$0xff]   ;;  %v10394_v38 = vld [vmem:[#allocation5 + $0x1f8] ss:$12 sps:$4 sm:$0xff]  }
0x1660   : > { %v4103_v49 = vmax.f32 %v4056_v41, 0.0  ;;  %v4105_v51 = vmax.f32 %v4097_v43, 0.0  ;;  %v4060_v52 = vpop.f32.mrb[99].mxu1  ;;  %v4101_v54 = vpop.f32.mrb[75].mxu0  ;;  %v10396_v35 = vld [vmem:[#allocation5 + $0x1fc] ss:$12 sps:$4 sm:$0xff]  }
0x1661   : > { %v4104_v56 = vmax.f32 %v4058_v46, 0.0  ;;  %v4106_v57 = vmax.f32 %v4099_v40, 0.0  ;;  %v10397_v29 = vld [vmem:[#allocation5 + $0x200] ss:$12 sps:$4 sm:$0xff]   ;;  %v10398_v43 = vld [vmem:[#allocation5 + $0x210] ss:$12 sps:$4 sm:$0xff]  }
0x1662   : > { %v4107_v62 = vpack.c.bf16 %v4103_v49, %v4103_v49  ;;  %v4109_v63 = vpack.c.bf16 %v4105_v51, %v4105_v51  ;;  %v10400_v41 = vld [vmem:[#allocation5 + $0x214] ss:$12 sps:$4 sm:$0xff]   ;;  %v10401_v45 = vld [vmem:[#allocation5 + $0x218] ss:$12 sps:$4 sm:$0xff]   ;;  %v10405_v40 = vld [vmem:[#allocation5 + $0x230] ss:$12 sps:$4 sm:$0xff]   ;;  %v4467_v51 = vrot.slane %v11858_v53, %v11636_v12 }
0x1663   : > { %v4108_v58 = vpack.c.bf16 %v4104_v56, %v4104_v56  ;;  %v4110_v61 = vpack.c.bf16 %v4106_v57, %v4106_v57  ;;  %v10404_v39 = vld [vmem:[#allocation5 + $0x22c] ss:$12 sps:$4 sm:$0xff]   ;;  %v10402_v46 = vld [vmem:[#allocation5 + $0x228] ss:$12 sps:$4 sm:$0xff]   ;;  %v4472_v56 = vrot.slane %v11858_v53, %v11661_v27 }
0x1665   : > { %4404 = vmatprep.mubr.bf16.mxu1 %v4108_v58  ;;  %4444 = vmatprep.mubr.bf16.mxu0 %v4110_v61 }
0x1666   : > { %4405 = vmatmul.mubr.bf16.vlgmr.msra.gmra.mrb[100].mxu1 %v4107_v62  ;;  %4445 = vmatmul.mubr.bf16.vlgmr.msra.gmra.mrb[76].mxu0 %v4109_v63  ;;  %v4511_v62 = vld [vmem:[#allocation7 + $0x6] sm:$0x7] }
0x1667   : > { %4688 = vmatprep.mubr.bf16.mxu1 %v11055_v0  ;;  %9748 = vmatprep.mubr.msk.bf16.mxu0 %vm11057_vm0, %v11056_v1  ;;  %v4520_v63 = vrot.slane %v4511_v62, %v11426_v30 }
0x1668   : > { %9733 = vmatpush3.bf16.msra.mxu0 %v10377_v17  ;;  %4657 = vmatpush1.bf16.msra.mxu1 %v10374_v16 }
0x1669   : > { %9734 = vmatprep.subr.bf16.mxu0 %v11056_v1  ;;  %4658 = vmatprep.subr.bf16.mxu1 %v10380_v18 }
0x166c   : > { %9735 = vmatpush3.bf16.msra.mxu0 %v10381_v50  ;;  %4659 = vmatpush1.bf16.msra.mxu1 %v10378_v19 }
0x166d   : > { %9736 = vmatprep.subr.bf16.mxu0 %v11056_v1  ;;  %4660 = vmatprep.subr.bf16.mxu1 %v10384_v20 }
0x1670   : > { %4661 = vmatpush1.bf16.msra.mxu1 %v10382_v21  ;;  %9737 = vmatpush3.bf16.msra.mxu0 %v10385_v25 }
0x1671   : > { %9738 = vmatprep.subr.bf16.mxu0 %v11056_v1  ;;  %4662 = vmatprep.subr.bf16.mxu1 %v10388_v26 }
0x1674   : > { %4663 = vmatpush1.bf16.msra.mxu1 %v10386_v28  ;;  %9739 = vmatpush3.bf16.msra.mxu0 %v10389_v31 }
0x1675   : > { %9740 = vmatprep.subr.bf16.mxu0 %v11056_v1  ;;  %4664 = vmatprep.subr.bf16.mxu1 %v10392_v33 }
0x1678   : > { %4665 = vmatpush1.bf16.msra.mxu1 %v10390_v59  ;;  %9741 = vmatpush3.bf16.msra.mxu0 %v10393_v34 }
0x1679   : > { %9742 = vmatprep.subr.bf16.mxu0 %v11056_v1  ;;  %4666 = vmatprep.subr.bf16.mxu1 %v10396_v35 }
0x167c   : > { %4667 = vmatpush1.bf16.msra.mxu1 %v10394_v38  ;;  %9743 = vmatpush3.bf16.msra.mxu0 %v10397_v29 }
0x167d   : > { %9744 = vmatprep.subr.bf16.mxu0 %v11056_v1  ;;  %4668 = vmatprep.subr.bf16.mxu1 %v10400_v41 }
0x1680   : > { %4669 = vmatpush1.bf16.msra.mxu1 %v10398_v43  ;;  %9745 = vmatpush3.bf16.msra.mxu0 %v10401_v45 }
0x1681   : > { %4670 = vmatprep.subr.bf16.mxu1 %v10404_v39  ;;  %9746 = vmatprep.subr.bf16.mxu0 %v11056_v1 }
0x1684   : > { %4671 = vmatpush1.bf16.msra.mxu1 %v10402_v46  ;;  %9747 = vmatpush3.bf16.msra.mxu0 %v10405_v40 }
0x1685   : > { %9752 = vmatprep.subr.bf16.mxu1 %v11056_v1  ;;  %9776 = vmatprep.subr.bf16.mxu0 %v11056_v1 }
0x1739   : > { %v9244_v2 = vpop.f32.mrb[100].mxu1  ;;  %v9266_v3 = vpop.f32.mrb[76].mxu0 }
0x173a   : > { %v9245_v37 = vpop.f32.mrb[101].mxu1  ;;  %v9267_v5 = vpop.f32.mrb[77].mxu0 }
0x173b   : > { %v9246_v6 = vadd.f32 %v9245_v37, %v9244_v2  ;;  %v9268_v7 = vadd.f32 %v9267_v5, %v9266_v3  ;;  %v9247_v8 = vpop.f32.mrb[102].mxu1  ;;  %v9269_v9 = vpop.f32.mrb[78].mxu0  ;;  %v4524_v37 = vrot.slane %v4511_v62, %v11449_v44 }
0x173c   : > { %v9248_v10 = vpop.f32.mrb[103].mxu1  ;;  %v9270_v11 = vpop.f32.mrb[79].mxu0 }
0x173d   : > { %v4407_v13 = vadd.f32 %v9246_v6, %v4179_v4  ;;  %v4516_v10 = vrot.slane %v4511_v62, %v11429_v32 }
0x173f   : > { %v4447_v14 = vadd.f32 %v9268_v7, %v4407_v13 }
0x1741   : > { %v4452_v15 = vadd.f32 %v4447_v14, %v11867_v60 }
0x1743   : > { %4453 = vadd.xlane.f32.xlu0 %v4452_v15 }
0x17d0   : > { %v4454_v60 = vpop.xlane.xlu0 %4453 }
0x17d1   : > { %v4455_v22 = vmul.f32 0.0078125, %v4454_v60 }
0x17d3   : > { %v4456_v23 = vsub.f32 %v4452_v15, %v4455_v22 }
0x17d5   : > { %v4457_v24 = vmul.f32 %v4456_v23, %v4456_v23 }
0x17d7   : > { %4458 = vadd.xlane.f32.xlu1 %v4457_v24 }
0x1864   : > { %v4459_v47 = vpop.xlane.xlu1 %4458 }
0x1865   : > { %v4460_v48 = vmul.f32 0.0078125, %v4459_v47 }
0x1867   : > { %v4461_v49 = vadd.f32 1e-06, %v4460_v48 }
0x1869   : > { %10684 = vrsqrt.f32 %v4461_v49 }
0x1873   : > { %v10685_v52 = vpop.eup %10684 }
0x1874   : > { %v4463_v54 = vmul.f32 %v10685_v52, %v4456_v23 }
0x1876   : > { %v4468_v57 = vmul.f32 %v4467_v51, %v4463_v54 }
0x1878   : > { %v11895_v58 = vadd.f32 %v4472_v56, %v4468_v57 }
0x187a   : > { %v4476_v61 = vpack.c.bf16 %v11895_v58, %v11895_v58 }
0x187c   : > { %4689 = vmatmul.mubr.bf16.vlgmr.msra.gmra.mrb[104].mxu1 %v4476_v61  ;;  %9749 = vmatmul.mubr.bf16.vlgmr.msra.gmra.mrb[80].mxu0 %v4476_v61 }
0x187d   : > { %9754 = vmatprep.mubr.msk.bf16.mxu1 %vm11057_vm0, %v11056_v1  ;;  %9778 = vmatprep.mubr.msk.bf16.mxu0 %vm11057_vm0, %v11056_v1 }
0x194f   : > { %v4690_v2 = vpop.f32.mrb[104].mxu1  ;;  %v4731_v3 = vpop.f32.mrb[80].mxu0 }
0x1950   : > { %v4692_v53 = vpop.f32.mrb[105].mxu1  ;;  %v9750_v4 = vpop.f32.mrb[81].mxu0  ;;  %v4732_v13 = vadd.f32 %v4731_v3, %v4524_v37  ;;  %v4691_v15 = vadd.f32 %v4690_v2, %v4516_v10 }
0x1951   : > { %v4693_v5 = vadd.f32 %v4692_v53, %v4520_v63  ;;  %v4694_v6 = vpop.f32.mrb[106].mxu1  ;;  %v4734_v7 = vpop.f32.mrb[82].mxu0 }
0x1952   : > { %v4695_v8 = vpop.f32.mrb[107].mxu1  ;;  %v9751_v9 = vpop.f32.mrb[83].mxu0  ;;  %v11908_v16 = vpack.c.bf16 %v4732_v13, %v4732_v13  ;;  %v4737_v36 = vpack.c.bf16 %v4691_v15, %v4691_v15 }
0x1953   : > { %v4738_v11 = vpack.c.bf16 %v4693_v5, %v4693_v5 }
0x1954   : > { %v4804_v17 = vsel %vm802_vm2, %v11908_v16, 0 }
0x1955   : > { %v4744_v14 = vsel %vm731_vm1, %v4738_v11, 0 }
0x1956   : > { %9753 = vmatpush3.bf16.xpose.msra.mxu1 %v4744_v14 }
0x1957   : > { %9758 = vmatprep.subr.bf16.mxu1 %v11056_v1 }
0x195d   : > { %9755 = vmatmul.mubr.msk.bf16.vlgmr.msra.gmra.mrb[108].mxu1 %vm731_vm1, %v4737_v36 }
0x195e   : > { %9759 = vmatpush3.bf16.msra.mxu1 %v4804_v17  ;;  %9760 = vmatprep.mubr.msk.bf16.mxu1 %vm11057_vm0, %v11056_v1 }
0x195f   : > { %9764 = vmatprep.subr.bf16.mxu1 %v11056_v1 }
0x1a30   : > { %v4780_v18 = vpop.f32.mrb[108].mxu1 }
0x1a31   : > { %v4786_v50 = vmul.f32 0.25, %v4780_v18  ;;  %v9756_v19 = vpop.f32.mrb[109].mxu1 }
0x1a32   : > { %v4783_v20 = vpop.f32.mrb[110].mxu1 }
0x1a33   : > { %v9757_v21 = vpop.f32.mrb[111].mxu1  ;;  %v4787_v60 = vadd.f32 %v4786_v50, %v11459_v55 }
0x1a35   : > { %v4788_v22 = vsel %vm786_vm3, %v4787_v60, -inf }
0x1a36   : > { %4789 = vmax.xlane.f32.xlu0 %v4788_v22 }
0x1a4c   : > { %4851 = vrot.lane.b32.xlu0 %v4738_v11, %s11058_s30 }
0x1a50   : > { %4967 = vrot.lane.b32.xlu0 %v4737_v36, %s11059_s12 }
0x1a54   : > { %5084 = vrot.lane.b32.xlu0 %v4737_v36, %s11060_s14 }
0x1a58   : > { %5201 = vrot.lane.b32.xlu0 %v4737_v36, %s11061_s21 }
0x1a5c   : > { %5318 = vrot.lane.b32.xlu0 %v4737_v36, %s11062_s24 }
0x1a60   : > { %5435 = vrot.lane.b32.xlu0 %v4737_v36, %s11063_s27 }
0x1a64   : > { %5552 = vrot.lane.b32.xlu0 %v4737_v36, %s11064_s23 }
0x1ac3   : > { %v4790_v23 = vpop.xlane.xlu0 %4789 }
0x1ac4   : > { %v4791_v24 = vsub.f32 %v4787_v60, %v4790_v23 }
0x1ac6   : > { %v4792_v25 = vmul.f32 1.442695, %v4791_v24 }
0x1ac7   : > { %v4852_v35 = vpop.permute.xlu0 %4851 }
0x1ac8   : > { %10686 = vpow2.f32 %v4792_v25  ;;  %v4857_v45 = vsel %vm731_vm1, %v4852_v35, 0 }
0x1acb   : > { %v4968_v39 = vpop.permute.xlu0 %4967 }
0x1acf   : > { %v5085_v47 = vpop.permute.xlu0 %5084 }
0x1ad2   : > { %v10687_v26 = vpop.eup %10686 }
0x1ad3   : > { %v4794_v28 = vsel %vm786_vm3, %v10687_v26, 0.0  ;;  %v5202_v51 = vpop.permute.xlu0 %5201 }
0x1ad4   : > { %4795 = vadd.xlane.f32.xlu1 %v4794_v28 }
0x1ad7   : > { %v5319_v56 = vpop.permute.xlu0 %5318 }
0x1adb   : > { %v5436_v62 = vpop.permute.xlu0 %5435 }
0x1adf   : > { %v5553_v2 = vpop.permute.xlu0 %5552 }
0x1ae5   : > { %4848 = vrot.lane.b32.xlu1 %v4737_v36, %s11058_s30 }
0x1ae9   : > { %4969 = vrot.lane.b32.xlu1 %v4738_v11, %s11059_s12 }
0x1aed   : > { %5086 = vrot.lane.b32.xlu1 %v4738_v11, %s11060_s14 }
0x1af1   : > { %5203 = vrot.lane.b32.xlu1 %v4738_v11, %s11061_s21 }
0x1af5   : > { %5320 = vrot.lane.b32.xlu1 %v4738_v11, %s11062_s24 }
0x1af9   : > { %5437 = vrot.lane.b32.xlu1 %v4738_v11, %s11063_s27 }
0x1afd   : > { %5554 = vrot.lane.b32.xlu1 %v4738_v11, %s11064_s23 }
0x1b61   : > { %v4796_v31 = vpop.xlane.xlu1 %4795 }
0x1b62   : > { %10688 = vrcp.f32 %v4796_v31 }
0x1b65   : > { %v4849_v33 = vpop.permute.xlu1 %4848 }
0x1b69   : > { %v4970_v59 = vpop.permute.xlu1 %4969 }
0x1b6a   : > { %v4975_v34 = vsel %vm731_vm1, %v4970_v59, 0 }
0x1b6b   : > { %9777 = vmatpush3.bf16.xpose.msra.mxu0 %v4975_v34 }
0x1b6c   : > { %v10689_v38 = vpop.eup %10688  ;;  %9788 = vmatprep.subr.bf16.mxu0 %v11056_v1 }
0x1b6d   : > { %v4798_v29 = vmul.f32 %v10689_v38, %v10687_v26  ;;  %v5087_v41 = vpop.permute.xlu1 %5086 }
0x1b6e   : > { %v5092_v46 = vsel %vm731_vm1, %v5087_v41, 0 }
0x1b6f   : > { %v4799_v43 = vpack.c.bf16 %v4798_v29, %v4798_v29 }
0x1b71   : > { %9761 = vmatmul.mubr.msk.bf16.vlgmr.msra.gmra.mrb[112].mxu1 %vm786_vm3, %v4799_v43  ;;  %v5204_v40 = vpop.permute.xlu1 %5203 }
0x1b72   : > { %9765 = vmatpush3.bf16.xpose.msra.mxu1 %v4857_v45  ;;  %9779 = vmatmul.mubr.msk.bf16.vlgmr.msra.gmra.mrb[84].mxu0 %vm731_vm1, %v4968_v39  ;;  %v5209_v48 = vsel %vm731_vm1, %v5204_v40, 0 }
0x1b73   : > { %9789 = vmatpush3.bf16.xpose.msra.mxu0 %v5092_v46  ;;  %9766 = vmatprep.mubr.msk.bf16.mxu1 %vm11057_vm0, %v11056_v1 }
0x1b74   : > { %9790 = vmatprep.mubr.msk.bf16.mxu0 %vm11057_vm0, %v11056_v1  ;;  %9800 = vmatprep.subr.bf16.mxu0 %v11056_v1 }
0x1b75   : > { %9770 = vmatprep.subr.bf16.mxu1 %v11056_v1  ;;  %v5321_v49 = vpop.permute.xlu1 %5320 }
0x1b76   : > { %v5326_v52 = vsel %vm731_vm1, %v5321_v49, 0 }
0x1b79   : > { %9767 = vmatmul.mubr.msk.bf16.vlgmr.msra.gmra.mrb[116].mxu1 %vm731_vm1, %v4849_v33  ;;  %v5438_v54 = vpop.permute.xlu1 %5437 }
0x1b7a   : > { %9791 = vmatmul.mubr.msk.bf16.vlgmr.msra.gmra.mrb[88].mxu0 %vm731_vm1, %v5085_v47  ;;  %9772 = vmatprep.mubr.msk.bf16.mxu1 %vm11057_vm0, %v11056_v1  ;;  %v5443_v57 = vsel %vm731_vm1, %v5438_v54, 0 }
0x1b7b   : > { %9801 = vmatpush3.bf16.xpose.msra.mxu0 %v5209_v48  ;;  %9802 = vmatprep.mubr.msk.bf16.mxu0 %vm11057_vm0, %v11056_v1 }
0x1b7c   : > { %9812 = vmatprep.subr.bf16.mxu0 %v11056_v1 }
0x1b7d   : > { %v5555_v61 = vpop.permute.xlu1 %5554 }
0x1b7e   : > { %v5560_v63 = vsel %vm731_vm1, %v5555_v61, 0 }
0x1b82   : > { %9803 = vmatmul.mubr.msk.bf16.vlgmr.msra.gmra.mrb[92].mxu0 %vm731_vm1, %v5202_v51 }
0x1b83   : > { %9813 = vmatpush3.bf16.xpose.msra.mxu0 %v5326_v52  ;;  %9814 = vmatprep.mubr.msk.bf16.mxu0 %vm11057_vm0, %v11056_v1 }
0x1b84   : > { %9824 = vmatprep.subr.bf16.mxu0 %v11056_v1 }
0x1b8a   : > { %9815 = vmatmul.mubr.msk.bf16.vlgmr.msra.gmra.mrb[96].mxu0 %vm731_vm1, %v5319_v56 }
0x1b8b   : > { %9825 = vmatpush3.bf16.xpose.msra.mxu0 %v5443_v57  ;;  %9826 = vmatprep.mubr.msk.bf16.mxu0 %vm11057_vm0, %v11056_v1 }
0x1b8c   : > { %9836 = vmatprep.subr.bf16.mxu0 %v11056_v1 }
0x1b92   : > { %9827 = vmatmul.mubr.msk.bf16.vlgmr.msra.gmra.mrb[100].mxu0 %vm731_vm1, %v5436_v62 }
0x1b93   : > { %9837 = vmatpush3.bf16.xpose.msra.mxu0 %v5560_v63  ;;  %9838 = vmatprep.mubr.msk.bf16.mxu0 %vm11057_vm0, %v11056_v1 }
0x1b94   : > { %9848 = vmatprep.subr.bf16.mxu0 %v11056_v1 }
0x1b9a   : > { %9839 = vmatmul.mubr.msk.bf16.vlgmr.msra.gmra.mrb[104].mxu0 %vm731_vm1, %v5553_v2 }
0x1b9b   : > { %9864 = vmatprep.mubr.msk.bf16.mxu0 %vm11057_vm0, %v11056_v1 }
0x1c44   : > { %v4840_v3 = vpop.f32.mrb[112].mxu1 }
0x1c45   : > { %4846 = vst.msk [vmem:[#allocation2] sm:$0xff] %vm731_vm1, %v4840_v3  ;;  %v9762_v53 = vpop.f32.mrb[113].mxu1  ;;  %v5011_v4 = vpop.f32.mrb[84].mxu0 }
0x1c46   : > { %v5017_v37 = vmul.f32 0.25, %v5011_v4  ;;  %v4843_v5 = vpop.f32.mrb[114].mxu1  ;;  %v9780_v6 = vpop.f32.mrb[85].mxu0 }
0x1c47   : > { %v9763_v7 = vpop.f32.mrb[115].mxu1  ;;  %v5014_v8 = vpop.f32.mrb[86].mxu0 }
0x1c48   : > { %v5018_v9 = vadd.f32 %v5017_v37, %v11459_v55  ;;  %v9781_v10 = vpop.f32.mrb[87].mxu0 }
0x1c4a   : > { %v5019_v11 = vsel %vm786_vm3, %v5018_v9, -inf }
0x1c4b   : > { %5020 = vmax.xlane.f32.xlu0 %v5019_v11 }
0x1c4c   : > { %v4893_v13 = vpop.f32.mrb[116].mxu1 }
0x1c4d   : > { %v4899_v14 = vmul.f32 0.25, %v4893_v13  ;;  %v9768_v15 = vpop.f32.mrb[117].mxu1  ;;  %v5128_v36 = vpop.f32.mrb[88].mxu0 }
0x1c4e   : > { %v5134_v17 = vmul.f32 0.25, %v5128_v36  ;;  %v4896_v18 = vpop.f32.mrb[118].mxu1  ;;  %v9792_v50 = vpop.f32.mrb[89].mxu0 }
0x1c4f   : > { %v4900_v19 = vadd.f32 %v4899_v14, %v11459_v55  ;;  %v9769_v20 = vpop.f32.mrb[119].mxu1  ;;  %v5131_v21 = vpop.f32.mrb[90].mxu0 }
0x1c50   : > { %v5135_v60 = vadd.f32 %v5134_v17, %v11459_v55  ;;  %v9793_v22 = vpop.f32.mrb[91].mxu0 }
0x1c51   : > { %v4901_v23 = vsel %vm786_vm3, %v4900_v19, -inf }
0x1c52   : > { %4902 = vmax.xlane.f32.xlu1 %v4901_v23  ;;  %v5136_v24 = vsel %vm786_vm3, %v5135_v60, -inf }
0x1c53   : > { %5137 = vmax.xlane.f32.xlu0 %v5136_v24 }
0x1c55   : > { %v5245_v25 = vpop.f32.mrb[92].mxu0 }
0x1c56   : > { %v5251_v26 = vmul.f32 0.25, %v5245_v25  ;;  %v9804_v28 = vpop.f32.mrb[93].mxu0 }
0x1c57   : > { %v5248_v31 = vpop.f32.mrb[94].mxu0 }
0x1c58   : > { %v5252_v33 = vadd.f32 %v5251_v26, %v11459_v55  ;;  %v9805_v59 = vpop.f32.mrb[95].mxu0 }
0x1c5a   : > { %v5253_v34 = vsel %vm786_vm3, %v5252_v33, -inf }
0x1c5b   : > { %5254 = vmax.xlane.f32.xlu1 %v5253_v34 }
0x1c5d   : > { %v5362_v35 = vpop.f32.mrb[96].mxu0 }
0x1c5e   : > { %v5368_v38 = vmul.f32 0.25, %v5362_v35  ;;  %v9816_v29 = vpop.f32.mrb[97].mxu0 }
0x1c5f   : > { %v5365_v41 = vpop.f32.mrb[98].mxu0 }
0x1c60   : > { %v5369_v43 = vadd.f32 %v5368_v38, %v11459_v55  ;;  %v9817_v45 = vpop.f32.mrb[99].mxu0 }
0x1c62   : > { %v5370_v39 = vsel %vm786_vm3, %v5369_v43, -inf }
0x1c63   : > { %5371 = vmax.xlane.f32.xlu0 %v5370_v39 }
0x1c65   : > { %v5479_v46 = vpop.f32.mrb[100].mxu0 }
0x1c66   : > { %v5485_v40 = vmul.f32 0.25, %v5479_v46  ;;  %v9828_v47 = vpop.f32.mrb[101].mxu0 }
0x1c67   : > { %v5482_v48 = vpop.f32.mrb[102].mxu0 }
0x1c68   : > { %v5486_v49 = vadd.f32 %v5485_v40, %v11459_v55  ;;  %v9829_v51 = vpop.f32.mrb[103].mxu0 }
0x1c6a   : > { %v5487_v52 = vsel %vm786_vm3, %v5486_v49, -inf }
0x1c6b   : > { %5488 = vmax.xlane.f32.xlu1 %v5487_v52 }
0x1c6d   : > { %v5596_v54 = vpop.f32.mrb[104].mxu0 }
0x1c6e   : > { %v5602_v56 = vmul.f32 0.25, %v5596_v54  ;;  %v9840_v57 = vpop.f32.mrb[105].mxu0 }
0x1c6f   : > { %v5599_v61 = vpop.f32.mrb[106].mxu0 }
0x1c70   : > { %v5603_v62 = vadd.f32 %v5602_v56, %v11459_v55  ;;  %v9841_v63 = vpop.f32.mrb[107].mxu0 }
0x1c72   : > { %v5604_v2 = vsel %vm786_vm3, %v5603_v62, -inf }
0x1c73   : > { %5605 = vmax.xlane.f32.xlu0 %v5604_v2 }
0x1cd8   : > { %v5021_v3 = vpop.xlane.xlu0 %5020 }
0x1cd9   : > { %v5022_v53 = vsub.f32 %v5018_v9, %v5021_v3 }
0x1cdb   : > { %v5023_v4 = vmul.f32 1.442695, %v5022_v53 }
0x1cdd   : > { %10690 = vpow2.f32 %v5023_v4 }
0x1cdf   : > { %v4903_v37 = vpop.xlane.xlu1 %4902 }
0x1ce0   : > { %v4904_v5 = vsub.f32 %v4900_v19, %v4903_v37  ;;  %v5138_v6 = vpop.xlane.xlu0 %5137 }
0x1ce1   : > { %v5139_v7 = vsub.f32 %v5135_v60, %v5138_v6 }
0x1ce2   : > { %v4905_v8 = vmul.f32 1.442695, %v4904_v5 }
0x1ce3   : > { %v5140_v10 = vmul.f32 1.442695, %v5139_v7 }
0x1ce5   : > { %10692 = vpow2.f32 %v5140_v10 }
0x1ce6   : > { %10694 = vpow2.f32 %v4905_v8 }
0x1ce7   : > { %v11986_v11 = vpop.eup %10690 }
0x1ce8   : > { %v5255_v13 = vpop.xlane.xlu1 %5254  ;;  %v5025_v14 = vsel %vm786_vm3, %v11986_v11, 0.0 }
0x1ce9   : > { %v5256_v15 = vsub.f32 %v5252_v33, %v5255_v13  ;;  %5026 = vadd.xlane.f32.xlu0 %v5025_v14 }
0x1ceb   : > { %v5257_v36 = vmul.f32 1.442695, %v5256_v15 }
0x1ced   : > { %10696 = vpow2.f32 %v5257_v36 }
0x1cef   : > { %v11990_v9 = vpop.eup %10692 }
0x1cf0   : > { %v5372_v17 = vpop.xlane.xlu0 %5371  ;;  %v5142_v18 = vsel %vm786_vm3, %v11990_v9, 0.0  ;;  %v10695_v50 = vpop.eup %10694 }
0x1cf1   : > { %v5373_v19 = vsub.f32 %v5369_v43, %v5372_v17  ;;  %5143 = vadd.xlane.f32.xlu1 %v5142_v18  ;;  %v4907_v21 = vsel %vm786_vm3, %v10695_v50, 0.0 }
0x1cf3   : > { %v5374_v20 = vmul.f32 1.442695, %v5373_v19 }
0x1cf5   : > { %10698 = vpow2.f32 %v5374_v20  ;;  %4908 = vadd.xlane.f32.xlu1 %v4907_v21 }
0x1cf7   : > { %v11995_v60 = vpop.eup %10696 }
0x1cf8   : > { %v5259_v22 = vsel %vm786_vm3, %v11995_v60, 0.0  ;;  %v5489_v25 = vpop.xlane.xlu1 %5488 }
0x1cf9   : > { %5260 = vadd.xlane.f32.xlu0 %v5259_v22  ;;  %v5490_v26 = vsub.f32 %v5486_v49, %v5489_v25 }
0x1cfb   : > { %v5491_v28 = vmul.f32 1.442695, %v5490_v26 }
0x1cfd   : > { %10700 = vpow2.f32 %v5491_v28 }
0x1cff   : > { %v11999_v23 = vpop.eup %10698 }
0x1d00   : > { %v5376_v24 = vsel %vm786_vm3, %v11999_v23, 0.0  ;;  %v5606_v31 = vpop.xlane.xlu0 %5605 }
0x1d01   : > { %5377 = vadd.xlane.f32.xlu0 %v5376_v24  ;;  %v5607_v33 = vsub.f32 %v5603_v62, %v5606_v31 }
0x1d03   : > { %v5608_v34 = vmul.f32 1.442695, %v5607_v33 }
0x1d05   : > { %10702 = vpow2.f32 %v5608_v34 }
0x1d06   : > { %4914 = vrot.lane.b32.xlu1 %v11908_v16, %s11058_s30 }
0x1d07   : > { %v12009_v59 = vpop.eup %10700 }
0x1d08   : > { %v5493_v35 = vsel %vm786_vm3, %v12009_v59, 0.0 }
0x1d0f   : > { %v12013_v38 = vpop.eup %10702 }
0x1d10   : > { %v5610_v29 = vsel %vm786_vm3, %v12013_v38, 0.0 }
0x1d17   : > { %5031 = vrot.lane.b32.xlu0 %v11908_v16, %s11059_s12 }
0x1d1b   : > { %5148 = vrot.lane.b32.xlu0 %v11908_v16, %s11060_s14 }
0x1d2a   : > { %5494 = vadd.xlane.f32.xlu1 %v5493_v35 }
0x1d3a   : > { %5611 = vadd.xlane.f32.xlu0 %v5610_v29 }
0x1d3b   : > { %5265 = vrot.lane.b32.xlu1 %v11908_v16, %s11061_s21 }
0x1d3f   : > { %5499 = vrot.lane.b32.xlu1 %v11908_v16, %s11063_s27 }
0x1d43   : > { %5616 = vrot.lane.b32.xlu1 %v11908_v16, %s11064_s23 }
0x1d50   : > { %5382 = vrot.lane.b32.xlu0 %v11908_v16, %s11062_s24 }
0x1d76   : > { %v5027_v45 = vpop.xlane.xlu0 %5026 }
0x1d7e   : > { %v5144_v41 = vpop.xlane.xlu1 %5143 }
0x1d82   : > { %v4909_v43 = vpop.xlane.xlu1 %4908 }
0x1d83   : > { %10704 = vrcp.f32 %v4909_v43  ;;  %v10407_v43 = vld [vmem:[#allocation8 + $0x88] sm:$0xff]  }
0x1d84   : > { %10706 = vrcp.f32 %v5027_v45 }
0x1d85   : > { %10708 = vrcp.f32 %v5144_v41  ;;  %v10406_v41 = vld [vmem:[#allocation8 + $0x80] sm:$0xff]  }
0x1d86   : > { %v4915_v39 = vpop.permute.xlu1 %4914  ;;  %v5261_v40 = vpop.xlane.xlu0 %5260  ;;  %9849 = vmatpush3.bf16.msra.mxu0 %v10406_v41 }
0x1d87   : > { %v4920_v46 = vsel %vm802_vm2, %v4915_v39, 0  ;;  %10710 = vrcp.f32 %v5261_v40  ;;  %9850 = vmatprep.subr.bf16.mxu0 %v11056_v1 }
0x1d88   : > { %9771 = vmatpush3.bf16.msra.mxu1 %v4920_v46 }
0x1d89   : > { %9782 = vmatprep.subr.bf16.mxu1 %v11056_v1 }
0x1d8a   : > { %9851 = vmatpush3.bf16.msra.mxu0 %v10407_v43 }
0x1d8b   : > { %9852 = vmatprep.subr.bf16.mxu0 %v11056_v1 }
0x1d8d   : > { %v10705_v47 = vpop.eup %10704 }
0x1d8e   : > { %v4911_v48 = vmul.f32 %v10705_v47, %v10695_v50  ;;  %v5378_v49 = vpop.xlane.xlu0 %5377  ;;  %v10707_v52 = vpop.eup %10706  ;;  %v10408_v47 = vld [vmem:[#allocation8 + $0x90] sm:$0xff]  }
0x1d8f   : > { %v5029_v56 = vmul.f32 %v10707_v52, %v11986_v11  ;;  %v10709_v62 = vpop.eup %10708  ;;  %10712 = vrcp.f32 %v5378_v49  ;;  %9853 = vmatpush3.bf16.msra.mxu0 %v10408_v47  ;;  %v10410_v49 = vld [vmem:[#allocation8 + $0xa0] sm:$0xff]  }
0x1d90   : > { %v4912_v51 = vpack.c.bf16 %v4911_v48, %v4911_v48  ;;  %v5146_v2 = vmul.f32 %v10709_v62, %v11990_v9  ;;  %v10409_v48 = vld [vmem:[#allocation8 + $0x98] sm:$0xff]   ;;  %9854 = vmatprep.subr.bf16.mxu0 %v11056_v1  ;;  %v10440_v47 = vld [vmem:[#allocation10 + $0x284] ss:$16 sps:$4 sm:$0xff]  }
0x1d91   : > { %v5030_v61 = vpack.c.bf16 %v5029_v56, %v5029_v56  ;;  %v10711_v53 = vpop.eup %10710 }
0x1d92   : > { %v5032_v54 = vpop.permute.xlu0 %5031  ;;  %9773 = vmatmul.mubr.msk.bf16.vlgmr.msra.gmra.mrb[120].mxu1 %vm786_vm3, %v4912_v51  ;;  %v5147_v3 = vpack.c.bf16 %v5146_v2, %v5146_v2  ;;  %v5263_v37 = vmul.f32 %v10711_v53, %v11995_v60  ;;  %v10411_v51 = vld [vmem:[#allocation8 + $0xa8] sm:$0xff]  }
0x1d93   : > { %v5037_v16 = vsel %vm802_vm2, %v5032_v54, 0  ;;  %9784 = vmatprep.mubr.msk.bf16.mxu1 %vm11057_vm0, %v11056_v1  ;;  %9855 = vmatpush3.bf16.msra.mxu0 %v10409_v48  ;;  %v10443_v48 = vld [vmem:[#allocation10 + $0x28c] ss:$16 sps:$4 sm:$0xff]  }
0x1d94   : > { %9783 = vmatpush3.bf16.msra.mxu1 %v5037_v16  ;;  %v5264_v7 = vpack.c.bf16 %v5263_v37, %v5263_v37  ;;  %9856 = vmatprep.subr.bf16.mxu0 %v11056_v1 }
0x1d95   : > { %9794 = vmatprep.subr.bf16.mxu1 %v11056_v1 }
0x1d96   : > { %v5149_v57 = vpop.permute.xlu0 %5148 }
0x1d97   : > { %v5154_v63 = vsel %vm802_vm2, %v5149_v57, 0  ;;  %9857 = vmatpush3.bf16.msra.mxu0 %v10410_v49  ;;  %v10412_v57 = vld [vmem:[#allocation8 + $0xb0] sm:$0xff]  }
0x1d98   : > { %9858 = vmatprep.subr.bf16.mxu0 %v11056_v1  ;;  %v10438_v49 = vld [vmem:[#allocation10 + $0x280] ss:$16 sps:$4 sm:$0xff]  }
0x1d99   : > { %v10713_v8 = vpop.eup %10712 }
0x1d9a   : > { %9785 = vmatmul.mubr.msk.bf16.vlgmr.msra.gmra.mrb[124].mxu1 %vm786_vm3, %v5030_v61  ;;  %v5380_v11 = vmul.f32 %v10713_v8, %v11999_v23  ;;  %v10413_v61 = vld [vmem:[#allocation8 + $0xb8] sm:$0xff]  }
0x1d9b   : > { %9795 = vmatpush3.bf16.msra.mxu1 %v5154_v63  ;;  %9796 = vmatprep.mubr.msk.bf16.mxu1 %vm11057_vm0, %v11056_v1 }
0x1d9c   : > { %9806 = vmatprep.subr.bf16.mxu1 %v11056_v1  ;;  %v5381_v36 = vpack.c.bf16 %v5380_v11, %v5380_v11  ;;  %9859 = vmatpush3.bf16.msra.mxu0 %v10411_v51  ;;  %v10441_v51 = vld [vmem:[#allocation10 + $0x288] ss:$16 sps:$4 sm:$0xff]  }
0x1d9d   : > { %9860 = vmatprep.subr.bf16.mxu0 %v11056_v1 }
0x1da0   : > { %9861 = vmatpush3.bf16.msra.mxu0 %v10412_v57  ;;  %v10452_v57 = vld [vmem:[#allocation10 + $0x2c4] ss:$16 sps:$4 sm:$0xff]  }
0x1da1   : > { %9862 = vmatprep.subr.bf16.mxu0 %v11056_v1 }
0x1da2   : > { %9797 = vmatmul.mubr.msk.bf16.vlgmr.msra.gmra.mrb[128].mxu1 %vm786_vm3, %v5147_v3 }
0x1da3   : > { %9808 = vmatprep.mubr.msk.bf16.mxu1 %vm11057_vm0, %v11056_v1 }
0x1da4   : > { %9863 = vmatpush3.bf16.msra.mxu0 %v10413_v61  ;;  %v10455_v61 = vld [vmem:[#allocation10 + $0x2cc] ss:$16 sps:$4 sm:$0xff]  }
0x1db7   : > { %v5495_v4 = vpop.xlane.xlu1 %5494 }
0x1db8   : > { %10714 = vrcp.f32 %v5495_v4 }
0x1dbb   : > { %v5266_v5 = vpop.permute.xlu1 %5265 }
0x1dbc   : > { %v5271_v6 = vsel %vm802_vm2, %v5266_v5, 0 }
0x1dbd   : > { %9807 = vmatpush3.bf16.msra.mxu1 %v5271_v6 }
0x1dbe   : > { %9818 = vmatprep.subr.bf16.mxu1 %v11056_v1 }
0x1dbf   : > { %v5500_v15 = vpop.permute.xlu1 %5499 }
0x1dc0   : > { %9809 = vmatmul.mubr.msk.bf16.vlgmr.msra.gmra.mrb[132].mxu1 %vm786_vm3, %v5264_v7  ;;  %v5505_v17 = vsel %vm802_vm2, %v5500_v15, 0 }
0x1dc1   : > { %9820 = vmatprep.mubr.msk.bf16.mxu1 %vm11057_vm0, %v11056_v1 }
0x1dc2   : > { %v10715_v9 = vpop.eup %10714 }
0x1dc3   : > { %v5497_v18 = vmul.f32 %v10715_v9, %v12009_v59  ;;  %v5617_v50 = vpop.permute.xlu1 %5616  ;;  %v12086_v9 = vld [vmem:[#allocation14 + $0x10] sm:$0xff] }
0x1dc4   : > { %v5622_v21 = vsel %vm802_vm2, %v5617_v50, 0 }
0x1dc5   : > { %v5498_v19 = vpack.c.bf16 %v5497_v18, %v5497_v18 }
0x1dc7   : > { %v5612_v10 = vpop.xlane.xlu0 %5611 }
0x1dc8   : > { %10716 = vrcp.f32 %v5612_v10 }
0x1dcb   : > { %v5383_v13 = vpop.permute.xlu0 %5382 }
0x1dcc   : > { %v5388_v14 = vsel %vm802_vm2, %v5383_v13, 0 }
0x1dcd   : > { %9819 = vmatpush3.bf16.msra.mxu1 %v5388_v14 }
0x1dce   : > { %9830 = vmatprep.subr.bf16.mxu1 %v11056_v1 }
0x1dd0   : > { %9821 = vmatmul.mubr.msk.bf16.vlgmr.msra.gmra.mrb[136].mxu1 %vm786_vm3, %v5381_v36 }
0x1dd1   : > { %9831 = vmatpush3.bf16.msra.mxu1 %v5505_v17  ;;  %9832 = vmatprep.mubr.msk.bf16.mxu1 %vm11057_vm0, %v11056_v1  ;;  %v5691_v17 = vrot.slane %v12086_v9, %v11429_v32 }
0x1dd2   : > { %9842 = vmatprep.subr.bf16.mxu1 %v11056_v1  ;;  %v10717_v20 = vpop.eup %10716 }
0x1dd3   : > { %v5614_v60 = vmul.f32 %v10717_v20, %v12013_v38 }
0x1dd5   : > { %v5615_v22 = vpack.c.bf16 %v5614_v60, %v5614_v60 }
0x1dd8   : > { %9833 = vmatmul.mubr.msk.bf16.vlgmr.msra.gmra.mrb[140].mxu1 %vm786_vm3, %v5498_v19 }
0x1dd9   : > { %9843 = vmatpush3.bf16.msra.mxu1 %v5622_v21  ;;  %9844 = vmatprep.mubr.msk.bf16.mxu1 %vm11057_vm0, %v11056_v1 }
0x1de0   : > { %9845 = vmatmul.mubr.msk.bf16.vlgmr.msra.gmra.mrb[144].mxu1 %vm786_vm3, %v5615_v22  ;;  %v10414_v22 = vld [vmem:[#allocation10 + $0x200] ss:$16 sps:$4 sm:$0xff]  }
0x1de1   : > { %6051 = vmatprep.mubr.bf16.mxu1 %v11055_v0 }
0x1e65   : > { %v4956_v23 = vpop.f32.mrb[120].mxu1 }
0x1e66   : > { %4963 = vrot.lane.b32.xlu1 %v4956_v23, %s11064_s23  ;;  %v9774_v24 = vpop.f32.mrb[121].mxu1  ;;  %v10416_v23 = vld [vmem:[#allocation10 + $0x204] ss:$16 sps:$4 sm:$0xff]  }
0x1e67   : > { %v4959_v25 = vpop.f32.mrb[122].mxu1  ;;  %v10417_v24 = vld [vmem:[#allocation10 + $0x208] ss:$16 sps:$4 sm:$0xff]   ;;  %6019 = vmatprep.subr.bf16.mxu1 %v10416_v23  ;;  %v10471_v23 = vld [vmem:[#allocation13 + $0x2d0] sm:$0xff]  }
0x1e68   : > { %v9775_v26 = vpop.f32.mrb[123].mxu1  ;;  %v10419_v25 = vld [vmem:[#allocation10 + $0x20c] ss:$16 sps:$4 sm:$0xff]   ;;  %6020 = vmatpush1.bf16.msra.mxu1 %v10414_v22  ;;  %v10470_v22 = vld [vmem:[#allocation13 + $0x250] sm:$0xff]  }
0x1e69   : > { %v10422_v26 = vld [vmem:[#allocation10 + $0x224] ss:$16 sps:$4 sm:$0xff]   ;;  %6060 = vmatprep.subr.bf16.mxu0 %v10419_v25 }
0x1e6a   : > { %6021 = vmatprep.subr.bf16.mxu1 %v10422_v26  ;;  %v10473_v25 = vld [vmem:[#allocation13 + $0x290] sm:$0xff]   ;;  %v10474_v26 = vld [vmem:[#allocation13 + $0x258] sm:$0xff]  }
0x1e6d   : > { %v5073_v28 = vpop.f32.mrb[124].mxu1 }
0x1e6e   : > { %5080 = vrot.lane.b32.xlu1 %v5073_v28, %s11063_s27  ;;  %v9786_v31 = vpop.f32.mrb[125].mxu1  ;;  %v10425_v28 = vld [vmem:[#allocation10 + $0x22c] ss:$16 sps:$4 sm:$0xff]  }
0x1e6f   : > { %v5076_v33 = vpop.f32.mrb[126].mxu1  ;;  %v10420_v31 = vld [vmem:[#allocation10 + $0x220] ss:$16 sps:$4 sm:$0xff]  }
0x1e70   : > { %v9787_v59 = vpop.f32.mrb[127].mxu1  ;;  %v10423_v33 = vld [vmem:[#allocation10 + $0x228] ss:$16 sps:$4 sm:$0xff]   ;;  %6022 = vmatpush1.bf16.msra.mxu1 %v10420_v31 }
0x1e71   : > { %v10428_v59 = vld [vmem:[#allocation10 + $0x244] ss:$16 sps:$4 sm:$0xff]   ;;  %v10476_v31 = vld [vmem:[#allocation13 + $0x218] sm:$0xff]  }
0x1e72   : > { %6023 = vmatprep.subr.bf16.mxu1 %v10428_v59  ;;  %v10478_v59 = vld [vmem:[#allocation13 + $0x260] sm:$0xff]  }
0x1e75   : > { %v5190_v34 = vpop.f32.mrb[128].mxu1 }
0x1e76   : > { %5197 = vrot.lane.b32.xlu0 %v5190_v34, %s11062_s24  ;;  %v9798_v35 = vpop.f32.mrb[129].mxu1  ;;  %v10431_v34 = vld [vmem:[#allocation10 + $0x24c] ss:$16 sps:$4 sm:$0xff]  }
0x1e77   : > { %v5193_v38 = vpop.f32.mrb[130].mxu1  ;;  %v10429_v35 = vld [vmem:[#allocation10 + $0x248] ss:$16 sps:$4 sm:$0xff]  }
0x1e78   : > { %v9799_v29 = vpop.f32.mrb[131].mxu1 }
0x1e93   : > { %v5307_v45 = vpop.f32.mrb[132].mxu1 }
0x1e94   : > { %5314 = vrot.lane.b32.xlu1 %v5307_v45, %s11061_s21  ;;  %v9810_v39 = vpop.f32.mrb[133].mxu1  ;;  %v10434_v45 = vld [vmem:[#allocation10 + $0x264] ss:$16 sps:$4 sm:$0xff]  }
0x1e95   : > { %v5310_v46 = vpop.f32.mrb[134].mxu1  ;;  %v10437_v39 = vld [vmem:[#allocation10 + $0x26c] ss:$16 sps:$4 sm:$0xff]  }
0x1e96   : > { %v9811_v40 = vpop.f32.mrb[135].mxu1  ;;  %v10432_v46 = vld [vmem:[#allocation10 + $0x260] ss:$16 sps:$4 sm:$0xff]  }
0x1e97   : > { %v10435_v40 = vld [vmem:[#allocation10 + $0x268] ss:$16 sps:$4 sm:$0xff]  }
0x1ea3   : > { %v5424_v52 = vpop.f32.mrb[136].mxu1 }
0x1ea4   : > { %5431 = vrot.lane.b32.xlu0 %v5424_v52, %s11060_s14  ;;  %v9822_v54 = vpop.f32.mrb[137].mxu1  ;;  %v10446_v52 = vld [vmem:[#allocation10 + $0x2a4] ss:$16 sps:$4 sm:$0xff]  }
0x1ea5   : > { %v5427_v16 = vpop.f32.mrb[138].mxu1  ;;  %v10449_v54 = vld [vmem:[#allocation10 + $0x2ac] ss:$16 sps:$4 sm:$0xff]  }
0x1ea6   : > { %v9823_v56 = vpop.f32.mrb[139].mxu1  ;;  %v10444_v16 = vld [vmem:[#allocation10 + $0x2a0] ss:$16 sps:$4 sm:$0xff]  }
0x1ea7   : > { %v10447_v56 = vld [vmem:[#allocation10 + $0x2a8] ss:$16 sps:$4 sm:$0xff]  }
0x1eab   : > { %v5541_v62 = vpop.f32.mrb[140].mxu1 }
0x1eac   : > { %5548 = vrot.lane.b32.xlu1 %v5541_v62, %s11059_s12  ;;  %v9834_v63 = vpop.f32.mrb[141].mxu1  ;;  %v10450_v62 = vld [vmem:[#allocation10 + $0x2c0] ss:$16 sps:$4 sm:$0xff]  }
0x1ead   : > { %v5544_v2 = vpop.f32.mrb[142].mxu1  ;;  %v10453_v63 = vld [vmem:[#allocation10 + $0x2c8] ss:$16 sps:$4 sm:$0xff]  }
0x1eae   : > { %v9835_v3 = vpop.f32.mrb[143].mxu1  ;;  %v10458_v2 = vld [vmem:[#allocation10 + $0x2e4] ss:$16 sps:$4 sm:$0xff]  }
0x1eaf   : > { %v10461_v3 = vld [vmem:[#allocation10 + $0x2ec] ss:$16 sps:$4 sm:$0xff]  }
0x1eb3   : > { %v5658_v53 = vpop.f32.mrb[144].mxu1 }
0x1eb4   : > { %5665 = vrot.lane.b32.xlu0 %v5658_v53, %s11058_s30  ;;  %v9846_v4 = vpop.f32.mrb[145].mxu1  ;;  %v10456_v53 = vld [vmem:[#allocation10 + $0x2e0] ss:$16 sps:$4 sm:$0xff]  }
0x1eb5   : > { %v5661_v37 = vpop.f32.mrb[146].mxu1  ;;  %v10459_v4 = vld [vmem:[#allocation10 + $0x2e8] ss:$16 sps:$4 sm:$0xff]  }
0x1eb6   : > { %v9847_v5 = vpop.f32.mrb[147].mxu1  ;;  %v10462_v37 = vld [vmem:[#allocation13 + $0x240] sm:$0xff]  }
0x1eb7   : > { %v10463_v5 = vld [vmem:[#allocation13 + $0x2c0] sm:$0xff]  }
0x1ed8   : > { %v4964_v6 = vpop.permute.xlu1 %4963 }
0x1ed9   : > { %4966 = vst.msk [vmem:[#allocation2] sm:$0xff] %vm966_vm4, %v4964_v6 }
0x1ee0   : > { %v5081_v7 = vpop.permute.xlu1 %5080 }
0x1ee1   : > { %5083 = vst.msk [vmem:[#allocation2] sm:$0xff] %vm1084_vm5, %v5081_v7 }
0x1ee8   : > { %v5198_v8 = vpop.permute.xlu0 %5197 }
0x1ee9   : > { %5200 = vst.msk [vmem:[#allocation2] sm:$0xff] %vm1202_vm6, %v5198_v8 }
0x1f06   : > { %v5315_v10 = vpop.permute.xlu1 %5314 }
0x1f07   : > { %5317 = vst.msk [vmem:[#allocation2] sm:$0xff] %vm1320_vm7, %v5315_v10  ;;  %v5795_v10 = vrot.slane %v12086_v9, %v11426_v30 }
0x1f16   : > { %v5432_v11 = vpop.permute.xlu0 %5431 }
0x1f17   : > { %5434 = vst.msk [vmem:[#allocation2] sm:$0xff] %vm1438_vm8, %v5432_v11 }
0x1f1e   : > { %v5549_v13 = vpop.permute.xlu1 %5548 }
0x1f1f   : > { %5551 = vst.msk [vmem:[#allocation2] sm:$0xff] %vm1556_vm9, %v5549_v13 }
0x1f26   : > { %v5666_v14 = vpop.permute.xlu0 %5665 }
0x1f27   : > { %5668 = vst.msk [vmem:[#allocation2] sm:$0xff] %vm1674_vm10, %v5666_v14  ;;  %v5800_v14 = vrot.slane %v12086_v9, %v11449_v44 }
0x1f2e   : > { %v5669_v15 = vld [vmem:[#allocation2] sm:$0xff] }
0x1f2f   : > { %v5670_v36 = vpack.c.bf16 %v5669_v15, %v5669_v15 }
0x1f31   : > { %9865 = vmatmul.mubr.bf16.vlgmr.msra.gmra.mrb[108].mxu0 %v5670_v36 }
0x1f32   : > { %6092 = vmatprep.mubr.bf16.mxu0 %v11055_v0  ;;  %6061 = vmatpush1.bf16.msra.mxu0 %v10417_v24  ;;  %v10472_v24 = vld [vmem:[#allocation13 + $0x210] sm:$0xff]  }
0x1f33   : > { %6062 = vmatprep.subr.bf16.mxu0 %v10425_v28  ;;  %v10475_v28 = vld [vmem:[#allocation13 + $0x2d8] sm:$0xff]  }
0x1f36   : > { %6063 = vmatpush1.bf16.msra.mxu0 %v10423_v33  ;;  %v10477_v33 = vld [vmem:[#allocation13 + $0x298] sm:$0xff]  }
0x1f37   : > { %6064 = vmatprep.subr.bf16.mxu0 %v10431_v34  ;;  %v10479_v34 = vld [vmem:[#allocation13 + $0x2e0] sm:$0xff]  }
0x1f3a   : > { %6065 = vmatpush1.bf16.msra.mxu0 %v10429_v35  ;;  %v10481_v35 = vld [vmem:[#allocation13 + $0x2a0] sm:$0xff]  }
0x1f3b   : > { %6066 = vmatprep.subr.bf16.mxu0 %v10437_v39  ;;  %v10487_v39 = vld [vmem:[#allocation13 + $0x2f0] sm:$0xff]  }
0x1f3e   : > { %6067 = vmatpush1.bf16.msra.mxu0 %v10435_v40  ;;  %v10489_v40 = vld [vmem:[#allocation13 + $0x2b0] sm:$0xff]  }
0x1f3f   : > { %6068 = vmatprep.subr.bf16.mxu0 %v10443_v48  ;;  %v10491_v48 = vld [vmem:[#allocation13 + $0x2f8] sm:$0xff]  }
0x1f42   : > { %6069 = vmatpush1.bf16.msra.mxu0 %v10441_v51  ;;  %v10493_v51 = vld [vmem:[#allocation13 + $0x2b8] sm:$0xff]  }
0x1f43   : > { %6070 = vmatprep.subr.bf16.mxu0 %v10449_v54 }
0x1f46   : > { %6071 = vmatpush1.bf16.msra.mxu0 %v10447_v56 }
0x1f47   : > { %6072 = vmatprep.subr.bf16.mxu0 %v10455_v61 }
0x1f4a   : > { %6073 = vmatpush1.bf16.msra.mxu0 %v10453_v63 }
0x1f4b   : > { %6074 = vmatprep.subr.bf16.mxu0 %v10461_v3 }
0x1f4e   : > { %6075 = vmatpush1.bf16.msra.mxu0 %v10459_v4 }
0x1f4f   : > { %9344 = vmatprep.subr.bf16.mxu0 %v10463_v5 }
0x2004   : > { %v5774_v18 = vpop.f32.mrb[108].mxu0 }
0x2005   : > { %v5775_v50 = vadd.f32 %v5774_v18, %v5691_v17  ;;  %v9866_v19 = vpop.f32.mrb[109].mxu0  ;;  %v10464_v17 = vld [vmem:[#allocation13 + $0x200] sm:$0xff]  }
0x2006   : > { %v5777_v20 = vpop.f32.mrb[110].mxu0  ;;  %v10465_v18 = vld [vmem:[#allocation13 + $0x280] sm:$0xff]   ;;  %v10466_v19 = vld [vmem:[#allocation13 + $0x248] sm:$0xff]  }
0x2007   : > { %v5780_v21 = vadd.f32 %v5775_v50, %v11895_v58  ;;  %v9867_v60 = vpop.f32.mrb[111].mxu0  ;;  %v10426_v58 = vld [vmem:[#allocation10 + $0x240] ss:$16 sps:$4 sm:$0xff]   ;;  %v10467_v20 = vld [vmem:[#allocation13 + $0x2c8] sm:$0xff]  }
0x2008   : > { %6024 = vmatpush1.bf16.msra.mxu1 %v10426_v58  ;;  %v10469_v60 = vld [vmem:[#allocation13 + $0x288] sm:$0xff]   ;;  %v10480_v58 = vld [vmem:[#allocation13 + $0x220] sm:$0xff]  }
0x2009   : > { %5781 = vadd.xlane.f32.xlu1 %v5780_v21  ;;  %6025 = vmatprep.subr.bf16.mxu1 %v10434_v45  ;;  %v10486_v45 = vld [vmem:[#allocation13 + $0x270] sm:$0xff]  }
0x200c   : > { %6026 = vmatpush1.bf16.msra.mxu1 %v10432_v46  ;;  %v10488_v46 = vld [vmem:[#allocation13 + $0x230] sm:$0xff]  }
0x200d   : > { %6027 = vmatprep.subr.bf16.mxu1 %v10440_v47  ;;  %v10490_v47 = vld [vmem:[#allocation13 + $0x278] sm:$0xff]  }
0x2010   : > { %6028 = vmatpush1.bf16.msra.mxu1 %v10438_v49  ;;  %v10492_v49 = vld [vmem:[#allocation13 + $0x238] sm:$0xff]  }
0x2011   : > { %6029 = vmatprep.subr.bf16.mxu1 %v10446_v52  ;;  %v5837_v52 = vld [vmem:[#allocation11 + $0x8] sm:$0xf] }
0x2012   : > { %v5842_v54 = vrot.slane %v5837_v52, %v11429_v32  ;;  %v5846_v56 = vrot.slane %v5837_v52, %v11426_v30 }
0x2014   : > { %6030 = vmatpush1.bf16.msra.mxu1 %v10444_v16  ;;  %v5850_v16 = vrot.slane %v5837_v52, %v11449_v44 }
0x2015   : > { %6031 = vmatprep.subr.bf16.mxu1 %v10452_v57  ;;  %v5854_v57 = vrot.slane %v5837_v52, %v11636_v12  ;;  %v10509_v52 = vld [vmem:[#allocation5 + $0x290] ss:$12 sps:$4 sm:$0xff]  }
0x2018   : > { %6032 = vmatpush1.bf16.msra.mxu1 %v10450_v62 }
0x2019   : > { %6033 = vmatprep.subr.bf16.mxu1 %v10458_v2 }
0x201c   : > { %6034 = vmatpush1.bf16.msra.mxu1 %v10456_v53 }
0x201d   : > { %9322 = vmatprep.subr.bf16.mxu1 %v10462_v37 }
0x2096   : > { %v5782_v38 = vpop.xlane.xlu1 %5781 }
0x2097   : > { %v5783_v29 = vmul.f32 0.0078125, %v5782_v38  ;;  %v10482_v38 = vld [vmem:[#allocation13 + $0x268] sm:$0xff]  }
0x2099   : > { %v5784_v41 = vsub.f32 %v5780_v21, %v5783_v29  ;;  %v10468_v21 = vld [vmem:[#allocation13 + $0x208] sm:$0xff]  }
0x209a   : > { %v10483_v29 = vld [vmem:[#allocation13 + $0x2e8] sm:$0xff]  }
0x209b   : > { %v5785_v43 = vmul.f32 %v5784_v41, %v5784_v41 }
0x209d   : > { %5786 = vadd.xlane.f32.xlu0 %v5785_v43  ;;  %v10485_v43 = vld [vmem:[#allocation13 + $0x2a8] sm:$0xff]  }
0x212a   : > { %v5787_v6 = vpop.xlane.xlu0 %5786 }
0x212b   : > { %v5788_v7 = vmul.f32 0.0078125, %v5787_v6 }
0x212d   : > { %v5789_v8 = vadd.f32 1e-06, %v5788_v7 }
0x212f   : > { %10718 = vrsqrt.f32 %v5789_v8 }
0x2139   : > { %v10719_v11 = vpop.eup %10718 }
0x213a   : > { %v5791_v13 = vmul.f32 %v10719_v11, %v5784_v41  ;;  %v10484_v41 = vld [vmem:[#allocation13 + $0x228] sm:$0xff]  }
0x213c   : > { %v5796_v15 = vmul.f32 %v5795_v10, %v5791_v13 }
0x213e   : > { %v12095_v36 = vadd.f32 %v5800_v14, %v5796_v15 }
0x2140   : > { %v5802_v50 = vpack.c.bf16 %v12095_v36, %v12095_v36 }
0x2142   : > { %6052 = vmatmul.mubr.bf16.vlgmr.msra.gmra.mrb[148].mxu1 %v5802_v50  ;;  %6093 = vmatmul.mubr.bf16.vlgmr.msra.gmra.mrb[112].mxu0 %v5802_v50 }
0x2143   : > { %9323 = vmatpush3.bf16.msra.mxu1 %v10464_v17  ;;  %9345 = vmatpush3.bf16.msra.mxu0 %v10465_v18 }
0x2144   : > { %9324 = vmatprep.subr.bf16.mxu1 %v10466_v19  ;;  %9346 = vmatprep.subr.bf16.mxu0 %v10467_v20 }
0x2147   : > { %9325 = vmatpush3.bf16.msra.mxu1 %v10468_v21  ;;  %9347 = vmatpush3.bf16.msra.mxu0 %v10469_v60  ;;  %v6177_v21 = vrot.slane %v12086_v9, %v11646_v42 }
0x2148   : > { %9326 = vmatprep.subr.bf16.mxu1 %v10470_v22  ;;  %9348 = vmatprep.subr.bf16.mxu0 %v10471_v23 }
0x214b   : > { %9327 = vmatpush3.bf16.msra.mxu1 %v10472_v24  ;;  %9349 = vmatpush3.bf16.msra.mxu0 %v10473_v25 }
0x214c   : > { %9328 = vmatprep.subr.bf16.mxu1 %v10474_v26  ;;  %9350 = vmatprep.subr.bf16.mxu0 %v10475_v28 }
0x214f   : > { %9329 = vmatpush3.bf16.msra.mxu1 %v10476_v31  ;;  %9351 = vmatpush3.bf16.msra.mxu0 %v10477_v33 }
0x2150   : > { %9330 = vmatprep.subr.bf16.mxu1 %v10478_v59  ;;  %9352 = vmatprep.subr.bf16.mxu0 %v10479_v34 }
0x2153   : > { %9331 = vmatpush3.bf16.msra.mxu1 %v10480_v58  ;;  %9353 = vmatpush3.bf16.msra.mxu0 %v10481_v35  ;;  %v10494_v58 = vld [vmem:[#allocation5 + $0x240] ss:$12 sps:$4 sm:$0xff]   ;;  %v10496_v35 = vld [vmem:[#allocation5 + $0x244] ss:$12 sps:$4 sm:$0xff]  }
0x2154   : > { %9332 = vmatprep.subr.bf16.mxu1 %v10482_v38  ;;  %9354 = vmatprep.subr.bf16.mxu0 %v10483_v29  ;;  %v10497_v38 = vld [vmem:[#allocation5 + $0x248] ss:$12 sps:$4 sm:$0xff]  }
0x2155   : > { %v10500_v29 = vld [vmem:[#allocation5 + $0x25c] ss:$12 sps:$4 sm:$0xff]  }
0x2157   : > { %9333 = vmatpush3.bf16.msra.mxu1 %v10484_v41  ;;  %9355 = vmatpush3.bf16.msra.mxu0 %v10485_v43  ;;  %v10501_v41 = vld [vmem:[#allocation5 + $0x260] ss:$12 sps:$4 sm:$0xff]   ;;  %v10498_v43 = vld [vmem:[#allocation5 + $0x258] ss:$12 sps:$4 sm:$0xff]  }
0x2158   : > { %9334 = vmatprep.subr.bf16.mxu1 %v10486_v45  ;;  %9356 = vmatprep.subr.bf16.mxu0 %v10487_v39  ;;  %v10504_v45 = vld [vmem:[#allocation5 + $0x274] ss:$12 sps:$4 sm:$0xff]   ;;  %v10502_v39 = vld [vmem:[#allocation5 + $0x270] ss:$12 sps:$4 sm:$0xff]  }
0x215b   : > { %9335 = vmatpush3.bf16.msra.mxu1 %v10488_v46  ;;  %9357 = vmatpush3.bf16.msra.mxu0 %v10489_v40 }
0x215c   : > { %9336 = vmatprep.subr.bf16.mxu1 %v10490_v47  ;;  %9358 = vmatprep.subr.bf16.mxu0 %v10491_v48  ;;  %v10505_v48 = vld [vmem:[#allocation5 + $0x278] ss:$12 sps:$4 sm:$0xff]  }
0x215f   : > { %9337 = vmatpush3.bf16.msra.mxu1 %v10492_v49  ;;  %9359 = vmatpush3.bf16.msra.mxu0 %v10493_v51  ;;  %v10508_v49 = vld [vmem:[#allocation5 + $0x28c] ss:$12 sps:$4 sm:$0xff]   ;;  %v10506_v51 = vld [vmem:[#allocation5 + $0x288] ss:$12 sps:$4 sm:$0xff]  }
0x2160   : > { %9868 = vmatprep.subr.bf16.mxu0 %v11056_v1  ;;  %6654 = vmatprep.subr.bf16.mxu1 %v10496_v35 }
0x2215   : > { %v6053_v61 = vpop.f32.mrb[148].mxu1  ;;  %v6094_v62 = vpop.f32.mrb[112].mxu0 }
0x2216   : > { %v6054_v63 = vadd.f32 %v6053_v61, %v5842_v54  ;;  %v6095_v2 = vadd.f32 %v6094_v62, %v5850_v16  ;;  %v6055_v3 = vpop.f32.mrb[149].mxu1  ;;  %v6096_v53 = vpop.f32.mrb[113].mxu0  ;;  %v10512_v54 = vld [vmem:[#allocation5 + $0x2a4] ss:$12 sps:$4 sm:$0xff]   ;;  %v10510_v16 = vld [vmem:[#allocation5 + $0x2a0] ss:$12 sps:$4 sm:$0xff]  }
0x2217   : > { %v6056_v4 = vadd.f32 %v6055_v3, %v5846_v56  ;;  %v6097_v37 = vadd.f32 %v6096_v53, %v5854_v57  ;;  %v6057_v5 = vpop.f32.mrb[150].mxu1  ;;  %v6098_v6 = vpop.f32.mrb[114].mxu0  ;;  %v10513_v56 = vld [vmem:[#allocation5 + $0x2a8] ss:$12 sps:$4 sm:$0xff]   ;;  %v10514_v61 = vld [vmem:[#allocation5 + $0x2b8] ss:$12 sps:$4 sm:$0xff]  }
0x2218   : > { %v6101_v7 = vmax.f32 %v6054_v63, 0.0  ;;  %v6103_v8 = vmax.f32 %v6095_v2, 0.0  ;;  %v6058_v10 = vpop.f32.mrb[151].mxu1  ;;  %v6099_v11 = vpop.f32.mrb[115].mxu0  ;;  %v10516_v57 = vld [vmem:[#allocation5 + $0x2bc] ss:$12 sps:$4 sm:$0xff]  }
0x2219   : > { %v6102_v13 = vmax.f32 %v6056_v4, 0.0  ;;  %v6104_v14 = vmax.f32 %v6097_v37, 0.0  ;;  %v10517_v62 = vld [vmem:[#allocation5 + $0x2c0] ss:$12 sps:$4 sm:$0xff]   ;;  %v10518_v2 = vld [vmem:[#allocation5 + $0x2d0] ss:$12 sps:$4 sm:$0xff]  }
0x221a   : > { %v6105_v18 = vpack.c.bf16 %v6101_v7, %v6101_v7  ;;  %v6107_v50 = vpack.c.bf16 %v6103_v8, %v6103_v8  ;;  %v10520_v63 = vld [vmem:[#allocation5 + $0x2d4] ss:$12 sps:$4 sm:$0xff]   ;;  %v10521_v3 = vld [vmem:[#allocation5 + $0x2d8] ss:$12 sps:$4 sm:$0xff]   ;;  %v10525_v37 = vld [vmem:[#allocation5 + $0x2f0] ss:$12 sps:$4 sm:$0xff]   ;;  %v6465_v8 = vrot.slane %v12086_v9, %v11636_v12 }
0x221b   : > { %v6106_v15 = vpack.c.bf16 %v6102_v13, %v6102_v13  ;;  %v6108_v17 = vpack.c.bf16 %v6104_v14, %v6104_v14  ;;  %v10524_v53 = vld [vmem:[#allocation5 + $0x2ec] ss:$12 sps:$4 sm:$0xff]   ;;  %v10522_v4 = vld [vmem:[#allocation5 + $0x2e8] ss:$12 sps:$4 sm:$0xff]   ;;  %v6470_v13 = vrot.slane %v12086_v9, %v11661_v27 }
0x221d   : > { %6402 = vmatprep.mubr.bf16.mxu1 %v6106_v15  ;;  %6442 = vmatprep.mubr.bf16.mxu0 %v6108_v17 }
0x221e   : > { %6403 = vmatmul.mubr.bf16.vlgmr.msra.gmra.mrb[152].mxu1 %v6105_v18  ;;  %6443 = vmatmul.mubr.bf16.vlgmr.msra.gmra.mrb[116].mxu0 %v6107_v50  ;;  %v6509_v18 = vld [vmem:[#allocation7 + $0x9] sm:$0x7] }
0x221f   : > { %6686 = vmatprep.mubr.bf16.mxu1 %v11055_v0  ;;  %9884 = vmatprep.mubr.msk.bf16.mxu0 %vm11057_vm0, %v11056_v1  ;;  %v6518_v50 = vrot.slane %v6509_v18, %v11426_v30 }
0x2220   : > { %9869 = vmatpush3.bf16.msra.mxu0 %v10497_v38  ;;  %6655 = vmatpush1.bf16.msra.mxu1 %v10494_v58 }
0x2221   : > { %9870 = vmatprep.subr.bf16.mxu0 %v11056_v1  ;;  %6656 = vmatprep.subr.bf16.mxu1 %v10500_v29 }
0x2224   : > { %9871 = vmatpush3.bf16.msra.mxu0 %v10501_v41  ;;  %6657 = vmatpush1.bf16.msra.mxu1 %v10498_v43 }
0x2225   : > { %9872 = vmatprep.subr.bf16.mxu0 %v11056_v1  ;;  %6658 = vmatprep.subr.bf16.mxu1 %v10504_v45 }
0x2228   : > { %6659 = vmatpush1.bf16.msra.mxu1 %v10502_v39  ;;  %9873 = vmatpush3.bf16.msra.mxu0 %v10505_v48 }
0x2229   : > { %9874 = vmatprep.subr.bf16.mxu0 %v11056_v1  ;;  %6660 = vmatprep.subr.bf16.mxu1 %v10508_v49 }
0x222c   : > { %6661 = vmatpush1.bf16.msra.mxu1 %v10506_v51  ;;  %9875 = vmatpush3.bf16.msra.mxu0 %v10509_v52 }
0x222d   : > { %9876 = vmatprep.subr.bf16.mxu0 %v11056_v1  ;;  %6662 = vmatprep.subr.bf16.mxu1 %v10512_v54 }
0x2230   : > { %6663 = vmatpush1.bf16.msra.mxu1 %v10510_v16  ;;  %9877 = vmatpush3.bf16.msra.mxu0 %v10513_v56 }
0x2231   : > { %9878 = vmatprep.subr.bf16.mxu0 %v11056_v1  ;;  %6664 = vmatprep.subr.bf16.mxu1 %v10516_v57 }
0x2234   : > { %6665 = vmatpush1.bf16.msra.mxu1 %v10514_v61  ;;  %9879 = vmatpush3.bf16.msra.mxu0 %v10517_v62 }
0x2235   : > { %9880 = vmatprep.subr.bf16.mxu0 %v11056_v1  ;;  %6666 = vmatprep.subr.bf16.mxu1 %v10520_v63 }
0x2238   : > { %6667 = vmatpush1.bf16.msra.mxu1 %v10518_v2  ;;  %9881 = vmatpush3.bf16.msra.mxu0 %v10521_v3 }
0x2239   : > { %6668 = vmatprep.subr.bf16.mxu1 %v10524_v53  ;;  %9882 = vmatprep.subr.bf16.mxu0 %v11056_v1 }
0x223c   : > { %6669 = vmatpush1.bf16.msra.mxu1 %v10522_v4  ;;  %9883 = vmatpush3.bf16.msra.mxu0 %v10525_v37 }
0x223d   : > { %9888 = vmatprep.subr.bf16.mxu1 %v11056_v1  ;;  %9912 = vmatprep.subr.bf16.mxu0 %v11056_v1 }
0x22f1   : > { %v9338_v19 = vpop.f32.mrb[152].mxu1  ;;  %v9360_v20 = vpop.f32.mrb[116].mxu0 }
0x22f2   : > { %v9339_v60 = vpop.f32.mrb[153].mxu1  ;;  %v9361_v22 = vpop.f32.mrb[117].mxu0 }
0x22f3   : > { %v9340_v23 = vadd.f32 %v9339_v60, %v9338_v19  ;;  %v9362_v24 = vadd.f32 %v9361_v22, %v9360_v20  ;;  %v9341_v25 = vpop.f32.mrb[154].mxu1  ;;  %v9363_v26 = vpop.f32.mrb[118].mxu0  ;;  %v6522_v60 = vrot.slane %v6509_v18, %v11449_v44 }
0x22f4   : > { %v9342_v28 = vpop.f32.mrb[155].mxu1  ;;  %v9364_v31 = vpop.f32.mrb[119].mxu0 }
0x22f5   : > { %v6405_v33 = vadd.f32 %v9340_v23, %v6177_v21  ;;  %v6514_v28 = vrot.slane %v6509_v18, %v11429_v32 }
0x22f7   : > { %v6445_v59 = vadd.f32 %v9362_v24, %v6405_v33 }
0x22f9   : > { %v6450_v34 = vadd.f32 %v6445_v59, %v12095_v36 }
0x22fb   : > { %6451 = vadd.xlane.f32.xlu0 %v6450_v34 }
0x2388   : > { %v6452_v36 = vpop.xlane.xlu0 %6451 }
0x2389   : > { %v6453_v46 = vmul.f32 0.0078125, %v6452_v36 }
0x238b   : > { %v6454_v40 = vsub.f32 %v6450_v34, %v6453_v46 }
0x238d   : > { %v6455_v47 = vmul.f32 %v6454_v40, %v6454_v40 }
0x238f   : > { %6456 = vadd.xlane.f32.xlu1 %v6455_v47 }
0x241c   : > { %v6457_v5 = vpop.xlane.xlu1 %6456 }
0x241d   : > { %v6458_v6 = vmul.f32 0.0078125, %v6457_v5 }
0x241f   : > { %v6459_v7 = vadd.f32 1e-06, %v6458_v6 }
0x2421   : > { %10720 = vrsqrt.f32 %v6459_v7 }
0x242b   : > { %v10721_v10 = vpop.eup %10720 }
0x242c   : > { %v6461_v11 = vmul.f32 %v10721_v10, %v6454_v40 }
0x242e   : > { %v6466_v14 = vmul.f32 %v6465_v8, %v6461_v11 }
0x2430   : > { %v12123_v15 = vadd.f32 %v6470_v13, %v6466_v14 }
0x2432   : > { %v6474_v17 = vpack.c.bf16 %v12123_v15, %v12123_v15 }
0x2434   : > { %6687 = vmatmul.mubr.bf16.vlgmr.msra.gmra.mrb[156].mxu1 %v6474_v17  ;;  %9885 = vmatmul.mubr.bf16.vlgmr.msra.gmra.mrb[120].mxu0 %v6474_v17 }
0x2435   : > { %9890 = vmatprep.mubr.msk.bf16.mxu1 %vm11057_vm0, %v11056_v1  ;;  %9914 = vmatprep.mubr.msk.bf16.mxu0 %vm11057_vm0, %v11056_v1 }
0x2507   : > { %v6688_v19 = vpop.f32.mrb[156].mxu1  ;;  %v6729_v20 = vpop.f32.mrb[120].mxu0 }
0x2508   : > { %v6690_v9 = vpop.f32.mrb[157].mxu1  ;;  %v9886_v21 = vpop.f32.mrb[121].mxu0  ;;  %v6730_v33 = vadd.f32 %v6729_v20, %v6522_v60  ;;  %v6689_v34 = vadd.f32 %v6688_v19, %v6514_v28 }
0x2509   : > { %v6691_v22 = vadd.f32 %v6690_v9, %v6518_v50  ;;  %v6692_v23 = vpop.f32.mrb[158].mxu1  ;;  %v6732_v24 = vpop.f32.mrb[122].mxu0 }
0x250a   : > { %v6693_v25 = vpop.f32.mrb[159].mxu1  ;;  %v9887_v26 = vpop.f32.mrb[123].mxu0  ;;  %v12136_v58 = vpack.c.bf16 %v6730_v33, %v6730_v33  ;;  %v6735_v35 = vpack.c.bf16 %v6689_v34, %v6689_v34 }
0x250b   : > { %v6736_v31 = vpack.c.bf16 %v6691_v22, %v6691_v22 }
0x250c   : > { %v6802_v38 = vsel %vm802_vm2, %v12136_v58, 0 }
0x250d   : > { %v6742_v59 = vsel %vm731_vm1, %v6736_v31, 0 }
0x250e   : > { %9889 = vmatpush3.bf16.xpose.msra.mxu1 %v6742_v59 }
0x250f   : > { %9894 = vmatprep.subr.bf16.mxu1 %v11056_v1 }
0x2515   : > { %9891 = vmatmul.mubr.msk.bf16.vlgmr.msra.gmra.mrb[160].mxu1 %vm731_vm1, %v6735_v35 }
0x2516   : > { %9895 = vmatpush3.bf16.msra.mxu1 %v6802_v38  ;;  %9896 = vmatprep.mubr.msk.bf16.mxu1 %vm11057_vm0, %v11056_v1 }
0x2517   : > { %9900 = vmatprep.subr.bf16.mxu1 %v11056_v1 }
0x25e8   : > { %v6778_v29 = vpop.f32.mrb[160].mxu1 }
0x25e9   : > { %v6784_v41 = vmul.f32 0.25, %v6778_v29  ;;  %v9892_v43 = vpop.f32.mrb[161].mxu1 }
0x25ea   : > { %v6781_v45 = vpop.f32.mrb[162].mxu1 }
0x25eb   : > { %v6785_v39 = vadd.f32 %v6784_v41, %v11459_v55  ;;  %v9893_v36 = vpop.f32.mrb[163].mxu1 }
0x25ed   : > { %v6786_v46 = vsel %vm786_vm3, %v6785_v39, -inf }
0x25ee   : > { %6787 = vmax.xlane.f32.xlu0 %v6786_v46 }
0x2604   : > { %6849 = vrot.lane.b32.xlu0 %v6736_v31, %s11058_s30 }
0x2608   : > { %6965 = vrot.lane.b32.xlu0 %v6735_v35, %s11059_s12 }
0x260c   : > { %7082 = vrot.lane.b32.xlu0 %v6735_v35, %s11060_s14 }
0x2610   : > { %7199 = vrot.lane.b32.xlu0 %v6735_v35, %s11061_s21 }
0x2614   : > { %7316 = vrot.lane.b32.xlu0 %v6735_v35, %s11062_s24 }
0x2618   : > { %7433 = vrot.lane.b32.xlu0 %v6735_v35, %s11063_s27 }
0x261c   : > { %7550 = vrot.lane.b32.xlu0 %v6735_v35, %s11064_s23 }
0x267b   : > { %v6788_v40 = vpop.xlane.xlu0 %6787 }
0x267c   : > { %v6789_v47 = vsub.f32 %v6785_v39, %v6788_v40 }
0x267e   : > { %v6790_v48 = vmul.f32 1.442695, %v6789_v47 }
0x267f   : > { %v6850_v57 = vpop.permute.xlu0 %6849 }
0x2680   : > { %10722 = vpow2.f32 %v6790_v48  ;;  %v6855_v3 = vsel %vm731_vm1, %v6850_v57, 0 }
0x2683   : > { %v6966_v53 = vpop.permute.xlu0 %6965 }
0x2687   : > { %v7083_v5 = vpop.permute.xlu0 %7082 }
0x268a   : > { %v10723_v49 = vpop.eup %10722 }
0x268b   : > { %v6792_v51 = vsel %vm786_vm3, %v10723_v49, 0.0  ;;  %v7200_v8 = vpop.permute.xlu0 %7199 }
0x268c   : > { %6793 = vadd.xlane.f32.xlu1 %v6792_v51 }
0x268f   : > { %v7317_v13 = vpop.permute.xlu0 %7316 }
0x2693   : > { %v7434_v18 = vpop.permute.xlu0 %7433 }
0x2697   : > { %v7551_v19 = vpop.permute.xlu0 %7550 }
0x269d   : > { %6846 = vrot.lane.b32.xlu1 %v6735_v35, %s11058_s30 }
0x26a1   : > { %6967 = vrot.lane.b32.xlu1 %v6736_v31, %s11059_s12 }
0x26a5   : > { %7084 = vrot.lane.b32.xlu1 %v6736_v31, %s11060_s14 }
0x26a9   : > { %7201 = vrot.lane.b32.xlu1 %v6736_v31, %s11061_s21 }
0x26ad   : > { %7318 = vrot.lane.b32.xlu1 %v6736_v31, %s11062_s24 }
0x26b1   : > { %7435 = vrot.lane.b32.xlu1 %v6736_v31, %s11063_s27 }
0x26b5   : > { %7552 = vrot.lane.b32.xlu1 %v6736_v31, %s11064_s23 }
0x2719   : > { %v6794_v52 = vpop.xlane.xlu1 %6793 }
0x271a   : > { %10724 = vrcp.f32 %v6794_v52 }
0x271d   : > { %v6847_v54 = vpop.permute.xlu1 %6846 }
0x2721   : > { %v6968_v16 = vpop.permute.xlu1 %6967 }
0x2722   : > { %v6973_v56 = vsel %vm731_vm1, %v6968_v16, 0 }
0x2723   : > { %9913 = vmatpush3.bf16.xpose.msra.mxu0 %v6973_v56 }
0x2724   : > { %v10725_v61 = vpop.eup %10724  ;;  %9924 = vmatprep.subr.bf16.mxu0 %v11056_v1 }
0x2725   : > { %v6796_v62 = vmul.f32 %v10725_v61, %v10723_v49  ;;  %v7085_v63 = vpop.permute.xlu1 %7084 }
0x2726   : > { %v7090_v4 = vsel %vm731_vm1, %v7085_v63, 0 }
0x2727   : > { %v6797_v2 = vpack.c.bf16 %v6796_v62, %v6796_v62 }
0x2729   : > { %9897 = vmatmul.mubr.msk.bf16.vlgmr.msra.gmra.mrb[164].mxu1 %vm786_vm3, %v6797_v2  ;;  %v7202_v37 = vpop.permute.xlu1 %7201 }
0x272a   : > { %9901 = vmatpush3.bf16.xpose.msra.mxu1 %v6855_v3  ;;  %9915 = vmatmul.mubr.msk.bf16.vlgmr.msra.gmra.mrb[124].mxu0 %vm731_vm1, %v6966_v53  ;;  %v7207_v6 = vsel %vm731_vm1, %v7202_v37, 0 }
0x272b   : > { %9925 = vmatpush3.bf16.xpose.msra.mxu0 %v7090_v4  ;;  %9902 = vmatprep.mubr.msk.bf16.mxu1 %vm11057_vm0, %v11056_v1 }
0x272c   : > { %9926 = vmatprep.mubr.msk.bf16.mxu0 %vm11057_vm0, %v11056_v1  ;;  %9936 = vmatprep.subr.bf16.mxu0 %v11056_v1 }
0x272d   : > { %9906 = vmatprep.subr.bf16.mxu1 %v11056_v1  ;;  %v7319_v7 = vpop.permute.xlu1 %7318 }
0x272e   : > { %v7324_v10 = vsel %vm731_vm1, %v7319_v7, 0 }
0x2731   : > { %9903 = vmatmul.mubr.msk.bf16.vlgmr.msra.gmra.mrb[168].mxu1 %vm731_vm1, %v6847_v54  ;;  %v7436_v11 = vpop.permute.xlu1 %7435 }
0x2732   : > { %9927 = vmatmul.mubr.msk.bf16.vlgmr.msra.gmra.mrb[128].mxu0 %vm731_vm1, %v7083_v5  ;;  %9908 = vmatprep.mubr.msk.bf16.mxu1 %vm11057_vm0, %v11056_v1  ;;  %v7441_v14 = vsel %vm731_vm1, %v7436_v11, 0 }
0x2733   : > { %9937 = vmatpush3.bf16.xpose.msra.mxu0 %v7207_v6  ;;  %9938 = vmatprep.mubr.msk.bf16.mxu0 %vm11057_vm0, %v11056_v1 }
0x2734   : > { %9948 = vmatprep.subr.bf16.mxu0 %v11056_v1 }
0x2735   : > { %v7553_v17 = vpop.permute.xlu1 %7552 }
0x2736   : > { %v7558_v50 = vsel %vm731_vm1, %v7553_v17, 0 }
0x273a   : > { %9939 = vmatmul.mubr.msk.bf16.vlgmr.msra.gmra.mrb[132].mxu0 %vm731_vm1, %v7200_v8 }
0x273b   : > { %9949 = vmatpush3.bf16.xpose.msra.mxu0 %v7324_v10  ;;  %9950 = vmatprep.mubr.msk.bf16.mxu0 %vm11057_vm0, %v11056_v1 }
0x273c   : > { %9960 = vmatprep.subr.bf16.mxu0 %v11056_v1 }
0x2742   : > { %9951 = vmatmul.mubr.msk.bf16.vlgmr.msra.gmra.mrb[136].mxu0 %vm731_vm1, %v7317_v13 }
0x2743   : > { %9961 = vmatpush3.bf16.xpose.msra.mxu0 %v7441_v14  ;;  %9962 = vmatprep.mubr.msk.bf16.mxu0 %vm11057_vm0, %v11056_v1 }
0x2744   : > { %9972 = vmatprep.subr.bf16.mxu0 %v11056_v1 }
0x274a   : > { %9963 = vmatmul.mubr.msk.bf16.vlgmr.msra.gmra.mrb[140].mxu0 %vm731_vm1, %v7434_v18 }
0x274b   : > { %9973 = vmatpush3.bf16.xpose.msra.mxu0 %v7558_v50  ;;  %9974 = vmatprep.mubr.msk.bf16.mxu0 %vm11057_vm0, %v11056_v1 }
0x274c   : > { %9984 = vmatprep.subr.bf16.mxu0 %v11056_v1 }
0x2752   : > { %9975 = vmatmul.mubr.msk.bf16.vlgmr.msra.gmra.mrb[144].mxu0 %vm731_vm1, %v7551_v19 }
0x2753   : > { %10000 = vmatprep.mubr.msk.bf16.mxu0 %vm11057_vm0, %v11056_v1 }
0x27fc   : > { %v6838_v20 = vpop.f32.mrb[164].mxu1 }
0x27fd   : > { %6844 = vst.msk [vmem:[#allocation2] sm:$0xff] %vm731_vm1, %v6838_v20  ;;  %v9898_v9 = vpop.f32.mrb[165].mxu1  ;;  %v7009_v21 = vpop.f32.mrb[124].mxu0 }
0x27fe   : > { %v7015_v60 = vmul.f32 0.25, %v7009_v21  ;;  %v6841_v22 = vpop.f32.mrb[166].mxu1  ;;  %v9916_v23 = vpop.f32.mrb[125].mxu0 }
0x27ff   : > { %v9899_v24 = vpop.f32.mrb[167].mxu1  ;;  %v7012_v25 = vpop.f32.mrb[126].mxu0 }
0x2800   : > { %v7016_v26 = vadd.f32 %v7015_v60, %v11459_v55  ;;  %v9917_v28 = vpop.f32.mrb[127].mxu0 }
0x2802   : > { %v7017_v31 = vsel %vm786_vm3, %v7016_v26, -inf }
0x2803   : > { %7018 = vmax.xlane.f32.xlu0 %v7017_v31 }
0x2804   : > { %v6891_v33 = vpop.f32.mrb[168].mxu1 }
0x2805   : > { %v6897_v59 = vmul.f32 0.25, %v6891_v33  ;;  %v9904_v34 = vpop.f32.mrb[169].mxu1  ;;  %v7126_v35 = vpop.f32.mrb[128].mxu0 }
0x2806   : > { %v7132_v38 = vmul.f32 0.25, %v7126_v35  ;;  %v6894_v29 = vpop.f32.mrb[170].mxu1  ;;  %v9928_v41 = vpop.f32.mrb[129].mxu0 }
0x2807   : > { %v6898_v43 = vadd.f32 %v6897_v59, %v11459_v55  ;;  %v9905_v45 = vpop.f32.mrb[171].mxu1  ;;  %v7129_v39 = vpop.f32.mrb[130].mxu0 }
0x2808   : > { %v7133_v36 = vadd.f32 %v7132_v38, %v11459_v55  ;;  %v9929_v46 = vpop.f32.mrb[131].mxu0 }
0x2809   : > { %v6899_v40 = vsel %vm786_vm3, %v6898_v43, -inf }
0x280a   : > { %6900 = vmax.xlane.f32.xlu1 %v6899_v40  ;;  %v7134_v47 = vsel %vm786_vm3, %v7133_v36, -inf }
0x280b   : > { %7135 = vmax.xlane.f32.xlu0 %v7134_v47 }
0x280d   : > { %v7243_v48 = vpop.f32.mrb[132].mxu0 }
0x280e   : > { %v7249_v49 = vmul.f32 0.25, %v7243_v48  ;;  %v9940_v51 = vpop.f32.mrb[133].mxu0 }
0x280f   : > { %v7246_v52 = vpop.f32.mrb[134].mxu0 }
0x2810   : > { %v7250_v54 = vadd.f32 %v7249_v49, %v11459_v55  ;;  %v9941_v16 = vpop.f32.mrb[135].mxu0 }
0x2812   : > { %v7251_v56 = vsel %vm786_vm3, %v7250_v54, -inf }
0x2813   : > { %7252 = vmax.xlane.f32.xlu1 %v7251_v56 }
0x2815   : > { %v7360_v57 = vpop.f32.mrb[136].mxu0 }
0x2816   : > { %v7366_v61 = vmul.f32 0.25, %v7360_v57  ;;  %v9952_v62 = vpop.f32.mrb[137].mxu0 }
0x2817   : > { %v7363_v63 = vpop.f32.mrb[138].mxu0 }
0x2818   : > { %v7367_v2 = vadd.f32 %v7366_v61, %v11459_v55  ;;  %v9953_v3 = vpop.f32.mrb[139].mxu0 }
0x281a   : > { %v7368_v53 = vsel %vm786_vm3, %v7367_v2, -inf }
0x281b   : > { %7369 = vmax.xlane.f32.xlu0 %v7368_v53 }
0x281d   : > { %v7477_v4 = vpop.f32.mrb[140].mxu0 }
0x281e   : > { %v7483_v37 = vmul.f32 0.25, %v7477_v4  ;;  %v9964_v5 = vpop.f32.mrb[141].mxu0 }
0x281f   : > { %v7480_v6 = vpop.f32.mrb[142].mxu0 }
0x2820   : > { %v7484_v7 = vadd.f32 %v7483_v37, %v11459_v55  ;;  %v9965_v8 = vpop.f32.mrb[143].mxu0 }
0x2822   : > { %v7485_v10 = vsel %vm786_vm3, %v7484_v7, -inf }
0x2823   : > { %7486 = vmax.xlane.f32.xlu1 %v7485_v10 }
0x2825   : > { %v7594_v11 = vpop.f32.mrb[144].mxu0 }
0x2826   : > { %v7600_v13 = vmul.f32 0.25, %v7594_v11  ;;  %v9976_v14 = vpop.f32.mrb[145].mxu0 }
0x2827   : > { %v7597_v17 = vpop.f32.mrb[146].mxu0 }
0x2828   : > { %v7601_v18 = vadd.f32 %v7600_v13, %v11459_v55  ;;  %v9977_v50 = vpop.f32.mrb[147].mxu0 }
0x282a   : > { %v7602_v19 = vsel %vm786_vm3, %v7601_v18, -inf }
0x282b   : > { %7603 = vmax.xlane.f32.xlu0 %v7602_v19 }
0x2890   : > { %v7019_v20 = vpop.xlane.xlu0 %7018 }
0x2891   : > { %v7020_v9 = vsub.f32 %v7016_v26, %v7019_v20 }
0x2893   : > { %v7021_v21 = vmul.f32 1.442695, %v7020_v9 }
0x2895   : > { %10726 = vpow2.f32 %v7021_v21 }
0x2897   : > { %v6901_v60 = vpop.xlane.xlu1 %6900 }
0x2898   : > { %v6902_v22 = vsub.f32 %v6898_v43, %v6901_v60  ;;  %v7136_v23 = vpop.xlane.xlu0 %7135 }
0x2899   : > { %v7137_v24 = vsub.f32 %v7133_v36, %v7136_v23 }
0x289a   : > { %v6903_v25 = vmul.f32 1.442695, %v6902_v22 }
0x289b   : > { %v7138_v28 = vmul.f32 1.442695, %v7137_v24 }
0x289d   : > { %10728 = vpow2.f32 %v7138_v28 }
0x289e   : > { %10730 = vpow2.f32 %v6903_v25 }
0x289f   : > { %v12214_v31 = vpop.eup %10726 }
0x28a0   : > { %v7253_v33 = vpop.xlane.xlu1 %7252  ;;  %v7023_v55 = vsel %vm786_vm3, %v12214_v31, 0.0 }
0x28a1   : > { %v7254_v59 = vsub.f32 %v7250_v54, %v7253_v33  ;;  %7024 = vadd.xlane.f32.xlu0 %v7023_v55 }
0x28a3   : > { %v7255_v34 = vmul.f32 1.442695, %v7254_v59 }
0x28a5   : > { %10732 = vpow2.f32 %v7255_v34 }
0x28a7   : > { %v12218_v26 = vpop.eup %10728 }
0x28a8   : > { %v7370_v35 = vpop.xlane.xlu0 %7369  ;;  %v7140_v38 = vsel %vm786_vm3, %v12218_v26, 0.0  ;;  %v10731_v29 = vpop.eup %10730 }
0x28a9   : > { %v7371_v41 = vsub.f32 %v7367_v2, %v7370_v35  ;;  %7141 = vadd.xlane.f32.xlu1 %v7140_v38  ;;  %v6905_v45 = vsel %vm786_vm3, %v10731_v29, 0.0 }
0x28ab   : > { %v7372_v43 = vmul.f32 1.442695, %v7371_v41 }
0x28ad   : > { %10734 = vpow2.f32 %v7372_v43  ;;  %6906 = vadd.xlane.f32.xlu1 %v6905_v45 }
0x28af   : > { %v12223_v39 = vpop.eup %10732 }
0x28b0   : > { %v7257_v36 = vsel %vm786_vm3, %v12223_v39, 0.0  ;;  %v7487_v47 = vpop.xlane.xlu1 %7486 }
0x28b1   : > { %7258 = vadd.xlane.f32.xlu0 %v7257_v36  ;;  %v7488_v48 = vsub.f32 %v7484_v7, %v7487_v47 }
0x28b3   : > { %v7489_v49 = vmul.f32 1.442695, %v7488_v48 }
0x28b5   : > { %10736 = vpow2.f32 %v7489_v49 }
0x28b7   : > { %v12227_v46 = vpop.eup %10734 }
0x28b8   : > { %v7374_v40 = vsel %vm786_vm3, %v12227_v46, 0.0  ;;  %v7604_v51 = vpop.xlane.xlu0 %7603 }
0x28b9   : > { %7375 = vadd.xlane.f32.xlu0 %v7374_v40  ;;  %v7605_v52 = vsub.f32 %v7601_v18, %v7604_v51 }
0x28bb   : > { %v7606_v16 = vmul.f32 1.442695, %v7605_v52 }
0x28bd   : > { %10738 = vpow2.f32 %v7606_v16 }
0x28be   : > { %6912 = vrot.lane.b32.xlu1 %v12136_v58, %s11058_s30 }
0x28bf   : > { %v12237_v54 = vpop.eup %10736 }
0x28c0   : > { %v7491_v56 = vsel %vm786_vm3, %v12237_v54, 0.0 }
0x28c7   : > { %v12241_v57 = vpop.eup %10738 }
0x28c8   : > { %v7608_v61 = vsel %vm786_vm3, %v12241_v57, 0.0 }
0x28cf   : > { %7029 = vrot.lane.b32.xlu0 %v12136_v58, %s11059_s12 }
0x28d3   : > { %7146 = vrot.lane.b32.xlu0 %v12136_v58, %s11060_s14 }
0x28e2   : > { %7492 = vadd.xlane.f32.xlu1 %v7491_v56 }
0x28f2   : > { %7609 = vadd.xlane.f32.xlu0 %v7608_v61  ;;  %v10526_v61 = vld [vmem:[#allocation8 + $0xc0] sm:$0xff]  }
0x28f3   : > { %7263 = vrot.lane.b32.xlu1 %v12136_v58, %s11061_s21  ;;  %9985 = vmatpush3.bf16.msra.mxu0 %v10526_v61  ;;  %v10557_v61 = vld [vmem:[#allocation10 + $0x36c] ss:$16 sps:$4 sm:$0xff]  }
0x28f4   : > { %9986 = vmatprep.subr.bf16.mxu0 %v11056_v1 }
0x28f7   : > { %7497 = vrot.lane.b32.xlu1 %v12136_v58, %s11063_s27 }
0x28fb   : > { %7614 = vrot.lane.b32.xlu1 %v12136_v58, %s11064_s23 }
0x2908   : > { %7380 = vrot.lane.b32.xlu0 %v12136_v58, %s11062_s24 }
0x292e   : > { %v7025_v2 = vpop.xlane.xlu0 %7024 }
0x2936   : > { %v7142_v62 = vpop.xlane.xlu1 %7141 }
0x293a   : > { %v6907_v63 = vpop.xlane.xlu1 %6906 }
0x293b   : > { %10740 = vrcp.f32 %v6907_v63 }
0x293c   : > { %10742 = vrcp.f32 %v7025_v2 }
0x293d   : > { %10744 = vrcp.f32 %v7142_v62  ;;  %v10527_v62 = vld [vmem:[#allocation8 + $0xc8] sm:$0xff]  }
0x293e   : > { %v6913_v3 = vpop.permute.xlu1 %6912  ;;  %v7259_v4 = vpop.xlane.xlu0 %7258  ;;  %9987 = vmatpush3.bf16.msra.mxu0 %v10527_v62  ;;  %v10552_v62 = vld [vmem:[#allocation10 + $0x360] ss:$16 sps:$4 sm:$0xff]  }
0x293f   : > { %v6918_v53 = vsel %vm802_vm2, %v6913_v3, 0  ;;  %10746 = vrcp.f32 %v7259_v4  ;;  %9988 = vmatprep.subr.bf16.mxu0 %v11056_v1  ;;  %v10528_v4 = vld [vmem:[#allocation8 + $0xd0] sm:$0xff]  }
0x2940   : > { %9907 = vmatpush3.bf16.msra.mxu1 %v6918_v53 }
0x2941   : > { %9918 = vmatprep.subr.bf16.mxu1 %v11056_v1 }
0x2942   : > { %9989 = vmatpush3.bf16.msra.mxu0 %v10528_v4  ;;  %v10561_v4 = vld [vmem:[#allocation10 + $0x388] ss:$16 sps:$4 sm:$0xff]  }
0x2943   : > { %9990 = vmatprep.subr.bf16.mxu0 %v11056_v1 }
0x2945   : > { %v10741_v37 = vpop.eup %10740 }
0x2946   : > { %v6909_v5 = vmul.f32 %v10741_v37, %v10731_v29  ;;  %v7376_v6 = vpop.xlane.xlu0 %7375  ;;  %v10743_v8 = vpop.eup %10742  ;;  %v10529_v37 = vld [vmem:[#allocation8 + $0xd8] sm:$0xff]  }
0x2947   : > { %v7027_v11 = vmul.f32 %v10743_v8, %v12214_v31  ;;  %v10745_v17 = vpop.eup %10744  ;;  %10748 = vrcp.f32 %v7376_v6  ;;  %9991 = vmatpush3.bf16.msra.mxu0 %v10529_v37  ;;  %v10531_v6 = vld [vmem:[#allocation8 + $0xe8] sm:$0xff]   ;;  %v10566_v37 = vld [vmem:[#allocation10 + $0x3a4] ss:$16 sps:$4 sm:$0xff]  }
0x2948   : > { %v6910_v7 = vpack.c.bf16 %v6909_v5, %v6909_v5  ;;  %v7144_v50 = vmul.f32 %v10745_v17, %v12218_v26  ;;  %9992 = vmatprep.subr.bf16.mxu0 %v11056_v1  ;;  %v10530_v5 = vld [vmem:[#allocation8 + $0xe0] sm:$0xff]  }
0x2949   : > { %v7028_v14 = vpack.c.bf16 %v7027_v11, %v7027_v11  ;;  %v10747_v20 = vpop.eup %10746  ;;  %v10532_v11 = vld [vmem:[#allocation8 + $0xf0] sm:$0xff]  }
0x294a   : > { %v7030_v10 = vpop.permute.xlu0 %7029  ;;  %9909 = vmatmul.mubr.msk.bf16.vlgmr.msra.gmra.mrb[172].mxu1 %vm786_vm3, %v6910_v7  ;;  %v7145_v19 = vpack.c.bf16 %v7144_v50, %v7144_v50  ;;  %v7261_v21 = vmul.f32 %v10747_v20, %v12223_v39 }
0x294b   : > { %v7035_v58 = vsel %vm802_vm2, %v7030_v10, 0  ;;  %9920 = vmatprep.mubr.msk.bf16.mxu1 %vm11057_vm0, %v11056_v1  ;;  %9993 = vmatpush3.bf16.msra.mxu0 %v10530_v5  ;;  %v10569_v5 = vld [vmem:[#allocation10 + $0x3ac] ss:$16 sps:$4 sm:$0xff]  }
0x294c   : > { %9919 = vmatpush3.bf16.msra.mxu1 %v7035_v58  ;;  %v7262_v23 = vpack.c.bf16 %v7261_v21, %v7261_v21  ;;  %9994 = vmatprep.subr.bf16.mxu0 %v11056_v1 }
0x294d   : > { %9930 = vmatprep.subr.bf16.mxu1 %v11056_v1 }
0x294e   : > { %v7147_v13 = vpop.permute.xlu0 %7146 }
0x294f   : > { %v7152_v18 = vsel %vm802_vm2, %v7147_v13, 0  ;;  %9995 = vmatpush3.bf16.msra.mxu0 %v10531_v6  ;;  %v10533_v13 = vld [vmem:[#allocation8 + $0xf8] sm:$0xff]   ;;  %v10564_v6 = vld [vmem:[#allocation10 + $0x3a0] ss:$16 sps:$4 sm:$0xff]  }
0x2950   : > { %9996 = vmatprep.subr.bf16.mxu0 %v11056_v1 }
0x2951   : > { %v10749_v24 = vpop.eup %10748 }
0x2952   : > { %9921 = vmatmul.mubr.msk.bf16.vlgmr.msra.gmra.mrb[176].mxu1 %vm786_vm3, %v7028_v14  ;;  %v7378_v28 = vmul.f32 %v10749_v24, %v12227_v46 }
0x2953   : > { %9931 = vmatpush3.bf16.msra.mxu1 %v7152_v18  ;;  %9932 = vmatprep.mubr.msk.bf16.mxu1 %vm11057_vm0, %v11056_v1 }
0x2954   : > { %9942 = vmatprep.subr.bf16.mxu1 %v11056_v1  ;;  %v7379_v59 = vpack.c.bf16 %v7378_v28, %v7378_v28  ;;  %9997 = vmatpush3.bf16.msra.mxu0 %v10532_v11  ;;  %v10573_v11 = vld [vmem:[#allocation10 + $0x3c8] ss:$16 sps:$4 sm:$0xff]  }
0x2955   : > { %9998 = vmatprep.subr.bf16.mxu0 %v11056_v1 }
0x2958   : > { %9999 = vmatpush3.bf16.msra.mxu0 %v10533_v13  ;;  %v10578_v13 = vld [vmem:[#allocation10 + $0x3e4] ss:$16 sps:$4 sm:$0xff]  }
0x295a   : > { %9933 = vmatmul.mubr.msk.bf16.vlgmr.msra.gmra.mrb[180].mxu1 %vm786_vm3, %v7145_v19 }
0x295b   : > { %9944 = vmatprep.mubr.msk.bf16.mxu1 %vm11057_vm0, %v11056_v1 }
0x296f   : > { %v7493_v9 = vpop.xlane.xlu1 %7492 }
0x2970   : > { %10750 = vrcp.f32 %v7493_v9 }
0x2973   : > { %v7264_v60 = vpop.permute.xlu1 %7263 }
0x2974   : > { %v7269_v22 = vsel %vm802_vm2, %v7264_v60, 0 }
0x2975   : > { %9943 = vmatpush3.bf16.msra.mxu1 %v7269_v22 }
0x2976   : > { %9954 = vmatprep.subr.bf16.mxu1 %v11056_v1 }
0x2977   : > { %v7498_v55 = vpop.permute.xlu1 %7497 }
0x2978   : > { %9945 = vmatmul.mubr.msk.bf16.vlgmr.msra.gmra.mrb[184].mxu1 %vm786_vm3, %v7262_v23  ;;  %v7503_v26 = vsel %vm802_vm2, %v7498_v55, 0  ;;  %v12314_v55 = vld [vmem:[#allocation14 + $0x18] sm:$0xff] }
0x2979   : > { %9956 = vmatprep.mubr.msk.bf16.mxu1 %vm11057_vm0, %v11056_v1 }
0x297a   : > { %v10751_v34 = vpop.eup %10750 }
0x297b   : > { %v7495_v35 = vmul.f32 %v10751_v34, %v12237_v54  ;;  %v7615_v38 = vpop.permute.xlu1 %7614 }
0x297c   : > { %v7620_v43 = vsel %vm802_vm2, %v7615_v38, 0 }
0x297d   : > { %v7496_v29 = vpack.c.bf16 %v7495_v35, %v7495_v35 }
0x297f   : > { %v7610_v25 = vpop.xlane.xlu0 %7609 }
0x2980   : > { %10752 = vrcp.f32 %v7610_v25 }
0x2983   : > { %v7381_v31 = vpop.permute.xlu0 %7380 }
0x2984   : > { %v7386_v33 = vsel %vm802_vm2, %v7381_v31, 0 }
0x2985   : > { %9955 = vmatpush3.bf16.msra.mxu1 %v7386_v33 }
0x2986   : > { %9966 = vmatprep.subr.bf16.mxu1 %v11056_v1 }
0x2988   : > { %9957 = vmatmul.mubr.msk.bf16.vlgmr.msra.gmra.mrb[188].mxu1 %vm786_vm3, %v7379_v59  ;;  %v7689_v59 = vrot.slane %v12314_v55, %v11429_v32 }
0x2989   : > { %9967 = vmatpush3.bf16.msra.mxu1 %v7503_v26  ;;  %9968 = vmatprep.mubr.msk.bf16.mxu1 %vm11057_vm0, %v11056_v1 }
0x298a   : > { %9978 = vmatprep.subr.bf16.mxu1 %v11056_v1  ;;  %v10753_v41 = vpop.eup %10752 }
0x298b   : > { %v7612_v45 = vmul.f32 %v10753_v41, %v12241_v57 }
0x298d   : > { %v7613_v39 = vpack.c.bf16 %v7612_v45, %v7612_v45  ;;  %v10536_v45 = vld [vmem:[#allocation10 + $0x304] ss:$16 sps:$4 sm:$0xff]  }
0x2990   : > { %9969 = vmatmul.mubr.msk.bf16.vlgmr.msra.gmra.mrb[192].mxu1 %vm786_vm3, %v7496_v29 }
0x2991   : > { %9979 = vmatpush3.bf16.msra.mxu1 %v7620_v43  ;;  %9980 = vmatprep.mubr.msk.bf16.mxu1 %vm11057_vm0, %v11056_v1  ;;  %v10534_v43 = vld [vmem:[#allocation10 + $0x300] ss:$16 sps:$4 sm:$0xff]  }
0x2992   : > { %8017 = vmatprep.subr.bf16.mxu1 %v10536_v45  ;;  %v10594_v45 = vld [vmem:[#allocation13 + $0x358] sm:$0xff]  }
0x2998   : > { %9981 = vmatmul.mubr.msk.bf16.vlgmr.msra.gmra.mrb[196].mxu1 %vm786_vm3, %v7613_v39  ;;  %v10537_v39 = vld [vmem:[#allocation10 + $0x308] ss:$16 sps:$4 sm:$0xff]  }
0x2999   : > { %8049 = vmatprep.mubr.bf16.mxu1 %v11055_v0  ;;  %8018 = vmatpush1.bf16.msra.mxu1 %v10534_v43  ;;  %v10593_v43 = vld [vmem:[#allocation13 + $0x390] sm:$0xff]  }
0x2a1d   : > { %v6954_v36 = vpop.f32.mrb[172].mxu1 }
0x2a1e   : > { %6961 = vrot.lane.b32.xlu1 %v6954_v36, %s11064_s23  ;;  %v9910_v46 = vpop.f32.mrb[173].mxu1  ;;  %v10539_v36 = vld [vmem:[#allocation10 + $0x30c] ss:$16 sps:$4 sm:$0xff]  }
0x2a1f   : > { %v6957_v40 = vpop.f32.mrb[174].mxu1  ;;  %v10542_v46 = vld [vmem:[#allocation10 + $0x324] ss:$16 sps:$4 sm:$0xff]   ;;  %8058 = vmatprep.subr.bf16.mxu0 %v10539_v36  ;;  %v10596_v36 = vld [vmem:[#allocation13 + $0x318] sm:$0xff]  }
0x2a20   : > { %v9911_v47 = vpop.f32.mrb[175].mxu1  ;;  %v10540_v40 = vld [vmem:[#allocation10 + $0x320] ss:$16 sps:$4 sm:$0xff]   ;;  %8019 = vmatprep.subr.bf16.mxu1 %v10542_v46  ;;  %v10597_v46 = vld [vmem:[#allocation13 + $0x398] sm:$0xff]  }
0x2a21   : > { %v10543_v47 = vld [vmem:[#allocation10 + $0x328] ss:$16 sps:$4 sm:$0xff]   ;;  %8020 = vmatpush1.bf16.msra.mxu1 %v10540_v40  ;;  %v10599_v40 = vld [vmem:[#allocation13 + $0x3e0] sm:$0xff]  }
0x2a25   : > { %v7071_v48 = vpop.f32.mrb[176].mxu1 }
0x2a26   : > { %7078 = vrot.lane.b32.xlu1 %v7071_v48, %s11063_s27  ;;  %v9922_v49 = vpop.f32.mrb[177].mxu1  ;;  %v10548_v48 = vld [vmem:[#allocation10 + $0x344] ss:$16 sps:$4 sm:$0xff]  }
0x2a27   : > { %v7074_v51 = vpop.f32.mrb[178].mxu1  ;;  %v10551_v49 = vld [vmem:[#allocation10 + $0x34c] ss:$16 sps:$4 sm:$0xff]   ;;  %8021 = vmatprep.subr.bf16.mxu1 %v10548_v48  ;;  %v10601_v48 = vld [vmem:[#allocation13 + $0x3a0] sm:$0xff]  }
0x2a28   : > { %v9923_v52 = vpop.f32.mrb[179].mxu1  ;;  %v10549_v51 = vld [vmem:[#allocation10 + $0x348] ss:$16 sps:$4 sm:$0xff]  }
0x2a2d   : > { %v7188_v54 = vpop.f32.mrb[180].mxu1 }
0x2a2e   : > { %7195 = vrot.lane.b32.xlu0 %v7188_v54, %s11062_s24  ;;  %v9934_v16 = vpop.f32.mrb[181].mxu1 }
0x2a2f   : > { %v7191_v56 = vpop.f32.mrb[182].mxu1 }
0x2a30   : > { %v9935_v57 = vpop.f32.mrb[183].mxu1 }
0x2a31   : > { %v10554_v57 = vld [vmem:[#allocation10 + $0x364] ss:$16 sps:$4 sm:$0xff]  }
0x2a4b   : > { %v7305_v63 = vpop.f32.mrb[184].mxu1 }
0x2a4c   : > { %7312 = vrot.lane.b32.xlu1 %v7305_v63, %s11061_s21  ;;  %v9946_v2 = vpop.f32.mrb[185].mxu1  ;;  %v10555_v63 = vld [vmem:[#allocation10 + $0x368] ss:$16 sps:$4 sm:$0xff]  }
0x2a4d   : > { %v7308_v3 = vpop.f32.mrb[186].mxu1  ;;  %v10560_v2 = vld [vmem:[#allocation10 + $0x384] ss:$16 sps:$4 sm:$0xff]  }
0x2a4e   : > { %v9947_v53 = vpop.f32.mrb[187].mxu1  ;;  %v10563_v3 = vld [vmem:[#allocation10 + $0x38c] ss:$16 sps:$4 sm:$0xff]  }
0x2a4f   : > { %v10558_v53 = vld [vmem:[#allocation10 + $0x380] ss:$16 sps:$4 sm:$0xff]  }
0x2a5b   : > { %v7422_v7 = vpop.f32.mrb[188].mxu1 }
0x2a5c   : > { %7429 = vrot.lane.b32.xlu0 %v7422_v7, %s11060_s14  ;;  %v9958_v8 = vpop.f32.mrb[189].mxu1  ;;  %v10567_v7 = vld [vmem:[#allocation10 + $0x3a8] ss:$16 sps:$4 sm:$0xff]  }
0x2a5d   : > { %v7425_v10 = vpop.f32.mrb[190].mxu1  ;;  %v10572_v8 = vld [vmem:[#allocation10 + $0x3c4] ss:$16 sps:$4 sm:$0xff]  }
0x2a5e   : > { %v9959_v58 = vpop.f32.mrb[191].mxu1  ;;  %v10575_v10 = vld [vmem:[#allocation10 + $0x3cc] ss:$16 sps:$4 sm:$0xff]  }
0x2a5f   : > { %v10570_v58 = vld [vmem:[#allocation10 + $0x3c0] ss:$16 sps:$4 sm:$0xff]  }
0x2a63   : > { %v7539_v14 = vpop.f32.mrb[192].mxu1 }
0x2a64   : > { %7546 = vrot.lane.b32.xlu1 %v7539_v14, %s11059_s12  ;;  %v9970_v17 = vpop.f32.mrb[193].mxu1  ;;  %v10581_v14 = vld [vmem:[#allocation10 + $0x3ec] ss:$16 sps:$4 sm:$0xff]  }
0x2a65   : > { %v7542_v18 = vpop.f32.mrb[194].mxu1  ;;  %v10576_v17 = vld [vmem:[#allocation10 + $0x3e0] ss:$16 sps:$4 sm:$0xff]  }
0x2a66   : > { %v9971_v50 = vpop.f32.mrb[195].mxu1  ;;  %v10579_v18 = vld [vmem:[#allocation10 + $0x3e8] ss:$16 sps:$4 sm:$0xff]  }
0x2a67   : > { %v10582_v50 = vld [vmem:[#allocation13 + $0x340] sm:$0xff]  }
0x2a6b   : > { %v7656_v19 = vpop.f32.mrb[196].mxu1 }
0x2a6c   : > { %7663 = vrot.lane.b32.xlu0 %v7656_v19, %s11058_s30  ;;  %v9982_v20 = vpop.f32.mrb[197].mxu1  ;;  %v10583_v19 = vld [vmem:[#allocation13 + $0x3c0] sm:$0xff]  }
0x2a6d   : > { %v7659_v9 = vpop.f32.mrb[198].mxu1 }
0x2a6e   : > { %v9983_v21 = vpop.f32.mrb[199].mxu1 }
0x2a90   : > { %v6962_v60 = vpop.permute.xlu1 %6961 }
0x2a91   : > { %6964 = vst.msk [vmem:[#allocation2] sm:$0xff] %vm966_vm4, %v6962_v60  ;;  %v7793_v60 = vrot.slane %v12314_v55, %v11426_v30 }
0x2a98   : > { %v7079_v22 = vpop.permute.xlu1 %7078 }
0x2a99   : > { %7081 = vst.msk [vmem:[#allocation2] sm:$0xff] %vm1084_vm5, %v7079_v22 }
0x2aa0   : > { %v7196_v1 = vpop.permute.xlu0 %7195 }
0x2aa1   : > { %7198 = vst.msk [vmem:[#allocation2] sm:$0xff] %vm1202_vm6, %v7196_v1 }
0x2abe   : > { %v7313_v23 = vpop.permute.xlu1 %7312 }
0x2abf   : > { %7315 = vst.msk [vmem:[#allocation2] sm:$0xff] %vm1320_vm7, %v7313_v23  ;;  %v7798_v23 = vrot.slane %v12314_v55, %v11449_v44 }
0x2ace   : > { %v7430_v24 = vpop.permute.xlu0 %7429 }
0x2acf   : > { %7432 = vst.msk [vmem:[#allocation2] sm:$0xff] %vm1438_vm8, %v7430_v24 }
0x2ad6   : > { %v7547_v25 = vpop.permute.xlu1 %7546 }
0x2ad7   : > { %7549 = vst.msk [vmem:[#allocation2] sm:$0xff] %vm1556_vm9, %v7547_v25 }
0x2ade   : > { %v7664_v28 = vpop.permute.xlu0 %7663 }
0x2adf   : > { %7666 = vst.msk [vmem:[#allocation2] sm:$0xff] %vm1674_vm10, %v7664_v28  ;;  %v10584_v28 = vld [vmem:[#allocation13 + $0x300] sm:$0xff]  }
0x2ae6   : > { %v7667_v31 = vld [vmem:[#allocation2] sm:$0xff] }
0x2ae7   : > { %v7668_v33 = vpack.c.bf16 %v7667_v31, %v7667_v31  ;;  %v10585_v31 = vld [vmem:[#allocation13 + $0x380] sm:$0xff]  }
0x2ae9   : > { %10001 = vmatmul.mubr.bf16.vlgmr.msra.gmra.mrb[148].mxu0 %v7668_v33 }
0x2aea   : > { %8090 = vmatprep.mubr.bf16.mxu0 %v11055_v0  ;;  %v10545_v0 = vld [vmem:[#allocation10 + $0x32c] ss:$16 sps:$4 sm:$0xff]   ;;  %8059 = vmatpush1.bf16.msra.mxu0 %v10537_v39 }
0x2aeb   : > { %8060 = vmatprep.subr.bf16.mxu0 %v10545_v0  ;;  %v10595_v39 = vld [vmem:[#allocation13 + $0x3d8] sm:$0xff]   ;;  %v10598_v0 = vld [vmem:[#allocation13 + $0x360] sm:$0xff]  }
0x2aee   : > { %8061 = vmatpush1.bf16.msra.mxu0 %v10543_v47  ;;  %v10600_v47 = vld [vmem:[#allocation13 + $0x320] sm:$0xff]  }
0x2aef   : > { %8062 = vmatprep.subr.bf16.mxu0 %v10551_v49  ;;  %v10602_v49 = vld [vmem:[#allocation13 + $0x368] sm:$0xff]  }
0x2af2   : > { %8063 = vmatpush1.bf16.msra.mxu0 %v10549_v51  ;;  %v10604_v51 = vld [vmem:[#allocation13 + $0x328] sm:$0xff]  }
0x2af3   : > { %8064 = vmatprep.subr.bf16.mxu0 %v10557_v61  ;;  %v10610_v61 = vld [vmem:[#allocation13 + $0x378] sm:$0xff]  }
0x2af6   : > { %8065 = vmatpush1.bf16.msra.mxu0 %v10555_v63  ;;  %v10612_v63 = vld [vmem:[#allocation13 + $0x338] sm:$0xff]  }
0x2af7   : > { %8066 = vmatprep.subr.bf16.mxu0 %v10563_v3  ;;  %v7835_v3 = vld [vmem:[#allocation11 + $0xc] sm:$0xf] }
0x2afa   : > { %8067 = vmatpush1.bf16.msra.mxu0 %v10561_v4  ;;  %v7848_v4 = vrot.slane %v7835_v3, %v11449_v44 }
0x2afb   : > { %8068 = vmatprep.subr.bf16.mxu0 %v10569_v5  ;;  %v7852_v5 = vrot.slane %v7835_v3, %v11636_v12 }
0x2afe   : > { %8069 = vmatpush1.bf16.msra.mxu0 %v10567_v7 }
0x2aff   : > { %8070 = vmatprep.subr.bf16.mxu0 %v10575_v10 }
0x2b02   : > { %8071 = vmatpush1.bf16.msra.mxu0 %v10573_v11 }
0x2b03   : > { %8072 = vmatprep.subr.bf16.mxu0 %v10581_v14 }
0x2b06   : > { %8073 = vmatpush1.bf16.msra.mxu0 %v10579_v18 }
0x2b07   : > { %9438 = vmatprep.subr.bf16.mxu0 %v10583_v19 }
0x2bbc   : > { %v7772_v34 = vpop.f32.mrb[148].mxu0 }
0x2bbd   : > { %v7773_v26 = vadd.f32 %v7772_v34, %v7689_v59  ;;  %v10002_v35 = vpop.f32.mrb[149].mxu0  ;;  %v10586_v59 = vld [vmem:[#allocation13 + $0x348] sm:$0xff]  }
0x2bbe   : > { %v7775_v38 = vpop.f32.mrb[150].mxu0  ;;  %v10587_v34 = vld [vmem:[#allocation13 + $0x3c8] sm:$0xff]  }
0x2bbf   : > { %v7778_v29 = vadd.f32 %v7773_v26, %v12123_v15  ;;  %v10003_v41 = vpop.f32.mrb[151].mxu0  ;;  %v10546_v15 = vld [vmem:[#allocation10 + $0x340] ss:$16 sps:$4 sm:$0xff]   ;;  %v10588_v26 = vld [vmem:[#allocation13 + $0x308] sm:$0xff]  }
0x2bc0   : > { %8022 = vmatpush1.bf16.msra.mxu1 %v10546_v15  ;;  %v10589_v35 = vld [vmem:[#allocation13 + $0x388] sm:$0xff]   ;;  %v10590_v38 = vld [vmem:[#allocation13 + $0x350] sm:$0xff]  }
0x2bc1   : > { %7779 = vadd.xlane.f32.xlu1 %v7778_v29  ;;  %8023 = vmatprep.subr.bf16.mxu1 %v10554_v57  ;;  %v10592_v41 = vld [vmem:[#allocation13 + $0x310] sm:$0xff]   ;;  %v10603_v15 = vld [vmem:[#allocation13 + $0x3e8] sm:$0xff]  }
0x2bc2   : > { %v10609_v57 = vld [vmem:[#allocation13 + $0x3b0] sm:$0xff]  }
0x2bc4   : > { %8024 = vmatpush1.bf16.msra.mxu1 %v10552_v62  ;;  %v10611_v62 = vld [vmem:[#allocation13 + $0x3f8] sm:$0xff]  }
0x2bc5   : > { %8025 = vmatprep.subr.bf16.mxu1 %v10560_v2  ;;  %v10613_v2 = vld [vmem:[#allocation13 + $0x3b8] sm:$0xff]  }
0x2bc8   : > { %8026 = vmatpush1.bf16.msra.mxu1 %v10558_v53  ;;  %v7840_v53 = vrot.slane %v7835_v3, %v11429_v32 }
0x2bc9   : > { %8027 = vmatprep.subr.bf16.mxu1 %v10566_v37  ;;  %v7844_v37 = vrot.slane %v7835_v3, %v11426_v30 }
0x2bcc   : > { %8028 = vmatpush1.bf16.msra.mxu1 %v10564_v6 }
0x2bcd   : > { %8029 = vmatprep.subr.bf16.mxu1 %v10572_v8 }
0x2bd0   : > { %8030 = vmatpush1.bf16.msra.mxu1 %v10570_v58 }
0x2bd1   : > { %8031 = vmatprep.subr.bf16.mxu1 %v10578_v13 }
0x2bd4   : > { %8032 = vmatpush1.bf16.msra.mxu1 %v10576_v17 }
0x2bd5   : > { %9416 = vmatprep.subr.bf16.mxu1 %v10582_v50 }
0x2c4e   : > { %v7780_v52 = vpop.xlane.xlu1 %7779 }
0x2c4f   : > { %v7781_v54 = vmul.f32 0.0078125, %v7780_v52  ;;  %v10605_v52 = vld [vmem:[#allocation13 + $0x3a8] sm:$0xff]  }
0x2c51   : > { %v7782_v16 = vsub.f32 %v7778_v29, %v7781_v54  ;;  %v10591_v29 = vld [vmem:[#allocation13 + $0x3d0] sm:$0xff]  }
0x2c52   : > { %v10606_v54 = vld [vmem:[#allocation13 + $0x370] sm:$0xff]  }
0x2c53   : > { %v7783_v56 = vmul.f32 %v7782_v16, %v7782_v16 }
0x2c55   : > { %7784 = vadd.xlane.f32.xlu0 %v7783_v56  ;;  %v10608_v56 = vld [vmem:[#allocation13 + $0x330] sm:$0xff]  }
0x2ce2   : > { %v7785_v20 = vpop.xlane.xlu0 %7784 }
0x2ce3   : > { %v7786_v9 = vmul.f32 0.0078125, %v7785_v20 }
0x2ce5   : > { %v7787_v21 = vadd.f32 1e-06, %v7786_v9 }
0x2ce7   : > { %10754 = vrsqrt.f32 %v7787_v21 }
0x2cf1   : > { %v10755_v22 = vpop.eup %10754 }
0x2cf2   : > { %v7789_v1 = vmul.f32 %v10755_v22, %v7782_v16  ;;  %v10607_v16 = vld [vmem:[#allocation13 + $0x3f0] sm:$0xff]  }
0x2cf4   : > { %v7794_v24 = vmul.f32 %v7793_v60, %v7789_v1 }
0x2cf6   : > { %v12323_v25 = vadd.f32 %v7798_v23, %v7794_v24  ;;  %v8175_v24 = vrot.slane %v12314_v55, %v11646_v42 }
0x2cf8   : > { %v7800_v33 = vpack.c.bf16 %v12323_v25, %v12323_v25 }
0x2cfa   : > { %8050 = vmatmul.mubr.bf16.vlgmr.msra.gmra.mrb[200].mxu1 %v7800_v33  ;;  %8091 = vmatmul.mubr.bf16.vlgmr.msra.gmra.mrb[152].mxu0 %v7800_v33 }
0x2cfb   : > { %9417 = vmatpush3.bf16.msra.mxu1 %v10584_v28  ;;  %9439 = vmatpush3.bf16.msra.mxu0 %v10585_v31 }
0x2cfc   : > { %9418 = vmatprep.subr.bf16.mxu1 %v10586_v59  ;;  %9440 = vmatprep.subr.bf16.mxu0 %v10587_v34 }
0x2cff   : > { %9419 = vmatpush3.bf16.msra.mxu1 %v10588_v26  ;;  %9441 = vmatpush3.bf16.msra.mxu0 %v10589_v35 }
0x2d00   : > { %9420 = vmatprep.subr.bf16.mxu1 %v10590_v38  ;;  %9442 = vmatprep.subr.bf16.mxu0 %v10591_v29 }
0x2d03   : > { %9421 = vmatpush3.bf16.msra.mxu1 %v10592_v41  ;;  %9443 = vmatpush3.bf16.msra.mxu0 %v10593_v43 }
0x2d04   : > { %9422 = vmatprep.subr.bf16.mxu1 %v10594_v45  ;;  %9444 = vmatprep.subr.bf16.mxu0 %v10595_v39 }
0x2d07   : > { %9423 = vmatpush3.bf16.msra.mxu1 %v10596_v36  ;;  %9445 = vmatpush3.bf16.msra.mxu0 %v10597_v46 }
0x2d08   : > { %9424 = vmatprep.subr.bf16.mxu1 %v10598_v0  ;;  %9446 = vmatprep.subr.bf16.mxu0 %v10599_v40 }
0x2d0b   : > { %9425 = vmatpush3.bf16.msra.mxu1 %v10600_v47  ;;  %9447 = vmatpush3.bf16.msra.mxu0 %v10601_v48  ;;  %v8463_v47 = vrot.slane %v12314_v55, %v11636_v12 }
0x2d0c   : > { %9426 = vmatprep.subr.bf16.mxu1 %v10602_v49  ;;  %9448 = vmatprep.subr.bf16.mxu0 %v10603_v15  ;;  %v8468_v49 = vrot.slane %v12314_v55, %v11661_v27 }
0x2d0f   : > { %9427 = vmatpush3.bf16.msra.mxu1 %v10604_v51  ;;  %9449 = vmatpush3.bf16.msra.mxu0 %v10605_v52 }
0x2d10   : > { %9428 = vmatprep.subr.bf16.mxu1 %v10606_v54  ;;  %9450 = vmatprep.subr.bf16.mxu0 %v10607_v16 }
0x2d13   : > { %9429 = vmatpush3.bf16.msra.mxu1 %v10608_v56  ;;  %9451 = vmatpush3.bf16.msra.mxu0 %v10609_v57 }
0x2d14   : > { %9430 = vmatprep.subr.bf16.mxu1 %v10610_v61  ;;  %9452 = vmatprep.subr.bf16.mxu0 %v10611_v62 }
0x2d17   : > { %9431 = vmatpush3.bf16.msra.mxu1 %v10612_v63  ;;  %9453 = vmatpush3.bf16.msra.mxu0 %v10613_v2 }
0x2dcd   : > { %v8051_v6 = vpop.f32.mrb[200].mxu1  ;;  %v8092_v7 = vpop.f32.mrb[152].mxu0 }
0x2dce   : > { %v8052_v8 = vadd.f32 %v8051_v6, %v7840_v53  ;;  %v8093_v10 = vadd.f32 %v8092_v7, %v7848_v4  ;;  %v8053_v58 = vpop.f32.mrb[201].mxu1  ;;  %v8094_v11 = vpop.f32.mrb[153].mxu0 }
0x2dcf   : > { %v8054_v13 = vadd.f32 %v8053_v58, %v7844_v37  ;;  %v8095_v14 = vadd.f32 %v8094_v11, %v7852_v5  ;;  %v8055_v17 = vpop.f32.mrb[202].mxu1  ;;  %v8096_v18 = vpop.f32.mrb[154].mxu0 }
0x2dd0   : > { %v8099_v50 = vmax.f32 %v8052_v8, 0.0  ;;  %v8101_v19 = vmax.f32 %v8093_v10, 0.0  ;;  %v8056_v20 = vpop.f32.mrb[203].mxu1  ;;  %v8097_v32 = vpop.f32.mrb[155].mxu0 }
0x2dd1   : > { %v8100_v9 = vmax.f32 %v8054_v13, 0.0  ;;  %v8102_v44 = vmax.f32 %v8095_v14, 0.0 }
0x2dd2   : > { %v8103_v60 = vpack.c.bf16 %v8099_v50, %v8099_v50  ;;  %v8105_v22 = vpack.c.bf16 %v8101_v19, %v8101_v19 }
0x2dd3   : > { %v8104_v21 = vpack.c.bf16 %v8100_v9, %v8100_v9  ;;  %v8106_v30 = vpack.c.bf16 %v8102_v44, %v8102_v44 }
0x2dd5   : > { %8400 = vmatprep.mubr.bf16.mxu1 %v8104_v21  ;;  %8440 = vmatprep.mubr.bf16.mxu0 %v8106_v30 }
0x2dd6   : > { %8401 = vmatmul.mubr.bf16.vlgmr.msra.gmra.mrb[204].mxu1 %v8103_v60  ;;  %8441 = vmatmul.mubr.bf16.vlgmr.msra.gmra.mrb[156].mxu0 %v8105_v22 }
0x2ea9   : > { %v9432_v1 = vpop.f32.mrb[204].mxu1  ;;  %v9454_v23 = vpop.f32.mrb[156].mxu0 }
0x2eaa   : > { %v9433_v28 = vpop.f32.mrb[205].mxu1  ;;  %v9455_v31 = vpop.f32.mrb[157].mxu0 }
0x2eab   : > { %v9434_v33 = vadd.f32 %v9433_v28, %v9432_v1  ;;  %v9456_v59 = vadd.f32 %v9455_v31, %v9454_v23  ;;  %v9435_v34 = vpop.f32.mrb[206].mxu1  ;;  %v9457_v26 = vpop.f32.mrb[158].mxu0 }
0x2eac   : > { %v9436_v35 = vpop.f32.mrb[207].mxu1  ;;  %v9458_v38 = vpop.f32.mrb[159].mxu0 }
0x2ead   : > { %v8403_v29 = vadd.f32 %v9434_v33, %v8175_v24 }
0x2eaf   : > { %v8443_v41 = vadd.f32 %v9456_v59, %v8403_v29 }
0x2eb1   : > { %v8448_v43 = vadd.f32 %v8443_v41, %v12323_v25 }
0x2eb3   : > { %8449 = vadd.xlane.f32.xlu0 %v8448_v43 }
0x2f40   : > { %v8450_v45 = vpop.xlane.xlu0 %8449 }
0x2f41   : > { %v8451_v39 = vmul.f32 0.0078125, %v8450_v45 }
0x2f43   : > { %v8452_v36 = vsub.f32 %v8448_v43, %v8451_v39 }
0x2f45   : > { %v8453_v46 = vmul.f32 %v8452_v36, %v8452_v36 }
0x2f47   : > { %8454 = vadd.xlane.f32.xlu1 %v8453_v46 }
0x2fd4   : > { %v8455_v42 = vpop.xlane.xlu1 %8454 }
0x2fd5   : > { %v8456_v0 = vmul.f32 0.0078125, %v8455_v42 }
0x2fd7   : > { %v8457_v40 = vadd.f32 1e-06, %v8456_v0 }
0x2fd9   : > { %10756 = vrsqrt.f32 %v8457_v40 }
0x2fe3   : > { %v10757_v48 = vpop.eup %10756 }
0x2fe4   : > { %v8459_v15 = vmul.f32 %v10757_v48, %v8452_v36 }
0x2fe6   : > { %v8464_v25 = vmul.f32 %v8463_v47, %v8459_v15 }
0x2fe8   : > { %v8469_v51 = vadd.f32 %v8468_v49, %v8464_v25 }
0x2fea   : > { %v8470_v52 = vpack.c.bf16 %v8469_v51, %v8469_v51 }
0x2fec   : > { %8471 = vst [vmem:[%s463_s28] sm:$0xf] %v8470_v52 }
0x2fed PF: > { %p23_p8 = scmp.ge.s32.totalorder %s11312_s18, 4   ;;  %s12392_s30 = smov %s11027_s10 }
0x2fee   : > { %s12393_s10 = smov %s11031_s11  ;;  %s12394_s11 = smov %s11323_s3 }
0x2fef   : > { %s12395_s12 = smov %s11312_s18  ;;  %25 = sbr.rel (!%p23_p8) target bundleno = 11 (0xb), region = 148 }
0x2ff6   :  { %8491 = vsyncpa [#allocation4], 1 }
0x2ff7   :  { %8493 = vsyncpa [#allocation4 + $0x1], 1 }
0x2ff8   :  { %8494 = vsyncpa [#allocation6], 1 }
0x2ff9   :  { %8495 = vsyncpa [#allocation9], 1 }
0x2ffa   :  { %8496 = vsyncpa [#allocation12], 1 }
0x2ffb   :  { %8497 = vsyncpa [#allocation15], 1 }

</bundles_post_ra>
